<compile_context>
chip_gen: v7x
topology: tpu7x:2x2x1
jax: 0.10.0
libtpu: 0.0.40
codegen_flags: <defaults>
</compile_context>

<pallas_src>
import jax
import jax.numpy as jnp
from jax import lax
from jax.experimental import pallas as pl
from jax.experimental.pallas import tpu as pltpu

EPS = 1e-5


def _even_row_selector(n_out, n_in):
    # 0/1 matrix S with S[r, 2r] = 1: (S @ M) picks rows 0,2,4,... of M (exact).
    r = lax.broadcasted_iota(jnp.int32, (n_out, n_in), 0)
    c = lax.broadcasted_iota(jnp.int32, (n_out, n_in), 1)
    return (c == 2 * r).astype(jnp.float32)


def _cnn_fused_kernel(x_ref, w1_ref, b1_ref, w2_ref, b2_ref, wfc_ref, bfc_ref, o_ref):
    """Whole CNN forward for one image, entirely VMEM/vreg resident.

    x_ref  : (1, 24, 24)   input image (Cin = 1)
    w1_ref : (25, 10)      conv1 weights, rows ordered (kh, kw)
    b1_ref : (1, 10)       conv1 bias
    w2_ref : (250, 20)     conv2 weights with bn1 folded in, rows ordered (kw, kh, cin)
    b2_ref : (1, 20)       conv2 bias with bn1 folded in
    wfc_ref: (180, 10)     fc weights, rows ordered (wq, hq, c) to match in-kernel flatten
    bfc_ref: (1, 10)       fc bias
    o_ref  : (1, 1, 10)    logits for this image
    """
    dot = lambda a, b: jnp.dot(a, b, precision=lax.Precision.HIGHEST,
                               preferred_element_type=jnp.float32)

    x = x_ref[0]          # (24, 24)
    w1 = w1_ref[...]
    b1 = b1_ref[...]
    w2 = w2_ref[...]
    b2 = b2_ref[...]
    wfc = wfc_ref[...]
    bfc = bfc_ref[...]

    sel1 = _even_row_selector(10, 19)   # row compaction for layer-1 2x2 pool
    sel2 = _even_row_selector(3, 5)     # row compaction for layer-2 2x2 pool

    # ---- conv1 (5x5, 1->10) + 2x2 maxpool + ReLU (bn1 folded into conv2) ----
    def conv1_col(wo):
        # im2col for one output column wo: (20 ho, 25 taps), tap k = kh*5 + kw
        q = jnp.concatenate([x[kh:kh + 20, wo:wo + 5] for kh in range(5)], axis=1)
        return dot(q, w1)                                            # (20, 10), pre-bias

    z1_cols = []                                                     # z1_cols[wp]: (10 hp, 10 c)
    for wp in range(10):
        m = jnp.maximum(conv1_col(2 * wp), conv1_col(2 * wp + 1))    # max over the wo pair
        pm = jnp.maximum(m[0:19, :], m[1:20, :])                     # max over adjacent ho
        z1_cols.append(jnp.maximum(dot(sel1, pm) + b1, 0.0))         # compact rows, +bias, ReLU

    # ---- conv2 (5x5, 10->20, bn1-folded) + 2x2 maxpool + ReLU ----
    def conv2_col(wo2):
        # im2col for one output column wo2: (6 ho2, 250), K = (kw*5 + kh)*10 + c
        groups = []
        for kw in range(5):
            a = z1_cols[wo2 + kw]                                    # (10 hp, 10 c)
            groups.append(jnp.concatenate([a[kh:kh + 6, :] for kh in range(5)], axis=1))
        p2 = jnp.concatenate(groups, axis=1)                         # (6, 250)
        return dot(p2, w2)                                           # (6, 20), pre-bias

    z2_cols = []                                                     # z2_cols[wq]: (3 hq, 20 c)
    for wq in range(3):
        m = jnp.maximum(conv2_col(2 * wq), conv2_col(2 * wq + 1))
        pm = jnp.maximum(m[0:5, :], m[1:6, :])
        z2_cols.append(jnp.maximum(dot(sel2, pm) + b2, 0.0))

    # ---- flatten (order (wq, hq, c); fc weights pre-permuted to match) + fc ----
    flat = jnp.concatenate([z2_cols[wq][hq:hq + 1, :]
                            for wq in range(3) for hq in range(3)], axis=1)   # (1, 180)
    o_ref[0] = dot(flat, wfc) + bfc                                  # (1, 10)


# ---------------- one-time parameter preparation (outside the kernel) ----------------

def prepare_params(p):
    """Fold eval-mode bn1 into conv2 and pre-arrange weights into the matmul
    layouts the fused kernel consumes (all one-time work)."""
    scale = p["bn1_gamma"] * lax.rsqrt(p["bn1_var"] + EPS)           # (10,)
    shift = p["bn1_beta"] - p["bn1_mean"] * scale                    # (10,)
    w2f = p["w2"] * scale[None, :, None, None]                       # (20, 10, 5, 5)
    b2f = p["b2"] + jnp.sum(p["w2"] * shift[None, :, None, None], axis=(1, 2, 3))
    return {
        # conv1: rows (kh, kw, cin=1) -> (25, 10)
        "w1m": jnp.transpose(p["w1"], (2, 3, 1, 0)).reshape(25, 10),
        "b1r": p["b1"].reshape(1, 10),
        # conv2 (bn-folded): rows (kw, kh, cin) -> (250, 20)
        "w2m": jnp.transpose(w2f, (3, 2, 1, 0)).reshape(250, 20),
        "b2r": b2f.reshape(1, 20),
        # fc: PyTorch columns are (c, hq, wq); permute to rows (wq, hq, c) -> (180, 10)
        "wfcm": jnp.transpose(p["fc_w"].reshape(10, 20, 3, 3), (3, 2, 1, 0)).reshape(180, 10),
        "bfcr": p["fc_b"].reshape(1, 10),
    }


# ---------------- forward (single fused pallas_call) ----------------

@jax.jit
def cnn_forward(x_nchw, kp):
    b, cin, h, w = x_nchw.shape
    assert (cin, h, w) == (1, 24, 24), (cin, h, w)
    x = x_nchw.reshape(b, h, w)                                      # metadata-only reshape
    out = pl.pallas_call(
        _cnn_fused_kernel,
        out_shape=jax.ShapeDtypeStruct((b, 1, 10), jnp.float32),
        grid=(b,),
        in_specs=[
            pl.BlockSpec((1, 24, 24), lambda i: (i, 0, 0)),
            pl.BlockSpec((25, 10), lambda i: (0, 0)),
            pl.BlockSpec((1, 10), lambda i: (0, 0)),
            pl.BlockSpec((250, 20), lambda i: (0, 0)),
            pl.BlockSpec((1, 20), lambda i: (0, 0)),
            pl.BlockSpec((180, 10), lambda i: (0, 0)),
            pl.BlockSpec((1, 10), lambda i: (0, 0)),
        ],
        out_specs=pl.BlockSpec((1, 1, 10), lambda i: (i, 0, 0)),
        compiler_params=pltpu.CompilerParams(dimension_semantics=("parallel",)),
    )(x, kp["w1m"], kp["b1r"], kp["w2m"], kp["b2r"], kp["wfcm"], kp["bfcr"])
    return out.reshape(b, 10)


# ---------------- pure-JAX reference (NCHW, mirrors PyTorch) ----------------

def cnn_reference(x, p):
    def conv(x, w, b):
        y = lax.conv_general_dilated(x, w, (1, 1), "VALID",
                                     dimension_numbers=("NCHW", "OIHW", "NCHW"),
                                     precision=lax.Precision.HIGHEST)
        return y + b[None, :, None, None]

    def maxpool2(x):
        return lax.reduce_window(x, -jnp.inf, lax.max,
                                 (1, 1, 2, 2), (1, 1, 2, 2), "VALID")

    y = jax.nn.relu(maxpool2(conv(x, p["w1"], p["b1"])))
    inv = lax.rsqrt(p["bn1_var"] + EPS)
    y = ((y - p["bn1_mean"][None, :, None, None]) * inv[None, :, None, None]
         * p["bn1_gamma"][None, :, None, None] + p["bn1_beta"][None, :, None, None])
    y = jax.nn.relu(maxpool2(conv(y, p["w2"], p["b2"])))
    y = y.reshape(x.shape[0], -1)
    return jnp.dot(y, p["fc_w"].T, precision=lax.Precision.HIGHEST) + p["fc_b"]


# ---------------- parameter init (deterministic, synthetic) ----------------

def init_params(key):
    ks = jax.random.split(key, 10)
    return {
        "w1": 0.10 * jax.random.normal(ks[0], (10, 1, 5, 5), jnp.float32),
        "b1": 0.10 * jax.random.normal(ks[1], (10,), jnp.float32),
        "bn1_gamma": 1.0 + 0.1 * jax.random.normal(ks[2], (10,), jnp.float32),
        "bn1_beta": 0.1 * jax.random.normal(ks[3], (10,), jnp.float32),
        "bn1_mean": 0.1 * jax.random.normal(ks[4], (10,), jnp.float32),
        "bn1_var": jax.random.uniform(ks[5], (10,), jnp.float32, 0.5, 1.5),
        "w2": 0.05 * jax.random.normal(ks[6], (20, 10, 5, 5), jnp.float32),
        "b2": 0.10 * jax.random.normal(ks[7], (20,), jnp.float32),
        "fc_w": 0.05 * jax.random.normal(ks[8], (10, 180), jnp.float32),
        "fc_b": 0.10 * jax.random.normal(ks[9], (10,), jnp.float32),
    }


if __name__ == "__main__":
    key = jax.random.PRNGKey(0)
    k_x, k_p = jax.random.split(key)
    params = init_params(k_p)
    # 24x24 input -> conv1:20 -> pool:10 -> conv2:6 -> pool:3 -> 20*3*3 = 180 = fc.in_features
    x = jax.random.normal(k_x, (2, 1, 24, 24), jnp.float32)

    kp = prepare_params(params)                      # one-time weight prep (bn fold, layouts)
    out = jax.block_until_ready(cnn_forward(x, kp))
    ref = jax.block_until_ready(cnn_reference(x, params))

    assert out.shape == (2, 10), out.shape
    assert jnp.allclose(out, ref, atol=1e-3, rtol=1e-3), (out, ref)
    print("KERNEL_OK")
</pallas_src>

<mosaic_0001>
module attributes {stable_mosaic.version = 11 : i64} {
  func.func @_cnn_fused_kernel(%arg0: i32, %arg1: memref<1x24x24xf32, #tpu.memory_space<vmem>>, %arg2: memref<25x10xf32, #tpu.memory_space<vmem>>, %arg3: memref<1x10xf32, #tpu.memory_space<vmem>>, %arg4: memref<250x20xf32, #tpu.memory_space<vmem>>, %arg5: memref<1x20xf32, #tpu.memory_space<vmem>>, %arg6: memref<180x10xf32, #tpu.memory_space<vmem>>, %arg7: memref<1x10xf32, #tpu.memory_space<vmem>>, %arg8: memref<1x1x10xf32, #tpu.memory_space<vmem>>) attributes {dimension_semantics = [#tpu.dimension_semantics<parallel>], iteration_bounds = array<i64: 2>, scalar_prefetch = 0 : i64, scratch_operands = 0 : i64, tpu.core_type = #tpu.core_type<tc>, window_params = [{transform_indices = @transform_0, window_bounds = array<i64: 1, 24, 24>}, {pipeline_mode = #tpu.pipeline_mode<synchronous>, transform_indices = @transform_1, window_bounds = array<i64: 25, 10>}, {pipeline_mode = #tpu.pipeline_mode<synchronous>, transform_indices = @transform_2, window_bounds = array<i64: 1, 10>}, {pipeline_mode = #tpu.pipeline_mode<synchronous>, transform_indices = @transform_3, window_bounds = array<i64: 250, 20>}, {pipeline_mode = #tpu.pipeline_mode<synchronous>, transform_indices = @transform_4, window_bounds = array<i64: 1, 20>}, {pipeline_mode = #tpu.pipeline_mode<synchronous>, transform_indices = @transform_5, window_bounds = array<i64: 180, 10>}, {pipeline_mode = #tpu.pipeline_mode<synchronous>, transform_indices = @transform_6, window_bounds = array<i64: 1, 10>}, {transform_indices = @transform_7, window_bounds = array<i64: 1, 1, 10>}]} {
    %c0 = arith.constant 0 : index
    %c0_0 = arith.constant 0 : index
    %c0_1 = arith.constant 0 : index
    %0 = vector.load %arg1[%c0, %c0_0, %c0_1] : memref<1x24x24xf32, #tpu.memory_space<vmem>>, vector<1x24x24xf32>
    %1 = vector.shape_cast %0 : vector<1x24x24xf32> to vector<24x24xf32>
    %c0_2 = arith.constant 0 : index
    %c0_3 = arith.constant 0 : index
    %2 = vector.load %arg2[%c0_2, %c0_3] : memref<25x10xf32, #tpu.memory_space<vmem>>, vector<25x10xf32>
    %c0_4 = arith.constant 0 : index
    %c0_5 = arith.constant 0 : index
    %3 = vector.load %arg3[%c0_4, %c0_5] : memref<1x10xf32, #tpu.memory_space<vmem>>, vector<1x10xf32>
    %c0_6 = arith.constant 0 : index
    %c0_7 = arith.constant 0 : index
    %4 = vector.load %arg4[%c0_6, %c0_7] : memref<250x20xf32, #tpu.memory_space<vmem>>, vector<250x20xf32>
    %c0_8 = arith.constant 0 : index
    %c0_9 = arith.constant 0 : index
    %5 = vector.load %arg5[%c0_8, %c0_9] : memref<1x20xf32, #tpu.memory_space<vmem>>, vector<1x20xf32>
    %c0_10 = arith.constant 0 : index
    %c0_11 = arith.constant 0 : index
    %6 = vector.load %arg6[%c0_10, %c0_11] : memref<180x10xf32, #tpu.memory_space<vmem>>, vector<180x10xf32>
    %c0_12 = arith.constant 0 : index
    %c0_13 = arith.constant 0 : index
    %7 = vector.load %arg7[%c0_12, %c0_13] : memref<1x10xf32, #tpu.memory_space<vmem>>, vector<1x10xf32>
    %8 = tpu.iota {dimensions = array<i32: 0>} : vector<10x19xi32>
    %9 = tpu.iota {dimensions = array<i32: 1>} : vector<10x19xi32>
    %c2_i32 = arith.constant 2 : i32
    %10 = vector.broadcast %c2_i32 : i32 to vector<10x19xi32>
    %11 = arith.muli %10, %8 : vector<10x19xi32>
    %12 = arith.cmpi eq, %9, %11 : vector<10x19xi32>
    %13 = arith.extui %12 : vector<10x19xi1> to vector<10x19xi32>
    %14 = arith.sitofp %13 : vector<10x19xi32> to vector<10x19xf32>
    %15 = tpu.iota {dimensions = array<i32: 0>} : vector<3x5xi32>
    %16 = tpu.iota {dimensions = array<i32: 1>} : vector<3x5xi32>
    %c2_i32_14 = arith.constant 2 : i32
    %17 = vector.broadcast %c2_i32_14 : i32 to vector<3x5xi32>
    %18 = arith.muli %17, %15 : vector<3x5xi32>
    %19 = arith.cmpi eq, %16, %18 : vector<3x5xi32>
    %20 = arith.extui %19 : vector<3x5xi1> to vector<3x5xi32>
    %21 = arith.sitofp %20 : vector<3x5xi32> to vector<3x5xf32>
    %22 = vector.extract_strided_slice %1 {offsets = [0, 0], sizes = [20, 5], strides = [1, 1]} : vector<24x24xf32> to vector<20x5xf32>
    %23 = vector.extract_strided_slice %1 {offsets = [1, 0], sizes = [20, 5], strides = [1, 1]} : vector<24x24xf32> to vector<20x5xf32>
    %24 = vector.extract_strided_slice %1 {offsets = [2, 0], sizes = [20, 5], strides = [1, 1]} : vector<24x24xf32> to vector<20x5xf32>
    %25 = vector.extract_strided_slice %1 {offsets = [3, 0], sizes = [20, 5], strides = [1, 1]} : vector<24x24xf32> to vector<20x5xf32>
    %26 = vector.extract_strided_slice %1 {offsets = [4, 0], sizes = [20, 5], strides = [1, 1]} : vector<24x24xf32> to vector<20x5xf32>
    %27 = tpu.concatenate %22, %23, %24, %25, %26 in 1 : vector<20x5xf32>, vector<20x5xf32>, vector<20x5xf32>, vector<20x5xf32>, vector<20x5xf32> -> vector<20x25xf32>
    %cst = arith.constant dense<0.000000e+00> : vector<20x10xf32>
    %28 = tpu.matmul %27, %2, %cst {dimension_numbers = #tpu.dot_dimension_numbers<[1], [0], [0], [1], [0, 0, 1, 1], [], []>, precision = #tpu.contract_precision<fp32>} : vector<20x25xf32>, vector<25x10xf32>, vector<20x10xf32> -> vector<20x10xf32>
    %29 = vector.extract_strided_slice %1 {offsets = [0, 1], sizes = [20, 5], strides = [1, 1]} : vector<24x24xf32> to vector<20x5xf32>
    %30 = vector.extract_strided_slice %1 {offsets = [1, 1], sizes = [20, 5], strides = [1, 1]} : vector<24x24xf32> to vector<20x5xf32>
    %31 = vector.extract_strided_slice %1 {offsets = [2, 1], sizes = [20, 5], strides = [1, 1]} : vector<24x24xf32> to vector<20x5xf32>
    %32 = vector.extract_strided_slice %1 {offsets = [3, 1], sizes = [20, 5], strides = [1, 1]} : vector<24x24xf32> to vector<20x5xf32>
    %33 = vector.extract_strided_slice %1 {offsets = [4, 1], sizes = [20, 5], strides = [1, 1]} : vector<24x24xf32> to vector<20x5xf32>
    %34 = tpu.concatenate %29, %30, %31, %32, %33 in 1 : vector<20x5xf32>, vector<20x5xf32>, vector<20x5xf32>, vector<20x5xf32>, vector<20x5xf32> -> vector<20x25xf32>
    %cst_15 = arith.constant dense<0.000000e+00> : vector<20x10xf32>
    %35 = tpu.matmul %34, %2, %cst_15 {dimension_numbers = #tpu.dot_dimension_numbers<[1], [0], [0], [1], [0, 0, 1, 1], [], []>, precision = #tpu.contract_precision<fp32>} : vector<20x25xf32>, vector<25x10xf32>, vector<20x10xf32> -> vector<20x10xf32>
    %36 = arith.maximumf %28, %35 : vector<20x10xf32>
    %37 = vector.extract_strided_slice %36 {offsets = [0, 0], sizes = [19, 10], strides = [1, 1]} : vector<20x10xf32> to vector<19x10xf32>
    %38 = vector.extract_strided_slice %36 {offsets = [1, 0], sizes = [19, 10], strides = [1, 1]} : vector<20x10xf32> to vector<19x10xf32>
    %39 = arith.maximumf %37, %38 : vector<19x10xf32>
    %cst_16 = arith.constant dense<0.000000e+00> : vector<10x10xf32>
    %40 = tpu.matmul %14, %39, %cst_16 {dimension_numbers = #tpu.dot_dimension_numbers<[1], [0], [0], [1], [0, 0, 1, 1], [], []>, precision = #tpu.contract_precision<fp32>} : vector<10x19xf32>, vector<19x10xf32>, vector<10x10xf32> -> vector<10x10xf32>
    %41 = vector.broadcast %3 : vector<1x10xf32> to vector<10x10xf32>
    %42 = arith.addf %40, %41 : vector<10x10xf32>
    %cst_17 = arith.constant 0.000000e+00 : f32
    %43 = vector.broadcast %cst_17 : f32 to vector<10x10xf32>
    %44 = arith.maximumf %42, %43 : vector<10x10xf32>
    %45 = vector.extract_strided_slice %1 {offsets = [0, 2], sizes = [20, 5], strides = [1, 1]} : vector<24x24xf32> to vector<20x5xf32>
    %46 = vector.extract_strided_slice %1 {offsets = [1, 2], sizes = [20, 5], strides = [1, 1]} : vector<24x24xf32> to vector<20x5xf32>
    %47 = vector.extract_strided_slice %1 {offsets = [2, 2], sizes = [20, 5], strides = [1, 1]} : vector<24x24xf32> to vector<20x5xf32>
    %48 = vector.extract_strided_slice %1 {offsets = [3, 2], sizes = [20, 5], strides = [1, 1]} : vector<24x24xf32> to vector<20x5xf32>
    %49 = vector.extract_strided_slice %1 {offsets = [4, 2], sizes = [20, 5], strides = [1, 1]} : vector<24x24xf32> to vector<20x5xf32>
    %50 = tpu.concatenate %45, %46, %47, %48, %49 in 1 : vector<20x5xf32>, vector<20x5xf32>, vector<20x5xf32>, vector<20x5xf32>, vector<20x5xf32> -> vector<20x25xf32>
    %cst_18 = arith.constant dense<0.000000e+00> : vector<20x10xf32>
    %51 = tpu.matmul %50, %2, %cst_18 {dimension_numbers = #tpu.dot_dimension_numbers<[1], [0], [0], [1], [0, 0, 1, 1], [], []>, precision = #tpu.contract_precision<fp32>} : vector<20x25xf32>, vector<25x10xf32>, vector<20x10xf32> -> vector<20x10xf32>
    %52 = vector.extract_strided_slice %1 {offsets = [0, 3], sizes = [20, 5], strides = [1, 1]} : vector<24x24xf32> to vector<20x5xf32>
    %53 = vector.extract_strided_slice %1 {offsets = [1, 3], sizes = [20, 5], strides = [1, 1]} : vector<24x24xf32> to vector<20x5xf32>
    %54 = vector.extract_strided_slice %1 {offsets = [2, 3], sizes = [20, 5], strides = [1, 1]} : vector<24x24xf32> to vector<20x5xf32>
    %55 = vector.extract_strided_slice %1 {offsets = [3, 3], sizes = [20, 5], strides = [1, 1]} : vector<24x24xf32> to vector<20x5xf32>
    %56 = vector.extract_strided_slice %1 {offsets = [4, 3], sizes = [20, 5], strides = [1, 1]} : vector<24x24xf32> to vector<20x5xf32>
    %57 = tpu.concatenate %52, %53, %54, %55, %56 in 1 : vector<20x5xf32>, vector<20x5xf32>, vector<20x5xf32>, vector<20x5xf32>, vector<20x5xf32> -> vector<20x25xf32>
    %cst_19 = arith.constant dense<0.000000e+00> : vector<20x10xf32>
    %58 = tpu.matmul %57, %2, %cst_19 {dimension_numbers = #tpu.dot_dimension_numbers<[1], [0], [0], [1], [0, 0, 1, 1], [], []>, precision = #tpu.contract_precision<fp32>} : vector<20x25xf32>, vector<25x10xf32>, vector<20x10xf32> -> vector<20x10xf32>
    %59 = arith.maximumf %51, %58 : vector<20x10xf32>
    %60 = vector.extract_strided_slice %59 {offsets = [0, 0], sizes = [19, 10], strides = [1, 1]} : vector<20x10xf32> to vector<19x10xf32>
    %61 = vector.extract_strided_slice %59 {offsets = [1, 0], sizes = [19, 10], strides = [1, 1]} : vector<20x10xf32> to vector<19x10xf32>
    %62 = arith.maximumf %60, %61 : vector<19x10xf32>
    %cst_20 = arith.constant dense<0.000000e+00> : vector<10x10xf32>
    %63 = tpu.matmul %14, %62, %cst_20 {dimension_numbers = #tpu.dot_dimension_numbers<[1], [0], [0], [1], [0, 0, 1, 1], [], []>, precision = #tpu.contract_precision<fp32>} : vector<10x19xf32>, vector<19x10xf32>, vector<10x10xf32> -> vector<10x10xf32>
    %64 = vector.broadcast %3 : vector<1x10xf32> to vector<10x10xf32>
    %65 = arith.addf %63, %64 : vector<10x10xf32>
    %cst_21 = arith.constant 0.000000e+00 : f32
    %66 = vector.broadcast %cst_21 : f32 to vector<10x10xf32>
    %67 = arith.maximumf %65, %66 : vector<10x10xf32>
    %68 = vector.extract_strided_slice %1 {offsets = [0, 4], sizes = [20, 5], strides = [1, 1]} : vector<24x24xf32> to vector<20x5xf32>
    %69 = vector.extract_strided_slice %1 {offsets = [1, 4], sizes = [20, 5], strides = [1, 1]} : vector<24x24xf32> to vector<20x5xf32>
    %70 = vector.extract_strided_slice %1 {offsets = [2, 4], sizes = [20, 5], strides = [1, 1]} : vector<24x24xf32> to vector<20x5xf32>
    %71 = vector.extract_strided_slice %1 {offsets = [3, 4], sizes = [20, 5], strides = [1, 1]} : vector<24x24xf32> to vector<20x5xf32>
    %72 = vector.extract_strided_slice %1 {offsets = [4, 4], sizes = [20, 5], strides = [1, 1]} : vector<24x24xf32> to vector<20x5xf32>
    %73 = tpu.concatenate %68, %69, %70, %71, %72 in 1 : vector<20x5xf32>, vector<20x5xf32>, vector<20x5xf32>, vector<20x5xf32>, vector<20x5xf32> -> vector<20x25xf32>
    %cst_22 = arith.constant dense<0.000000e+00> : vector<20x10xf32>
    %74 = tpu.matmul %73, %2, %cst_22 {dimension_numbers = #tpu.dot_dimension_numbers<[1], [0], [0], [1], [0, 0, 1, 1], [], []>, precision = #tpu.contract_precision<fp32>} : vector<20x25xf32>, vector<25x10xf32>, vector<20x10xf32> -> vector<20x10xf32>
    %75 = vector.extract_strided_slice %1 {offsets = [0, 5], sizes = [20, 5], strides = [1, 1]} : vector<24x24xf32> to vector<20x5xf32>
    %76 = vector.extract_strided_slice %1 {offsets = [1, 5], sizes = [20, 5], strides = [1, 1]} : vector<24x24xf32> to vector<20x5xf32>
    %77 = vector.extract_strided_slice %1 {offsets = [2, 5], sizes = [20, 5], strides = [1, 1]} : vector<24x24xf32> to vector<20x5xf32>
    %78 = vector.extract_strided_slice %1 {offsets = [3, 5], sizes = [20, 5], strides = [1, 1]} : vector<24x24xf32> to vector<20x5xf32>
    %79 = vector.extract_strided_slice %1 {offsets = [4, 5], sizes = [20, 5], strides = [1, 1]} : vector<24x24xf32> to vector<20x5xf32>
    %80 = tpu.concatenate %75, %76, %77, %78, %79 in 1 : vector<20x5xf32>, vector<20x5xf32>, vector<20x5xf32>, vector<20x5xf32>, vector<20x5xf32> -> vector<20x25xf32>
    %cst_23 = arith.constant dense<0.000000e+00> : vector<20x10xf32>
    %81 = tpu.matmul %80, %2, %cst_23 {dimension_numbers = #tpu.dot_dimension_numbers<[1], [0], [0], [1], [0, 0, 1, 1], [], []>, precision = #tpu.contract_precision<fp32>} : vector<20x25xf32>, vector<25x10xf32>, vector<20x10xf32> -> vector<20x10xf32>
    %82 = arith.maximumf %74, %81 : vector<20x10xf32>
    %83 = vector.extract_strided_slice %82 {offsets = [0, 0], sizes = [19, 10], strides = [1, 1]} : vector<20x10xf32> to vector<19x10xf32>
    %84 = vector.extract_strided_slice %82 {offsets = [1, 0], sizes = [19, 10], strides = [1, 1]} : vector<20x10xf32> to vector<19x10xf32>
    %85 = arith.maximumf %83, %84 : vector<19x10xf32>
    %cst_24 = arith.constant dense<0.000000e+00> : vector<10x10xf32>
    %86 = tpu.matmul %14, %85, %cst_24 {dimension_numbers = #tpu.dot_dimension_numbers<[1], [0], [0], [1], [0, 0, 1, 1], [], []>, precision = #tpu.contract_precision<fp32>} : vector<10x19xf32>, vector<19x10xf32>, vector<10x10xf32> -> vector<10x10xf32>
    %87 = vector.broadcast %3 : vector<1x10xf32> to vector<10x10xf32>
    %88 = arith.addf %86, %87 : vector<10x10xf32>
    %cst_25 = arith.constant 0.000000e+00 : f32
    %89 = vector.broadcast %cst_25 : f32 to vector<10x10xf32>
    %90 = arith.maximumf %88, %89 : vector<10x10xf32>
    %91 = vector.extract_strided_slice %1 {offsets = [0, 6], sizes = [20, 5], strides = [1, 1]} : vector<24x24xf32> to vector<20x5xf32>
    %92 = vector.extract_strided_slice %1 {offsets = [1, 6], sizes = [20, 5], strides = [1, 1]} : vector<24x24xf32> to vector<20x5xf32>
    %93 = vector.extract_strided_slice %1 {offsets = [2, 6], sizes = [20, 5], strides = [1, 1]} : vector<24x24xf32> to vector<20x5xf32>
    %94 = vector.extract_strided_slice %1 {offsets = [3, 6], sizes = [20, 5], strides = [1, 1]} : vector<24x24xf32> to vector<20x5xf32>
    %95 = vector.extract_strided_slice %1 {offsets = [4, 6], sizes = [20, 5], strides = [1, 1]} : vector<24x24xf32> to vector<20x5xf32>
    %96 = tpu.concatenate %91, %92, %93, %94, %95 in 1 : vector<20x5xf32>, vector<20x5xf32>, vector<20x5xf32>, vector<20x5xf32>, vector<20x5xf32> -> vector<20x25xf32>
    %cst_26 = arith.constant dense<0.000000e+00> : vector<20x10xf32>
    %97 = tpu.matmul %96, %2, %cst_26 {dimension_numbers = #tpu.dot_dimension_numbers<[1], [0], [0], [1], [0, 0, 1, 1], [], []>, precision = #tpu.contract_precision<fp32>} : vector<20x25xf32>, vector<25x10xf32>, vector<20x10xf32> -> vector<20x10xf32>
    %98 = vector.extract_strided_slice %1 {offsets = [0, 7], sizes = [20, 5], strides = [1, 1]} : vector<24x24xf32> to vector<20x5xf32>
    %99 = vector.extract_strided_slice %1 {offsets = [1, 7], sizes = [20, 5], strides = [1, 1]} : vector<24x24xf32> to vector<20x5xf32>
    %100 = vector.extract_strided_slice %1 {offsets = [2, 7], sizes = [20, 5], strides = [1, 1]} : vector<24x24xf32> to vector<20x5xf32>
    %101 = vector.extract_strided_slice %1 {offsets = [3, 7], sizes = [20, 5], strides = [1, 1]} : vector<24x24xf32> to vector<20x5xf32>
    %102 = vector.extract_strided_slice %1 {offsets = [4, 7], sizes = [20, 5], strides = [1, 1]} : vector<24x24xf32> to vector<20x5xf32>
    %103 = tpu.concatenate %98, %99, %100, %101, %102 in 1 : vector<20x5xf32>, vector<20x5xf32>, vector<20x5xf32>, vector<20x5xf32>, vector<20x5xf32> -> vector<20x25xf32>
    %cst_27 = arith.constant dense<0.000000e+00> : vector<20x10xf32>
    %104 = tpu.matmul %103, %2, %cst_27 {dimension_numbers = #tpu.dot_dimension_numbers<[1], [0], [0], [1], [0, 0, 1, 1], [], []>, precision = #tpu.contract_precision<fp32>} : vector<20x25xf32>, vector<25x10xf32>, vector<20x10xf32> -> vector<20x10xf32>
    %105 = arith.maximumf %97, %104 : vector<20x10xf32>
    %106 = vector.extract_strided_slice %105 {offsets = [0, 0], sizes = [19, 10], strides = [1, 1]} : vector<20x10xf32> to vector<19x10xf32>
    %107 = vector.extract_strided_slice %105 {offsets = [1, 0], sizes = [19, 10], strides = [1, 1]} : vector<20x10xf32> to vector<19x10xf32>
    %108 = arith.maximumf %106, %107 : vector<19x10xf32>
    %cst_28 = arith.constant dense<0.000000e+00> : vector<10x10xf32>
    %109 = tpu.matmul %14, %108, %cst_28 {dimension_numbers = #tpu.dot_dimension_numbers<[1], [0], [0], [1], [0, 0, 1, 1], [], []>, precision = #tpu.contract_precision<fp32>} : vector<10x19xf32>, vector<19x10xf32>, vector<10x10xf32> -> vector<10x10xf32>
    %110 = vector.broadcast %3 : vector<1x10xf32> to vector<10x10xf32>
    %111 = arith.addf %109, %110 : vector<10x10xf32>
    %cst_29 = arith.constant 0.000000e+00 : f32
    %112 = vector.broadcast %cst_29 : f32 to vector<10x10xf32>
    %113 = arith.maximumf %111, %112 : vector<10x10xf32>
    %114 = vector.extract_strided_slice %1 {offsets = [0, 8], sizes = [20, 5], strides = [1, 1]} : vector<24x24xf32> to vector<20x5xf32>
    %115 = vector.extract_strided_slice %1 {offsets = [1, 8], sizes = [20, 5], strides = [1, 1]} : vector<24x24xf32> to vector<20x5xf32>
    %116 = vector.extract_strided_slice %1 {offsets = [2, 8], sizes = [20, 5], strides = [1, 1]} : vector<24x24xf32> to vector<20x5xf32>
    %117 = vector.extract_strided_slice %1 {offsets = [3, 8], sizes = [20, 5], strides = [1, 1]} : vector<24x24xf32> to vector<20x5xf32>
    %118 = vector.extract_strided_slice %1 {offsets = [4, 8], sizes = [20, 5], strides = [1, 1]} : vector<24x24xf32> to vector<20x5xf32>
    %119 = tpu.concatenate %114, %115, %116, %117, %118 in 1 : vector<20x5xf32>, vector<20x5xf32>, vector<20x5xf32>, vector<20x5xf32>, vector<20x5xf32> -> vector<20x25xf32>
    %cst_30 = arith.constant dense<0.000000e+00> : vector<20x10xf32>
    %120 = tpu.matmul %119, %2, %cst_30 {dimension_numbers = #tpu.dot_dimension_numbers<[1], [0], [0], [1], [0, 0, 1, 1], [], []>, precision = #tpu.contract_precision<fp32>} : vector<20x25xf32>, vector<25x10xf32>, vector<20x10xf32> -> vector<20x10xf32>
    %121 = vector.extract_strided_slice %1 {offsets = [0, 9], sizes = [20, 5], strides = [1, 1]} : vector<24x24xf32> to vector<20x5xf32>
    %122 = vector.extract_strided_slice %1 {offsets = [1, 9], sizes = [20, 5], strides = [1, 1]} : vector<24x24xf32> to vector<20x5xf32>
    %123 = vector.extract_strided_slice %1 {offsets = [2, 9], sizes = [20, 5], strides = [1, 1]} : vector<24x24xf32> to vector<20x5xf32>
    %124 = vector.extract_strided_slice %1 {offsets = [3, 9], sizes = [20, 5], strides = [1, 1]} : vector<24x24xf32> to vector<20x5xf32>
    %125 = vector.extract_strided_slice %1 {offsets = [4, 9], sizes = [20, 5], strides = [1, 1]} : vector<24x24xf32> to vector<20x5xf32>
    %126 = tpu.concatenate %121, %122, %123, %124, %125 in 1 : vector<20x5xf32>, vector<20x5xf32>, vector<20x5xf32>, vector<20x5xf32>, vector<20x5xf32> -> vector<20x25xf32>
    %cst_31 = arith.constant dense<0.000000e+00> : vector<20x10xf32>
    %127 = tpu.matmul %126, %2, %cst_31 {dimension_numbers = #tpu.dot_dimension_numbers<[1], [0], [0], [1], [0, 0, 1, 1], [], []>, precision = #tpu.contract_precision<fp32>} : vector<20x25xf32>, vector<25x10xf32>, vector<20x10xf32> -> vector<20x10xf32>
    %128 = arith.maximumf %120, %127 : vector<20x10xf32>
    %129 = vector.extract_strided_slice %128 {offsets = [0, 0], sizes = [19, 10], strides = [1, 1]} : vector<20x10xf32> to vector<19x10xf32>
    %130 = vector.extract_strided_slice %128 {offsets = [1, 0], sizes = [19, 10], strides = [1, 1]} : vector<20x10xf32> to vector<19x10xf32>
    %131 = arith.maximumf %129, %130 : vector<19x10xf32>
    %cst_32 = arith.constant dense<0.000000e+00> : vector<10x10xf32>
    %132 = tpu.matmul %14, %131, %cst_32 {dimension_numbers = #tpu.dot_dimension_numbers<[1], [0], [0], [1], [0, 0, 1, 1], [], []>, precision = #tpu.contract_precision<fp32>} : vector<10x19xf32>, vector<19x10xf32>, vector<10x10xf32> -> vector<10x10xf32>
    %133 = vector.broadcast %3 : vector<1x10xf32> to vector<10x10xf32>
    %134 = arith.addf %132, %133 : vector<10x10xf32>
    %cst_33 = arith.constant 0.000000e+00 : f32
    %135 = vector.broadcast %cst_33 : f32 to vector<10x10xf32>
    %136 = arith.maximumf %134, %135 : vector<10x10xf32>
    %137 = vector.extract_strided_slice %1 {offsets = [0, 10], sizes = [20, 5], strides = [1, 1]} : vector<24x24xf32> to vector<20x5xf32>
    %138 = vector.extract_strided_slice %1 {offsets = [1, 10], sizes = [20, 5], strides = [1, 1]} : vector<24x24xf32> to vector<20x5xf32>
    %139 = vector.extract_strided_slice %1 {offsets = [2, 10], sizes = [20, 5], strides = [1, 1]} : vector<24x24xf32> to vector<20x5xf32>
    %140 = vector.extract_strided_slice %1 {offsets = [3, 10], sizes = [20, 5], strides = [1, 1]} : vector<24x24xf32> to vector<20x5xf32>
    %141 = vector.extract_strided_slice %1 {offsets = [4, 10], sizes = [20, 5], strides = [1, 1]} : vector<24x24xf32> to vector<20x5xf32>
    %142 = tpu.concatenate %137, %138, %139, %140, %141 in 1 : vector<20x5xf32>, vector<20x5xf32>, vector<20x5xf32>, vector<20x5xf32>, vector<20x5xf32> -> vector<20x25xf32>
    %cst_34 = arith.constant dense<0.000000e+00> : vector<20x10xf32>
    %143 = tpu.matmul %142, %2, %cst_34 {dimension_numbers = #tpu.dot_dimension_numbers<[1], [0], [0], [1], [0, 0, 1, 1], [], []>, precision = #tpu.contract_precision<fp32>} : vector<20x25xf32>, vector<25x10xf32>, vector<20x10xf32> -> vector<20x10xf32>
    %144 = vector.extract_strided_slice %1 {offsets = [0, 11], sizes = [20, 5], strides = [1, 1]} : vector<24x24xf32> to vector<20x5xf32>
    %145 = vector.extract_strided_slice %1 {offsets = [1, 11], sizes = [20, 5], strides = [1, 1]} : vector<24x24xf32> to vector<20x5xf32>
    %146 = vector.extract_strided_slice %1 {offsets = [2, 11], sizes = [20, 5], strides = [1, 1]} : vector<24x24xf32> to vector<20x5xf32>
    %147 = vector.extract_strided_slice %1 {offsets = [3, 11], sizes = [20, 5], strides = [1, 1]} : vector<24x24xf32> to vector<20x5xf32>
    %148 = vector.extract_strided_slice %1 {offsets = [4, 11], sizes = [20, 5], strides = [1, 1]} : vector<24x24xf32> to vector<20x5xf32>
    %149 = tpu.concatenate %144, %145, %146, %147, %148 in 1 : vector<20x5xf32>, vector<20x5xf32>, vector<20x5xf32>, vector<20x5xf32>, vector<20x5xf32> -> vector<20x25xf32>
    %cst_35 = arith.constant dense<0.000000e+00> : vector<20x10xf32>
    %150 = tpu.matmul %149, %2, %cst_35 {dimension_numbers = #tpu.dot_dimension_numbers<[1], [0], [0], [1], [0, 0, 1, 1], [], []>, precision = #tpu.contract_precision<fp32>} : vector<20x25xf32>, vector<25x10xf32>, vector<20x10xf32> -> vector<20x10xf32>
    %151 = arith.maximumf %143, %150 : vector<20x10xf32>
    %152 = vector.extract_strided_slice %151 {offsets = [0, 0], sizes = [19, 10], strides = [1, 1]} : vector<20x10xf32> to vector<19x10xf32>
    %153 = vector.extract_strided_slice %151 {offsets = [1, 0], sizes = [19, 10], strides = [1, 1]} : vector<20x10xf32> to vector<19x10xf32>
    %154 = arith.maximumf %152, %153 : vector<19x10xf32>
    %cst_36 = arith.constant dense<0.000000e+00> : vector<10x10xf32>
    %155 = tpu.matmul %14, %154, %cst_36 {dimension_numbers = #tpu.dot_dimension_numbers<[1], [0], [0], [1], [0, 0, 1, 1], [], []>, precision = #tpu.contract_precision<fp32>} : vector<10x19xf32>, vector<19x10xf32>, vector<10x10xf32> -> vector<10x10xf32>
    %156 = vector.broadcast %3 : vector<1x10xf32> to vector<10x10xf32>
    %157 = arith.addf %155, %156 : vector<10x10xf32>
    %cst_37 = arith.constant 0.000000e+00 : f32
    %158 = vector.broadcast %cst_37 : f32 to vector<10x10xf32>
    %159 = arith.maximumf %157, %158 : vector<10x10xf32>
    %160 = vector.extract_strided_slice %1 {offsets = [0, 12], sizes = [20, 5], strides = [1, 1]} : vector<24x24xf32> to vector<20x5xf32>
    %161 = vector.extract_strided_slice %1 {offsets = [1, 12], sizes = [20, 5], strides = [1, 1]} : vector<24x24xf32> to vector<20x5xf32>
    %162 = vector.extract_strided_slice %1 {offsets = [2, 12], sizes = [20, 5], strides = [1, 1]} : vector<24x24xf32> to vector<20x5xf32>
    %163 = vector.extract_strided_slice %1 {offsets = [3, 12], sizes = [20, 5], strides = [1, 1]} : vector<24x24xf32> to vector<20x5xf32>
    %164 = vector.extract_strided_slice %1 {offsets = [4, 12], sizes = [20, 5], strides = [1, 1]} : vector<24x24xf32> to vector<20x5xf32>
    %165 = tpu.concatenate %160, %161, %162, %163, %164 in 1 : vector<20x5xf32>, vector<20x5xf32>, vector<20x5xf32>, vector<20x5xf32>, vector<20x5xf32> -> vector<20x25xf32>
    %cst_38 = arith.constant dense<0.000000e+00> : vector<20x10xf32>
    %166 = tpu.matmul %165, %2, %cst_38 {dimension_numbers = #tpu.dot_dimension_numbers<[1], [0], [0], [1], [0, 0, 1, 1], [], []>, precision = #tpu.contract_precision<fp32>} : vector<20x25xf32>, vector<25x10xf32>, vector<20x10xf32> -> vector<20x10xf32>
    %167 = vector.extract_strided_slice %1 {offsets = [0, 13], sizes = [20, 5], strides = [1, 1]} : vector<24x24xf32> to vector<20x5xf32>
    %168 = vector.extract_strided_slice %1 {offsets = [1, 13], sizes = [20, 5], strides = [1, 1]} : vector<24x24xf32> to vector<20x5xf32>
    %169 = vector.extract_strided_slice %1 {offsets = [2, 13], sizes = [20, 5], strides = [1, 1]} : vector<24x24xf32> to vector<20x5xf32>
    %170 = vector.extract_strided_slice %1 {offsets = [3, 13], sizes = [20, 5], strides = [1, 1]} : vector<24x24xf32> to vector<20x5xf32>
    %171 = vector.extract_strided_slice %1 {offsets = [4, 13], sizes = [20, 5], strides = [1, 1]} : vector<24x24xf32> to vector<20x5xf32>
    %172 = tpu.concatenate %167, %168, %169, %170, %171 in 1 : vector<20x5xf32>, vector<20x5xf32>, vector<20x5xf32>, vector<20x5xf32>, vector<20x5xf32> -> vector<20x25xf32>
    %cst_39 = arith.constant dense<0.000000e+00> : vector<20x10xf32>
    %173 = tpu.matmul %172, %2, %cst_39 {dimension_numbers = #tpu.dot_dimension_numbers<[1], [0], [0], [1], [0, 0, 1, 1], [], []>, precision = #tpu.contract_precision<fp32>} : vector<20x25xf32>, vector<25x10xf32>, vector<20x10xf32> -> vector<20x10xf32>
    %174 = arith.maximumf %166, %173 : vector<20x10xf32>
    %175 = vector.extract_strided_slice %174 {offsets = [0, 0], sizes = [19, 10], strides = [1, 1]} : vector<20x10xf32> to vector<19x10xf32>
    %176 = vector.extract_strided_slice %174 {offsets = [1, 0], sizes = [19, 10], strides = [1, 1]} : vector<20x10xf32> to vector<19x10xf32>
    %177 = arith.maximumf %175, %176 : vector<19x10xf32>
    %cst_40 = arith.constant dense<0.000000e+00> : vector<10x10xf32>
    %178 = tpu.matmul %14, %177, %cst_40 {dimension_numbers = #tpu.dot_dimension_numbers<[1], [0], [0], [1], [0, 0, 1, 1], [], []>, precision = #tpu.contract_precision<fp32>} : vector<10x19xf32>, vector<19x10xf32>, vector<10x10xf32> -> vector<10x10xf32>
    %179 = vector.broadcast %3 : vector<1x10xf32> to vector<10x10xf32>
    %180 = arith.addf %178, %179 : vector<10x10xf32>
    %cst_41 = arith.constant 0.000000e+00 : f32
    %181 = vector.broadcast %cst_41 : f32 to vector<10x10xf32>
    %182 = arith.maximumf %180, %181 : vector<10x10xf32>
    %183 = vector.extract_strided_slice %1 {offsets = [0, 14], sizes = [20, 5], strides = [1, 1]} : vector<24x24xf32> to vector<20x5xf32>
    %184 = vector.extract_strided_slice %1 {offsets = [1, 14], sizes = [20, 5], strides = [1, 1]} : vector<24x24xf32> to vector<20x5xf32>
    %185 = vector.extract_strided_slice %1 {offsets = [2, 14], sizes = [20, 5], strides = [1, 1]} : vector<24x24xf32> to vector<20x5xf32>
    %186 = vector.extract_strided_slice %1 {offsets = [3, 14], sizes = [20, 5], strides = [1, 1]} : vector<24x24xf32> to vector<20x5xf32>
    %187 = vector.extract_strided_slice %1 {offsets = [4, 14], sizes = [20, 5], strides = [1, 1]} : vector<24x24xf32> to vector<20x5xf32>
    %188 = tpu.concatenate %183, %184, %185, %186, %187 in 1 : vector<20x5xf32>, vector<20x5xf32>, vector<20x5xf32>, vector<20x5xf32>, vector<20x5xf32> -> vector<20x25xf32>
    %cst_42 = arith.constant dense<0.000000e+00> : vector<20x10xf32>
    %189 = tpu.matmul %188, %2, %cst_42 {dimension_numbers = #tpu.dot_dimension_numbers<[1], [0], [0], [1], [0, 0, 1, 1], [], []>, precision = #tpu.contract_precision<fp32>} : vector<20x25xf32>, vector<25x10xf32>, vector<20x10xf32> -> vector<20x10xf32>
    %190 = vector.extract_strided_slice %1 {offsets = [0, 15], sizes = [20, 5], strides = [1, 1]} : vector<24x24xf32> to vector<20x5xf32>
    %191 = vector.extract_strided_slice %1 {offsets = [1, 15], sizes = [20, 5], strides = [1, 1]} : vector<24x24xf32> to vector<20x5xf32>
    %192 = vector.extract_strided_slice %1 {offsets = [2, 15], sizes = [20, 5], strides = [1, 1]} : vector<24x24xf32> to vector<20x5xf32>
    %193 = vector.extract_strided_slice %1 {offsets = [3, 15], sizes = [20, 5], strides = [1, 1]} : vector<24x24xf32> to vector<20x5xf32>
    %194 = vector.extract_strided_slice %1 {offsets = [4, 15], sizes = [20, 5], strides = [1, 1]} : vector<24x24xf32> to vector<20x5xf32>
    %195 = tpu.concatenate %190, %191, %192, %193, %194 in 1 : vector<20x5xf32>, vector<20x5xf32>, vector<20x5xf32>, vector<20x5xf32>, vector<20x5xf32> -> vector<20x25xf32>
    %cst_43 = arith.constant dense<0.000000e+00> : vector<20x10xf32>
    %196 = tpu.matmul %195, %2, %cst_43 {dimension_numbers = #tpu.dot_dimension_numbers<[1], [0], [0], [1], [0, 0, 1, 1], [], []>, precision = #tpu.contract_precision<fp32>} : vector<20x25xf32>, vector<25x10xf32>, vector<20x10xf32> -> vector<20x10xf32>
    %197 = arith.maximumf %189, %196 : vector<20x10xf32>
    %198 = vector.extract_strided_slice %197 {offsets = [0, 0], sizes = [19, 10], strides = [1, 1]} : vector<20x10xf32> to vector<19x10xf32>
    %199 = vector.extract_strided_slice %197 {offsets = [1, 0], sizes = [19, 10], strides = [1, 1]} : vector<20x10xf32> to vector<19x10xf32>
    %200 = arith.maximumf %198, %199 : vector<19x10xf32>
    %cst_44 = arith.constant dense<0.000000e+00> : vector<10x10xf32>
    %201 = tpu.matmul %14, %200, %cst_44 {dimension_numbers = #tpu.dot_dimension_numbers<[1], [0], [0], [1], [0, 0, 1, 1], [], []>, precision = #tpu.contract_precision<fp32>} : vector<10x19xf32>, vector<19x10xf32>, vector<10x10xf32> -> vector<10x10xf32>
    %202 = vector.broadcast %3 : vector<1x10xf32> to vector<10x10xf32>
    %203 = arith.addf %201, %202 : vector<10x10xf32>
    %cst_45 = arith.constant 0.000000e+00 : f32
    %204 = vector.broadcast %cst_45 : f32 to vector<10x10xf32>
    %205 = arith.maximumf %203, %204 : vector<10x10xf32>
    %206 = vector.extract_strided_slice %1 {offsets = [0, 16], sizes = [20, 5], strides = [1, 1]} : vector<24x24xf32> to vector<20x5xf32>
    %207 = vector.extract_strided_slice %1 {offsets = [1, 16], sizes = [20, 5], strides = [1, 1]} : vector<24x24xf32> to vector<20x5xf32>
    %208 = vector.extract_strided_slice %1 {offsets = [2, 16], sizes = [20, 5], strides = [1, 1]} : vector<24x24xf32> to vector<20x5xf32>
    %209 = vector.extract_strided_slice %1 {offsets = [3, 16], sizes = [20, 5], strides = [1, 1]} : vector<24x24xf32> to vector<20x5xf32>
    %210 = vector.extract_strided_slice %1 {offsets = [4, 16], sizes = [20, 5], strides = [1, 1]} : vector<24x24xf32> to vector<20x5xf32>
    %211 = tpu.concatenate %206, %207, %208, %209, %210 in 1 : vector<20x5xf32>, vector<20x5xf32>, vector<20x5xf32>, vector<20x5xf32>, vector<20x5xf32> -> vector<20x25xf32>
    %cst_46 = arith.constant dense<0.000000e+00> : vector<20x10xf32>
    %212 = tpu.matmul %211, %2, %cst_46 {dimension_numbers = #tpu.dot_dimension_numbers<[1], [0], [0], [1], [0, 0, 1, 1], [], []>, precision = #tpu.contract_precision<fp32>} : vector<20x25xf32>, vector<25x10xf32>, vector<20x10xf32> -> vector<20x10xf32>
    %213 = vector.extract_strided_slice %1 {offsets = [0, 17], sizes = [20, 5], strides = [1, 1]} : vector<24x24xf32> to vector<20x5xf32>
    %214 = vector.extract_strided_slice %1 {offsets = [1, 17], sizes = [20, 5], strides = [1, 1]} : vector<24x24xf32> to vector<20x5xf32>
    %215 = vector.extract_strided_slice %1 {offsets = [2, 17], sizes = [20, 5], strides = [1, 1]} : vector<24x24xf32> to vector<20x5xf32>
    %216 = vector.extract_strided_slice %1 {offsets = [3, 17], sizes = [20, 5], strides = [1, 1]} : vector<24x24xf32> to vector<20x5xf32>
    %217 = vector.extract_strided_slice %1 {offsets = [4, 17], sizes = [20, 5], strides = [1, 1]} : vector<24x24xf32> to vector<20x5xf32>
    %218 = tpu.concatenate %213, %214, %215, %216, %217 in 1 : vector<20x5xf32>, vector<20x5xf32>, vector<20x5xf32>, vector<20x5xf32>, vector<20x5xf32> -> vector<20x25xf32>
    %cst_47 = arith.constant dense<0.000000e+00> : vector<20x10xf32>
    %219 = tpu.matmul %218, %2, %cst_47 {dimension_numbers = #tpu.dot_dimension_numbers<[1], [0], [0], [1], [0, 0, 1, 1], [], []>, precision = #tpu.contract_precision<fp32>} : vector<20x25xf32>, vector<25x10xf32>, vector<20x10xf32> -> vector<20x10xf32>
    %220 = arith.maximumf %212, %219 : vector<20x10xf32>
    %221 = vector.extract_strided_slice %220 {offsets = [0, 0], sizes = [19, 10], strides = [1, 1]} : vector<20x10xf32> to vector<19x10xf32>
    %222 = vector.extract_strided_slice %220 {offsets = [1, 0], sizes = [19, 10], strides = [1, 1]} : vector<20x10xf32> to vector<19x10xf32>
    %223 = arith.maximumf %221, %222 : vector<19x10xf32>
    %cst_48 = arith.constant dense<0.000000e+00> : vector<10x10xf32>
    %224 = tpu.matmul %14, %223, %cst_48 {dimension_numbers = #tpu.dot_dimension_numbers<[1], [0], [0], [1], [0, 0, 1, 1], [], []>, precision = #tpu.contract_precision<fp32>} : vector<10x19xf32>, vector<19x10xf32>, vector<10x10xf32> -> vector<10x10xf32>
    %225 = vector.broadcast %3 : vector<1x10xf32> to vector<10x10xf32>
    %226 = arith.addf %224, %225 : vector<10x10xf32>
    %cst_49 = arith.constant 0.000000e+00 : f32
    %227 = vector.broadcast %cst_49 : f32 to vector<10x10xf32>
    %228 = arith.maximumf %226, %227 : vector<10x10xf32>
    %229 = vector.extract_strided_slice %1 {offsets = [0, 18], sizes = [20, 5], strides = [1, 1]} : vector<24x24xf32> to vector<20x5xf32>
    %230 = vector.extract_strided_slice %1 {offsets = [1, 18], sizes = [20, 5], strides = [1, 1]} : vector<24x24xf32> to vector<20x5xf32>
    %231 = vector.extract_strided_slice %1 {offsets = [2, 18], sizes = [20, 5], strides = [1, 1]} : vector<24x24xf32> to vector<20x5xf32>
    %232 = vector.extract_strided_slice %1 {offsets = [3, 18], sizes = [20, 5], strides = [1, 1]} : vector<24x24xf32> to vector<20x5xf32>
    %233 = vector.extract_strided_slice %1 {offsets = [4, 18], sizes = [20, 5], strides = [1, 1]} : vector<24x24xf32> to vector<20x5xf32>
    %234 = tpu.concatenate %229, %230, %231, %232, %233 in 1 : vector<20x5xf32>, vector<20x5xf32>, vector<20x5xf32>, vector<20x5xf32>, vector<20x5xf32> -> vector<20x25xf32>
    %cst_50 = arith.constant dense<0.000000e+00> : vector<20x10xf32>
    %235 = tpu.matmul %234, %2, %cst_50 {dimension_numbers = #tpu.dot_dimension_numbers<[1], [0], [0], [1], [0, 0, 1, 1], [], []>, precision = #tpu.contract_precision<fp32>} : vector<20x25xf32>, vector<25x10xf32>, vector<20x10xf32> -> vector<20x10xf32>
    %236 = vector.extract_strided_slice %1 {offsets = [0, 19], sizes = [20, 5], strides = [1, 1]} : vector<24x24xf32> to vector<20x5xf32>
    %237 = vector.extract_strided_slice %1 {offsets = [1, 19], sizes = [20, 5], strides = [1, 1]} : vector<24x24xf32> to vector<20x5xf32>
    %238 = vector.extract_strided_slice %1 {offsets = [2, 19], sizes = [20, 5], strides = [1, 1]} : vector<24x24xf32> to vector<20x5xf32>
    %239 = vector.extract_strided_slice %1 {offsets = [3, 19], sizes = [20, 5], strides = [1, 1]} : vector<24x24xf32> to vector<20x5xf32>
    %240 = vector.extract_strided_slice %1 {offsets = [4, 19], sizes = [20, 5], strides = [1, 1]} : vector<24x24xf32> to vector<20x5xf32>
    %241 = tpu.concatenate %236, %237, %238, %239, %240 in 1 : vector<20x5xf32>, vector<20x5xf32>, vector<20x5xf32>, vector<20x5xf32>, vector<20x5xf32> -> vector<20x25xf32>
    %cst_51 = arith.constant dense<0.000000e+00> : vector<20x10xf32>
    %242 = tpu.matmul %241, %2, %cst_51 {dimension_numbers = #tpu.dot_dimension_numbers<[1], [0], [0], [1], [0, 0, 1, 1], [], []>, precision = #tpu.contract_precision<fp32>} : vector<20x25xf32>, vector<25x10xf32>, vector<20x10xf32> -> vector<20x10xf32>
    %243 = arith.maximumf %235, %242 : vector<20x10xf32>
    %244 = vector.extract_strided_slice %243 {offsets = [0, 0], sizes = [19, 10], strides = [1, 1]} : vector<20x10xf32> to vector<19x10xf32>
    %245 = vector.extract_strided_slice %243 {offsets = [1, 0], sizes = [19, 10], strides = [1, 1]} : vector<20x10xf32> to vector<19x10xf32>
    %246 = arith.maximumf %244, %245 : vector<19x10xf32>
    %cst_52 = arith.constant dense<0.000000e+00> : vector<10x10xf32>
    %247 = tpu.matmul %14, %246, %cst_52 {dimension_numbers = #tpu.dot_dimension_numbers<[1], [0], [0], [1], [0, 0, 1, 1], [], []>, precision = #tpu.contract_precision<fp32>} : vector<10x19xf32>, vector<19x10xf32>, vector<10x10xf32> -> vector<10x10xf32>
    %248 = vector.broadcast %3 : vector<1x10xf32> to vector<10x10xf32>
    %249 = arith.addf %247, %248 : vector<10x10xf32>
    %cst_53 = arith.constant 0.000000e+00 : f32
    %250 = vector.broadcast %cst_53 : f32 to vector<10x10xf32>
    %251 = arith.maximumf %249, %250 : vector<10x10xf32>
    %252 = vector.extract_strided_slice %44 {offsets = [0, 0], sizes = [6, 10], strides = [1, 1]} : vector<10x10xf32> to vector<6x10xf32>
    %253 = vector.extract_strided_slice %44 {offsets = [1, 0], sizes = [6, 10], strides = [1, 1]} : vector<10x10xf32> to vector<6x10xf32>
    %254 = vector.extract_strided_slice %44 {offsets = [2, 0], sizes = [6, 10], strides = [1, 1]} : vector<10x10xf32> to vector<6x10xf32>
    %255 = vector.extract_strided_slice %44 {offsets = [3, 0], sizes = [6, 10], strides = [1, 1]} : vector<10x10xf32> to vector<6x10xf32>
    %256 = vector.extract_strided_slice %44 {offsets = [4, 0], sizes = [6, 10], strides = [1, 1]} : vector<10x10xf32> to vector<6x10xf32>
    %257 = tpu.concatenate %252, %253, %254, %255, %256 in 1 : vector<6x10xf32>, vector<6x10xf32>, vector<6x10xf32>, vector<6x10xf32>, vector<6x10xf32> -> vector<6x50xf32>
    %258 = vector.extract_strided_slice %67 {offsets = [0, 0], sizes = [6, 10], strides = [1, 1]} : vector<10x10xf32> to vector<6x10xf32>
    %259 = vector.extract_strided_slice %67 {offsets = [1, 0], sizes = [6, 10], strides = [1, 1]} : vector<10x10xf32> to vector<6x10xf32>
    %260 = vector.extract_strided_slice %67 {offsets = [2, 0], sizes = [6, 10], strides = [1, 1]} : vector<10x10xf32> to vector<6x10xf32>
    %261 = vector.extract_strided_slice %67 {offsets = [3, 0], sizes = [6, 10], strides = [1, 1]} : vector<10x10xf32> to vector<6x10xf32>
    %262 = vector.extract_strided_slice %67 {offsets = [4, 0], sizes = [6, 10], strides = [1, 1]} : vector<10x10xf32> to vector<6x10xf32>
    %263 = tpu.concatenate %258, %259, %260, %261, %262 in 1 : vector<6x10xf32>, vector<6x10xf32>, vector<6x10xf32>, vector<6x10xf32>, vector<6x10xf32> -> vector<6x50xf32>
    %264 = vector.extract_strided_slice %90 {offsets = [0, 0], sizes = [6, 10], strides = [1, 1]} : vector<10x10xf32> to vector<6x10xf32>
    %265 = vector.extract_strided_slice %90 {offsets = [1, 0], sizes = [6, 10], strides = [1, 1]} : vector<10x10xf32> to vector<6x10xf32>
    %266 = vector.extract_strided_slice %90 {offsets = [2, 0], sizes = [6, 10], strides = [1, 1]} : vector<10x10xf32> to vector<6x10xf32>
    %267 = vector.extract_strided_slice %90 {offsets = [3, 0], sizes = [6, 10], strides = [1, 1]} : vector<10x10xf32> to vector<6x10xf32>
    %268 = vector.extract_strided_slice %90 {offsets = [4, 0], sizes = [6, 10], strides = [1, 1]} : vector<10x10xf32> to vector<6x10xf32>
    %269 = tpu.concatenate %264, %265, %266, %267, %268 in 1 : vector<6x10xf32>, vector<6x10xf32>, vector<6x10xf32>, vector<6x10xf32>, vector<6x10xf32> -> vector<6x50xf32>
    %270 = vector.extract_strided_slice %113 {offsets = [0, 0], sizes = [6, 10], strides = [1, 1]} : vector<10x10xf32> to vector<6x10xf32>
    %271 = vector.extract_strided_slice %113 {offsets = [1, 0], sizes = [6, 10], strides = [1, 1]} : vector<10x10xf32> to vector<6x10xf32>
    %272 = vector.extract_strided_slice %113 {offsets = [2, 0], sizes = [6, 10], strides = [1, 1]} : vector<10x10xf32> to vector<6x10xf32>
    %273 = vector.extract_strided_slice %113 {offsets = [3, 0], sizes = [6, 10], strides = [1, 1]} : vector<10x10xf32> to vector<6x10xf32>
    %274 = vector.extract_strided_slice %113 {offsets = [4, 0], sizes = [6, 10], strides = [1, 1]} : vector<10x10xf32> to vector<6x10xf32>
    %275 = tpu.concatenate %270, %271, %272, %273, %274 in 1 : vector<6x10xf32>, vector<6x10xf32>, vector<6x10xf32>, vector<6x10xf32>, vector<6x10xf32> -> vector<6x50xf32>
    %276 = vector.extract_strided_slice %136 {offsets = [0, 0], sizes = [6, 10], strides = [1, 1]} : vector<10x10xf32> to vector<6x10xf32>
    %277 = vector.extract_strided_slice %136 {offsets = [1, 0], sizes = [6, 10], strides = [1, 1]} : vector<10x10xf32> to vector<6x10xf32>
    %278 = vector.extract_strided_slice %136 {offsets = [2, 0], sizes = [6, 10], strides = [1, 1]} : vector<10x10xf32> to vector<6x10xf32>
    %279 = vector.extract_strided_slice %136 {offsets = [3, 0], sizes = [6, 10], strides = [1, 1]} : vector<10x10xf32> to vector<6x10xf32>
    %280 = vector.extract_strided_slice %136 {offsets = [4, 0], sizes = [6, 10], strides = [1, 1]} : vector<10x10xf32> to vector<6x10xf32>
    %281 = tpu.concatenate %276, %277, %278, %279, %280 in 1 : vector<6x10xf32>, vector<6x10xf32>, vector<6x10xf32>, vector<6x10xf32>, vector<6x10xf32> -> vector<6x50xf32>
    %282 = tpu.concatenate %257, %263, %269, %275, %281 in 1 : vector<6x50xf32>, vector<6x50xf32>, vector<6x50xf32>, vector<6x50xf32>, vector<6x50xf32> -> vector<6x250xf32>
    %cst_54 = arith.constant dense<0.000000e+00> : vector<6x20xf32>
    %283 = tpu.matmul %282, %4, %cst_54 {dimension_numbers = #tpu.dot_dimension_numbers<[1], [0], [0], [1], [0, 0, 1, 1], [], []>, precision = #tpu.contract_precision<fp32>} : vector<6x250xf32>, vector<250x20xf32>, vector<6x20xf32> -> vector<6x20xf32>
    %284 = vector.extract_strided_slice %67 {offsets = [0, 0], sizes = [6, 10], strides = [1, 1]} : vector<10x10xf32> to vector<6x10xf32>
    %285 = vector.extract_strided_slice %67 {offsets = [1, 0], sizes = [6, 10], strides = [1, 1]} : vector<10x10xf32> to vector<6x10xf32>
    %286 = vector.extract_strided_slice %67 {offsets = [2, 0], sizes = [6, 10], strides = [1, 1]} : vector<10x10xf32> to vector<6x10xf32>
    %287 = vector.extract_strided_slice %67 {offsets = [3, 0], sizes = [6, 10], strides = [1, 1]} : vector<10x10xf32> to vector<6x10xf32>
    %288 = vector.extract_strided_slice %67 {offsets = [4, 0], sizes = [6, 10], strides = [1, 1]} : vector<10x10xf32> to vector<6x10xf32>
    %289 = tpu.concatenate %284, %285, %286, %287, %288 in 1 : vector<6x10xf32>, vector<6x10xf32>, vector<6x10xf32>, vector<6x10xf32>, vector<6x10xf32> -> vector<6x50xf32>
    %290 = vector.extract_strided_slice %90 {offsets = [0, 0], sizes = [6, 10], strides = [1, 1]} : vector<10x10xf32> to vector<6x10xf32>
    %291 = vector.extract_strided_slice %90 {offsets = [1, 0], sizes = [6, 10], strides = [1, 1]} : vector<10x10xf32> to vector<6x10xf32>
    %292 = vector.extract_strided_slice %90 {offsets = [2, 0], sizes = [6, 10], strides = [1, 1]} : vector<10x10xf32> to vector<6x10xf32>
    %293 = vector.extract_strided_slice %90 {offsets = [3, 0], sizes = [6, 10], strides = [1, 1]} : vector<10x10xf32> to vector<6x10xf32>
    %294 = vector.extract_strided_slice %90 {offsets = [4, 0], sizes = [6, 10], strides = [1, 1]} : vector<10x10xf32> to vector<6x10xf32>
    %295 = tpu.concatenate %290, %291, %292, %293, %294 in 1 : vector<6x10xf32>, vector<6x10xf32>, vector<6x10xf32>, vector<6x10xf32>, vector<6x10xf32> -> vector<6x50xf32>
    %296 = vector.extract_strided_slice %113 {offsets = [0, 0], sizes = [6, 10], strides = [1, 1]} : vector<10x10xf32> to vector<6x10xf32>
    %297 = vector.extract_strided_slice %113 {offsets = [1, 0], sizes = [6, 10], strides = [1, 1]} : vector<10x10xf32> to vector<6x10xf32>
    %298 = vector.extract_strided_slice %113 {offsets = [2, 0], sizes = [6, 10], strides = [1, 1]} : vector<10x10xf32> to vector<6x10xf32>
    %299 = vector.extract_strided_slice %113 {offsets = [3, 0], sizes = [6, 10], strides = [1, 1]} : vector<10x10xf32> to vector<6x10xf32>
    %300 = vector.extract_strided_slice %113 {offsets = [4, 0], sizes = [6, 10], strides = [1, 1]} : vector<10x10xf32> to vector<6x10xf32>
    %301 = tpu.concatenate %296, %297, %298, %299, %300 in 1 : vector<6x10xf32>, vector<6x10xf32>, vector<6x10xf32>, vector<6x10xf32>, vector<6x10xf32> -> vector<6x50xf32>
    %302 = vector.extract_strided_slice %136 {offsets = [0, 0], sizes = [6, 10], strides = [1, 1]} : vector<10x10xf32> to vector<6x10xf32>
    %303 = vector.extract_strided_slice %136 {offsets = [1, 0], sizes = [6, 10], strides = [1, 1]} : vector<10x10xf32> to vector<6x10xf32>
    %304 = vector.extract_strided_slice %136 {offsets = [2, 0], sizes = [6, 10], strides = [1, 1]} : vector<10x10xf32> to vector<6x10xf32>
    %305 = vector.extract_strided_slice %136 {offsets = [3, 0], sizes = [6, 10], strides = [1, 1]} : vector<10x10xf32> to vector<6x10xf32>
    %306 = vector.extract_strided_slice %136 {offsets = [4, 0], sizes = [6, 10], strides = [1, 1]} : vector<10x10xf32> to vector<6x10xf32>
    %307 = tpu.concatenate %302, %303, %304, %305, %306 in 1 : vector<6x10xf32>, vector<6x10xf32>, vector<6x10xf32>, vector<6x10xf32>, vector<6x10xf32> -> vector<6x50xf32>
    %308 = vector.extract_strided_slice %159 {offsets = [0, 0], sizes = [6, 10], strides = [1, 1]} : vector<10x10xf32> to vector<6x10xf32>
    %309 = vector.extract_strided_slice %159 {offsets = [1, 0], sizes = [6, 10], strides = [1, 1]} : vector<10x10xf32> to vector<6x10xf32>
    %310 = vector.extract_strided_slice %159 {offsets = [2, 0], sizes = [6, 10], strides = [1, 1]} : vector<10x10xf32> to vector<6x10xf32>
    %311 = vector.extract_strided_slice %159 {offsets = [3, 0], sizes = [6, 10], strides = [1, 1]} : vector<10x10xf32> to vector<6x10xf32>
    %312 = vector.extract_strided_slice %159 {offsets = [4, 0], sizes = [6, 10], strides = [1, 1]} : vector<10x10xf32> to vector<6x10xf32>
    %313 = tpu.concatenate %308, %309, %310, %311, %312 in 1 : vector<6x10xf32>, vector<6x10xf32>, vector<6x10xf32>, vector<6x10xf32>, vector<6x10xf32> -> vector<6x50xf32>
    %314 = tpu.concatenate %289, %295, %301, %307, %313 in 1 : vector<6x50xf32>, vector<6x50xf32>, vector<6x50xf32>, vector<6x50xf32>, vector<6x50xf32> -> vector<6x250xf32>
    %cst_55 = arith.constant dense<0.000000e+00> : vector<6x20xf32>
    %315 = tpu.matmul %314, %4, %cst_55 {dimension_numbers = #tpu.dot_dimension_numbers<[1], [0], [0], [1], [0, 0, 1, 1], [], []>, precision = #tpu.contract_precision<fp32>} : vector<6x250xf32>, vector<250x20xf32>, vector<6x20xf32> -> vector<6x20xf32>
    %316 = arith.maximumf %283, %315 : vector<6x20xf32>
    %317 = vector.extract_strided_slice %316 {offsets = [0, 0], sizes = [5, 20], strides = [1, 1]} : vector<6x20xf32> to vector<5x20xf32>
    %318 = vector.extract_strided_slice %316 {offsets = [1, 0], sizes = [5, 20], strides = [1, 1]} : vector<6x20xf32> to vector<5x20xf32>
    %319 = arith.maximumf %317, %318 : vector<5x20xf32>
    %cst_56 = arith.constant dense<0.000000e+00> : vector<3x20xf32>
    %320 = tpu.matmul %21, %319, %cst_56 {dimension_numbers = #tpu.dot_dimension_numbers<[1], [0], [0], [1], [0, 0, 1, 1], [], []>, precision = #tpu.contract_precision<fp32>} : vector<3x5xf32>, vector<5x20xf32>, vector<3x20xf32> -> vector<3x20xf32>
    %321 = vector.broadcast %5 : vector<1x20xf32> to vector<3x20xf32>
    %322 = arith.addf %320, %321 : vector<3x20xf32>
    %cst_57 = arith.constant 0.000000e+00 : f32
    %323 = vector.broadcast %cst_57 : f32 to vector<3x20xf32>
    %324 = arith.maximumf %322, %323 : vector<3x20xf32>
    %325 = vector.extract_strided_slice %90 {offsets = [0, 0], sizes = [6, 10], strides = [1, 1]} : vector<10x10xf32> to vector<6x10xf32>
    %326 = vector.extract_strided_slice %90 {offsets = [1, 0], sizes = [6, 10], strides = [1, 1]} : vector<10x10xf32> to vector<6x10xf32>
    %327 = vector.extract_strided_slice %90 {offsets = [2, 0], sizes = [6, 10], strides = [1, 1]} : vector<10x10xf32> to vector<6x10xf32>
    %328 = vector.extract_strided_slice %90 {offsets = [3, 0], sizes = [6, 10], strides = [1, 1]} : vector<10x10xf32> to vector<6x10xf32>
    %329 = vector.extract_strided_slice %90 {offsets = [4, 0], sizes = [6, 10], strides = [1, 1]} : vector<10x10xf32> to vector<6x10xf32>
    %330 = tpu.concatenate %325, %326, %327, %328, %329 in 1 : vector<6x10xf32>, vector<6x10xf32>, vector<6x10xf32>, vector<6x10xf32>, vector<6x10xf32> -> vector<6x50xf32>
    %331 = vector.extract_strided_slice %113 {offsets = [0, 0], sizes = [6, 10], strides = [1, 1]} : vector<10x10xf32> to vector<6x10xf32>
    %332 = vector.extract_strided_slice %113 {offsets = [1, 0], sizes = [6, 10], strides = [1, 1]} : vector<10x10xf32> to vector<6x10xf32>
    %333 = vector.extract_strided_slice %113 {offsets = [2, 0], sizes = [6, 10], strides = [1, 1]} : vector<10x10xf32> to vector<6x10xf32>
    %334 = vector.extract_strided_slice %113 {offsets = [3, 0], sizes = [6, 10], strides = [1, 1]} : vector<10x10xf32> to vector<6x10xf32>
    %335 = vector.extract_strided_slice %113 {offsets = [4, 0], sizes = [6, 10], strides = [1, 1]} : vector<10x10xf32> to vector<6x10xf32>
    %336 = tpu.concatenate %331, %332, %333, %334, %335 in 1 : vector<6x10xf32>, vector<6x10xf32>, vector<6x10xf32>, vector<6x10xf32>, vector<6x10xf32> -> vector<6x50xf32>
    %337 = vector.extract_strided_slice %136 {offsets = [0, 0], sizes = [6, 10], strides = [1, 1]} : vector<10x10xf32> to vector<6x10xf32>
    %338 = vector.extract_strided_slice %136 {offsets = [1, 0], sizes = [6, 10], strides = [1, 1]} : vector<10x10xf32> to vector<6x10xf32>
    %339 = vector.extract_strided_slice %136 {offsets = [2, 0], sizes = [6, 10], strides = [1, 1]} : vector<10x10xf32> to vector<6x10xf32>
    %340 = vector.extract_strided_slice %136 {offsets = [3, 0], sizes = [6, 10], strides = [1, 1]} : vector<10x10xf32> to vector<6x10xf32>
    %341 = vector.extract_strided_slice %136 {offsets = [4, 0], sizes = [6, 10], strides = [1, 1]} : vector<10x10xf32> to vector<6x10xf32>
    %342 = tpu.concatenate %337, %338, %339, %340, %341 in 1 : vector<6x10xf32>, vector<6x10xf32>, vector<6x10xf32>, vector<6x10xf32>, vector<6x10xf32> -> vector<6x50xf32>
    %343 = vector.extract_strided_slice %159 {offsets = [0, 0], sizes = [6, 10], strides = [1, 1]} : vector<10x10xf32> to vector<6x10xf32>
    %344 = vector.extract_strided_slice %159 {offsets = [1, 0], sizes = [6, 10], strides = [1, 1]} : vector<10x10xf32> to vector<6x10xf32>
    %345 = vector.extract_strided_slice %159 {offsets = [2, 0], sizes = [6, 10], strides = [1, 1]} : vector<10x10xf32> to vector<6x10xf32>
    %346 = vector.extract_strided_slice %159 {offsets = [3, 0], sizes = [6, 10], strides = [1, 1]} : vector<10x10xf32> to vector<6x10xf32>
    %347 = vector.extract_strided_slice %159 {offsets = [4, 0], sizes = [6, 10], strides = [1, 1]} : vector<10x10xf32> to vector<6x10xf32>
    %348 = tpu.concatenate %343, %344, %345, %346, %347 in 1 : vector<6x10xf32>, vector<6x10xf32>, vector<6x10xf32>, vector<6x10xf32>, vector<6x10xf32> -> vector<6x50xf32>
    %349 = vector.extract_strided_slice %182 {offsets = [0, 0], sizes = [6, 10], strides = [1, 1]} : vector<10x10xf32> to vector<6x10xf32>
    %350 = vector.extract_strided_slice %182 {offsets = [1, 0], sizes = [6, 10], strides = [1, 1]} : vector<10x10xf32> to vector<6x10xf32>
    %351 = vector.extract_strided_slice %182 {offsets = [2, 0], sizes = [6, 10], strides = [1, 1]} : vector<10x10xf32> to vector<6x10xf32>
    %352 = vector.extract_strided_slice %182 {offsets = [3, 0], sizes = [6, 10], strides = [1, 1]} : vector<10x10xf32> to vector<6x10xf32>
    %353 = vector.extract_strided_slice %182 {offsets = [4, 0], sizes = [6, 10], strides = [1, 1]} : vector<10x10xf32> to vector<6x10xf32>
    %354 = tpu.concatenate %349, %350, %351, %352, %353 in 1 : vector<6x10xf32>, vector<6x10xf32>, vector<6x10xf32>, vector<6x10xf32>, vector<6x10xf32> -> vector<6x50xf32>
    %355 = tpu.concatenate %330, %336, %342, %348, %354 in 1 : vector<6x50xf32>, vector<6x50xf32>, vector<6x50xf32>, vector<6x50xf32>, vector<6x50xf32> -> vector<6x250xf32>
    %cst_58 = arith.constant dense<0.000000e+00> : vector<6x20xf32>
    %356 = tpu.matmul %355, %4, %cst_58 {dimension_numbers = #tpu.dot_dimension_numbers<[1], [0], [0], [1], [0, 0, 1, 1], [], []>, precision = #tpu.contract_precision<fp32>} : vector<6x250xf32>, vector<250x20xf32>, vector<6x20xf32> -> vector<6x20xf32>
    %357 = vector.extract_strided_slice %113 {offsets = [0, 0], sizes = [6, 10], strides = [1, 1]} : vector<10x10xf32> to vector<6x10xf32>
    %358 = vector.extract_strided_slice %113 {offsets = [1, 0], sizes = [6, 10], strides = [1, 1]} : vector<10x10xf32> to vector<6x10xf32>
    %359 = vector.extract_strided_slice %113 {offsets = [2, 0], sizes = [6, 10], strides = [1, 1]} : vector<10x10xf32> to vector<6x10xf32>
    %360 = vector.extract_strided_slice %113 {offsets = [3, 0], sizes = [6, 10], strides = [1, 1]} : vector<10x10xf32> to vector<6x10xf32>
    %361 = vector.extract_strided_slice %113 {offsets = [4, 0], sizes = [6, 10], strides = [1, 1]} : vector<10x10xf32> to vector<6x10xf32>
    %362 = tpu.concatenate %357, %358, %359, %360, %361 in 1 : vector<6x10xf32>, vector<6x10xf32>, vector<6x10xf32>, vector<6x10xf32>, vector<6x10xf32> -> vector<6x50xf32>
    %363 = vector.extract_strided_slice %136 {offsets = [0, 0], sizes = [6, 10], strides = [1, 1]} : vector<10x10xf32> to vector<6x10xf32>
    %364 = vector.extract_strided_slice %136 {offsets = [1, 0], sizes = [6, 10], strides = [1, 1]} : vector<10x10xf32> to vector<6x10xf32>
    %365 = vector.extract_strided_slice %136 {offsets = [2, 0], sizes = [6, 10], strides = [1, 1]} : vector<10x10xf32> to vector<6x10xf32>
    %366 = vector.extract_strided_slice %136 {offsets = [3, 0], sizes = [6, 10], strides = [1, 1]} : vector<10x10xf32> to vector<6x10xf32>
    %367 = vector.extract_strided_slice %136 {offsets = [4, 0], sizes = [6, 10], strides = [1, 1]} : vector<10x10xf32> to vector<6x10xf32>
    %368 = tpu.concatenate %363, %364, %365, %366, %367 in 1 : vector<6x10xf32>, vector<6x10xf32>, vector<6x10xf32>, vector<6x10xf32>, vector<6x10xf32> -> vector<6x50xf32>
    %369 = vector.extract_strided_slice %159 {offsets = [0, 0], sizes = [6, 10], strides = [1, 1]} : vector<10x10xf32> to vector<6x10xf32>
    %370 = vector.extract_strided_slice %159 {offsets = [1, 0], sizes = [6, 10], strides = [1, 1]} : vector<10x10xf32> to vector<6x10xf32>
    %371 = vector.extract_strided_slice %159 {offsets = [2, 0], sizes = [6, 10], strides = [1, 1]} : vector<10x10xf32> to vector<6x10xf32>
    %372 = vector.extract_strided_slice %159 {offsets = [3, 0], sizes = [6, 10], strides = [1, 1]} : vector<10x10xf32> to vector<6x10xf32>
    %373 = vector.extract_strided_slice %159 {offsets = [4, 0], sizes = [6, 10], strides = [1, 1]} : vector<10x10xf32> to vector<6x10xf32>
    %374 = tpu.concatenate %369, %370, %371, %372, %373 in 1 : vector<6x10xf32>, vector<6x10xf32>, vector<6x10xf32>, vector<6x10xf32>, vector<6x10xf32> -> vector<6x50xf32>
    %375 = vector.extract_strided_slice %182 {offsets = [0, 0], sizes = [6, 10], strides = [1, 1]} : vector<10x10xf32> to vector<6x10xf32>
    %376 = vector.extract_strided_slice %182 {offsets = [1, 0], sizes = [6, 10], strides = [1, 1]} : vector<10x10xf32> to vector<6x10xf32>
    %377 = vector.extract_strided_slice %182 {offsets = [2, 0], sizes = [6, 10], strides = [1, 1]} : vector<10x10xf32> to vector<6x10xf32>
    %378 = vector.extract_strided_slice %182 {offsets = [3, 0], sizes = [6, 10], strides = [1, 1]} : vector<10x10xf32> to vector<6x10xf32>
    %379 = vector.extract_strided_slice %182 {offsets = [4, 0], sizes = [6, 10], strides = [1, 1]} : vector<10x10xf32> to vector<6x10xf32>
    %380 = tpu.concatenate %375, %376, %377, %378, %379 in 1 : vector<6x10xf32>, vector<6x10xf32>, vector<6x10xf32>, vector<6x10xf32>, vector<6x10xf32> -> vector<6x50xf32>
    %381 = vector.extract_strided_slice %205 {offsets = [0, 0], sizes = [6, 10], strides = [1, 1]} : vector<10x10xf32> to vector<6x10xf32>
    %382 = vector.extract_strided_slice %205 {offsets = [1, 0], sizes = [6, 10], strides = [1, 1]} : vector<10x10xf32> to vector<6x10xf32>
    %383 = vector.extract_strided_slice %205 {offsets = [2, 0], sizes = [6, 10], strides = [1, 1]} : vector<10x10xf32> to vector<6x10xf32>
    %384 = vector.extract_strided_slice %205 {offsets = [3, 0], sizes = [6, 10], strides = [1, 1]} : vector<10x10xf32> to vector<6x10xf32>
    %385 = vector.extract_strided_slice %205 {offsets = [4, 0], sizes = [6, 10], strides = [1, 1]} : vector<10x10xf32> to vector<6x10xf32>
    %386 = tpu.concatenate %381, %382, %383, %384, %385 in 1 : vector<6x10xf32>, vector<6x10xf32>, vector<6x10xf32>, vector<6x10xf32>, vector<6x10xf32> -> vector<6x50xf32>
    %387 = tpu.concatenate %362, %368, %374, %380, %386 in 1 : vector<6x50xf32>, vector<6x50xf32>, vector<6x50xf32>, vector<6x50xf32>, vector<6x50xf32> -> vector<6x250xf32>
    %cst_59 = arith.constant dense<0.000000e+00> : vector<6x20xf32>
    %388 = tpu.matmul %387, %4, %cst_59 {dimension_numbers = #tpu.dot_dimension_numbers<[1], [0], [0], [1], [0, 0, 1, 1], [], []>, precision = #tpu.contract_precision<fp32>} : vector<6x250xf32>, vector<250x20xf32>, vector<6x20xf32> -> vector<6x20xf32>
    %389 = arith.maximumf %356, %388 : vector<6x20xf32>
    %390 = vector.extract_strided_slice %389 {offsets = [0, 0], sizes = [5, 20], strides = [1, 1]} : vector<6x20xf32> to vector<5x20xf32>
    %391 = vector.extract_strided_slice %389 {offsets = [1, 0], sizes = [5, 20], strides = [1, 1]} : vector<6x20xf32> to vector<5x20xf32>
    %392 = arith.maximumf %390, %391 : vector<5x20xf32>
    %cst_60 = arith.constant dense<0.000000e+00> : vector<3x20xf32>
    %393 = tpu.matmul %21, %392, %cst_60 {dimension_numbers = #tpu.dot_dimension_numbers<[1], [0], [0], [1], [0, 0, 1, 1], [], []>, precision = #tpu.contract_precision<fp32>} : vector<3x5xf32>, vector<5x20xf32>, vector<3x20xf32> -> vector<3x20xf32>
    %394 = vector.broadcast %5 : vector<1x20xf32> to vector<3x20xf32>
    %395 = arith.addf %393, %394 : vector<3x20xf32>
    %cst_61 = arith.constant 0.000000e+00 : f32
    %396 = vector.broadcast %cst_61 : f32 to vector<3x20xf32>
    %397 = arith.maximumf %395, %396 : vector<3x20xf32>
    %398 = vector.extract_strided_slice %136 {offsets = [0, 0], sizes = [6, 10], strides = [1, 1]} : vector<10x10xf32> to vector<6x10xf32>
    %399 = vector.extract_strided_slice %136 {offsets = [1, 0], sizes = [6, 10], strides = [1, 1]} : vector<10x10xf32> to vector<6x10xf32>
    %400 = vector.extract_strided_slice %136 {offsets = [2, 0], sizes = [6, 10], strides = [1, 1]} : vector<10x10xf32> to vector<6x10xf32>
    %401 = vector.extract_strided_slice %136 {offsets = [3, 0], sizes = [6, 10], strides = [1, 1]} : vector<10x10xf32> to vector<6x10xf32>
    %402 = vector.extract_strided_slice %136 {offsets = [4, 0], sizes = [6, 10], strides = [1, 1]} : vector<10x10xf32> to vector<6x10xf32>
    %403 = tpu.concatenate %398, %399, %400, %401, %402 in 1 : vector<6x10xf32>, vector<6x10xf32>, vector<6x10xf32>, vector<6x10xf32>, vector<6x10xf32> -> vector<6x50xf32>
    %404 = vector.extract_strided_slice %159 {offsets = [0, 0], sizes = [6, 10], strides = [1, 1]} : vector<10x10xf32> to vector<6x10xf32>
    %405 = vector.extract_strided_slice %159 {offsets = [1, 0], sizes = [6, 10], strides = [1, 1]} : vector<10x10xf32> to vector<6x10xf32>
    %406 = vector.extract_strided_slice %159 {offsets = [2, 0], sizes = [6, 10], strides = [1, 1]} : vector<10x10xf32> to vector<6x10xf32>
    %407 = vector.extract_strided_slice %159 {offsets = [3, 0], sizes = [6, 10], strides = [1, 1]} : vector<10x10xf32> to vector<6x10xf32>
    %408 = vector.extract_strided_slice %159 {offsets = [4, 0], sizes = [6, 10], strides = [1, 1]} : vector<10x10xf32> to vector<6x10xf32>
    %409 = tpu.concatenate %404, %405, %406, %407, %408 in 1 : vector<6x10xf32>, vector<6x10xf32>, vector<6x10xf32>, vector<6x10xf32>, vector<6x10xf32> -> vector<6x50xf32>
    %410 = vector.extract_strided_slice %182 {offsets = [0, 0], sizes = [6, 10], strides = [1, 1]} : vector<10x10xf32> to vector<6x10xf32>
    %411 = vector.extract_strided_slice %182 {offsets = [1, 0], sizes = [6, 10], strides = [1, 1]} : vector<10x10xf32> to vector<6x10xf32>
    %412 = vector.extract_strided_slice %182 {offsets = [2, 0], sizes = [6, 10], strides = [1, 1]} : vector<10x10xf32> to vector<6x10xf32>
    %413 = vector.extract_strided_slice %182 {offsets = [3, 0], sizes = [6, 10], strides = [1, 1]} : vector<10x10xf32> to vector<6x10xf32>
    %414 = vector.extract_strided_slice %182 {offsets = [4, 0], sizes = [6, 10], strides = [1, 1]} : vector<10x10xf32> to vector<6x10xf32>
    %415 = tpu.concatenate %410, %411, %412, %413, %414 in 1 : vector<6x10xf32>, vector<6x10xf32>, vector<6x10xf32>, vector<6x10xf32>, vector<6x10xf32> -> vector<6x50xf32>
    %416 = vector.extract_strided_slice %205 {offsets = [0, 0], sizes = [6, 10], strides = [1, 1]} : vector<10x10xf32> to vector<6x10xf32>
    %417 = vector.extract_strided_slice %205 {offsets = [1, 0], sizes = [6, 10], strides = [1, 1]} : vector<10x10xf32> to vector<6x10xf32>
    %418 = vector.extract_strided_slice %205 {offsets = [2, 0], sizes = [6, 10], strides = [1, 1]} : vector<10x10xf32> to vector<6x10xf32>
    %419 = vector.extract_strided_slice %205 {offsets = [3, 0], sizes = [6, 10], strides = [1, 1]} : vector<10x10xf32> to vector<6x10xf32>
    %420 = vector.extract_strided_slice %205 {offsets = [4, 0], sizes = [6, 10], strides = [1, 1]} : vector<10x10xf32> to vector<6x10xf32>
    %421 = tpu.concatenate %416, %417, %418, %419, %420 in 1 : vector<6x10xf32>, vector<6x10xf32>, vector<6x10xf32>, vector<6x10xf32>, vector<6x10xf32> -> vector<6x50xf32>
    %422 = vector.extract_strided_slice %228 {offsets = [0, 0], sizes = [6, 10], strides = [1, 1]} : vector<10x10xf32> to vector<6x10xf32>
    %423 = vector.extract_strided_slice %228 {offsets = [1, 0], sizes = [6, 10], strides = [1, 1]} : vector<10x10xf32> to vector<6x10xf32>
    %424 = vector.extract_strided_slice %228 {offsets = [2, 0], sizes = [6, 10], strides = [1, 1]} : vector<10x10xf32> to vector<6x10xf32>
    %425 = vector.extract_strided_slice %228 {offsets = [3, 0], sizes = [6, 10], strides = [1, 1]} : vector<10x10xf32> to vector<6x10xf32>
    %426 = vector.extract_strided_slice %228 {offsets = [4, 0], sizes = [6, 10], strides = [1, 1]} : vector<10x10xf32> to vector<6x10xf32>
    %427 = tpu.concatenate %422, %423, %424, %425, %426 in 1 : vector<6x10xf32>, vector<6x10xf32>, vector<6x10xf32>, vector<6x10xf32>, vector<6x10xf32> -> vector<6x50xf32>
    %428 = tpu.concatenate %403, %409, %415, %421, %427 in 1 : vector<6x50xf32>, vector<6x50xf32>, vector<6x50xf32>, vector<6x50xf32>, vector<6x50xf32> -> vector<6x250xf32>
    %cst_62 = arith.constant dense<0.000000e+00> : vector<6x20xf32>
    %429 = tpu.matmul %428, %4, %cst_62 {dimension_numbers = #tpu.dot_dimension_numbers<[1], [0], [0], [1], [0, 0, 1, 1], [], []>, precision = #tpu.contract_precision<fp32>} : vector<6x250xf32>, vector<250x20xf32>, vector<6x20xf32> -> vector<6x20xf32>
    %430 = vector.extract_strided_slice %159 {offsets = [0, 0], sizes = [6, 10], strides = [1, 1]} : vector<10x10xf32> to vector<6x10xf32>
    %431 = vector.extract_strided_slice %159 {offsets = [1, 0], sizes = [6, 10], strides = [1, 1]} : vector<10x10xf32> to vector<6x10xf32>
    %432 = vector.extract_strided_slice %159 {offsets = [2, 0], sizes = [6, 10], strides = [1, 1]} : vector<10x10xf32> to vector<6x10xf32>
    %433 = vector.extract_strided_slice %159 {offsets = [3, 0], sizes = [6, 10], strides = [1, 1]} : vector<10x10xf32> to vector<6x10xf32>
    %434 = vector.extract_strided_slice %159 {offsets = [4, 0], sizes = [6, 10], strides = [1, 1]} : vector<10x10xf32> to vector<6x10xf32>
    %435 = tpu.concatenate %430, %431, %432, %433, %434 in 1 : vector<6x10xf32>, vector<6x10xf32>, vector<6x10xf32>, vector<6x10xf32>, vector<6x10xf32> -> vector<6x50xf32>
    %436 = vector.extract_strided_slice %182 {offsets = [0, 0], sizes = [6, 10], strides = [1, 1]} : vector<10x10xf32> to vector<6x10xf32>
    %437 = vector.extract_strided_slice %182 {offsets = [1, 0], sizes = [6, 10], strides = [1, 1]} : vector<10x10xf32> to vector<6x10xf32>
    %438 = vector.extract_strided_slice %182 {offsets = [2, 0], sizes = [6, 10], strides = [1, 1]} : vector<10x10xf32> to vector<6x10xf32>
    %439 = vector.extract_strided_slice %182 {offsets = [3, 0], sizes = [6, 10], strides = [1, 1]} : vector<10x10xf32> to vector<6x10xf32>
    %440 = vector.extract_strided_slice %182 {offsets = [4, 0], sizes = [6, 10], strides = [1, 1]} : vector<10x10xf32> to vector<6x10xf32>
    %441 = tpu.concatenate %436, %437, %438, %439, %440 in 1 : vector<6x10xf32>, vector<6x10xf32>, vector<6x10xf32>, vector<6x10xf32>, vector<6x10xf32> -> vector<6x50xf32>
    %442 = vector.extract_strided_slice %205 {offsets = [0, 0], sizes = [6, 10], strides = [1, 1]} : vector<10x10xf32> to vector<6x10xf32>
    %443 = vector.extract_strided_slice %205 {offsets = [1, 0], sizes = [6, 10], strides = [1, 1]} : vector<10x10xf32> to vector<6x10xf32>
    %444 = vector.extract_strided_slice %205 {offsets = [2, 0], sizes = [6, 10], strides = [1, 1]} : vector<10x10xf32> to vector<6x10xf32>
    %445 = vector.extract_strided_slice %205 {offsets = [3, 0], sizes = [6, 10], strides = [1, 1]} : vector<10x10xf32> to vector<6x10xf32>
    %446 = vector.extract_strided_slice %205 {offsets = [4, 0], sizes = [6, 10], strides = [1, 1]} : vector<10x10xf32> to vector<6x10xf32>
    %447 = tpu.concatenate %442, %443, %444, %445, %446 in 1 : vector<6x10xf32>, vector<6x10xf32>, vector<6x10xf32>, vector<6x10xf32>, vector<6x10xf32> -> vector<6x50xf32>
    %448 = vector.extract_strided_slice %228 {offsets = [0, 0], sizes = [6, 10], strides = [1, 1]} : vector<10x10xf32> to vector<6x10xf32>
    %449 = vector.extract_strided_slice %228 {offsets = [1, 0], sizes = [6, 10], strides = [1, 1]} : vector<10x10xf32> to vector<6x10xf32>
    %450 = vector.extract_strided_slice %228 {offsets = [2, 0], sizes = [6, 10], strides = [1, 1]} : vector<10x10xf32> to vector<6x10xf32>
    %451 = vector.extract_strided_slice %228 {offsets = [3, 0], sizes = [6, 10], strides = [1, 1]} : vector<10x10xf32> to vector<6x10xf32>
    %452 = vector.extract_strided_slice %228 {offsets = [4, 0], sizes = [6, 10], strides = [1, 1]} : vector<10x10xf32> to vector<6x10xf32>
    %453 = tpu.concatenate %448, %449, %450, %451, %452 in 1 : vector<6x10xf32>, vector<6x10xf32>, vector<6x10xf32>, vector<6x10xf32>, vector<6x10xf32> -> vector<6x50xf32>
    %454 = vector.extract_strided_slice %251 {offsets = [0, 0], sizes = [6, 10], strides = [1, 1]} : vector<10x10xf32> to vector<6x10xf32>
    %455 = vector.extract_strided_slice %251 {offsets = [1, 0], sizes = [6, 10], strides = [1, 1]} : vector<10x10xf32> to vector<6x10xf32>
    %456 = vector.extract_strided_slice %251 {offsets = [2, 0], sizes = [6, 10], strides = [1, 1]} : vector<10x10xf32> to vector<6x10xf32>
    %457 = vector.extract_strided_slice %251 {offsets = [3, 0], sizes = [6, 10], strides = [1, 1]} : vector<10x10xf32> to vector<6x10xf32>
    %458 = vector.extract_strided_slice %251 {offsets = [4, 0], sizes = [6, 10], strides = [1, 1]} : vector<10x10xf32> to vector<6x10xf32>
    %459 = tpu.concatenate %454, %455, %456, %457, %458 in 1 : vector<6x10xf32>, vector<6x10xf32>, vector<6x10xf32>, vector<6x10xf32>, vector<6x10xf32> -> vector<6x50xf32>
    %460 = tpu.concatenate %435, %441, %447, %453, %459 in 1 : vector<6x50xf32>, vector<6x50xf32>, vector<6x50xf32>, vector<6x50xf32>, vector<6x50xf32> -> vector<6x250xf32>
    %cst_63 = arith.constant dense<0.000000e+00> : vector<6x20xf32>
    %461 = tpu.matmul %460, %4, %cst_63 {dimension_numbers = #tpu.dot_dimension_numbers<[1], [0], [0], [1], [0, 0, 1, 1], [], []>, precision = #tpu.contract_precision<fp32>} : vector<6x250xf32>, vector<250x20xf32>, vector<6x20xf32> -> vector<6x20xf32>
    %462 = arith.maximumf %429, %461 : vector<6x20xf32>
    %463 = vector.extract_strided_slice %462 {offsets = [0, 0], sizes = [5, 20], strides = [1, 1]} : vector<6x20xf32> to vector<5x20xf32>
    %464 = vector.extract_strided_slice %462 {offsets = [1, 0], sizes = [5, 20], strides = [1, 1]} : vector<6x20xf32> to vector<5x20xf32>
    %465 = arith.maximumf %463, %464 : vector<5x20xf32>
    %cst_64 = arith.constant dense<0.000000e+00> : vector<3x20xf32>
    %466 = tpu.matmul %21, %465, %cst_64 {dimension_numbers = #tpu.dot_dimension_numbers<[1], [0], [0], [1], [0, 0, 1, 1], [], []>, precision = #tpu.contract_precision<fp32>} : vector<3x5xf32>, vector<5x20xf32>, vector<3x20xf32> -> vector<3x20xf32>
    %467 = vector.broadcast %5 : vector<1x20xf32> to vector<3x20xf32>
    %468 = arith.addf %466, %467 : vector<3x20xf32>
    %cst_65 = arith.constant 0.000000e+00 : f32
    %469 = vector.broadcast %cst_65 : f32 to vector<3x20xf32>
    %470 = arith.maximumf %468, %469 : vector<3x20xf32>
    %471 = vector.extract_strided_slice %324 {offsets = [0, 0], sizes = [1, 20], strides = [1, 1]} : vector<3x20xf32> to vector<1x20xf32>
    %472 = vector.extract_strided_slice %324 {offsets = [1, 0], sizes = [1, 20], strides = [1, 1]} : vector<3x20xf32> to vector<1x20xf32>
    %473 = vector.extract_strided_slice %324 {offsets = [2, 0], sizes = [1, 20], strides = [1, 1]} : vector<3x20xf32> to vector<1x20xf32>
    %474 = vector.extract_strided_slice %397 {offsets = [0, 0], sizes = [1, 20], strides = [1, 1]} : vector<3x20xf32> to vector<1x20xf32>
    %475 = vector.extract_strided_slice %397 {offsets = [1, 0], sizes = [1, 20], strides = [1, 1]} : vector<3x20xf32> to vector<1x20xf32>
    %476 = vector.extract_strided_slice %397 {offsets = [2, 0], sizes = [1, 20], strides = [1, 1]} : vector<3x20xf32> to vector<1x20xf32>
    %477 = vector.extract_strided_slice %470 {offsets = [0, 0], sizes = [1, 20], strides = [1, 1]} : vector<3x20xf32> to vector<1x20xf32>
    %478 = vector.extract_strided_slice %470 {offsets = [1, 0], sizes = [1, 20], strides = [1, 1]} : vector<3x20xf32> to vector<1x20xf32>
    %479 = vector.extract_strided_slice %470 {offsets = [2, 0], sizes = [1, 20], strides = [1, 1]} : vector<3x20xf32> to vector<1x20xf32>
    %480 = tpu.concatenate %471, %472, %473, %474, %475, %476, %477, %478, %479 in 1 : vector<1x20xf32>, vector<1x20xf32>, vector<1x20xf32>, vector<1x20xf32>, vector<1x20xf32>, vector<1x20xf32>, vector<1x20xf32>, vector<1x20xf32>, vector<1x20xf32> -> vector<1x180xf32>
    %cst_66 = arith.constant dense<0.000000e+00> : vector<1x10xf32>
    %481 = tpu.matmul %480, %6, %cst_66 {dimension_numbers = #tpu.dot_dimension_numbers<[1], [0], [0], [1], [0, 0, 1, 1], [], []>, precision = #tpu.contract_precision<fp32>} : vector<1x180xf32>, vector<180x10xf32>, vector<1x10xf32> -> vector<1x10xf32>
    %482 = arith.addf %481, %7 : vector<1x10xf32>
    %c0_67 = arith.constant 0 : index
    %c0_68 = arith.constant 0 : index
    %c0_69 = arith.constant 0 : index
    %483 = vector.load %arg8[%c0_67, %c0_68, %c0_69] : memref<1x1x10xf32, #tpu.memory_space<vmem>>, vector<1x1x10xf32>
    %484 = vector.shape_cast %483 : vector<1x1x10xf32> to vector<1x10xf32>
    %485 = vector.shape_cast %482 : vector<1x10xf32> to vector<1x1x10xf32>
    tpu.vector_store %arg8[%c0_67, %c0_68, %c0_69], %485 {strides = array<i32>} : memref<1x1x10xf32, #tpu.memory_space<vmem>>, vector<1x1x10xf32>,
    return
  }
  func.func @transform_0(%arg0: i32) -> (i32, i32, i32) {
    %c0_i32 = arith.constant 0 : i32
    %c0_i32_0 = arith.constant 0 : i32
    %c0_i32_1 = arith.constant 0 : i32
    return %arg0, %c0_i32, %c0_i32_0 : i32, i32, i32
  }
  func.func @transform_1(%arg0: i32) -> (i32, i32) {
    %c0_i32 = arith.constant 0 : i32
    %c0_i32_0 = arith.constant 0 : i32
    %c0_i32_1 = arith.constant 0 : i32
    return %c0_i32, %c0_i32_0 : i32, i32
  }
  func.func @transform_2(%arg0: i32) -> (i32, i32) {
    %c0_i32 = arith.constant 0 : i32
    %c0_i32_0 = arith.constant 0 : i32
    %c0_i32_1 = arith.constant 0 : i32
    return %c0_i32, %c0_i32_0 : i32, i32
  }
  func.func @transform_3(%arg0: i32) -> (i32, i32) {
    %c0_i32 = arith.constant 0 : i32
    %c0_i32_0 = arith.constant 0 : i32
    %c0_i32_1 = arith.constant 0 : i32
    return %c0_i32, %c0_i32_0 : i32, i32
  }
  func.func @transform_4(%arg0: i32) -> (i32, i32) {
    %c0_i32 = arith.constant 0 : i32
    %c0_i32_0 = arith.constant 0 : i32
    %c0_i32_1 = arith.constant 0 : i32
    return %c0_i32, %c0_i32_0 : i32, i32
  }
  func.func @transform_5(%arg0: i32) -> (i32, i32) {
    %c0_i32 = arith.constant 0 : i32
    %c0_i32_0 = arith.constant 0 : i32
    %c0_i32_1 = arith.constant 0 : i32
    return %c0_i32, %c0_i32_0 : i32, i32
  }
  func.func @transform_6(%arg0: i32) -> (i32, i32) {
    %c0_i32 = arith.constant 0 : i32
    %c0_i32_0 = arith.constant 0 : i32
    %c0_i32_1 = arith.constant 0 : i32
    return %c0_i32, %c0_i32_0 : i32, i32
  }
  func.func @transform_7(%arg0: i32) -> (i32, i32, i32) {
    %c0_i32 = arith.constant 0 : i32
    %c0_i32_0 = arith.constant 0 : i32
    %c0_i32_1 = arith.constant 0 : i32
    return %arg0, %c0_i32, %c0_i32_0 : i32, i32, i32
  }
}

</mosaic_0001>

<bundles_post_ra>
// kernel: cnn_forward.1
= control target key start
LH: loop header
LB: loop body
LE: loop exit
PB: predicated region body
PF: predicated region fallthrough
CT: control target
= control target key end

     0   :  { %s41249_s0 = inlined_call_operand.vmem [shape: f32[2,24,24], index: 0, kind: input, shape index: {}]   ;;  %s41250_s1 = inlined_call_operand.vmem [shape: f32[25,10], index: 1, kind: input, shape index: {}]   ;;  %s41251_s2 = inlined_call_operand.vmem [shape: f32[1,10], index: 2, kind: input, shape index: {}]   ;;  %s41252_s3 = inlined_call_operand.vmem [shape: f32[250,20], index: 3, kind: input, shape index: {}]   ;;  %s41253_s4 = inlined_call_operand.vmem [shape: f32[1,20], index: 4, kind: input, shape index: {}]   ;;  %s41254_s5 = inlined_call_operand.vmem [shape: f32[180,10], index: 5, kind: input, shape index: {}]   ;;  %s41255_s6 = inlined_call_operand.vmem [shape: f32[1,10], index: 6, kind: input, shape index: {}]   ;;  %s41256_s7 = inlined_call_operand.hbm [shape: f32[2,1,10], index: 7, kind: output, shape index: {}]  }
   0x1   :  { %41547 = sst [smem:[#allocation148_spill]] %s41249_s0 }
   0x2   :  { %41548 = sst [smem:[#allocation149_spill]] %s41250_s1 }
   0x3   :  { %12 = vsyncpa [#allocation3], 0 }
   0x4   :  { %14 = vsyncpa [#allocation3 + $0x1], 0  ;;  %s34811_s24 = smov 0   ;;  %s34813_s25 = smov 0  }
   0x5   :  { %s34815_s26 = smov 0   ;;  %s34817_s27 = smov 0  }
   0x6 LB: > { %41549 = sst [smem:[#allocation5_spill]] %s34705_s24  ;;  %s34832_s28 = sadd.s32 4294967295, %s34717_s27   ;;  %s34717_s27 = sphi %s34817_s27, %s42260_s27   ;;  %s34713_s26 = sphi %s34815_s26, %s42262_s26   ;;  %s34709_s25 = sphi %s34813_s25, %s42264_s25   ;;  %s34705_s24 = sphi %s34811_s24, %s42263_s24  }
   0x7   : > { %41550 = sst [smem:[#allocation6_spill]] %s34713_s26  ;;  %s26294_s29 = sadd.s32 4294967294, %s34717_s27  }
   0x8   : > { %s34836_s30 = sadd.s32 1, %s34717_s27   ;;  %s179_s8 = sadd.s32 1, %s34713_s26 }
   0x9   : > { %41551 = sst [smem:[#allocation7_spill]] %s34836_s30  ;;  %s176_s9 = ssub.s32 %s34717_s27, %s34836_s30 }
   0xa   : > { %p189_p0 = scmp.ne.s32.totalorder %s34713_s26, %s34709_s25  ;;  %p177_p1 = scmp.eq.s32.totalorder %s176_s9, 0 }
   0xb   : > { %p190_p2 = scmp.eq.s32.totalorder %s34832_s28, 1  ;;  %p195_p3 = scmp.ne.s32.totalorder %s34709_s25, %s34705_s24 }
   0xc   : > { %p196_p4 = scmp.eq.s32.totalorder %s26294_s29, 1  ;;  %p26297_p7 = scmp.ge.s32.totalorder %s34717_s27, 1 }
   0xd   : > { %s34847_s10 = scalar_select %p177_p1, %s34713_s26, %s179_s8  }
   0xe   : > { %p34849_p5 = por %p190_p2, %p189_p0  ;;  %p34853_p6 = por %p196_p4, %p195_p3 }
   0xf   : > { %41552 = sst [smem:[#allocation8_spill]] %s34847_s10  ;;  %p240_p8 = scmp.lt.s32.totalorder %s34717_s27, 3 }
  0x10   : > { %s41554_s12 = scalar_select %p34853_p6, 1, 0 }
  0x11   : > { %p241_p9 = pnand %p26297_p7, %p240_p8 }
  0x12   : > { %41555 = sst [smem:[#allocation9_spill]] %s41554_s12 }
  0x13   : > { %244 = sbr.rel (%p241_p9) target bundleno = 5702 (0x1646), region = 48 }
  0x1a   : > { %p271_p10 = scmp.lt.s32.totalorder %s34832_s28, 1  ;;  %s41556_s0 = sld [smem:[#allocation148_spill]]  ;;  %vm357_vm0 = vcmask 1046528   ;;  %vm372_vm1 = vcmask 1045504   ;;  %vm387_vm2 = vcmask 1044480   ;;  %vm443_vm3 = vcmask 1040384  }
  0x1b   : > { %s41265_s18 = smov 127   ;;  %s41557_s1 = sld [smem:[#allocation149_spill]]  ;;  %v41287_v15 = vmov 0.0|0.0   ;;  %vm402_vm4 = vcmask 1043456   ;;  %vm34727_vm5 = vmmov 0   ;;  %v41285_v28 = vmov 0.0  }
  0x1c   : > { %s272_s13 = scalar_select %p271_p10, %s34832_s28, 1  ;;  %31481 = vmatprep.subr.bf16.mxu0 %v41287_v15  ;;  %31517 = vmatprep.subr.bf16.mxu1 %v41287_v15  ;;  %vm417_vm6 = vcmask 39936   ;;  %vm421_vm7 = vcmask 80896   ;;  %vm425_vm8 = vcmask 121856   ;;  %vm429_vm9 = vcmask 162816  }
  0x1d   : > { %s41263_s23 = smov 4   ;;  %s41301_s29 = smov 5   ;;  %28819 = vmatprep.mubr.msk.f32.mxu0 %vm34727_vm5, %v41285_v28  ;;  %28921 = vmatprep.mubr.msk.f32.mxu1 %vm34727_vm5, %v41285_v28  ;;  %vm433_vm10 = vcmask 203776   ;;  %vm1678_vm12 = vcmask 154624   ;;  %vm1685_vm14 = vcmask 1042432   ;;  %vm18513_vm15 = vcmask 326656  }
  0x1e   : > { %s34553_s14 = smul.u32 24, %s272_s13  ;;  %s41289_s15 = smov 10  }
  0x1f   : > { %s41261_s16 = smov 9   ;;  %s34725_s19 = smov 15  }
  0x20   : > { %s34864_s17 = scalar_lea.vmem %s41556_s0, %s34553_s14  ;;  %s41259_s20 = smov 14  }
  0x21   : > { %v34867_v0 = vld [vmem:[%s34864_s17] sm:$0xff]  ;;  %v34870_v1 = vld [vmem:[%s34864_s17 + $0x8] sm:$0xff]  ;;  %v282_v14 = vld [vmem:[%s41557_s1 + $0x18] sm:$0x1]  ;;  %s41257_s21 = smov 20   ;;  %s34730_s22 = smov 19  }
  0x22   : > { %1018 = vrot.lane.b32.xlu0 %v34867_v0, %s41265_s18  ;;  %v358_v2 = vrot.slane %v34867_v0, 1  ;;  %v359_v3 = vrot.slane %v34870_v1, 1  ;;  %v373_v4 = vrot.slane %v34867_v0, 2  ;;  %v374_v5 = vrot.slane %v34870_v1, 2  ;;  %v34884_v7 = vld [vmem:[%s41557_s1] sm:$0xff]  ;;  %v34889_v8 = vld [vmem:[%s41557_s1 + $0x8] sm:$0xff] }
  0x23   : > { %v448_v9 = vand.u32 4294901760, %v34884_v7  ;;  %v388_v11 = vrot.slane %v34867_v0, 3  ;;  %v389_v12 = vrot.slane %v34870_v1, 3  ;;  %v451_v13 = vand.u32 4294901760, %v34889_v8  ;;  %v281_v17 = vld [vmem:[%s41557_s1 + $0x10] sm:$0xff]  ;;  %s41295_s8 = smov 126  }
  0x24   : > { %v34879_v6 = vsel %vm357_vm0, %v358_v2, %v359_v3  ;;  %v34899_v10 = vsel %vm372_vm1, %v373_v4, %v374_v5  ;;  %v445_v18 = vsel %vm443_vm3, %v282_v14, 0  ;;  %v454_v19 = vand.u32 4294901760, %v281_v17  ;;  %v34928_v24 = vld [vmem:[%s34864_s17 + $0x10] sm:$0xff]  ;;  %s41273_s9 = smov 125   ;;  %s34733_s13 = smov 8  }
  0x25   : > { %1027 = vrot.lane.b32.xlu1 %v34879_v6, %s41263_s23  ;;  %v34910_v16 = vpack.c.bf16 %v451_v13, %v448_v9  ;;  %v457_v20 = vand.u32 4294901760, %v445_v18  ;;  %v34921_v21 = vsel %vm387_vm2, %v388_v11, %v389_v12  ;;  %v403_v22 = vrot.slane %v34867_v0, 4  ;;  %s34734_s14 = smov 13   ;;  %s41612_s0 = smov 116  }
  0x26   : > { %363 = vrot.lane.b32.xlu0 %v34879_v6, %s41301_s29  ;;  %v404_v23 = vrot.slane %v34870_v1, 4  ;;  %v34939_v26 = vrot.slane %v34928_v24, 1  ;;  %v34957_v29 = vrot.slane %v34928_v24, 2  ;;  %v34968_v31 = vrot.slane %v34928_v24, 3  ;;  %s41613_s1 = smov 121   ;;  %s41617_s10 = smov 3  }
  0x27   : > { %31483 = vmatpush3.bf16.msra.mxu0 %v34910_v16  ;;  %31519 = vmatpush3.bf16.msra.mxu1 %v34910_v16  ;;  %v34931_v25 = vpack.c.bf16 %v457_v20, %v454_v19  ;;  %v34981_v33 = vrot.slane %v34928_v24, 4  ;;  %v548_v36 = vsub.f32 %v34884_v7, %v448_v9  ;;  %v555_v37 = vsub.f32 %v34889_v8, %v451_v13  ;;  %s41644_s26 = smov 12   ;;  %s41645_s30 = smov 120  }
  0x28   : > { %31484 = vmatprep.subr.bf16.mxu0 %v41287_v15  ;;  %31520 = vmatprep.subr.bf16.mxu1 %v41287_v15  ;;  %v34942_v27 = vsel %vm402_vm4, %v403_v22, %v404_v23  ;;  %v34961_v30 = vsel %vm357_vm0, %v359_v3, %v34939_v26  ;;  %41558 = vst [vmem:[#allocation10_spill] sm:$0xff] %v34968_v31  ;;  %s41648_s12 = smov 10   ;;  %s41655_s24 = smov 20   ;;  %vm18639_vm3 = vcmask 179200  }
  0x29   : > { %378 = vrot.lane.b32.xlu1 %v34899_v10, %s41289_s15  ;;  %v34974_v32 = vsel %vm372_vm1, %v374_v5, %v34957_v29  ;;  %v34985_v34 = vsel %vm387_vm2, %v389_v12, %v34968_v31  ;;  %v34993_v35 = vsel %vm402_vm4, %v404_v23, %v34981_v33  ;;  %v549_v38 = vand.u32 4294901760, %v548_v36 }
  0x2a   : > { %1036 = vrot.lane.b32.xlu0 %v34899_v10, %s41261_s16  ;;  %41559 = vst [vmem:[#allocation11_spill] sm:$0xff] %v34985_v34  ;;  %v556_v39 = vand.u32 4294901760, %v555_v37  ;;  %v562_v42 = vsub.f32 %v281_v17, %v454_v19  ;;  %v569_v43 = vsub.f32 %v445_v18, %v457_v20  ;;  %v35027_v54 = vpack.c.bf16 %v555_v37, %v548_v36 }
  0x2b   : > { %31486 = vmatpush3.bf16.msra.mxu0 %v34931_v25  ;;  %31522 = vmatpush3.bf16.msra.mxu1 %v34931_v25  ;;  %v550_v40 = vsub.f32 %v548_v36, %v549_v38  ;;  %vm18511_vm1 = vcmask 244736  }
  0x2c   : > { %31487 = vmatprep.subr.bf16.mxu0 %v41287_v15  ;;  %31523 = vmatprep.subr.bf16.mxu1 %v41287_v15  ;;  %v557_v41 = vsub.f32 %v555_v37, %v556_v39  ;;  %v563_v46 = vand.u32 4294901760, %v562_v42  ;;  %v570_v47 = vand.u32 4294901760, %v569_v43  ;;  %v35029_v55 = vpack.c.bf16 %v569_v43, %v562_v42 }
  0x2d   : > { %393 = vrot.lane.b32.xlu1 %v34921_v21, %s34725_s19  ;;  %v551_v44 = vand.u32 4294901760, %v550_v40  ;;  %v35031_v56 = vpack.c.bf16 %v556_v39, %v549_v38 }
  0x2e   : > { %1045 = vrot.lane.b32.xlu0 %v34921_v21, %s41259_s20  ;;  %v558_v45 = vand.u32 4294901760, %v557_v41  ;;  %v564_v49 = vsub.f32 %v562_v42, %v563_v46  ;;  %v571_v50 = vsub.f32 %v569_v43, %v570_v47  ;;  %v35033_v57 = vpack.c.bf16 %v570_v47, %v563_v46 }
  0x30   : > { %v35015_v48 = vpack.c.bf16 %v558_v45, %v551_v44  ;;  %v565_v51 = vand.u32 4294901760, %v564_v49  ;;  %v572_v52 = vand.u32 4294901760, %v571_v50 }
  0x31   : > { %408 = vrot.lane.b32.xlu1 %v34942_v27, %s41257_s21 }
  0x32   : > { %1054 = vrot.lane.b32.xlu0 %v34942_v27, %s34730_s22  ;;  %v35021_v53 = vpack.c.bf16 %v572_v52, %v565_v51 }
  0x35   : > { %365 = vrot.lane.b32.xlu1 %v34961_v30, %s41301_s29 }
  0x36   : > { %1020 = vrot.lane.b32.xlu0 %v34870_v1, %s41265_s18 }
  0x39   : > { %1029 = vrot.lane.b32.xlu1 %v34961_v30, %s41263_s23 }
  0x3a   : > { %380 = vrot.lane.b32.xlu0 %v34974_v32, %s41289_s15 }
  0x3d   : > { %1038 = vrot.lane.b32.xlu1 %v34974_v32, %s41261_s16 }
  0x3e   : > { %395 = vrot.lane.b32.xlu0 %v34985_v34, %s34725_s19 }
  0x41   : > { %1047 = vrot.lane.b32.xlu1 %v34985_v34, %s41259_s20 }
  0x42   : > { %410 = vrot.lane.b32.xlu0 %v34993_v35, %s41257_s21 }
  0x45   : > { %1056 = vrot.lane.b32.xlu1 %v34993_v35, %s34730_s22 }
  0x46   : > { %367 = vrot.lane.b32.xlu0 %v34939_v26, %s41301_s29 }
  0x49   : > { %1022 = vrot.lane.b32.xlu1 %v34928_v24, %s41265_s18  ;;  %s34740_s18 = smov 17  }
  0x4a   : > { %1031 = vrot.lane.b32.xlu0 %v34939_v26, %s41263_s23  ;;  %s41267_s23 = smov 12  }
  0x4d   : > { %382 = vrot.lane.b32.xlu1 %v34957_v29, %s41289_s15 }
  0x4e   : > { %1040 = vrot.lane.b32.xlu0 %v34957_v29, %s41261_s16  ;;  %s41269_s16 = smov 7  }
  0x51   : > { %397 = vrot.lane.b32.xlu1 %v34968_v31, %s34725_s19 }
  0x52   : > { %1049 = vrot.lane.b32.xlu0 %v34968_v31, %s41259_s20  ;;  %s41271_s20 = smov 2  }
  0x55   : > { %412 = vrot.lane.b32.xlu1 %v34981_v33, %s41257_s21  ;;  %s34736_s21 = smov 18  }
  0x56   : > { %1058 = vrot.lane.b32.xlu0 %v34981_v33, %s34730_s22  ;;  %s41293_s22 = smov 3  }
  0x59   : > { %2206 = vrot.lane.b32.xlu1 %v34867_v0, %s41295_s8 }
  0x5a   : > { %2215 = vrot.lane.b32.xlu0 %v34879_v6, %s41293_s22 }
  0x5d   : > { %2843 = vrot.lane.b32.xlu1 %v34867_v0, %s41273_s9 }
  0x5e   : > { %2852 = vrot.lane.b32.xlu0 %v34879_v6, %s41271_s20 }
  0x61   : > { %2224 = vrot.lane.b32.xlu1 %v34899_v10, %s34733_s13 }
  0x62   : > { %2861 = vrot.lane.b32.xlu0 %v34899_v10, %s41269_s16 }
  0x65   : > { %2233 = vrot.lane.b32.xlu1 %v34921_v21, %s34734_s14 }
  0x66   : > { %2870 = vrot.lane.b32.xlu0 %v34921_v21, %s41267_s23 }
  0x69   : > { %2242 = vrot.lane.b32.xlu1 %v34942_v27, %s34736_s21 }
  0x6a   : > { %2879 = vrot.lane.b32.xlu0 %v34942_v27, %s34740_s18 }
  0x6d   : > { %2208 = vrot.lane.b32.xlu1 %v34870_v1, %s41295_s8 }
  0x6e   : > { %2217 = vrot.lane.b32.xlu0 %v34961_v30, %s41293_s22 }
  0x71   : > { %2845 = vrot.lane.b32.xlu1 %v34870_v1, %s41273_s9 }
  0x72   : > { %2854 = vrot.lane.b32.xlu0 %v34961_v30, %s41271_s20 }
  0x75   : > { %2226 = vrot.lane.b32.xlu1 %v34974_v32, %s34733_s13 }
  0x76   : > { %2863 = vrot.lane.b32.xlu0 %v34974_v32, %s41269_s16 }
  0x79   : > { %2235 = vrot.lane.b32.xlu1 %v34985_v34, %s34734_s14 }
  0x7a   : > { %2872 = vrot.lane.b32.xlu0 %v34985_v34, %s41267_s23 }
  0x7d   : > { %2244 = vrot.lane.b32.xlu1 %v34993_v35, %s34736_s21 }
  0x7e   : > { %2881 = vrot.lane.b32.xlu0 %v34993_v35, %s34740_s18 }
  0x81   : > { %2210 = vrot.lane.b32.xlu1 %v34928_v24, %s41295_s8 }
  0x82   : > { %2219 = vrot.lane.b32.xlu0 %v34939_v26, %s41293_s22 }
  0x85   : > { %2847 = vrot.lane.b32.xlu1 %v34928_v24, %s41273_s9  ;;  %s34746_s9 = smov 16  }
  0x86   : > { %2856 = vrot.lane.b32.xlu0 %v34939_v26, %s41271_s20  ;;  %s41283_s20 = smov 123  }
  0x89   : > { %2228 = vrot.lane.b32.xlu1 %v34957_v29, %s34733_s13 }
  0x8a   : > { %2865 = vrot.lane.b32.xlu0 %v34957_v29, %s41269_s16  ;;  %s34744_s16 = smov 11  }
  0x8d   : > { %2237 = vrot.lane.b32.xlu1 %v34968_v31, %s34734_s14 }
  0x8e   : > { %2874 = vrot.lane.b32.xlu0 %v34968_v31, %s41267_s23  ;;  %s41303_s23 = smov 124  }
  0x91   : > { %2246 = vrot.lane.b32.xlu1 %v34981_v33, %s34736_s21  ;;  %s41275_s21 = smov 6  }
  0x92   : > { %2883 = vrot.lane.b32.xlu0 %v34981_v33, %s34740_s18  ;;  %s41281_s18 = smov 1  }
  0x94   : > { %v1019_v58 = vpop.permute.xlu0 %1018 }
  0x96   : > { %4026 = vrot.lane.b32.xlu0 %v34879_v6, %s41281_s18 }
  0x97   : > { %v1028_v59 = vpop.permute.xlu1 %1027 }
  0x98   : > { %v364_v60 = vpop.permute.xlu0 %363  ;;  %v1063_v3 = vsel %vm417_vm6, %v1019_v58, %v1028_v59 }
  0x99   : > { %v418_v4 = vsel %vm417_vm6, %v34867_v0, %v364_v60 }
  0x9a   : > { %4035 = vrot.lane.b32.xlu0 %v34899_v10, %s41275_s21 }
  0x9b   : > { %v379_v61 = vpop.permute.xlu1 %378 }
  0x9c   : > { %v1037_v62 = vpop.permute.xlu0 %1036  ;;  %v422_v5 = vsel %vm421_vm7, %v418_v4, %v379_v61 }
  0x9d   : > { %v1066_v7 = vsel %vm421_vm7, %v1063_v3, %v1037_v62 }
  0x9e   : > { %4044 = vrot.lane.b32.xlu0 %v34921_v21, %s34744_s16 }
  0x9f   : > { %v394_v63 = vpop.permute.xlu1 %393 }
  0xa0   : > { %v1046_v2 = vpop.permute.xlu0 %1045  ;;  %v426_v8 = vsel %vm425_vm8, %v422_v5, %v394_v63 }
  0xa1   : > { %v1069_v9 = vsel %vm425_vm8, %v1066_v7, %v1046_v2 }
  0xa2   : > { %4053 = vrot.lane.b32.xlu0 %v34942_v27, %s34746_s9 }
  0xa3   : > { %v409_v11 = vpop.permute.xlu1 %408 }
  0xa4   : > { %v1055_v12 = vpop.permute.xlu0 %1054  ;;  %v430_v0 = vsel %vm429_vm9, %v426_v8, %v409_v11 }
  0xa5   : > { %v1072_v13 = vsel %vm429_vm9, %v1069_v9, %v1055_v12  ;;  %v435_v14 = vsel %vm433_vm10, %v430_v0, 0 }
  0xa6   : > { %v1076_v17 = vsel %vm433_vm10, %v1072_v13, 0  ;;  %v35076_v18 = vand.u32 4294901760, %v435_v14 }
  0xa7   : > { %v35078_v19 = vand.u32 4294901760, %v1076_v17  ;;  %v366_v20 = vpop.permute.xlu1 %365 }
  0xa8   : > { %v1021_v22 = vpop.permute.xlu0 %1020  ;;  %v35083_v23 = vsub.f32 %v435_v14, %v35076_v18  ;;  %v419_v47 = vsel %vm417_vm6, %v34870_v1, %v366_v20 }
  0xa9   : > { %v35086_v36 = vsub.f32 %v1076_v17, %v35078_v19 }
  0xaa   : > { %v518_v37 = vand.u32 4294901760, %v35083_v23 }
  0xab   : > { %v1155_v38 = vand.u32 4294901760, %v35086_v36  ;;  %v1030_v39 = vpop.permute.xlu1 %1029 }
  0xac   : > { %v381_v40 = vpop.permute.xlu0 %380  ;;  %v519_v41 = vsub.f32 %v35083_v23, %v518_v37  ;;  %v1064_v58 = vsel %vm417_vm6, %v1021_v22, %v1030_v39 }
  0xad   : > { %v1156_v42 = vsub.f32 %v35086_v36, %v1155_v38  ;;  %v423_v49 = vsel %vm421_vm7, %v419_v47, %v381_v40 }
  0xae   : > { %v520_v43 = vand.u32 4294901760, %v519_v41 }
  0xaf   : > { %v1157_v44 = vand.u32 4294901760, %v1156_v42  ;;  %v1039_v45 = vpop.permute.xlu1 %1038 }
  0xb0   : > { %v396_v46 = vpop.permute.xlu0 %395  ;;  %28820 = vmatmul.mubr.f32.vlgmr.msra.gmra.mrb[0].mxu0 %v520_v43  ;;  %v1067_v60 = vsel %vm421_vm7, %v1064_v58, %v1039_v45 }
  0xb1   : > { %28922 = vmatmul.mubr.f32.vlgmr.msra.gmra.mrb[0].mxu1 %v1157_v44  ;;  %28822 = vmatprep.mubr.msk.f32.mxu0 %vm34727_vm5, %v41285_v28  ;;  %v427_v50 = vsel %vm425_vm8, %v423_v49, %v396_v46 }
  0xb2   : > { %28924 = vmatprep.mubr.msk.f32.mxu1 %vm34727_vm5, %v41285_v28  ;;  %31489 = vmatpush3.bf16.msra.mxu0 %v35015_v48 }
  0xb3   : > { %31525 = vmatpush3.bf16.msra.mxu1 %v35015_v48  ;;  %v1048_v51 = vpop.permute.xlu1 %1047  ;;  %31490 = vmatprep.subr.bf16.mxu0 %v41287_v15 }
  0xb4   : > { %v411_v52 = vpop.permute.xlu0 %410  ;;  %31526 = vmatprep.subr.bf16.mxu1 %v41287_v15  ;;  %v1070_v62 = vsel %vm425_vm8, %v1067_v60, %v1048_v51 }
  0xb5   : > { %v431_v1 = vsel %vm429_vm9, %v427_v50, %v411_v52 }
  0xb6   : > { %v438_v59 = vsel %vm433_vm10, %v431_v1, 0  ;;  %31492 = vmatpush3.bf16.msra.mxu0 %v35021_v53 }
  0xb7   : > { %v35124_v61 = vand.u32 4294901760, %v438_v59  ;;  %31528 = vmatpush3.bf16.msra.mxu1 %v35021_v53  ;;  %v1057_v63 = vpop.permute.xlu1 %1056  ;;  %31493 = vmatprep.subr.bf16.mxu0 %v41287_v15 }
  0xb8   : > { %v368_v2 = vpop.permute.xlu0 %367  ;;  %31529 = vmatprep.subr.bf16.mxu1 %v41287_v15  ;;  %v1073_v4 = vsel %vm429_vm9, %v1070_v62, %v1057_v63 }
  0xb9   : > { %v35132_v3 = vsub.f32 %v438_v59, %v35124_v61  ;;  %v1079_v5 = vsel %vm433_vm10, %v1073_v4, 0  ;;  %v420_v42 = vsel %vm417_vm6, %v34928_v24, %v368_v2 }
  0xba   : > { %v35140_v7 = vand.u32 4294901760, %v1079_v5 }
  0xbb   : > { %v528_v8 = vand.u32 4294901760, %v35132_v3  ;;  %v1023_v9 = vpop.permute.xlu1 %1022 }
  0xbc   : > { %v1032_v11 = vpop.permute.xlu0 %1031  ;;  %v35144_v12 = vsub.f32 %v1079_v5, %v35140_v7 }
  0xbd   : > { %v529_v0 = vsub.f32 %v35132_v3, %v528_v8  ;;  %v1065_v43 = vsel %vm417_vm6, %v1023_v9, %v1032_v11 }
  0xbe   : > { %v1165_v14 = vand.u32 4294901760, %v35144_v12 }
  0xbf   : > { %v530_v13 = vand.u32 4294901760, %v529_v0  ;;  %v383_v17 = vpop.permute.xlu1 %382 }
  0xc0   : > { %v1041_v20 = vpop.permute.xlu0 %1040  ;;  %v1166_v22 = vsub.f32 %v35144_v12, %v1165_v14  ;;  %v424_v44 = vsel %vm421_vm7, %v420_v42, %v383_v17 }
  0xc1   : > { %28823 = vmatmul.mubr.f32.gmra.mrb[2].mxu0 %v530_v13  ;;  %v1068_v45 = vsel %vm421_vm7, %v1065_v43, %v1041_v20 }
  0xc2   : > { %28825 = vmatprep.mubr.msk.f32.mxu0 %vm34727_vm5, %v41285_v28  ;;  %v1167_v39 = vand.u32 4294901760, %v1166_v22 }
  0xc3   : > { %v398_v40 = vpop.permute.xlu1 %397 }
  0xc4   : > { %v1050_v41 = vpop.permute.xlu0 %1049  ;;  %28925 = vmatmul.mubr.f32.gmra.mrb[2].mxu1 %v1167_v39  ;;  %v428_v46 = vsel %vm425_vm8, %v424_v44, %v398_v40 }
  0xc5   : > { %28927 = vmatprep.mubr.msk.f32.mxu1 %vm34727_vm5, %v41285_v28  ;;  %v1071_v47 = vsel %vm425_vm8, %v1068_v45, %v1050_v41 }
  0xc7   : > { %v413_v49 = vpop.permute.xlu1 %412 }
  0xc8   : > { %v1059_v50 = vpop.permute.xlu0 %1058  ;;  %v432_v51 = vsel %vm429_vm9, %v428_v46, %v413_v49 }
  0xc9   : > { %v1074_v52 = vsel %vm429_vm9, %v1071_v47, %v1059_v50  ;;  %v441_v24 = vsel %vm433_vm10, %v432_v51, 0 }
  0xca   : > { %v1082_v1 = vsel %vm433_vm10, %v1074_v52, 0  ;;  %v35178_v58 = vand.u32 4294901760, %v441_v24 }
  0xcb   : > { %v35180_v59 = vand.u32 4294901760, %v1082_v1 }
  0xcc   : > { %v35183_v60 = vsub.f32 %v441_v24, %v35178_v58 }
  0xcd   : > { %v35186_v62 = vsub.f32 %v1082_v1, %v35180_v59 }
  0xce   : > { %v538_v63 = vand.u32 4294901760, %v35183_v60 }
  0xcf   : > { %v1175_v2 = vand.u32 4294901760, %v35186_v62 }
  0xd0   : > { %v539_v4 = vsub.f32 %v35183_v60, %v538_v63 }
  0xd1   : > { %v1176_v5 = vsub.f32 %v35186_v62, %v1175_v2 }
  0xd2   : > { %v540_v9 = vand.u32 4294901760, %v539_v4 }
  0xd3   : > { %v1177_v11 = vand.u32 4294901760, %v1176_v5 }
  0xd4   : > { %28826 = vmatmul.mubr.f32.gmra.mrb[4].mxu0 %v540_v9 }
  0xd5   : > { %28928 = vmatmul.mubr.f32.gmra.mrb[4].mxu1 %v1177_v11  ;;  %28836 = vmatprep.mubr.msk.f32.mxu0 %vm34727_vm5, %v41285_v28 }
  0xd6   : > { %28938 = vmatprep.mubr.msk.f32.mxu1 %vm34727_vm5, %v41285_v28 }
  0xd8   : > { %28837 = vmatmul.mubr.f32.vlgmr.msra.gmra.mrb[0].mxu0 %v35076_v18 }
  0xd9   : > { %28939 = vmatmul.mubr.f32.vlgmr.msra.gmra.mrb[0].mxu1 %v35078_v19  ;;  %28839 = vmatprep.mubr.msk.f32.mxu0 %vm34727_vm5, %v41285_v28 }
  0xda   : > { %28941 = vmatprep.mubr.msk.f32.mxu1 %vm34727_vm5, %v41285_v28  ;;  %31495 = vmatpush3.bf16.msra.mxu0 %v35027_v54 }
  0xdb   : > { %31531 = vmatpush3.bf16.msra.mxu1 %v35027_v54  ;;  %31496 = vmatprep.subr.bf16.mxu0 %v41287_v15 }
  0xdc   : > { %31532 = vmatprep.subr.bf16.mxu1 %v41287_v15  ;;  %28840 = vmatmul.mubr.f32.gmra.mrb[2].mxu0 %v35124_v61 }
  0xdd   : > { %28942 = vmatmul.mubr.f32.gmra.mrb[2].mxu1 %v35140_v7  ;;  %28842 = vmatprep.mubr.msk.f32.mxu0 %vm34727_vm5, %v41285_v28 }
  0xde   : > { %28944 = vmatprep.mubr.msk.f32.mxu1 %vm34727_vm5, %v41285_v28  ;;  %31498 = vmatpush3.bf16.msra.mxu0 %v35029_v55 }
  0xdf   : > { %31534 = vmatpush3.bf16.msra.mxu1 %v35029_v55  ;;  %31499 = vmatprep.subr.bf16.mxu0 %v41287_v15 }
  0xe0   : > { %31535 = vmatprep.subr.bf16.mxu1 %v41287_v15  ;;  %28843 = vmatmul.mubr.f32.gmra.mrb[4].mxu0 %v35178_v58 }
  0xe1   : > { %28945 = vmatmul.mubr.f32.gmra.mrb[4].mxu1 %v35180_v59  ;;  %28853 = vmatprep.mubr.msk.f32.mxu0 %vm34727_vm5, %v41285_v28 }
  0xe2   : > { %28955 = vmatprep.mubr.msk.f32.mxu1 %vm34727_vm5, %v41285_v28 }
  0xe4   : > { %28854 = vmatmul.mubr.f32.vlgmr.msra.gmra.mrb[0].mxu0 %v35083_v23  ;;  %v2207_v23 = vpop.permute.xlu1 %2206 }
  0xe5   : > { %28956 = vmatmul.mubr.f32.vlgmr.msra.gmra.mrb[0].mxu1 %v35086_v36  ;;  %28856 = vmatprep.mubr.msk.f32.mxu0 %vm34727_vm5, %v41285_v28 }
  0xe6   : > { %28958 = vmatprep.mubr.msk.f32.mxu1 %vm34727_vm5, %v41285_v28  ;;  %31501 = vmatpush3.bf16.msra.mxu0 %v34910_v16 }
  0xe7   : > { %31537 = vmatpush3.bf16.msra.mxu1 %v34910_v16  ;;  %31502 = vmatprep.subr.bf16.mxu0 %v41287_v15 }
  0xe8   : > { %31538 = vmatprep.subr.bf16.mxu1 %v41287_v15  ;;  %28857 = vmatmul.mubr.f32.gmra.mrb[2].mxu0 %v35132_v3  ;;  %v35282_v36 = vpop.permute.xlu1 %2843  ;;  %v2216_v3 = vpop.permute.xlu0 %2215 }
  0xe9   : > { %28959 = vmatmul.mubr.f32.gmra.mrb[2].mxu1 %v35144_v12  ;;  %28859 = vmatprep.mubr.msk.f32.mxu0 %vm34727_vm5, %v41285_v28 }
  0xea   : > { %28961 = vmatprep.mubr.msk.f32.mxu1 %vm34727_vm5, %v41285_v28  ;;  %31504 = vmatpush3.bf16.msra.mxu0 %v34931_v25 }
  0xeb   : > { %31540 = vmatpush3.bf16.msra.mxu1 %v34931_v25  ;;  %31505 = vmatprep.subr.bf16.mxu0 %v41287_v15 }
  0xec   : > { %31541 = vmatprep.subr.bf16.mxu1 %v41287_v15  ;;  %28860 = vmatmul.mubr.f32.gmra.mrb[4].mxu0 %v35183_v60  ;;  %v35317_v17 = vpop.permute.xlu0 %2852 }
  0xed   : > { %28962 = vmatmul.mubr.f32.gmra.mrb[4].mxu1 %v35186_v62  ;;  %28870 = vmatprep.mubr.msk.f32.mxu0 %vm34727_vm5, %v41285_v28 }
  0xee   : > { %28972 = vmatprep.mubr.msk.f32.mxu1 %vm34727_vm5, %v41285_v28 }
  0xf0   : > { %28871 = vmatmul.mubr.f32.vlgmr.msra.gmra.mrb[0].mxu0 %v518_v37  ;;  %v2225_v37 = vpop.permute.xlu1 %2224  ;;  %v35332_v41 = vpop.permute.xlu0 %2861 }
  0xf1   : > { %28973 = vmatmul.mubr.f32.vlgmr.msra.gmra.mrb[0].mxu1 %v1155_v38  ;;  %28873 = vmatprep.mubr.msk.f32.mxu0 %vm34727_vm5, %v41285_v28 }
  0xf2   : > { %28975 = vmatprep.mubr.msk.f32.mxu1 %vm34727_vm5, %v41285_v28  ;;  %31507 = vmatpush3.bf16.msra.mxu0 %v35031_v56 }
  0xf3   : > { %31543 = vmatpush3.bf16.msra.mxu1 %v35031_v56  ;;  %31508 = vmatprep.subr.bf16.mxu0 %v41287_v15 }
  0xf4   : > { %31544 = vmatprep.subr.bf16.mxu1 %v41287_v15  ;;  %28874 = vmatmul.mubr.f32.gmra.mrb[2].mxu0 %v528_v8  ;;  %v2234_v38 = vpop.permute.xlu1 %2233  ;;  %v2251_v8 = vsel %vm417_vm6, %v2207_v23, %v2216_v3  ;;  %v35348_v43 = vpop.permute.xlu0 %2870 }
  0xf5   : > { %28976 = vmatmul.mubr.f32.gmra.mrb[2].mxu1 %v1165_v14  ;;  %28876 = vmatprep.mubr.msk.f32.mxu0 %vm34727_vm5, %v41285_v28  ;;  %v2254_v0 = vsel %vm421_vm7, %v2251_v8, %v2225_v37 }
  0xf6   : > { %28978 = vmatprep.mubr.msk.f32.mxu1 %vm34727_vm5, %v41285_v28  ;;  %31510 = vmatpush3.bf16.msra.mxu0 %v35033_v57  ;;  %v2257_v13 = vsel %vm425_vm8, %v2254_v0, %v2234_v38 }
  0xf7   : > { %31546 = vmatpush3.bf16.msra.mxu1 %v35033_v57  ;;  %31511 = vmatprep.subr.bf16.mxu0 %v41287_v15 }
  0xf8   : > { %31547 = vmatprep.subr.bf16.mxu1 %v41287_v15  ;;  %28877 = vmatmul.mubr.f32.gmra.mrb[4].mxu0 %v538_v63  ;;  %v2243_v12 = vpop.permute.xlu1 %2242  ;;  %v35355_v44 = vpop.permute.xlu0 %2879 }
  0xf9   : > { %28979 = vmatmul.mubr.f32.gmra.mrb[4].mxu1 %v1175_v2  ;;  %28887 = vmatprep.mubr.msk.f32.mxu0 %vm34727_vm5, %v41285_v28  ;;  %v2260_v14 = vsel %vm429_vm9, %v2257_v13, %v2243_v12 }
  0xfa   : > { %28989 = vmatprep.mubr.msk.f32.mxu1 %vm34727_vm5, %v41285_v28  ;;  %v2264_v20 = vsel %vm433_vm10, %v2260_v14, 0 }
  0xfb   : > { %v35326_v39 = vand.u32 4294901760, %v2264_v20 }
  0xfc   : > { %28888 = vmatmul.mubr.f32.vlgmr.msra.gmra.mrb[0].mxu0 %v35076_v18  ;;  %v2209_v22 = vpop.permute.xlu1 %2208  ;;  %v2218_v46 = vpop.permute.xlu0 %2217 }
  0xfd   : > { %28990 = vmatmul.mubr.f32.vlgmr.msra.gmra.mrb[0].mxu1 %v35078_v19  ;;  %28890 = vmatprep.mubr.msk.f32.mxu0 %vm34727_vm5, %v41285_v28  ;;  %v35330_v40 = vsub.f32 %v2264_v20, %v35326_v39  ;;  %v2252_v47 = vsel %vm417_vm6, %v2209_v22, %v2218_v46 }
  0xfe   : > { %28992 = vmatprep.mubr.msk.f32.mxu1 %vm34727_vm5, %v41285_v28  ;;  %31513 = vmatpush3.bf16.msra.mxu0 %v34910_v16 }
  0xff   : > { %31549 = vmatpush3.bf16.msra.mxu1 %v34910_v16  ;;  %31514 = vmatprep.subr.bf16.mxu0 %v41287_v15 }
 0x100   : > { %31550 = vmatprep.subr.bf16.mxu1 %v41287_v15  ;;  %28891 = vmatmul.mubr.f32.gmra.mrb[2].mxu0 %v35124_v61  ;;  %v35367_v24 = vpop.permute.xlu0 %2854 }
 0x101   : > { %28993 = vmatmul.mubr.f32.gmra.mrb[2].mxu1 %v35140_v7  ;;  %28893 = vmatprep.mubr.msk.f32.mxu0 %vm34727_vm5, %v41285_v28 }
 0x102   : > { %28995 = vmatprep.mubr.msk.f32.mxu1 %vm34727_vm5, %v41285_v28  ;;  %31516 = vmatpush3.bf16.msra.mxu0 %v34931_v25 }
 0x103   : > { %31552 = vmatpush3.bf16.msra.mxu1 %v34931_v25 }
 0x104   : > { %31577 = vmatprep.subr.bf16.mxu1 %v41287_v15  ;;  %28894 = vmatmul.mubr.f32.gmra.mrb[4].mxu0 %v35178_v58  ;;  %v35373_v62 = vpop.permute.xlu0 %2863 }
 0x105   : > { %28996 = vmatmul.mubr.f32.gmra.mrb[4].mxu1 %v35180_v59  ;;  %28904 = vmatprep.mubr.msk.f32.mxu0 %vm34727_vm5, %v41285_v28 }
 0x106   : > { %29006 = vmatprep.mubr.msk.f32.mxu1 %vm34727_vm5, %v41285_v28 }
 0x108   : > { %28905 = vmatmul.mubr.f32.vlgmr.msra.gmra.mrb[0].mxu0 %v35076_v18  ;;  %v35337_v18 = vpop.permute.xlu1 %2845  ;;  %v35377_v9 = vpop.permute.xlu0 %2872 }
 0x109   : > { %29007 = vmatmul.mubr.f32.vlgmr.msra.gmra.mrb[0].mxu1 %v35078_v19  ;;  %28907 = vmatprep.mubr.msk.f32.mxu0 %vm34727_vm5, %v41285_v28  ;;  %v2343_v19 = vand.u32 4294901760, %v35330_v40 }
 0x10a   : > { %29009 = vmatprep.mubr.msk.f32.mxu1 %vm34727_vm5, %v41285_v28  ;;  %31579 = vmatpush3.bf16.msra.mxu1 %v34910_v16 }
 0x10b   : > { %31580 = vmatprep.subr.bf16.mxu1 %v41287_v15  ;;  %v2344_v42 = vsub.f32 %v35330_v40, %v2343_v19 }
 0x10c   : > { %28908 = vmatmul.mubr.f32.gmra.mrb[2].mxu0 %v35124_v61  ;;  %v2227_v61 = vpop.permute.xlu1 %2226  ;;  %v35381_v23 = vpop.permute.xlu0 %2881 }
 0x10d   : > { %29010 = vmatmul.mubr.f32.gmra.mrb[2].mxu1 %v35140_v7  ;;  %28910 = vmatprep.mubr.msk.f32.mxu0 %vm34727_vm5, %v41285_v28  ;;  %v2345_v7 = vand.u32 4294901760, %v2344_v42  ;;  %v2255_v50 = vsel %vm421_vm7, %v2252_v47, %v2227_v61 }
 0x10e   : > { %29012 = vmatprep.mubr.msk.f32.mxu1 %vm34727_vm5, %v41285_v28  ;;  %31582 = vmatpush3.bf16.msra.mxu1 %v34931_v25 }
 0x10f   : > { %31583 = vmatprep.subr.bf16.mxu1 %v41287_v15 }
 0x110   : > { %28911 = vmatmul.mubr.f32.gmra.mrb[4].mxu0 %v35178_v58  ;;  %v2236_v45 = vpop.permute.xlu1 %2235  ;;  %v2220_v38 = vpop.permute.xlu0 %2219 }
 0x111   : > { %29013 = vmatmul.mubr.f32.gmra.mrb[4].mxu1 %v35180_v59  ;;  %v2258_v51 = vsel %vm425_vm8, %v2255_v50, %v2236_v45 }
 0x112   : > { %29077 = vmatprep.mubr.msk.f32.mxu1 %vm34727_vm5, %v41285_v28 }
 0x114   : > { %v2245_v49 = vpop.permute.xlu1 %2244 }
 0x115   : > { %29078 = vmatmul.mubr.f32.vlgmr.msra.gmra.mrb[6].mxu1 %v2345_v7  ;;  %v2261_v52 = vsel %vm429_vm9, %v2258_v51, %v2245_v49 }
 0x116   : > { %29080 = vmatprep.mubr.msk.f32.mxu1 %vm34727_vm5, %v41285_v28  ;;  %31585 = vmatpush3.bf16.msra.mxu1 %v35015_v48  ;;  %v2267_v1 = vsel %vm433_vm10, %v2261_v52, 0 }
 0x117   : > { %31586 = vmatprep.subr.bf16.mxu1 %v41287_v15  ;;  %v35370_v59 = vand.u32 4294901760, %v2267_v1 }
 0x118   : > { %v2211_v58 = vpop.permute.xlu1 %2210 }
 0x119   : > { %v2352_v60 = vsub.f32 %v2267_v1, %v35370_v59  ;;  %v2253_v3 = vsel %vm417_vm6, %v2211_v58, %v2220_v38 }
 0x11a   : > { %31588 = vmatpush3.bf16.msra.mxu1 %v35021_v53 }
 0x11b   : > { %31589 = vmatprep.subr.bf16.mxu1 %v41287_v15  ;;  %v2353_v2 = vand.u32 4294901760, %v2352_v60 }
 0x11c   : > { %v35375_v63 = vpop.permute.xlu1 %2847 }
 0x11d   : > { %v2354_v4 = vsub.f32 %v2352_v60, %v2353_v2 }
 0x11f   : > { %v2355_v5 = vand.u32 4294901760, %v2354_v4 }
 0x120   : > { %v2229_v11 = vpop.permute.xlu1 %2228 }
 0x121   : > { %29081 = vmatmul.mubr.f32.gmra.mrb[8].mxu1 %v2355_v5  ;;  %v2256_v12 = vsel %vm421_vm7, %v2253_v3, %v2229_v11 }
 0x122   : > { %29083 = vmatprep.mubr.msk.f32.mxu1 %vm34727_vm5, %v41285_v28 }
 0x124   : > { %v2238_v37 = vpop.permute.xlu1 %2237 }
 0x125   : > { %v2259_v0 = vsel %vm425_vm8, %v2256_v12, %v2238_v37 }
 0x128   : > { %v2247_v8 = vpop.permute.xlu1 %2246 }
 0x129   : > { %v2262_v13 = vsel %vm429_vm9, %v2259_v0, %v2247_v8 }
 0x12a   : > { %v2270_v14 = vsel %vm433_vm10, %v2262_v13, 0 }
 0x12b   : > { %v35388_v20 = vand.u32 4294901760, %v2270_v14 }
 0x12d   : > { %v2362_v22 = vsub.f32 %v2270_v14, %v35388_v20 }
 0x12f   : > { %v2363_v42 = vand.u32 4294901760, %v2362_v22 }
 0x131   : > { %v2364_v61 = vsub.f32 %v2362_v22, %v2363_v42 }
 0x133   : > { %v2365_v7 = vand.u32 4294901760, %v2364_v61 }
 0x135   : > { %29084 = vmatmul.mubr.f32.gmra.mrb[10].mxu1 %v2365_v7 }
 0x136   : > { %29094 = vmatprep.mubr.msk.f32.mxu1 %vm34727_vm5, %v41285_v28 }
 0x139   : > { %29095 = vmatmul.mubr.f32.vlgmr.msra.gmra.mrb[6].mxu1 %v35326_v39 }
 0x13a   : > { %29097 = vmatprep.mubr.msk.f32.mxu1 %vm34727_vm5, %v41285_v28  ;;  %31591 = vmatpush3.bf16.msra.mxu1 %v35027_v54 }
 0x13b   : > { %31592 = vmatprep.subr.bf16.mxu1 %v41287_v15 }
 0x13d   : > { %29098 = vmatmul.mubr.f32.gmra.mrb[8].mxu1 %v35370_v59 }
 0x13e   : > { %29100 = vmatprep.mubr.msk.f32.mxu1 %vm34727_vm5, %v41285_v28  ;;  %31594 = vmatpush3.bf16.msra.mxu1 %v35029_v55 }
 0x13f   : > { %31595 = vmatprep.subr.bf16.mxu1 %v41287_v15 }
 0x141   : > { %29101 = vmatmul.mubr.f32.gmra.mrb[10].mxu1 %v35388_v20 }
 0x142   : > { %29111 = vmatprep.mubr.msk.f32.mxu1 %vm34727_vm5, %v41285_v28 }
 0x145   : > { %29112 = vmatmul.mubr.f32.vlgmr.msra.gmra.mrb[6].mxu1 %v35330_v40  ;;  %v341_v40 = vlaneseq }
 0x146   : > { %29114 = vmatprep.mubr.msk.f32.mxu1 %vm34727_vm5, %v41285_v28  ;;  %31597 = vmatpush3.bf16.msra.mxu1 %v34910_v16 }
 0x147   : > { %31598 = vmatprep.subr.bf16.mxu1 %v41287_v15  ;;  %v345_v46 = vand.u32 127, %v341_v40 }
 0x149   : > { %29115 = vmatmul.mubr.f32.gmra.mrb[8].mxu1 %v2352_v60 }
 0x14a   : > { %29117 = vmatprep.mubr.msk.f32.mxu1 %vm34727_vm5, %v41285_v28  ;;  %31600 = vmatpush3.bf16.msra.mxu1 %v34931_v25 }
 0x14b   : > { %31601 = vmatprep.subr.bf16.mxu1 %v41287_v15 }
 0x14d   : > { %29118 = vmatmul.mubr.f32.gmra.mrb[10].mxu1 %v2362_v22 }
 0x14e   : > { %29128 = vmatprep.mubr.msk.f32.mxu1 %vm34727_vm5, %v41285_v28 }
 0x151   : > { %29129 = vmatmul.mubr.f32.vlgmr.msra.gmra.mrb[6].mxu1 %v2343_v19  ;;  %v342_v19 = vshrl.u32 %v341_v40, 7 }
 0x152   : > { %29131 = vmatprep.mubr.msk.f32.mxu1 %vm34727_vm5, %v41285_v28  ;;  %31603 = vmatpush3.bf16.msra.mxu1 %v35031_v56 }
 0x153   : > { %31604 = vmatprep.subr.bf16.mxu1 %v41287_v15  ;;  %v343_v45 = vadd.s32 8, %v342_v19  ;;  %v346_v47 = vmul.u32 2, %v342_v19 }
 0x155   : > { %29132 = vmatmul.mubr.f32.gmra.mrb[8].mxu1 %v2353_v2  ;;  %v347_v49 = vmul.u32 2, %v343_v45  ;;  %vm348_vm11 = vcmp.eq.s32.totalorder %v345_v46, %v346_v47 }
 0x156   : > { %29134 = vmatprep.mubr.msk.f32.mxu1 %vm34727_vm5, %v41285_v28  ;;  %31606 = vmatpush3.bf16.msra.mxu1 %v35033_v57  ;;  %v35439_v50 = vsel %vm348_vm11, 1.0, %v41285_v28  ;;  %vm18643_vm11 = vcmask 998400  }
 0x157   : > { %31607 = vmatprep.subr.bf16.mxu1 %v41287_v15  ;;  %41560 = vst [vmem:[#allocation12_spill] sm:$0xff] %v35439_v50  ;;  %vm35441_vm13 = vcmp.eq.s32.totalorder %v345_v46, %v347_v49  ;;  %v1680_v52 = vsel %vm1678_vm12, %v35439_v50, 0 }
 0x158   : > { %v35447_v1 = vsub.f32 %v1680_v52, %v1680_v52  ;;  %v35471_v8 = vsel %vm35441_vm13, 1.0, %v41285_v28  ;;  %vm18635_vm13 = vcmask 408576  }
 0x159   : > { %29135 = vmatmul.mubr.f32.gmra.mrb[10].mxu1 %v2363_v42  ;;  %41566 = vst [vmem:[#allocation16_spill] sm:$0xff] %v35471_v8 }
 0x15a   : > { %29145 = vmatprep.mubr.msk.f32.mxu1 %vm34727_vm5, %v41285_v28  ;;  %41563 = vst [vmem:[#allocation13_spill] sm:$0xff] %v35447_v1  ;;  %v35453_v58 = vand.u32 4294901760, %v35447_v1 }
 0x15c   : > { %41564 = vst [vmem:[#allocation14_spill] sm:$0xff] %v35453_v58  ;;  %v1760_v60 = vsub.f32 %v35447_v1, %v35453_v58 }
 0x15d   : > { %29146 = vmatmul.mubr.f32.vlgmr.msra.gmra.mrb[6].mxu1 %v35326_v39 }
 0x15e   : > { %29148 = vmatprep.mubr.msk.f32.mxu1 %vm34727_vm5, %v41285_v28  ;;  %31609 = vmatpush3.bf16.msra.mxu1 %v34910_v16  ;;  %v35458_v2 = vand.u32 4294901760, %v1760_v60 }
 0x15f   : > { %31610 = vmatprep.subr.bf16.mxu1 %v41287_v15 }
 0x160   : > { %41565 = vst [vmem:[#allocation15_spill] sm:$0xff] %v35458_v2  ;;  %29021 = vmatprep.mubr.f32.mxu0 %v35458_v2 }
 0x161   : > { %29149 = vmatmul.mubr.f32.gmra.mrb[8].mxu1 %v35370_v59 }
 0x162   : > { %29151 = vmatprep.mubr.msk.f32.mxu1 %vm34727_vm5, %v41285_v28  ;;  %31612 = vmatpush3.bf16.msra.mxu1 %v34931_v25 }
 0x165   : > { %29152 = vmatmul.mubr.f32.gmra.mrb[10].mxu1 %v35388_v20 }
 0x166   : > { %29162 = vmatprep.mubr.msk.f32.mxu1 %vm34727_vm5, %v41285_v28 }
 0x169   : > { %29163 = vmatmul.mubr.f32.vlgmr.msra.gmra.mrb[6].mxu1 %v35326_v39 }
 0x16a   : > { %29165 = vmatprep.mubr.msk.f32.mxu1 %vm34727_vm5, %v41285_v28 }
 0x16d   : > { %29166 = vmatmul.mubr.f32.gmra.mrb[8].mxu1 %v35370_v59 }
 0x16e   : > { %29168 = vmatprep.mubr.msk.f32.mxu1 %vm34727_vm5, %v41285_v28 }
 0x171   : > { %29169 = vmatmul.mubr.f32.gmra.mrb[10].mxu1 %v35388_v20  ;;  %v1683_v20 = vsel %vm1678_vm12, %v35471_v8, 0 }
 0x172   : > { %29279 = vmatprep.mubr.f32.mxu1 %v35458_v2  ;;  %v35476_v46 = vsub.f32 %v1683_v20, %v1683_v20 }
 0x174   : > { %41567 = vst [vmem:[#allocation17_spill] sm:$0xff] %v35476_v46 }
 0x1db   : > { %v1002_v4 = vpop.f32.mrb[0].mxu0 }
 0x1dc   : > { %v1639_v5 = vpop.f32.mrb[0].mxu1  ;;  %v28906_v11 = vpop.f32.mrb[1].mxu0 }
 0x1dd   : > { %v1655_v39 = vmax.f32 %v1002_v4, %v1639_v5  ;;  %v29008_v37 = vpop.f32.mrb[1].mxu1  ;;  %v35482_v5 = vand.u32 4294901760, %v35476_v46 }
 0x1df   : > { %v1008_v38 = vpop.f32.mrb[2].mxu0  ;;  %v1661_v13 = vrot.slane %v1655_v39, 1  ;;  %41568 = vst [vmem:[#allocation18_spill] sm:$0xff] %v35482_v5 }
 0x1e0   : > { %v1645_v3 = vpop.f32.mrb[2].mxu1  ;;  %v28909_v59 = vpop.f32.mrb[3].mxu0 }
 0x1e1   : > { %v1656_v12 = vmax.f32 %v1008_v38, %v1645_v3  ;;  %v29011_v0 = vpop.f32.mrb[3].mxu1  ;;  %v35490_v3 = vld [vmem:[%s34864_s17] sm:$0xff] }
 0x1e2   : > { %4017 = vrot.lane.b32.xlu1 %v35490_v3, %s41303_s23 }
 0x1e3   : > { %v1662_v14 = vrot.slane %v1656_v12, 1  ;;  %v1014_v22 = vpop.f32.mrb[4].mxu0 }
 0x1e4   : > { %v1651_v42 = vpop.f32.mrb[4].mxu1  ;;  %v28912_v7 = vpop.f32.mrb[5].mxu0 }
 0x1e5   : > { %v1663_v61 = vsel %vm357_vm0, %v1661_v13, %v1662_v14  ;;  %v1657_v40 = vmax.f32 %v1014_v22, %v1651_v42  ;;  %v29014_v19 = vpop.f32.mrb[5].mxu1  ;;  %v1770_v13 = vsub.f32 %v35476_v46, %v35482_v5 }
 0x1e6   : > { %v1669_v45 = vmax.f32 %v1655_v39, %v1663_v61  ;;  %4654 = vrot.lane.b32.xlu1 %v35490_v3, %s41283_s20 }
 0x1e7   : > { %v1664_v47 = vrot.slane %v1657_v40, 1  ;;  %v35508_v61 = vand.u32 4294901760, %v1770_v13 }
 0x1e8   : > { %v1690_v49 = vand.u32 4294901760, %v1669_v45 }
 0x1e9   : > { %v1665_v51 = vsel %vm357_vm0, %v1662_v14, %v1664_v47  ;;  %v1671_v52 = vmax.f32 %v1657_v40, %v1664_v47  ;;  %41569 = vst [vmem:[#allocation19_spill] sm:$0xff] %v35508_v61 }
 0x1ea   : > { %v1779_v60 = vsub.f32 %v1669_v45, %v1690_v49  ;;  %v1670_v4 = vmax.f32 %v1656_v12, %v1665_v51  ;;  %4666 = vrot.lane.b32.xlu1 %v34899_v10, %s41301_s29  ;;  %v35520_v51 = vld [vmem:[%s34864_s17 + $0x8] sm:$0xff] }
 0x1eb   : > { %v1687_v11 = vsel %vm1685_vm14, %v1671_v52, 0  ;;  %4019 = vrot.lane.b32.xlu0 %v35520_v51, %s41303_s23 }
 0x1ec   : > { %v1693_v39 = vand.u32 4294901760, %v1670_v4  ;;  %v35487_v37 = vand.u32 4294901760, %v1687_v11  ;;  %v1780_v38 = vand.u32 4294901760, %v1779_v60 }
 0x1ee   : > { %v35494_v59 = vpack.c.bf16 %v1693_v39, %v1690_v49  ;;  %v1786_v12 = vsub.f32 %v1670_v4, %v1693_v39  ;;  %v1793_v0 = vsub.f32 %v1687_v11, %v35487_v37  ;;  %v1781_v14 = vsub.f32 %v1779_v60, %v1780_v38  ;;  %4675 = vrot.lane.b32.xlu1 %v34921_v21, %s41289_s15 }
 0x1ef   : > { %4656 = vrot.lane.b32.xlu0 %v35520_v51, %s41283_s20  ;;  %v2888_v4 = vsel %vm417_vm6, %v35282_v36, %v35317_v17  ;;  %v2889_v36 = vsel %vm417_vm6, %v35337_v18, %v35367_v24 }
 0x1f0   : > { %31554 = vmatprep.subr.bf16.mxu0 %v35494_v59  ;;  %v1787_v20 = vand.u32 4294901760, %v1786_v12  ;;  %v35502_v22 = vand.u32 4294901760, %v1793_v0  ;;  %v31561_v42 = vpack.c.bf16 %v1786_v12, %v1779_v60  ;;  %v1782_v19 = vand.u32 4294901760, %v1781_v14  ;;  %v2857_v60 = vpop.permute.xlu0 %2856 }
 0x1f1   : > { %31556 = vmatpush3.bf16.msra.mxu0 %v35494_v59  ;;  %v2891_v39 = vsel %vm421_vm7, %v2888_v4, %v35332_v41  ;;  %v2892_v41 = vsel %vm421_vm7, %v2889_v36, %v35373_v62 }
 0x1f2   : > { %29019 = vmatprep.subr.mxu0 %v35487_v37  ;;  %v1788_v7 = vsub.f32 %v1786_v12, %v1787_v20  ;;  %v31569_v40 = vpack.c.bf16 %v1787_v20, %v1780_v38  ;;  %v1795_v47 = vsub.f32 %v1793_v0, %v35502_v22  ;;  %4684 = vrot.lane.b32.xlu1 %v34942_v27, %s34725_s19  ;;  %v35582_v12 = vld [vmem:[%s34864_s17 + $0x10] sm:$0xff] }
 0x1f3   : > { %4668 = vrot.lane.b32.xlu0 %v34974_v32, %s41301_s29  ;;  %v2894_v17 = vsel %vm425_vm8, %v2891_v39, %v35348_v43  ;;  %v2890_v38 = vsel %vm417_vm6, %v35375_v63, %v2857_v60  ;;  %v2895_v24 = vsel %vm425_vm8, %v2892_v41, %v35377_v9 }
 0x1f4   : > { %v1789_v45 = vand.u32 4294901760, %v1788_v7  ;;  %v1796_v52 = vand.u32 4294901760, %v1795_v47  ;;  %v2866_v11 = vpop.permute.xlu0 %2865  ;;  %v2897_v43 = vsel %vm429_vm9, %v2894_v17, %v35355_v44  ;;  %v2898_v44 = vsel %vm429_vm9, %v2895_v24, %v35381_v23 }
 0x1f5   : > { %29020 = vmatpush3.msra.mxu0 %v35487_v37  ;;  %v2893_v62 = vsel %vm421_vm7, %v2890_v38, %v2866_v11  ;;  %v2901_v63 = vsel %vm433_vm10, %v2897_v43, 0  ;;  %v2904_v14 = vsel %vm433_vm10, %v2898_v44, 0 }
 0x1f6   : > { %29022 = vmatmul.mubr.f32.vlgmr.msra.gmra.mrb[6].mxu0 %v35508_v61  ;;  %v31557_v49 = vpack.c.bf16 %v1789_v45, %v1782_v19  ;;  %4028 = vrot.lane.b32.xlu1 %v34961_v30, %s41281_s18  ;;  %v35590_v13 = vand.u32 4294901760, %v2901_v63 }
 0x1f7   : > { %29030 = vmatprep.mubr.msk.f32.mxu0 %vm1678_vm12, %v35439_v50  ;;  %4677 = vrot.lane.b32.xlu0 %v34985_v34, %s41289_s15 }
 0x1f8   : > { %31558 = vmatprep.subr.bf16.mxu0 %v31557_v49  ;;  %v2875_v18 = vpop.permute.xlu0 %2874  ;;  %v35605_v23 = vsub.f32 %v2901_v63, %v35590_v13 }
 0x1f9   : > { %31560 = vmatpush3.bf16.msra.mxu0 %v31557_v49  ;;  %v2896_v9 = vsel %vm425_vm8, %v2893_v62, %v2875_v18 }
 0x1fa   : > { %29028 = vmatprep.subr.mxu0 %v1796_v52  ;;  %4037 = vrot.lane.b32.xlu1 %v34974_v32, %s41275_s21 }
 0x1fb   : > { %4686 = vrot.lane.b32.xlu0 %v34993_v35, %s34725_s19 }
 0x1fd   : > { %29029 = vmatpush3.msra.mxu0 %v1796_v52 }
 0x1fe   : > { %29031 = vmatmul.mubr.msk.f32.vlgmr.msra.gmra.mrb[6].mxu0 %vm1678_vm12, %v35471_v8  ;;  %31562 = vmatprep.subr.bf16.mxu0 %v31561_v42 }
 0x1ff   : > { %31564 = vmatpush3.bf16.msra.mxu0 %v31561_v42  ;;  %29039 = vmatprep.mubr.f32.mxu0 %v35447_v1 }
 0x200   : > { %29037 = vmatprep.subr.mxu0 %v1793_v0  ;;  %4046 = vrot.lane.b32.xlu1 %v34985_v34, %s34744_s16 }
 0x201   : > { %4030 = vrot.lane.b32.xlu0 %v34939_v26, %s41281_s18 }
 0x203   : > { %29038 = vmatpush3.msra.mxu0 %v1793_v0  ;;  %v2884_v0 = vpop.permute.xlu0 %2883 }
 0x204   : > { %31566 = vmatprep.subr.bf16.mxu0 %v35494_v59  ;;  %4055 = vrot.lane.b32.xlu1 %v34993_v35, %s34746_s9  ;;  %v2899_v20 = vsel %vm429_vm9, %v2896_v9, %v2884_v0 }
 0x205   : > { %4039 = vrot.lane.b32.xlu0 %v34957_v29, %s41275_s21  ;;  %v2907_v42 = vsel %vm433_vm10, %v2899_v20, 0 }
 0x206   : > { %29040 = vmatmul.mubr.f32.vlgmr.msra.gmra.mrb[6].mxu0 %v35476_v46 }
 0x207   : > { %31568 = vmatpush3.bf16.msra.mxu0 %v35494_v59  ;;  %29048 = vmatprep.mubr.f32.mxu0 %v35453_v58  ;;  %v4027_v43 = vpop.permute.xlu0 %4026 }
 0x208   : > { %29046 = vmatprep.subr.mxu0 %v35487_v37  ;;  %4021 = vrot.lane.b32.xlu1 %v35582_v12, %s41303_s23 }
 0x209   : > { %4048 = vrot.lane.b32.xlu0 %v34968_v31, %s34744_s16 }
 0x20b   : > { %29047 = vmatpush3.msra.mxu0 %v35487_v37  ;;  %v4036_v24 = vpop.permute.xlu0 %4035 }
 0x20c   : > { %31570 = vmatprep.subr.bf16.mxu0 %v31569_v40  ;;  %4658 = vrot.lane.b32.xlu1 %v35582_v12, %s41283_s20 }
 0x20d   : > { %4057 = vrot.lane.b32.xlu0 %v34981_v33, %s34746_s9  ;;  %s41570_s9 = smov 127  }
 0x20e   : > { %29049 = vmatmul.mubr.f32.vlgmr.msra.gmra.mrb[6].mxu0 %v35482_v5 }
 0x20f   : > { %31572 = vmatpush3.bf16.msra.mxu0 %v31569_v40  ;;  %29057 = vmatprep.mubr.msk.f32.mxu0 %vm1678_vm12, %v35439_v50  ;;  %v35620_v40 = vand.u32 4294901760, %v2907_v42  ;;  %v4045_v9 = vpop.permute.xlu0 %4044 }
 0x210   : > { %29055 = vmatprep.subr.mxu0 %v35502_v22  ;;  %4670 = vrot.lane.b32.xlu1 %v34957_v29, %s41301_s29 }
 0x213   : > { %29056 = vmatpush3.msra.mxu0 %v35502_v22  ;;  %v35607_v22 = vand.u32 4294901760, %v2904_v14  ;;  %v4054_v20 = vpop.permute.xlu0 %4053 }
 0x214   : > { %31574 = vmatprep.subr.bf16.mxu0 %v35494_v59  ;;  %4679 = vrot.lane.b32.xlu1 %v34968_v31, %s41289_s15 }
 0x215   : > { %v35618_v7 = vsub.f32 %v2904_v14, %v35607_v22 }
 0x216   : > { %29058 = vmatmul.mubr.msk.f32.vlgmr.msra.gmra.mrb[6].mxu0 %vm1678_vm12, %v35471_v8 }
 0x217   : > { %31576 = vmatpush3.bf16.msra.mxu0 %v35494_v59  ;;  %29066 = vmatprep.mubr.msk.f32.mxu0 %vm1678_vm12, %v35439_v50  ;;  %v2980_v59 = vand.u32 4294901760, %v35605_v23  ;;  %v2990_v45 = vand.u32 4294901760, %v35618_v7 }
 0x218   : > { %29064 = vmatprep.subr.mxu0 %v35487_v37  ;;  %4688 = vrot.lane.b32.xlu1 %v34981_v33, %s34725_s19  ;;  %s41571_s19 = smov 125  }
 0x219   : > { %v2981_v19 = vsub.f32 %v35605_v23, %v2980_v59  ;;  %v2991_v49 = vsub.f32 %v35618_v7, %v2990_v45 }
 0x21b   : > { %29065 = vmatpush3.msra.mxu0 %v35487_v37  ;;  %v35631_v37 = vsub.f32 %v2907_v42, %v35620_v40  ;;  %v2982_v47 = vand.u32 4294901760, %v2981_v19  ;;  %v2992_v60 = vand.u32 4294901760, %v2991_v49 }
 0x21c   : > { %31613 = vmatprep.subr.bf16.mxu0 %v41287_v15  ;;  %5831 = vrot.lane.b32.xlu1 %v34879_v6, %s41570_s9 }
 0x21d   : > { %v3000_v52 = vand.u32 4294901760, %v35631_v37 }
 0x21e   : > { %29067 = vmatmul.mubr.msk.f32.vlgmr.msra.gmra.mrb[6].mxu0 %vm1678_vm12, %v35471_v8 }
 0x21f   : > { %31615 = vmatpush3.bf16.msra.mxu0 %v34910_v16  ;;  %29179 = vmatprep.mubr.msk.f32.mxu0 %vm34727_vm5, %v41285_v28  ;;  %v3001_v4 = vsub.f32 %v35631_v37, %v3000_v52 }
 0x220   : > { %31616 = vmatprep.subr.bf16.mxu0 %v41287_v15  ;;  %6468 = vrot.lane.b32.xlu1 %v34879_v6, %s41295_s8 }
 0x221   : > { %v3002_v11 = vand.u32 4294901760, %v3001_v4 }
 0x223   : > { %31618 = vmatpush3.bf16.msra.mxu0 %v34931_v25 }
 0x224   : > { %31619 = vmatprep.subr.bf16.mxu0 %v41287_v15  ;;  %6477 = vrot.lane.b32.xlu1 %v34899_v10, %s41293_s22 }
 0x226   : > { %29180 = vmatmul.mubr.f32.vlgmr.msra.gmra.mrb[8].mxu0 %v2982_v47 }
 0x227   : > { %29182 = vmatprep.mubr.msk.f32.mxu0 %vm34727_vm5, %v41285_v28  ;;  %31621 = vmatpush3.bf16.msra.mxu0 %v35015_v48 }
 0x228   : > { %31622 = vmatprep.subr.bf16.mxu0 %v41287_v15  ;;  %6486 = vrot.lane.b32.xlu1 %v34921_v21, %s34733_s13 }
 0x22a   : > { %29183 = vmatmul.mubr.f32.gmra.mrb[10].mxu0 %v2992_v60 }
 0x22b   : > { %29185 = vmatprep.mubr.msk.f32.mxu0 %vm34727_vm5, %v41285_v28  ;;  %31624 = vmatpush3.bf16.msra.mxu0 %v35021_v53 }
 0x22c   : > { %31625 = vmatprep.subr.bf16.mxu0 %v41287_v15  ;;  %6495 = vrot.lane.b32.xlu1 %v34942_v27, %s34734_s14 }
 0x22e   : > { %29186 = vmatmul.mubr.f32.gmra.mrb[12].mxu0 %v3002_v11 }
 0x22f   : > { %29196 = vmatprep.mubr.msk.f32.mxu0 %vm34727_vm5, %v41285_v28 }
 0x230   : > { %5833 = vrot.lane.b32.xlu1 %v34961_v30, %s41570_s9 }
 0x232   : > { %29197 = vmatmul.mubr.f32.vlgmr.msra.gmra.mrb[8].mxu0 %v35590_v13 }
 0x233   : > { %29199 = vmatprep.mubr.msk.f32.mxu0 %vm34727_vm5, %v41285_v28  ;;  %31627 = vmatpush3.bf16.msra.mxu0 %v35027_v54 }
 0x234   : > { %31628 = vmatprep.subr.bf16.mxu0 %v41287_v15  ;;  %6470 = vrot.lane.b32.xlu1 %v34961_v30, %s41295_s8 }
 0x236   : > { %29200 = vmatmul.mubr.f32.gmra.mrb[10].mxu0 %v35607_v22 }
 0x237   : > { %29202 = vmatprep.mubr.msk.f32.mxu0 %vm34727_vm5, %v41285_v28  ;;  %31630 = vmatpush3.bf16.msra.mxu0 %v35029_v55 }
 0x238   : > { %31631 = vmatprep.subr.bf16.mxu0 %v41287_v15  ;;  %6479 = vrot.lane.b32.xlu1 %v34974_v32, %s41293_s22 }
 0x23a   : > { %29203 = vmatmul.mubr.f32.gmra.mrb[12].mxu0 %v35620_v40 }
 0x23b   : > { %29213 = vmatprep.mubr.msk.f32.mxu0 %vm34727_vm5, %v41285_v28 }
 0x23c   : > { %6488 = vrot.lane.b32.xlu1 %v34985_v34, %s34733_s13  ;;  %v35695_v39 = vpop.f32.mrb[6].mxu1 }
 0x23d   : > { %v29164_v36 = vpop.f32.mrb[7].mxu1 }
 0x23e   : > { %29214 = vmatmul.mubr.f32.vlgmr.msra.gmra.mrb[8].mxu0 %v35605_v23 }
 0x23f   : > { %29216 = vmatprep.mubr.msk.f32.mxu0 %vm34727_vm5, %v41285_v28  ;;  %31633 = vmatpush3.bf16.msra.mxu0 %v34910_v16 }
 0x240   : > { %31634 = vmatprep.subr.bf16.mxu0 %v41287_v15  ;;  %6497 = vrot.lane.b32.xlu1 %v34993_v35, %s34734_s14  ;;  %v35701_v17 = vpop.f32.mrb[8].mxu1 }
 0x241   : > { %v29167_v41 = vpop.f32.mrb[9].mxu1 }
 0x242   : > { %29217 = vmatmul.mubr.f32.gmra.mrb[10].mxu0 %v35618_v7 }
 0x243   : > { %29219 = vmatprep.mubr.msk.f32.mxu0 %vm34727_vm5, %v41285_v28  ;;  %31636 = vmatpush3.bf16.msra.mxu0 %v34931_v25 }
 0x244   : > { %31637 = vmatprep.subr.bf16.mxu0 %v41287_v15  ;;  %5835 = vrot.lane.b32.xlu1 %v34939_v26, %s41570_s9  ;;  %v35709_v38 = vpop.f32.mrb[10].mxu1 }
 0x245   : > { %v29170_v18 = vpop.f32.mrb[11].mxu1 }
 0x246   : > { %29220 = vmatmul.mubr.f32.gmra.mrb[12].mxu0 %v35631_v37 }
 0x247   : > { %29230 = vmatprep.mubr.msk.f32.mxu0 %vm34727_vm5, %v41285_v28 }
 0x248   : > { %6472 = vrot.lane.b32.xlu1 %v34939_v26, %s41295_s8 }
 0x24a   : > { %29231 = vmatmul.mubr.f32.vlgmr.msra.gmra.mrb[8].mxu0 %v2980_v59 }
 0x24b   : > { %29233 = vmatprep.mubr.msk.f32.mxu0 %vm34727_vm5, %v41285_v28  ;;  %31639 = vmatpush3.bf16.msra.mxu0 %v35031_v56 }
 0x24c   : > { %31640 = vmatprep.subr.bf16.mxu0 %v41287_v15  ;;  %6481 = vrot.lane.b32.xlu1 %v34957_v29, %s41293_s22 }
 0x24e   : > { %29234 = vmatmul.mubr.f32.gmra.mrb[10].mxu0 %v2990_v45 }
 0x24f   : > { %29236 = vmatprep.mubr.msk.f32.mxu0 %vm34727_vm5, %v41285_v28  ;;  %31642 = vmatpush3.bf16.msra.mxu0 %v35033_v57 }
 0x250   : > { %31643 = vmatprep.subr.bf16.mxu0 %v41287_v15  ;;  %6490 = vrot.lane.b32.xlu1 %v34968_v31, %s34733_s13 }
 0x252   : > { %29237 = vmatmul.mubr.f32.gmra.mrb[12].mxu0 %v3000_v52 }
 0x253   : > { %29247 = vmatprep.mubr.msk.f32.mxu0 %vm34727_vm5, %v41285_v28 }
 0x254   : > { %6499 = vrot.lane.b32.xlu1 %v34981_v33, %s34734_s14  ;;  %v4018_v62 = vpop.permute.xlu1 %4017  ;;  %s41277_s14 = smov 118  }
 0x255   : > { %v4062_v63 = vsel %vm417_vm6, %v4018_v62, %v4027_v43 }
 0x256   : > { %29248 = vmatmul.mubr.f32.vlgmr.msra.gmra.mrb[8].mxu0 %v35590_v13  ;;  %v4065_v44 = vsel %vm421_vm7, %v4062_v63, %v4036_v24 }
 0x257   : > { %29250 = vmatprep.mubr.msk.f32.mxu0 %vm34727_vm5, %v41285_v28  ;;  %31645 = vmatpush3.bf16.msra.mxu0 %v34910_v16  ;;  %v4068_v14 = vsel %vm425_vm8, %v4065_v44, %v4045_v9 }
 0x258   : > { %31646 = vmatprep.subr.bf16.mxu0 %v41287_v15  ;;  %7642 = vrot.lane.b32.xlu1 %v34879_v6, %s41571_s19  ;;  %v35743_v0 = vpop.permute.xlu1 %4654  ;;  %v4071_v23 = vsel %vm429_vm9, %v4068_v14, %v4054_v20 }
 0x25a   : > { %29251 = vmatmul.mubr.f32.gmra.mrb[10].mxu0 %v35607_v22 }
 0x25b   : > { %29253 = vmatprep.mubr.msk.f32.mxu0 %vm34727_vm5, %v41285_v28  ;;  %31648 = vmatpush3.bf16.msra.mxu0 %v34931_v25 }
 0x25c   : > { %31673 = vmatprep.subr.bf16.mxu0 %v41287_v15  ;;  %8279 = vrot.lane.b32.xlu1 %v34879_v6, %s41303_s23  ;;  %v35760_v59 = vpop.permute.xlu1 %4666 }
 0x25d   : > { %v4020_v7 = vpop.permute.xlu0 %4019 }
 0x25e   : > { %29254 = vmatmul.mubr.f32.gmra.mrb[12].mxu0 %v35620_v40 }
 0x25f   : > { %29264 = vmatprep.mubr.msk.f32.mxu0 %vm34727_vm5, %v41285_v28 }
 0x260   : > { %8288 = vrot.lane.b32.xlu1 %v34899_v10, %s41281_s18  ;;  %v35779_v47 = vpop.permute.xlu1 %4675 }
 0x261   : > { %v35772_v19 = vpop.permute.xlu0 %4656 }
 0x262   : > { %29265 = vmatmul.mubr.f32.vlgmr.msra.gmra.mrb[8].mxu0 %v35590_v13  ;;  %v4075_v13 = vsel %vm433_vm10, %v4071_v23, 0 }
 0x263   : > { %29267 = vmatprep.mubr.msk.f32.mxu0 %vm34727_vm5, %v41285_v28  ;;  %31675 = vmatpush3.bf16.msra.mxu0 %v34910_v16  ;;  %v35758_v42 = vand.u32 4294901760, %v4075_v13 }
 0x264   : > { %31676 = vmatprep.subr.bf16.mxu0 %v41287_v15  ;;  %8297 = vrot.lane.b32.xlu1 %v34921_v21, %s41275_s21  ;;  %v35788_v52 = vpop.permute.xlu1 %4684 }
 0x265   : > { %v35783_v49 = vpop.permute.xlu0 %4668 }
 0x266   : > { %29268 = vmatmul.mubr.f32.gmra.mrb[10].mxu0 %v35607_v22  ;;  %v35767_v22 = vsub.f32 %v4075_v13, %v35758_v42 }
 0x267   : > { %29270 = vmatprep.mubr.msk.f32.mxu0 %vm34727_vm5, %v41285_v28  ;;  %31678 = vmatpush3.bf16.msra.mxu0 %v34931_v25 }
 0x268   : > { %31679 = vmatprep.subr.bf16.mxu0 %v41287_v15  ;;  %v4154_v37 = vand.u32 4294901760, %v35767_v22  ;;  %8306 = vrot.lane.b32.xlu1 %v34942_v27, %s34744_s16  ;;  %v4029_v4 = vpop.permute.xlu1 %4028 }
 0x269   : > { %v35793_v60 = vpop.permute.xlu0 %4677  ;;  %v4063_v36 = vsel %vm417_vm6, %v4020_v7, %v4029_v4 }
 0x26a   : > { %29271 = vmatmul.mubr.f32.gmra.mrb[12].mxu0 %v35620_v40  ;;  %v4155_v45 = vsub.f32 %v35767_v22, %v4154_v37 }
 0x26b   : > { %29335 = vmatprep.mubr.msk.f32.mxu0 %vm34727_vm5, %v41285_v28 }
 0x26c   : > { %v4156_v40 = vand.u32 4294901760, %v4155_v45  ;;  %7644 = vrot.lane.b32.xlu1 %v34961_v30, %s41571_s19  ;;  %v4038_v41 = vpop.permute.xlu1 %4037 }
 0x26d   : > { %v35799_v11 = vpop.permute.xlu0 %4686  ;;  %v4066_v18 = vsel %vm421_vm7, %v4063_v36, %v4038_v41 }
 0x26e   : > { %29336 = vmatmul.mubr.f32.vlgmr.msra.gmra.mrb[14].mxu0 %v4156_v40 }
 0x26f   : > { %29338 = vmatprep.mubr.msk.f32.mxu0 %vm34727_vm5, %v41285_v28  ;;  %31681 = vmatpush3.bf16.msra.mxu0 %v35015_v48 }
 0x270   : > { %31682 = vmatprep.subr.bf16.mxu0 %v41287_v15  ;;  %8281 = vrot.lane.b32.xlu1 %v34961_v30, %s41303_s23 }
 0x272   : > { %v4047_v24 = vpop.permute.xlu1 %4046 }
 0x273   : > { %31684 = vmatpush3.bf16.msra.mxu0 %v35021_v53  ;;  %v4031_v43 = vpop.permute.xlu0 %4030  ;;  %v4069_v62 = vsel %vm425_vm8, %v4066_v18, %v4047_v24 }
 0x274   : > { %31685 = vmatprep.subr.bf16.mxu0 %v41287_v15  ;;  %8290 = vrot.lane.b32.xlu1 %v34974_v32, %s41281_s18 }
 0x276   : > { %v4056_v44 = vpop.permute.xlu1 %4055 }
 0x277   : > { %v4040_v63 = vpop.permute.xlu0 %4039  ;;  %v4072_v9 = vsel %vm429_vm9, %v4069_v62, %v4056_v44 }
 0x278   : > { %8299 = vrot.lane.b32.xlu1 %v34985_v34, %s41275_s21  ;;  %v4078_v14 = vsel %vm433_vm10, %v4072_v9, 0 }
 0x279   : > { %v35812_v20 = vand.u32 4294901760, %v4078_v14 }
 0x27a   : > { %v4022_v13 = vpop.permute.xlu1 %4021 }
 0x27b   : > { %v4049_v23 = vpop.permute.xlu0 %4048  ;;  %v4163_v7 = vsub.f32 %v4078_v14, %v35812_v20  ;;  %v4064_v45 = vsel %vm417_vm6, %v4022_v13, %v4031_v43 }
 0x27c   : > { %8308 = vrot.lane.b32.xlu1 %v34993_v35, %s34744_s16  ;;  %v4067_v40 = vsel %vm421_vm7, %v4064_v45, %v4040_v63 }
 0x27d   : > { %v4070_v4 = vsel %vm425_vm8, %v4067_v40, %v4049_v23  ;;  %v4164_v41 = vand.u32 4294901760, %v4163_v7 }
 0x27e   : > { %v35826_v43 = vpop.permute.xlu1 %4658 }
 0x27f   : > { %v4058_v36 = vpop.permute.xlu0 %4057  ;;  %v4165_v62 = vsub.f32 %v4163_v7, %v4164_v41 }
 0x280   : > { %7646 = vrot.lane.b32.xlu1 %v34939_v26, %s41571_s19  ;;  %v4073_v18 = vsel %vm429_vm9, %v4070_v4, %v4058_v36 }
 0x281   : > { %v4081_v24 = vsel %vm433_vm10, %v4073_v18, 0  ;;  %v4166_v9 = vand.u32 4294901760, %v4165_v62 }
 0x282   : > { %v35824_v44 = vand.u32 4294901760, %v4081_v24  ;;  %v35833_v13 = vpop.permute.xlu1 %4670 }
 0x283   : > { %29339 = vmatmul.mubr.f32.gmra.mrb[16].mxu0 %v4166_v9 }
 0x284   : > { %8283 = vrot.lane.b32.xlu1 %v34939_v26, %s41303_s23  ;;  %v4173_v14 = vsub.f32 %v4081_v24, %v35824_v44  ;;  %29341 = vmatprep.mubr.msk.f32.mxu0 %vm34727_vm5, %v41285_v28 }
 0x286   : > { %v4174_v63 = vand.u32 4294901760, %v4173_v14  ;;  %v35841_v40 = vpop.permute.xlu1 %4679 }
 0x288   : > { %8292 = vrot.lane.b32.xlu1 %v34957_v29, %s41281_s18  ;;  %v4175_v23 = vsub.f32 %v4173_v14, %v4174_v63  ;;  %s41297_s18 = smov 116  }
 0x28a   : > { %v4176_v45 = vand.u32 4294901760, %v4175_v23  ;;  %v35851_v4 = vpop.permute.xlu1 %4688 }
 0x28c   : > { %8301 = vrot.lane.b32.xlu1 %v34968_v31, %s41275_s21  ;;  %29342 = vmatmul.mubr.f32.gmra.mrb[18].mxu0 %v4176_v45  ;;  %s41279_s21 = smov 117  }
 0x28d   : > { %29352 = vmatprep.mubr.msk.f32.mxu0 %vm34727_vm5, %v41285_v28 }
 0x28e   : > { %v35860_v36 = vpop.permute.xlu1 %5831 }
 0x290   : > { %8310 = vrot.lane.b32.xlu1 %v34981_v33, %s34744_s16  ;;  %29353 = vmatmul.mubr.f32.vlgmr.msra.gmra.mrb[14].mxu0 %v35758_v42  ;;  %s41310_s16 = smov 122  }
 0x291   : > { %29355 = vmatprep.mubr.msk.f32.mxu0 %vm34727_vm5, %v41285_v28  ;;  %31687 = vmatpush3.bf16.msra.mxu0 %v35027_v54 }
 0x292   : > { %31688 = vmatprep.subr.bf16.mxu0 %v41287_v15  ;;  %v35867_v18 = vpop.permute.xlu1 %6468  ;;  %5822 = vrot.lane.b32.xlu0 %v35490_v3, %s41310_s16 }
 0x294   : > { %9453 = vrot.lane.b32.xlu1 %v34879_v6, %s41283_s20  ;;  %29356 = vmatmul.mubr.f32.gmra.mrb[16].mxu0 %v35812_v20 }
 0x295   : > { %29358 = vmatprep.mubr.msk.f32.mxu0 %vm34727_vm5, %v41285_v28  ;;  %31690 = vmatpush3.bf16.msra.mxu0 %v35029_v55 }
 0x296   : > { %31691 = vmatprep.subr.bf16.mxu0 %v41287_v15  ;;  %v35875_v24 = vpop.permute.xlu1 %6477 }
 0x298   : > { %29359 = vmatmul.mubr.f32.gmra.mrb[18].mxu0 %v35824_v44  ;;  %10084 = vrot.lane.b32.xlu1 %v34879_v6, %s41310_s16 }
 0x299   : > { %29369 = vmatprep.mubr.msk.f32.mxu0 %vm34727_vm5, %v41285_v28 }
 0x29c   : > { %29370 = vmatmul.mubr.f32.vlgmr.msra.gmra.mrb[14].mxu0 %v35767_v22  ;;  %9465 = vrot.lane.b32.xlu1 %v34921_v21, %s41301_s29 }
 0x29d   : > { %29372 = vmatprep.mubr.msk.f32.mxu0 %vm34727_vm5, %v41285_v28  ;;  %31693 = vmatpush3.bf16.msra.mxu0 %v34910_v16 }
 0x29e   : > { %31694 = vmatprep.subr.bf16.mxu0 %v41287_v15 }
 0x2a0   : > { %29373 = vmatmul.mubr.f32.gmra.mrb[16].mxu0 %v4163_v7  ;;  %v35887_v7 = vpop.permute.xlu1 %6486  ;;  %9474 = vrot.lane.b32.xlu1 %v34942_v27, %s41289_s15 }
 0x2a1   : > { %29375 = vmatprep.mubr.msk.f32.mxu0 %vm34727_vm5, %v41285_v28  ;;  %31696 = vmatpush3.bf16.msra.mxu0 %v34931_v25  ;;  %41572 = vst [vmem:[#allocation20_spill] sm:$0xff] %v35887_v7 }
 0x2a2   : > { %31697 = vmatprep.subr.bf16.mxu0 %v41287_v15 }
 0x2a4   : > { %29376 = vmatmul.mubr.f32.gmra.mrb[18].mxu0 %v4173_v14  ;;  %v35895_v22 = vpop.permute.xlu1 %6495  ;;  %9446 = vrot.lane.b32.xlu1 %v35520_v51, %s41277_s14  ;;  %s41576_s14 = smov 4  }
 0x2a5   : > { %29386 = vmatprep.mubr.msk.f32.mxu0 %vm34727_vm5, %v41285_v28  ;;  %41573 = vst [vmem:[#allocation21_spill] sm:$0xff] %v35895_v22 }
 0x2a8   : > { %29387 = vmatmul.mubr.f32.vlgmr.msra.gmra.mrb[14].mxu0 %v4154_v37  ;;  %v35901_v37 = vpop.permute.xlu1 %5833  ;;  %10077 = vrot.lane.b32.xlu1 %v35520_v51, %s41279_s21  ;;  %s41578_s21 = smov 9  }
 0x2a9   : > { %29389 = vmatprep.mubr.msk.f32.mxu0 %vm34727_vm5, %v41285_v28  ;;  %31699 = vmatpush3.bf16.msra.mxu0 %v35031_v56 }
 0x2aa   : > { %31700 = vmatprep.subr.bf16.mxu0 %v41287_v15 }
 0x2ac   : > { %29390 = vmatmul.mubr.f32.gmra.mrb[16].mxu0 %v4164_v41  ;;  %v35910_v41 = vpop.permute.xlu1 %6470  ;;  %10095 = vrot.lane.b32.xlu1 %v34974_v32, %s41570_s9 }
 0x2ad   : > { %29392 = vmatprep.mubr.msk.f32.mxu0 %vm34727_vm5, %v41285_v28  ;;  %31702 = vmatpush3.bf16.msra.mxu0 %v35033_v57 }
 0x2ae   : > { %31703 = vmatprep.subr.bf16.mxu0 %v41287_v15 }
 0x2b0   : > { %29393 = vmatmul.mubr.f32.gmra.mrb[18].mxu0 %v4174_v63  ;;  %v35918_v62 = vpop.permute.xlu1 %6479  ;;  %10104 = vrot.lane.b32.xlu1 %v34985_v34, %s41576_s14 }
 0x2b1   : > { %29403 = vmatprep.mubr.msk.f32.mxu0 %vm34727_vm5, %v41285_v28  ;;  %41574 = vst [vmem:[#allocation22_spill] sm:$0xff] %v35918_v62 }
 0x2b4   : > { %29404 = vmatmul.mubr.f32.vlgmr.msra.gmra.mrb[14].mxu0 %v35758_v42  ;;  %v35925_v9 = vpop.permute.xlu1 %6488  ;;  %10113 = vrot.lane.b32.xlu1 %v34993_v35, %s41578_s21 }
 0x2b5   : > { %29406 = vmatprep.mubr.msk.f32.mxu0 %vm34727_vm5, %v41285_v28  ;;  %31705 = vmatpush3.bf16.msra.mxu0 %v34910_v16  ;;  %41575 = vst [vmem:[#allocation23_spill] sm:$0xff] %v35925_v9 }
 0x2b6   : > { %31706 = vmatprep.subr.bf16.mxu0 %v41287_v15 }
 0x2b8   : > { %29407 = vmatmul.mubr.f32.gmra.mrb[16].mxu0 %v35812_v20  ;;  %v35932_v14 = vpop.permute.xlu1 %6497  ;;  %9457 = vrot.lane.b32.xlu1 %v34939_v26, %s41283_s20  ;;  %s41291_s20 = smov 115  }
 0x2b9   : > { %29409 = vmatprep.mubr.msk.f32.mxu0 %vm34727_vm5, %v41285_v28  ;;  %31708 = vmatpush3.bf16.msra.mxu0 %v34931_v25  ;;  %41577 = vst [vmem:[#allocation24_spill] sm:$0xff] %v35932_v14 }
 0x2bc   : > { %29410 = vmatmul.mubr.f32.gmra.mrb[18].mxu0 %v35824_v44  ;;  %v35939_v63 = vpop.permute.xlu1 %5835  ;;  %10088 = vrot.lane.b32.xlu1 %v34939_v26, %s41310_s16 }
 0x2bd   : > { %29420 = vmatprep.mubr.msk.f32.mxu0 %vm34727_vm5, %v41285_v28 }
 0x2c0   : > { %29421 = vmatmul.mubr.f32.vlgmr.msra.gmra.mrb[14].mxu0 %v35758_v42  ;;  %v35945_v42 = vpop.permute.xlu1 %6472  ;;  %9469 = vrot.lane.b32.xlu1 %v34968_v31, %s41301_s29 }
 0x2c1   : > { %29423 = vmatprep.mubr.msk.f32.mxu0 %vm34727_vm5, %v41285_v28  ;;  %41579 = vst [vmem:[#allocation25_spill] sm:$0xff] %v35945_v42 }
 0x2c4   : > { %29424 = vmatmul.mubr.f32.gmra.mrb[16].mxu0 %v35812_v20  ;;  %v35949_v20 = vpop.permute.xlu1 %6481  ;;  %9478 = vrot.lane.b32.xlu1 %v34981_v33, %s41289_s15  ;;  %s41305_s15 = smov 114  }
 0x2c5   : > { %29426 = vmatprep.mubr.msk.f32.mxu0 %vm34727_vm5, %v41285_v28  ;;  %41580 = vst [vmem:[#allocation26_spill] sm:$0xff] %v35949_v20 }
 0x2c8   : > { %29427 = vmatmul.mubr.f32.gmra.mrb[18].mxu0 %v35824_v44  ;;  %v35955_v23 = vpop.permute.xlu1 %6490  ;;  %11249 = vrot.lane.b32.xlu1 %v35490_v3, %s41297_s18 }
 0x2c9   : > { %29537 = vmatprep.mubr.f32.mxu0 %v35458_v2  ;;  %41581 = vst [vmem:[#allocation27_spill] sm:$0xff] %v35955_v23 }
 0x2cc   : > { %v35959_v44 = vpop.permute.xlu1 %6499  ;;  %11886 = vrot.lane.b32.xlu1 %v35490_v3, %s41291_s20 }
 0x2cd   : > { %41582 = vst [vmem:[#allocation28_spill] sm:$0xff] %v35959_v44 }
 0x2d0   : > { %11267 = vrot.lane.b32.xlu1 %v34899_v10, %s41295_s8  ;;  %v35965_v45 = vpop.permute.xlu1 %7642 }
 0x2d1   : > { %41583 = vst [vmem:[#allocation29_spill] sm:$0xff] %v35965_v45 }
 0x2d4   : > { %11276 = vrot.lane.b32.xlu1 %v34921_v21, %s41293_s22  ;;  %v35973_v23 = vpop.permute.xlu1 %8279 }
 0x2d5   : > { %41586 = vst [vmem:[#allocation32_spill] sm:$0xff] %v35973_v23 }
 0x2d8   : > { %11285 = vrot.lane.b32.xlu1 %v34942_v27, %s34733_s13  ;;  %v35979_v44 = vpop.permute.xlu1 %8288 }
 0x2d9   : > { %41587 = vst [vmem:[#allocation33_spill] sm:$0xff] %v35979_v44 }
 0x2dc   : > { %11251 = vrot.lane.b32.xlu1 %v35520_v51, %s41297_s18  ;;  %v35983_v45 = vpop.permute.xlu1 %8297 }
 0x2dd   : > { %41588 = vst [vmem:[#allocation34_spill] sm:$0xff] %v35983_v45 }
 0x2e0   : > { %11888 = vrot.lane.b32.xlu1 %v35520_v51, %s41291_s20 }
 0x2e4   : > { %11269 = vrot.lane.b32.xlu1 %v34974_v32, %s41295_s8 }
 0x2e8   : > { %11278 = vrot.lane.b32.xlu1 %v34985_v34, %s41293_s22 }
 0x2ec   : > { %11287 = vrot.lane.b32.xlu1 %v34993_v35, %s34733_s13 }
 0x2f0   : > { %11253 = vrot.lane.b32.xlu1 %v35582_v12, %s41297_s18  ;;  %s41599_s18 = smov 118  }
 0x2f1   : > { %v35967_v28 = vpop.f32.mrb[6].mxu0 }
 0x2f2   : > { %41584 = vst [vmem:[#allocation30_spill] sm:$0xff] %v35967_v28  ;;  %v35969_v15 = vpop.f32.mrb[7].mxu0  ;;  %v35989_v28 = vpop.permute.xlu1 %8306 }
 0x2f3   : > { %41585 = vst [vmem:[#allocation31_spill] sm:$0xff] %v35969_v15  ;;  %41589 = vst [vmem:[#allocation35_spill] sm:$0xff] %v35989_v28 }
 0x2f4   : > { %11890 = vrot.lane.b32.xlu1 %v35582_v12, %s41291_s20  ;;  %s41307_s20 = smov 113  }
 0x2f6   : > { %v35993_v15 = vpop.permute.xlu1 %7644 }
 0x2f7   : > { %41590 = vst [vmem:[#allocation36_spill] sm:$0xff] %v35993_v15 }
 0x2f8   : > { %11271 = vrot.lane.b32.xlu1 %v34957_v29, %s41295_s8  ;;  %s41308_s8 = smov 121  }
 0x2f9   : > { %6459 = vrot.lane.b32.xlu0 %v35490_v3, %s41308_s8 }
 0x2fa   : > { %v35999_v45 = vpop.permute.xlu1 %8281 }
 0x2fb   : > { %41591 = vst [vmem:[#allocation37_spill] sm:$0xff] %v35999_v45 }
 0x2fc   : > { %11280 = vrot.lane.b32.xlu1 %v34968_v31, %s41293_s22  ;;  %s41596_s22 = smov 1  }
 0x2fd   : > { %5840 = vrot.lane.b32.xlu0 %v34899_v10, %s41576_s14 }
 0x2fe   : > { %v36003_v44 = vpop.permute.xlu1 %8290 }
 0x2ff   : > { %41592 = vst [vmem:[#allocation38_spill] sm:$0xff] %v36003_v44 }
 0x300   : > { %11289 = vrot.lane.b32.xlu1 %v34981_v33, %s34733_s13  ;;  %s41299_s13 = smov 119  }
 0x301   : > { %5849 = vrot.lane.b32.xlu0 %v34921_v21, %s41578_s21 }
 0x302   : > { %v36009_v28 = vpop.permute.xlu1 %8299 }
 0x303   : > { %41593 = vst [vmem:[#allocation39_spill] sm:$0xff] %v36009_v28 }
 0x304   : > { %13060 = vrot.lane.b32.xlu1 %v35490_v3, %s41305_s15 }
 0x306   : > { %v36013_v23 = vpop.permute.xlu1 %8308 }
 0x307   : > { %41594 = vst [vmem:[#allocation40_spill] sm:$0xff] %v36013_v23 }
 0x308   : > { %13697 = vrot.lane.b32.xlu1 %v35490_v3, %s41307_s20 }
 0x30a   : > { %v36019_v44 = vpop.permute.xlu1 %7646 }
 0x30b   : > { %41595 = vst [vmem:[#allocation41_spill] sm:$0xff] %v36019_v44 }
 0x30c   : > { %13078 = vrot.lane.b32.xlu1 %v34899_v10, %s41303_s23  ;;  %s41604_s23 = smov 14  }
 0x30d   : > { %5858 = vrot.lane.b32.xlu0 %v34942_v27, %s41604_s23 }
 0x30e   : > { %v36023_v45 = vpop.permute.xlu1 %8283 }
 0x30f   : > { %41597 = vst [vmem:[#allocation42_spill] sm:$0xff] %v36023_v45 }
 0x310   : > { %13087 = vrot.lane.b32.xlu1 %v34921_v21, %s41596_s22 }
 0x311   : > { %5824 = vrot.lane.b32.xlu0 %v35520_v51, %s41310_s16 }
 0x312   : > { %v36030_v14 = vpop.permute.xlu1 %8292 }
 0x313   : > { %41598 = vst [vmem:[#allocation43_spill] sm:$0xff] %v36030_v14 }
 0x314   : > { %13727 = vrot.lane.b32.xlu1 %v34942_v27, %s41301_s29  ;;  %s41602_s29 = smov 6  }
 0x315   : > { %6461 = vrot.lane.b32.xlu0 %v35520_v51, %s41308_s8  ;;  %s41610_s8 = smov 117  }
 0x316   : > { %v36041_v42 = vpop.permute.xlu1 %8301 }
 0x317   : > { %41600 = vst [vmem:[#allocation44_spill] sm:$0xff] %v36041_v42 }
 0x318   : > { %13071 = vrot.lane.b32.xlu1 %v34961_v30, %s41299_s13  ;;  %s41601_s13 = smov 123  }
 0x319   : > { %5842 = vrot.lane.b32.xlu0 %v34974_v32, %s41576_s14 }
 0x31c   : > { %13708 = vrot.lane.b32.xlu1 %v34961_v30, %s41599_s18 }
 0x31d   : > { %5851 = vrot.lane.b32.xlu0 %v34985_v34, %s41578_s21 }
 0x320   : > { %13717 = vrot.lane.b32.xlu1 %v34974_v32, %s41601_s13 }
 0x321   : > { %5860 = vrot.lane.b32.xlu0 %v34993_v35, %s41604_s23 }
 0x324   : > { %13098 = vrot.lane.b32.xlu1 %v34993_v35, %s41602_s29 }
 0x325   : > { %5826 = vrot.lane.b32.xlu0 %v35582_v12, %s41310_s16  ;;  %s41615_s16 = smov 126  }
 0x328   : > { %13064 = vrot.lane.b32.xlu1 %v35582_v12, %s41305_s15  ;;  %s41606_s15 = smov 124  }
 0x329   : > { %6463 = vrot.lane.b32.xlu0 %v35582_v12, %s41613_s1 }
 0x32c   : > { %13701 = vrot.lane.b32.xlu1 %v35582_v12, %s41307_s20  ;;  %s41609_s20 = smov 5   ;;  %v4695_v12 = vsel %vm417_vm6, %v35826_v43, %v34939_v26 }
 0x32d   : > { %5844 = vrot.lane.b32.xlu0 %v34957_v29, %s41576_s14  ;;  %v4698_v43 = vsel %vm421_vm7, %v4695_v12, %v35833_v13 }
 0x330   : > { %13082 = vrot.lane.b32.xlu1 %v34957_v29, %s41606_s15 }
 0x331   : > { %5853 = vrot.lane.b32.xlu0 %v34968_v31, %s41578_s21 }
 0x334   : > { %13091 = vrot.lane.b32.xlu1 %v34968_v31, %s41596_s22 }
 0x335   : > { %v3464_v28 = vpop.f32.mrb[8].mxu0  ;;  %5862 = vrot.lane.b32.xlu0 %v34981_v33, %s41604_s23  ;;  %s41631_s23 = smov 119  }
 0x336   : > { %v3480_v23 = vmax.f32 %v35695_v39, %v3464_v28  ;;  %v29266_v15 = vpop.f32.mrb[9].mxu0 }
 0x338   : > { %v3486_v9 = vrot.slane %v3480_v23, 1  ;;  %13731 = vrot.lane.b32.xlu1 %v34981_v33, %s41609_s20 }
 0x339   : > { %v3470_v44 = vpop.f32.mrb[10].mxu0 }
 0x33a   : > { %v3481_v45 = vmax.f32 %v35701_v17, %v3470_v44  ;;  %v29269_v20 = vpop.f32.mrb[11].mxu0 }
 0x33c   : > { %v3487_v28 = vrot.slane %v3481_v45, 1  ;;  %14874 = vrot.lane.b32.xlu1 %v34879_v6, %s41610_s8 }
 0x33d   : > { %v3476_v15 = vpop.f32.mrb[12].mxu0 }
 0x33e   : > { %v3488_v39 = vsel %vm357_vm0, %v3486_v9, %v3487_v28  ;;  %v3482_v14 = vmax.f32 %v35709_v38, %v3476_v15  ;;  %v29272_v22 = vpop.f32.mrb[13].mxu0  ;;  %v36051_v15 = vpop.permute.xlu1 %8310 }
 0x33f   : > { %v3494_v3 = vmax.f32 %v3480_v23, %v3488_v39  ;;  %41603 = vst [vmem:[#allocation45_spill] sm:$0xff] %v36051_v15 }
 0x340   : > { %v3489_v17 = vrot.slane %v3482_v14, 1  ;;  %15511 = vrot.lane.b32.xlu1 %v34879_v6, %s41612_s0 }
 0x341   : > { %v3501_v20 = vand.u32 4294901760, %v3494_v3 }
 0x342   : > { %v3490_v44 = vsel %vm357_vm0, %v3487_v28, %v3489_v17  ;;  %v3496_v62 = vmax.f32 %v3482_v14, %v3489_v17  ;;  %v36068_v15 = vpop.permute.xlu1 %9453 }
 0x343   : > { %v3590_v9 = vsub.f32 %v3494_v3, %v3501_v20  ;;  %v3495_v38 = vmax.f32 %v3481_v45, %v3490_v44  ;;  %41605 = vst [vmem:[#allocation46_spill] sm:$0xff] %v36068_v15 }
 0x344   : > { %v3498_v22 = vsel %vm1685_vm14, %v3496_v62, 0  ;;  %15520 = vrot.lane.b32.xlu1 %v34899_v10, %s41613_s1 }
 0x345   : > { %v3504_v23 = vand.u32 4294901760, %v3495_v38  ;;  %v36055_v39 = vand.u32 4294901760, %v3498_v22  ;;  %v3591_v42 = vand.u32 4294901760, %v3590_v9 }
 0x347   : > { %v36059_v14 = vpack.c.bf16 %v3504_v23, %v3501_v20  ;;  %v3597_v28 = vsub.f32 %v3495_v38, %v3504_v23  ;;  %v3604_v3 = vsub.f32 %v3498_v22, %v36055_v39  ;;  %v3592_v62 = vsub.f32 %v3590_v9, %v3591_v42 }
 0x348   : > { %15529 = vrot.lane.b32.xlu1 %v34921_v21, %s41615_s16 }
 0x349   : > { %31650 = vmatprep.subr.bf16.mxu1 %v36059_v14  ;;  %v3598_v45 = vand.u32 4294901760, %v3597_v28  ;;  %v36065_v17 = vand.u32 4294901760, %v3604_v3  ;;  %v31657_v44 = vpack.c.bf16 %v3597_v28, %v3590_v9  ;;  %v3593_v22 = vand.u32 4294901760, %v3592_v62 }
 0x34a   : > { %31652 = vmatpush3.bf16.msra.mxu1 %v36059_v14  ;;  %v4693_v62 = vsel %vm417_vm6, %v35743_v0, %v34879_v6  ;;  %v4694_v0 = vsel %vm417_vm6, %v35772_v19, %v34961_v30 }
 0x34b   : > { %29277 = vmatprep.subr.mxu1 %v36055_v39  ;;  %v3599_v20 = vsub.f32 %v3597_v28, %v3598_v45  ;;  %v31665_v38 = vpack.c.bf16 %v3598_v45, %v3591_v42  ;;  %v3606_v7 = vsub.f32 %v3604_v3, %v36065_v17  ;;  %v36082_v28 = vpop.permute.xlu1 %10084 }
 0x34c   : > { %41607 = vst [vmem:[#allocation47_spill] sm:$0xff] %v36082_v28  ;;  %15538 = vrot.lane.b32.xlu1 %v34942_v27, %s41617_s10 }
 0x34d   : > { %v3600_v23 = vand.u32 4294901760, %v3599_v20  ;;  %v3607_v51 = vand.u32 4294901760, %v3606_v7  ;;  %v4701_v20 = vsel %vm425_vm8, %v4698_v43, %v35841_v40 }
 0x34e   : > { %29278 = vmatpush3.msra.mxu1 %v36055_v39 }
 0x34f   : > { %29280 = vmatmul.mubr.f32.vlgmr.msra.gmra.mrb[12].mxu1 %v35508_v61  ;;  %v31653_v9 = vpack.c.bf16 %v3600_v23, %v3593_v22  ;;  %v36090_v42 = vpop.permute.xlu1 %9465 }
 0x350   : > { %29288 = vmatprep.mubr.msk.f32.mxu1 %vm1678_vm12, %v35439_v50  ;;  %41608 = vst [vmem:[#allocation48_spill] sm:$0xff] %v36090_v42  ;;  %14876 = vrot.lane.b32.xlu1 %v34961_v30, %s41610_s8 }
 0x351   : > { %31654 = vmatprep.subr.bf16.mxu1 %v31653_v9 }
 0x352   : > { %31656 = vmatpush3.bf16.msra.mxu1 %v31653_v9 }
 0x353   : > { %29286 = vmatprep.subr.mxu1 %v3607_v51  ;;  %v36101_v7 = vpop.permute.xlu1 %9474 }
 0x354   : > { %41611 = vst [vmem:[#allocation49_spill] sm:$0xff] %v36101_v7  ;;  %15513 = vrot.lane.b32.xlu1 %v34961_v30, %s41612_s0 }
 0x356   : > { %29287 = vmatpush3.msra.mxu1 %v3607_v51 }
 0x357   : > { %29289 = vmatmul.mubr.msk.f32.vlgmr.msra.gmra.mrb[12].mxu1 %vm1678_vm12, %v35471_v8  ;;  %31658 = vmatprep.subr.bf16.mxu1 %v31657_v44  ;;  %v36122_v45 = vpop.permute.xlu1 %9446 }
 0x358   : > { %31660 = vmatpush3.bf16.msra.mxu1 %v31657_v44  ;;  %29297 = vmatprep.mubr.f32.mxu1 %v35447_v1  ;;  %41614 = vst [vmem:[#allocation50_spill] sm:$0xff] %v36122_v45 }
 0x359   : > { %29295 = vmatprep.subr.mxu1 %v3604_v3  ;;  %15522 = vrot.lane.b32.xlu1 %v34974_v32, %s41613_s1 }
 0x35c   : > { %29296 = vmatpush3.msra.mxu1 %v3604_v3  ;;  %v4696_v3 = vsel %vm421_vm7, %v4693_v62, %v35760_v59  ;;  %v4697_v59 = vsel %vm421_vm7, %v4694_v0, %v35783_v49  ;;  %v36145_v49 = vpop.permute.xlu1 %10077  ;;  %v41620_v62 = vmov 0.0|0.0  }
 0x35d   : > { %31662 = vmatprep.subr.bf16.mxu1 %v36059_v14  ;;  %v4699_v44 = vsel %vm425_vm8, %v4696_v3, %v35779_v47  ;;  %v4700_v47 = vsel %vm425_vm8, %v4697_v59, %v35793_v60  ;;  %41616 = vst [vmem:[#allocation51_spill] sm:$0xff] %v36145_v49  ;;  %15531 = vrot.lane.b32.xlu1 %v34985_v34, %s41615_s16 }
 0x35e   : > { %v4702_v19 = vsel %vm429_vm9, %v4699_v44, %v35788_v52  ;;  %v4703_v60 = vsel %vm429_vm9, %v4700_v47, %v35799_v11  ;;  %v4704_v11 = vsel %vm429_vm9, %v4701_v20, %v35851_v4 }
 0x35f   : > { %29298 = vmatmul.mubr.f32.vlgmr.msra.gmra.mrb[12].mxu1 %v35476_v46  ;;  %v4706_v52 = vsel %vm433_vm10, %v4702_v19, 0  ;;  %v4709_v13 = vsel %vm433_vm10, %v4703_v60, 0  ;;  %v4712_v23 = vsel %vm433_vm10, %v4704_v11, 0 }
 0x360   : > { %31664 = vmatpush3.bf16.msra.mxu1 %v36059_v14  ;;  %29306 = vmatprep.mubr.f32.mxu1 %v35453_v58  ;;  %v36166_v22 = vpop.permute.xlu1 %10095  ;;  %v36193_v51 = vand.u32 4294901760, %v4712_v23 }
 0x361   : > { %29304 = vmatprep.subr.mxu1 %v36055_v39  ;;  %41618 = vst [vmem:[#allocation52_spill] sm:$0xff] %v36166_v22  ;;  %15540 = vrot.lane.b32.xlu1 %v34993_v35, %s41617_s10 }
 0x362   : > { %v36204_v3 = vsub.f32 %v4712_v23, %v36193_v51 }
 0x364   : > { %29305 = vmatpush3.msra.mxu1 %v36055_v39  ;;  %v36187_v4 = vpop.permute.xlu1 %10104  ;;  %v41312_v47 = vand.u32 4294901760, %v36204_v3 }
 0x365   : > { %31666 = vmatprep.subr.bf16.mxu1 %v31665_v38  ;;  %41619 = vst [vmem:[#allocation53_spill] sm:$0xff] %v36187_v4  ;;  %14878 = vrot.lane.b32.xlu1 %v34939_v26, %s41610_s8 }
 0x366   : > { %v4806_v60 = vsub.f32 %v36204_v3, %v41312_v47 }
 0x367   : > { %29307 = vmatmul.mubr.f32.vlgmr.msra.gmra.mrb[12].mxu1 %v35482_v5 }
 0x368   : > { %31668 = vmatpush3.bf16.msra.mxu1 %v31665_v38  ;;  %29315 = vmatprep.mubr.msk.f32.mxu1 %vm1678_vm12, %v35439_v50  ;;  %v36160_v38 = vand.u32 4294901760, %v4706_v52  ;;  %v36211_v59 = vpop.permute.xlu1 %10113  ;;  %v4807_v20 = vand.u32 4294901760, %v4806_v60  ;;  %v5823_v60 = vpop.permute.xlu0 %5822 }
 0x369   : > { %29313 = vmatprep.subr.mxu1 %v36065_v17  ;;  %41622 = vst [vmem:[#allocation54_spill] sm:$0xff] %v36211_v59  ;;  %15515 = vrot.lane.b32.xlu1 %v34939_v26, %s41612_s0  ;;  %s41627_s0 = smov 115  }
 0x36a   : > { %v36178_v40 = vsub.f32 %v4706_v52, %v36160_v38 }
 0x36c   : > { %29314 = vmatpush3.msra.mxu1 %v36065_v17  ;;  %v36180_v17 = vand.u32 4294901760, %v4709_v13  ;;  %v36226_v43 = vpop.permute.xlu1 %9457 }
 0x36d   : > { %31670 = vmatprep.subr.bf16.mxu1 %v36059_v14  ;;  %41623 = vst [vmem:[#allocation55_spill] sm:$0xff] %v36226_v43  ;;  %15524 = vrot.lane.b32.xlu1 %v34957_v29, %s41613_s1 }
 0x36e   : > { %v36191_v9 = vsub.f32 %v4709_v13, %v36180_v17 }
 0x36f   : > { %29316 = vmatmul.mubr.msk.f32.vlgmr.msra.gmra.mrb[12].mxu1 %vm1678_vm12, %v35471_v8 }
 0x370   : > { %31672 = vmatpush3.bf16.msra.mxu1 %v36059_v14  ;;  %29324 = vmatprep.mubr.msk.f32.mxu1 %vm1678_vm12, %v35439_v50  ;;  %v4785_v14 = vand.u32 4294901760, %v36178_v40  ;;  %v41313_v44 = vand.u32 4294901760, %v36191_v9  ;;  %v36238_v13 = vpop.permute.xlu1 %10088 }
 0x371   : > { %29322 = vmatprep.subr.mxu1 %v36055_v39  ;;  %41624 = vst [vmem:[#allocation56_spill] sm:$0xff] %v36238_v13  ;;  %15533 = vrot.lane.b32.xlu1 %v34968_v31, %s41615_s16  ;;  %s41315_s16 = smov 120  }
 0x372   : > { %v4786_v0 = vsub.f32 %v36178_v40, %v4785_v14  ;;  %v4796_v19 = vsub.f32 %v36191_v9, %v41313_v44 }
 0x374   : > { %29323 = vmatpush3.msra.mxu1 %v36055_v39  ;;  %v41621_v39 = vmov 0.0   ;;  %v4787_v12 = vand.u32 4294901760, %v4786_v0  ;;  %v4797_v52 = vand.u32 4294901760, %v4796_v19  ;;  %v36250_v11 = vpop.permute.xlu1 %9469 }
 0x375   : > { %31709 = vmatprep.subr.bf16.mxu1 %v41620_v62  ;;  %41625 = vst [vmem:[#allocation57_spill] sm:$0xff] %v36250_v11  ;;  %15542 = vrot.lane.b32.xlu1 %v34981_v33, %s41617_s10  ;;  %s41629_s10 = smov 114  }
 0x377   : > { %29325 = vmatmul.mubr.msk.f32.vlgmr.msra.gmra.mrb[12].mxu1 %vm1678_vm12, %v35471_v8 }
 0x378   : > { %31711 = vmatpush3.bf16.msra.mxu1 %v34910_v16  ;;  %29437 = vmatprep.mubr.msk.f32.mxu1 %vm34727_vm5, %v41621_v39  ;;  %v36260_v23 = vpop.permute.xlu1 %9478 }
 0x379   : > { %31712 = vmatprep.subr.bf16.mxu1 %v41620_v62  ;;  %41626 = vst [vmem:[#allocation58_spill] sm:$0xff] %v36260_v23  ;;  %16685 = vrot.lane.b32.xlu1 %v34879_v6, %s41627_s0 }
 0x37c   : > { %31714 = vmatpush3.bf16.msra.mxu1 %v34931_v25  ;;  %v36273_v0 = vpop.permute.xlu1 %11249 }
 0x37d   : > { %31715 = vmatprep.subr.bf16.mxu1 %v41620_v62  ;;  %41628 = vst [vmem:[#allocation59_spill] sm:$0xff] %v36273_v0  ;;  %17322 = vrot.lane.b32.xlu1 %v34879_v6, %s41629_s10 }
 0x37f   : > { %29438 = vmatmul.mubr.f32.vlgmr.msra.gmra.mrb[14].mxu1 %v4787_v12 }
 0x380   : > { %29440 = vmatprep.mubr.msk.f32.mxu1 %vm34727_vm5, %v41621_v39  ;;  %31717 = vmatpush3.bf16.msra.mxu1 %v35015_v48  ;;  %v36283_v12 = vpop.permute.xlu1 %11886 }
 0x381   : > { %31718 = vmatprep.subr.bf16.mxu1 %v41620_v62  ;;  %41630 = vst [vmem:[#allocation60_spill] sm:$0xff] %v36283_v12  ;;  %17331 = vrot.lane.b32.xlu1 %v34899_v10, %s41631_s23 }
 0x383   : > { %29441 = vmatmul.mubr.f32.gmra.mrb[16].mxu1 %v4797_v52 }
 0x384   : > { %29443 = vmatprep.mubr.msk.f32.mxu1 %vm34727_vm5, %v41621_v39  ;;  %31720 = vmatpush3.bf16.msra.mxu1 %v35021_v53  ;;  %v36301_v47 = vpop.permute.xlu1 %11267 }
 0x385   : > { %31721 = vmatprep.subr.bf16.mxu1 %v41620_v62  ;;  %17340 = vrot.lane.b32.xlu1 %v34921_v21, %s41606_s15  ;;  %41632 = vst [vmem:[#allocation61_spill] sm:$0xff] %v36301_v47 }
 0x387   : > { %29444 = vmatmul.mubr.f32.gmra.mrb[18].mxu1 %v4807_v20 }
 0x388   : > { %29454 = vmatprep.mubr.msk.f32.mxu1 %vm34727_vm5, %v41621_v39  ;;  %v36314_v12 = vpop.permute.xlu1 %11276 }
 0x389   : > { %17349 = vrot.lane.b32.xlu1 %v34942_v27, %s41596_s22  ;;  %41634 = vst [vmem:[#allocation62_spill] sm:$0xff] %v36314_v12 }
 0x38b   : > { %29455 = vmatmul.mubr.f32.vlgmr.msra.gmra.mrb[14].mxu1 %v36160_v38 }
 0x38c   : > { %29457 = vmatprep.mubr.msk.f32.mxu1 %vm34727_vm5, %v41621_v39  ;;  %31723 = vmatpush3.bf16.msra.mxu1 %v35027_v54  ;;  %v36332_v12 = vpop.permute.xlu1 %11285 }
 0x38d   : > { %31724 = vmatprep.subr.bf16.mxu1 %v41620_v62  ;;  %16687 = vrot.lane.b32.xlu1 %v34961_v30, %s41627_s0  ;;  %41636 = vst [vmem:[#allocation63_spill] sm:$0xff] %v36332_v12 }
 0x38f   : > { %29458 = vmatmul.mubr.f32.gmra.mrb[16].mxu1 %v36180_v17 }
 0x390   : > { %29460 = vmatprep.mubr.msk.f32.mxu1 %vm34727_vm5, %v41621_v39  ;;  %31726 = vmatpush3.bf16.msra.mxu1 %v35029_v55 }
 0x391   : > { %31727 = vmatprep.subr.bf16.mxu1 %v41620_v62  ;;  %17324 = vrot.lane.b32.xlu1 %v34961_v30, %s41629_s10 }
 0x393   : > { %29461 = vmatmul.mubr.f32.gmra.mrb[18].mxu1 %v36193_v51  ;;  %v36288_v19 = vpop.f32.mrb[14].mxu0 }
 0x394   : > { %29471 = vmatprep.mubr.msk.f32.mxu1 %vm34727_vm5, %v41621_v39  ;;  %v29422_v52 = vpop.f32.mrb[15].mxu0 }
 0x395   : > { %v41633_v52 = vand.u32 4294901760, %v36191_v9  ;;  %17333 = vrot.lane.b32.xlu1 %v34974_v32, %s41631_s23 }
 0x397   : > { %29472 = vmatmul.mubr.f32.vlgmr.msra.gmra.mrb[14].mxu1 %v36178_v40  ;;  %v36296_v20 = vpop.f32.mrb[16].mxu0 }
 0x398   : > { %29474 = vmatprep.mubr.msk.f32.mxu1 %vm34727_vm5, %v41621_v39  ;;  %31729 = vmatpush3.bf16.msra.mxu1 %v34910_v16  ;;  %v29425_v44 = vpop.f32.mrb[17].mxu0 }
 0x399   : > { %31730 = vmatprep.subr.bf16.mxu1 %v41620_v62  ;;  %v36318_v44 = vpop.permute.xlu0 %6459  ;;  %17342 = vrot.lane.b32.xlu1 %v34985_v34, %s41606_s15 }
 0x39b   : > { %29475 = vmatmul.mubr.f32.gmra.mrb[16].mxu1 %v36191_v9  ;;  %v36308_v40 = vpop.f32.mrb[18].mxu0  ;;  %v41635_v9 = vand.u32 4294901760, %v36204_v3 }
 0x39c   : > { %29477 = vmatprep.mubr.msk.f32.mxu1 %vm34727_vm5, %v41621_v39  ;;  %31732 = vmatpush3.bf16.msra.mxu1 %v34931_v25 }
 0x39d   : > { %31733 = vmatprep.subr.bf16.mxu1 %v41620_v62  ;;  %17351 = vrot.lane.b32.xlu1 %v34993_v35, %s41596_s22 }
 0x39f   : > { %29478 = vmatmul.mubr.f32.gmra.mrb[18].mxu1 %v36204_v3 }
 0x3a0   : > { %29488 = vmatprep.mubr.msk.f32.mxu1 %vm34727_vm5, %v41621_v39 }
 0x3a3   : > { %29489 = vmatmul.mubr.f32.vlgmr.msra.gmra.mrb[14].mxu1 %v4785_v14  ;;  %v29428_v14 = vpop.f32.mrb[19].mxu0 }
 0x3a4   : > { %29491 = vmatprep.mubr.msk.f32.mxu1 %vm34727_vm5, %v41621_v39  ;;  %31735 = vmatpush3.bf16.msra.mxu1 %v35031_v56  ;;  %v5841_v14 = vpop.permute.xlu0 %5840 }
 0x3a5   : > { %31736 = vmatprep.subr.bf16.mxu1 %v41620_v62 }
 0x3a7   : > { %29492 = vmatmul.mubr.f32.gmra.mrb[16].mxu1 %v41633_v52  ;;  %v5867_v52 = vsel %vm417_vm6, %v5823_v60, %v35860_v36 }
 0x3a8   : > { %29494 = vmatprep.mubr.msk.f32.mxu1 %vm34727_vm5, %v41621_v39  ;;  %31738 = vmatpush3.bf16.msra.mxu1 %v35033_v57  ;;  %v5870_v3 = vsel %vm421_vm7, %v5867_v52, %v5841_v14  ;;  %v5850_v36 = vpop.permute.xlu0 %5849 }
 0x3a9   : > { %31739 = vmatprep.subr.bf16.mxu1 %v41620_v62  ;;  %v5873_v60 = vsel %vm425_vm8, %v5870_v3, %v5850_v36 }
 0x3ab   : > { %29495 = vmatmul.mubr.f32.gmra.mrb[18].mxu1 %v41635_v9  ;;  %v36344_v9 = vpop.permute.xlu1 %11251  ;;  %16689 = vrot.lane.b32.xlu1 %v34939_v26, %s41627_s0  ;;  %s41642_s0 = smov 2  }
 0x3ac   : > { %29505 = vmatprep.mubr.msk.f32.mxu1 %vm34727_vm5, %v41621_v39  ;;  %41637 = vst [vmem:[#allocation64_spill] sm:$0xff] %v36344_v9  ;;  %v5859_v52 = vpop.permute.xlu0 %5858 }
 0x3ad   : > { %v5876_v14 = vsel %vm429_vm9, %v5873_v60, %v5859_v52 }
 0x3ae   : > { %v5880_v12 = vsel %vm433_vm10, %v5876_v14, 0 }
 0x3af   : > { %29506 = vmatmul.mubr.f32.vlgmr.msra.gmra.mrb[14].mxu1 %v36160_v38  ;;  %v36353_v47 = vand.u32 4294901760, %v5880_v12  ;;  %v36363_v60 = vpop.permute.xlu1 %11888  ;;  %17326 = vrot.lane.b32.xlu1 %v34939_v26, %s41629_s10 }
 0x3b0   : > { %29508 = vmatprep.mubr.msk.f32.mxu1 %vm34727_vm5, %v41621_v39  ;;  %31741 = vmatpush3.bf16.msra.mxu1 %v34910_v16  ;;  %v5825_v3 = vpop.permute.xlu0 %5824  ;;  %41638 = vst [vmem:[#allocation65_spill] sm:$0xff] %v36363_v60 }
 0x3b1   : > { %31742 = vmatprep.subr.bf16.mxu1 %v41620_v62  ;;  %v36359_v36 = vsub.f32 %v5880_v12, %v36353_v47 }
 0x3b3   : > { %29509 = vmatmul.mubr.f32.gmra.mrb[16].mxu1 %v36180_v17  ;;  %v41314_v52 = vand.u32 4294901760, %v36359_v36  ;;  %v36380_v12 = vpop.permute.xlu1 %11269  ;;  %17335 = vrot.lane.b32.xlu1 %v34957_v29, %s41631_s23 }
 0x3b4   : > { %29511 = vmatprep.mubr.msk.f32.mxu1 %vm34727_vm5, %v41621_v39  ;;  %31744 = vmatpush3.bf16.msra.mxu1 %v34931_v25  ;;  %v36370_v14 = vpop.permute.xlu0 %6461  ;;  %41639 = vst [vmem:[#allocation66_spill] sm:$0xff] %v36380_v12 }
 0x3b5   : > { %31769 = vmatprep.subr.bf16.mxu1 %v41620_v62 }
 0x3b7   : > { %29512 = vmatmul.mubr.f32.gmra.mrb[18].mxu1 %v36193_v51  ;;  %v36391_v12 = vpop.permute.xlu1 %11278  ;;  %17344 = vrot.lane.b32.xlu1 %v34968_v31, %s41606_s15 }
 0x3b8   : > { %29522 = vmatprep.mubr.msk.f32.mxu1 %vm34727_vm5, %v41621_v39  ;;  %v5843_v60 = vpop.permute.xlu0 %5842  ;;  %41640 = vst [vmem:[#allocation67_spill] sm:$0xff] %v36391_v12 }
 0x3bb   : > { %29523 = vmatmul.mubr.f32.vlgmr.msra.gmra.mrb[14].mxu1 %v36160_v38  ;;  %v5960_v38 = vsub.f32 %v36359_v36, %v41314_v52  ;;  %v5868_v52 = vsel %vm417_vm6, %v5825_v3, %v35901_v37 }
 0x3bc   : > { %29525 = vmatprep.mubr.msk.f32.mxu1 %vm34727_vm5, %v41621_v39  ;;  %31771 = vmatpush3.bf16.msra.mxu1 %v34910_v16  ;;  %v5852_v9 = vpop.permute.xlu0 %5851 }
 0x3bd   : > { %31772 = vmatprep.subr.bf16.mxu1 %v41620_v62 }
 0x3bf   : > { %29526 = vmatmul.mubr.f32.gmra.mrb[16].mxu1 %v36180_v17  ;;  %v5961_v17 = vand.u32 4294901760, %v5960_v38  ;;  %v36403_v38 = vpop.permute.xlu1 %11287  ;;  %17353 = vrot.lane.b32.xlu1 %v34981_v33, %s41596_s22 }
 0x3c0   : > { %29528 = vmatprep.mubr.msk.f32.mxu1 %vm34727_vm5, %v41621_v39  ;;  %31774 = vmatpush3.bf16.msra.mxu1 %v34931_v25  ;;  %v5861_v3 = vpop.permute.xlu0 %5860  ;;  %41641 = vst [vmem:[#allocation68_spill] sm:$0xff] %v36403_v38 }
 0x3c1   : > { %31775 = vmatprep.subr.bf16.mxu1 %v41620_v62 }
 0x3c3   : > { %29529 = vmatmul.mubr.f32.gmra.mrb[18].mxu1 %v36193_v51  ;;  %v5871_v51 = vsel %vm421_vm7, %v5868_v52, %v5843_v60  ;;  %v36409_v60 = vld [vmem:[%s34864_s17] sm:$0xff] }
 0x3c4   : > { %29593 = vmatprep.mubr.msk.f32.mxu1 %vm34727_vm5, %v41621_v39  ;;  %v5874_v37 = vsel %vm425_vm8, %v5871_v51, %v5852_v9  ;;  %7633 = vrot.lane.b32.xlu0 %v36409_v60, %s41315_s16  ;;  %v5827_v52 = vpop.permute.xlu0 %5826  ;;  %s41643_s16 = smov 7  }
 0x3c7   : > { %29594 = vmatmul.mubr.f32.vlgmr.msra.gmra.mrb[20].mxu1 %v5961_v17  ;;  %v5877_v17 = vsel %vm429_vm9, %v5874_v37, %v5861_v3  ;;  %v5869_v37 = vsel %vm417_vm6, %v5827_v52, %v35939_v63 }
 0x3c8   : > { %29596 = vmatprep.mubr.msk.f32.mxu1 %vm34727_vm5, %v41621_v39  ;;  %31777 = vmatpush3.bf16.msra.mxu1 %v35015_v48  ;;  %v5883_v9 = vsel %vm433_vm10, %v5877_v17, 0  ;;  %v36418_v38 = vpop.permute.xlu0 %6463 }
 0x3c9   : > { %31778 = vmatprep.subr.bf16.mxu1 %v41620_v62  ;;  %v36414_v51 = vand.u32 4294901760, %v5883_v9  ;;  %8270 = vrot.lane.b32.xlu0 %v36409_v60, %s41631_s23 }
 0x3cb   : > { %v5968_v12 = vsub.f32 %v5883_v9, %v36414_v51 }
 0x3cc   : > { %31780 = vmatpush3.bf16.msra.mxu1 %v35021_v53  ;;  %v5845_v3 = vpop.permute.xlu0 %5844 }
 0x3cd   : > { %31781 = vmatprep.subr.bf16.mxu1 %v41620_v62  ;;  %7651 = vrot.lane.b32.xlu0 %v34899_v10, %s41642_s0  ;;  %v5969_v0 = vand.u32 4294901760, %v5968_v12  ;;  %v5872_v17 = vsel %vm421_vm7, %v5869_v37, %v5845_v3  ;;  %v36438_v3 = vld [vmem:[%s34864_s17 + $0x8] sm:$0xff] }
 0x3cf   : > { %v5970_v4 = vsub.f32 %v5968_v12, %v5969_v0 }
 0x3d0   : > { %v5854_v59 = vpop.permute.xlu0 %5853 }
 0x3d1   : > { %7660 = vrot.lane.b32.xlu0 %v34921_v21, %s41643_s16  ;;  %v5875_v13 = vsel %vm425_vm8, %v5872_v17, %v5854_v59  ;;  %v5971_v22 = vand.u32 4294901760, %v5970_v4  ;;  %v36463_v17 = vld [vmem:[%s34864_s17 + $0x10] sm:$0xff]  ;;  %s41647_s17 = smov 122  }
 0x3d3   : > { %29597 = vmatmul.mubr.f32.gmra.mrb[22].mxu1 %v5971_v22 }
 0x3d4   : > { %v5863_v9 = vpop.permute.xlu0 %5862  ;;  %29599 = vmatprep.mubr.msk.f32.mxu1 %vm34727_vm5, %v41621_v39 }
 0x3d5   : > { %7669 = vrot.lane.b32.xlu0 %v34942_v27, %s41644_s26  ;;  %v5878_v63 = vsel %vm429_vm9, %v5875_v13, %v5863_v9  ;;  %v41646_v9 = vand.u32 4294901760, %v36359_v36 }
 0x3d6   : > { %v5886_v52 = vsel %vm433_vm10, %v5878_v63, 0 }
 0x3d7   : > { %v36435_v37 = vand.u32 4294901760, %v5886_v52 }
 0x3d9   : > { %7635 = vrot.lane.b32.xlu0 %v36438_v3, %s41645_s30  ;;  %v5978_v4 = vsub.f32 %v5886_v52, %v36435_v37 }
 0x3db   : > { %v5979_v22 = vand.u32 4294901760, %v5978_v4 }
 0x3dd   : > { %8272 = vrot.lane.b32.xlu0 %v36438_v3, %s41631_s23  ;;  %v5980_v59 = vsub.f32 %v5978_v4, %v5979_v22 }
 0x3df   : > { %v5981_v13 = vand.u32 4294901760, %v5980_v59 }
 0x3e1   : > { %7653 = vrot.lane.b32.xlu0 %v34974_v32, %s41642_s0  ;;  %29600 = vmatmul.mubr.f32.gmra.mrb[24].mxu1 %v5981_v13 }
 0x3e2   : > { %29610 = vmatprep.mubr.msk.f32.mxu1 %vm34727_vm5, %v41621_v39 }
 0x3e5   : > { %7662 = vrot.lane.b32.xlu0 %v34985_v34, %s41643_s16  ;;  %29611 = vmatmul.mubr.f32.vlgmr.msra.gmra.mrb[20].mxu1 %v36353_v47 }
 0x3e6   : > { %29613 = vmatprep.mubr.msk.f32.mxu1 %vm34727_vm5, %v41621_v39  ;;  %31783 = vmatpush3.bf16.msra.mxu1 %v35027_v54 }
 0x3e7   : > { %31784 = vmatprep.subr.bf16.mxu1 %v41620_v62 }
 0x3e9   : > { %7671 = vrot.lane.b32.xlu0 %v34993_v35, %s41644_s26  ;;  %29614 = vmatmul.mubr.f32.gmra.mrb[22].mxu1 %v36414_v51 }
 0x3ea   : > { %29616 = vmatprep.mubr.msk.f32.mxu1 %vm34727_vm5, %v41621_v39  ;;  %31786 = vmatpush3.bf16.msra.mxu1 %v35029_v55 }
 0x3eb   : > { %31787 = vmatprep.subr.bf16.mxu1 %v41620_v62 }
 0x3ed   : > { %7637 = vrot.lane.b32.xlu0 %v36463_v17, %s41645_s30  ;;  %29617 = vmatmul.mubr.f32.gmra.mrb[24].mxu1 %v36435_v37 }
 0x3ee   : > { %29627 = vmatprep.mubr.msk.f32.mxu1 %vm34727_vm5, %v41621_v39 }
 0x3f1   : > { %8274 = vrot.lane.b32.xlu0 %v36463_v17, %s41631_s23  ;;  %29628 = vmatmul.mubr.f32.vlgmr.msra.gmra.mrb[20].mxu1 %v36359_v36 }
 0x3f2   : > { %29630 = vmatprep.mubr.msk.f32.mxu1 %vm34727_vm5, %v41621_v39  ;;  %31789 = vmatpush3.bf16.msra.mxu1 %v34910_v16 }
 0x3f3   : > { %31790 = vmatprep.subr.bf16.mxu1 %v41620_v62 }
 0x3f5   : > { %7655 = vrot.lane.b32.xlu0 %v34957_v29, %s41642_s0  ;;  %29631 = vmatmul.mubr.f32.gmra.mrb[22].mxu1 %v5968_v12 }
 0x3f6   : > { %29633 = vmatprep.mubr.msk.f32.mxu1 %vm34727_vm5, %v41621_v39  ;;  %31792 = vmatpush3.bf16.msra.mxu1 %v34931_v25 }
 0x3f7   : > { %31793 = vmatprep.subr.bf16.mxu1 %v41620_v62 }
 0x3f9   : > { %7664 = vrot.lane.b32.xlu0 %v34968_v31, %s41643_s16  ;;  %29634 = vmatmul.mubr.f32.gmra.mrb[24].mxu1 %v5978_v4  ;;  %v36571_v4 = vpop.permute.xlu1 %11253 }
 0x3fa   : > { %29644 = vmatprep.mubr.msk.f32.mxu1 %vm34727_vm5, %v41621_v39  ;;  %41652 = vst [vmem:[#allocation72_spill] sm:$0xff] %v36571_v4 }
 0x3fd   : > { %7673 = vrot.lane.b32.xlu0 %v34981_v33, %s41644_s26  ;;  %29645 = vmatmul.mubr.f32.vlgmr.msra.gmra.mrb[20].mxu1 %v41646_v9 }
 0x3fe   : > { %29647 = vmatprep.mubr.msk.f32.mxu1 %vm34727_vm5, %v41621_v39  ;;  %31795 = vmatpush3.bf16.msra.mxu1 %v35031_v56 }
 0x3ff   : > { %31796 = vmatprep.subr.bf16.mxu1 %v41620_v62 }
 0x401   : > { %9444 = vrot.lane.b32.xlu0 %v36409_v60, %s41599_s18  ;;  %29648 = vmatmul.mubr.f32.gmra.mrb[22].mxu1 %v5969_v0 }
 0x402   : > { %29650 = vmatprep.mubr.msk.f32.mxu1 %vm34727_vm5, %v41621_v39  ;;  %31798 = vmatpush3.bf16.msra.mxu1 %v35033_v57 }
 0x403   : > { %31799 = vmatprep.subr.bf16.mxu1 %v41620_v62 }
 0x405   : > { %10075 = vrot.lane.b32.xlu0 %v36409_v60, %s41610_s8  ;;  %29651 = vmatmul.mubr.f32.gmra.mrb[24].mxu1 %v5979_v22 }
 0x406   : > { %29661 = vmatprep.mubr.msk.f32.mxu1 %vm34727_vm5, %v41621_v39 }
 0x409   : > { %10093 = vrot.lane.b32.xlu0 %v34899_v10, %s41570_s9  ;;  %29662 = vmatmul.mubr.f32.vlgmr.msra.gmra.mrb[20].mxu1 %v36353_v47 }
 0x40a   : > { %29664 = vmatprep.mubr.msk.f32.mxu1 %vm34727_vm5, %v41621_v39  ;;  %31801 = vmatpush3.bf16.msra.mxu1 %v34910_v16 }
 0x40b   : > { %31802 = vmatprep.subr.bf16.mxu1 %v41620_v62 }
 0x40d   : > { %10102 = vrot.lane.b32.xlu0 %v34921_v21, %s41576_s14  ;;  %29665 = vmatmul.mubr.f32.gmra.mrb[22].mxu1 %v36414_v51 }
 0x40e   : > { %29667 = vmatprep.mubr.msk.f32.mxu1 %vm34727_vm5, %v41621_v39  ;;  %31804 = vmatpush3.bf16.msra.mxu1 %v34931_v25 }
 0x411   : > { %10111 = vrot.lane.b32.xlu0 %v34942_v27, %s41578_s21  ;;  %29668 = vmatmul.mubr.f32.gmra.mrb[24].mxu1 %v36435_v37 }
 0x412   : > { %29678 = vmatprep.mubr.msk.f32.mxu1 %vm34727_vm5, %v41621_v39 }
 0x415   : > { %9455 = vrot.lane.b32.xlu0 %v34961_v30, %s41601_s13  ;;  %29679 = vmatmul.mubr.f32.vlgmr.msra.gmra.mrb[20].mxu1 %v36353_v47 }
 0x416   : > { %29681 = vmatprep.mubr.msk.f32.mxu1 %vm34727_vm5, %v41621_v39 }
 0x419   : > { %10086 = vrot.lane.b32.xlu0 %v34961_v30, %s41647_s17  ;;  %29682 = vmatmul.mubr.f32.gmra.mrb[22].mxu1 %v36414_v51  ;;  %v36563_v51 = vld [vmem:[%s41251_s2] ss:$0 sm:$0xff] }
 0x41a   : > { %29684 = vmatprep.mubr.msk.f32.mxu1 %vm34727_vm5, %v41621_v39  ;;  %41650 = vst [vmem:[#allocation70_spill] sm:$0xff] %v36563_v51 }
 0x41d   : > { %9467 = vrot.lane.b32.xlu0 %v34985_v34, %s41609_s20  ;;  %29685 = vmatmul.mubr.f32.gmra.mrb[24].mxu1 %v36435_v37 }
 0x41e   : > { %29795 = vmatprep.mubr.f32.mxu1 %v35458_v2 }
 0x421   : > { %9476 = vrot.lane.b32.xlu0 %v34993_v35, %s41648_s12 }
 0x425   : > { %9448 = vrot.lane.b32.xlu0 %v36463_v17, %s41599_s18 }
 0x429   : > { %10079 = vrot.lane.b32.xlu0 %v36463_v17, %s41610_s8  ;;  %s26372_s8 = sshll.u32 %s34832_s28, 4 }
 0x42d   : > { %10097 = vrot.lane.b32.xlu0 %v34957_v29, %s41570_s9 }
 0x431   : > { %10106 = vrot.lane.b32.xlu0 %v34968_v31, %s41576_s14 }
 0x435   : > { %10115 = vrot.lane.b32.xlu0 %v34981_v33, %s41578_s21  ;;  %s34757_s21 = smov 30  }
 0x436   : > { %v36550_v47 = vpop.permute.xlu0 %7633 }
 0x439   : > { %11258 = vrot.lane.b32.xlu0 %v34879_v6, %s41613_s1 }
 0x43b   : > { %v36554_v0 = vpop.permute.xlu0 %8270 }
 0x43c   : > { %41649 = vst [vmem:[#allocation69_spill] sm:$0xff] %v36554_v0 }
 0x43d   : > { %11895 = vrot.lane.b32.xlu0 %v34879_v6, %s41645_s30 }
 0x43f   : > { %v36558_v12 = vpop.permute.xlu0 %7651 }
 0x441   : > { %11904 = vrot.lane.b32.xlu0 %v34899_v10, %s41571_s19 }
 0x443   : > { %v36575_v59 = vpop.permute.xlu0 %7660 }
 0x445   : > { %11913 = vrot.lane.b32.xlu0 %v34921_v21, %s41642_s0 }
 0x447   : > { %v36582_v49 = vpop.permute.xlu0 %7669 }
 0x449   : > { %11922 = vrot.lane.b32.xlu0 %v34942_v27, %s41643_s16 }
 0x44a   : > { %v29326_v36 = vpop.f32.mrb[12].mxu1 }
 0x44b   : > { %v4005_v63 = vpop.f32.mrb[13].mxu1  ;;  %v36569_v37 = vadd.f32 %v29326_v36, %v36563_v51  ;;  %v36586_v36 = vpop.permute.xlu1 %11890 }
 0x44c   : > { %v33794_v52 = vadd.f32 %v36563_v51, %v4005_v63  ;;  %41654 = vst [vmem:[#allocation74_spill] sm:$0xff] %v36586_v36  ;;  %v36593_v28 = vpop.permute.xlu0 %7635 }
 0x44d   : > { %41651 = vst [vmem:[#allocation71_spill] sm:$0xff] %v36569_v37  ;;  %v41322_v9 = vmax.f32 %v36569_v37, 0.0  ;;  %11260 = vrot.lane.b32.xlu0 %v34961_v30, %s41613_s1 }
 0x44e   : > { %v36573_v22 = vmax.f32 %v33794_v52, 0.0 }
 0x44f   : > { %v18526_v52 = vrot.slane %v41322_v9, 3  ;;  %v36598_v23 = vpop.permute.xlu1 %11271 }
 0x450   : > { %41653 = vst [vmem:[#allocation73_spill] sm:$0xff] %v36573_v22  ;;  %v18516_v13 = vrot.slane %v36573_v22, 1  ;;  %v18520_v63 = vrot.slane %v36573_v22, 2  ;;  %v18525_v4 = vrot.slane %v36573_v22, 3  ;;  %41656 = vst [vmem:[#allocation75_spill] sm:$0xff] %v36598_v23  ;;  %v36601_v36 = vpop.permute.xlu0 %8272 }
 0x451   : > { %41657 = vst [vmem:[#allocation76_spill] sm:$0xff] %v36601_v36  ;;  %11897 = vrot.lane.b32.xlu0 %v34961_v30, %s41645_s30 }
 0x452   : > { %18517 = vrot.lane.b32.xlu1 %v18516_v13, %s41648_s12  ;;  %v18527_v13 = vsel %vm387_vm2, %v18525_v4, %v18526_v52 }
 0x454   : > { %v36605_v9 = vpop.permute.xlu0 %7653 }
 0x455   : > { %11906 = vrot.lane.b32.xlu0 %v34974_v32, %s41571_s19 }
 0x456   : > { %18521 = vrot.lane.b32.xlu1 %v18520_v63, %s41655_s24 }
 0x458   : > { %v36609_v63 = vpop.permute.xlu0 %7662 }
 0x459   : > { %11915 = vrot.lane.b32.xlu0 %v34985_v34, %s41642_s0 }
 0x45a   : > { %18528 = vrot.lane.b32.xlu1 %v18527_v13, %s34757_s21 }
 0x45c   : > { %v36613_v4 = vpop.permute.xlu0 %7671 }
 0x45d   : > { %41658 = vst [vmem:[#allocation77_spill] sm:$0xff] %v36613_v4  ;;  %11924 = vrot.lane.b32.xlu0 %v34993_v35, %s41643_s16 }
 0x460   : > { %v36617_v52 = vpop.permute.xlu0 %7637 }
 0x461   : > { %11262 = vrot.lane.b32.xlu0 %v34939_v26, %s41613_s1  ;;  %s41667_s1 = smov 113  }
 0x464   : > { %v36621_v30 = vpop.permute.xlu0 %8274 }
 0x465   : > { %41659 = vst [vmem:[#allocation78_spill] sm:$0xff] %v36621_v30  ;;  %11899 = vrot.lane.b32.xlu0 %v34939_v26, %s41645_s30 }
 0x468   : > { %v36625_v13 = vpop.permute.xlu0 %7655 }
 0x469   : > { %11908 = vrot.lane.b32.xlu0 %v34957_v29, %s41571_s19 }
 0x46c   : > { %v36629_v23 = vpop.permute.xlu0 %7664 }
 0x46d   : > { %11917 = vrot.lane.b32.xlu0 %v34968_v31, %s41642_s0 }
 0x470   : > { %v36633_v22 = vpop.permute.xlu0 %7673 }
 0x471   : > { %41660 = vst [vmem:[#allocation79_spill] sm:$0xff] %v36633_v22  ;;  %11926 = vrot.lane.b32.xlu0 %v34981_v33, %s41643_s16 }
 0x474   : > { %v36637_v37 = vpop.permute.xlu0 %9444 }
 0x475   : > { %41661 = vst [vmem:[#allocation80_spill] sm:$0xff] %v36637_v37  ;;  %13069 = vrot.lane.b32.xlu0 %v34879_v6, %s41631_s23 }
 0x478   : > { %v36641_v11 = vpop.permute.xlu0 %10075 }
 0x479   : > { %41662 = vst [vmem:[#allocation81_spill] sm:$0xff] %v36641_v11  ;;  %13706 = vrot.lane.b32.xlu0 %v34879_v6, %s41599_s18 }
 0x47c   : > { %v36645_v43 = vpop.permute.xlu0 %10093 }
 0x47d   : > { %41663 = vst [vmem:[#allocation82_spill] sm:$0xff] %v36645_v43  ;;  %13715 = vrot.lane.b32.xlu0 %v34899_v10, %s41601_s13 }
 0x480   : > { %v36649_v7 = vpop.permute.xlu0 %10102 }
 0x481   : > { %41664 = vst [vmem:[#allocation83_spill] sm:$0xff] %v36649_v7  ;;  %13096 = vrot.lane.b32.xlu0 %v34942_v27, %s41602_s29 }
 0x484   : > { %v36653_v45 = vpop.permute.xlu0 %10111 }
 0x485   : > { %41665 = vst [vmem:[#allocation84_spill] sm:$0xff] %v36653_v45  ;;  %13062 = vrot.lane.b32.xlu0 %v36438_v3, %s41629_s10  ;;  %s34765_s10 = smov 22  }
 0x488   : > { %v36658_v11 = vpop.permute.xlu0 %9455 }
 0x489   : > { %41666 = vst [vmem:[#allocation85_spill] sm:$0xff] %v36658_v11  ;;  %13699 = vrot.lane.b32.xlu0 %v36438_v3, %s41667_s1 }
 0x48c   : > { %v36663_v51 = vpop.permute.xlu0 %10086 }
 0x48d   : > { %41668 = vst [vmem:[#allocation86_spill] sm:$0xff] %v36663_v51  ;;  %13080 = vrot.lane.b32.xlu0 %v34974_v32, %s41606_s15  ;;  %s34758_s15 = smov 112  }
 0x48e   : > { %v5269_v42 = vpop.f32.mrb[14].mxu1 }
 0x48f   : > { %v5285_v37 = vmax.f32 %v36288_v19, %v5269_v42  ;;  %v29524_v15 = vpop.f32.mrb[15].mxu1 }
 0x491   : > { %v5291_v7 = vrot.slane %v5285_v37, 1  ;;  %13089 = vrot.lane.b32.xlu0 %v34985_v34, %s41596_s22  ;;  %s34761_s22 = smov 109  }
 0x492   : > { %v5275_v6 = vpop.f32.mrb[16].mxu1 }
 0x493   : > { %v5286_v43 = vmax.f32 %v36296_v20, %v5275_v6  ;;  %v29527_v30 = vpop.f32.mrb[17].mxu1  ;;  %v36669_v20 = vpop.permute.xlu1 %11280 }
 0x494   : > { %41669 = vst [vmem:[#allocation87_spill] sm:$0xff] %v36669_v20  ;;  %v36671_v6 = vpop.permute.xlu0 %9467 }
 0x495   : > { %v5292_v36 = vrot.slane %v5286_v43, 1  ;;  %41670 = vst [vmem:[#allocation88_spill] sm:$0xff] %v36671_v6  ;;  %13729 = vrot.lane.b32.xlu0 %v34993_v35, %s41609_s20  ;;  %s34760_s20 = smov 110  }
 0x496   : > { %v5281_v0 = vpop.f32.mrb[18].mxu1 }
 0x497   : > { %v5293_v42 = vsel %vm357_vm0, %v5291_v7, %v5292_v36  ;;  %v5287_v15 = vmax.f32 %v36308_v40, %v5281_v0  ;;  %v29530_v19 = vpop.f32.mrb[19].mxu1  ;;  %v36683_v20 = vpop.permute.xlu1 %11289 }
 0x498   : > { %v5299_v45 = vmax.f32 %v5285_v37, %v5293_v42  ;;  %v36679_v42 = vpop.permute.xlu0 %9476  ;;  %41672 = vst [vmem:[#allocation90_spill] sm:$0xff] %v36683_v20 }
 0x499   : > { %v5294_v11 = vrot.slane %v5287_v15, 1  ;;  %41671 = vst [vmem:[#allocation89_spill] sm:$0xff] %v36679_v42  ;;  %13073 = vrot.lane.b32.xlu0 %v34939_v26, %s41631_s23  ;;  %s34766_s23 = smov 72  }
 0x49a   : > { %v5306_v30 = vand.u32 4294901760, %v5299_v45 }
 0x49b   : > { %v5295_v2 = vsel %vm357_vm0, %v5292_v36, %v5294_v11  ;;  %v5301_v22 = vmax.f32 %v5287_v15, %v5294_v11 }
 0x49c   : > { %v5395_v7 = vsub.f32 %v5299_v45, %v5306_v30  ;;  %v5300_v51 = vmax.f32 %v5286_v43, %v5295_v2  ;;  %v36691_v6 = vpop.permute.xlu0 %9448 }
 0x49d   : > { %v5303_v40 = vsel %vm1685_vm14, %v5301_v22, 0  ;;  %13710 = vrot.lane.b32.xlu0 %v34939_v26, %s41599_s18  ;;  %s34762_s18 = smov 40  }
 0x49e   : > { %v5309_v0 = vand.u32 4294901760, %v5300_v51  ;;  %v36677_v19 = vand.u32 4294901760, %v5303_v40  ;;  %v5396_v37 = vand.u32 4294901760, %v5395_v7 }
 0x4a0   : > { %v36685_v36 = vpack.c.bf16 %v5309_v0, %v5306_v30  ;;  %v5402_v11 = vsub.f32 %v5300_v51, %v5309_v0  ;;  %v5409_v15 = vsub.f32 %v5303_v40, %v36677_v19  ;;  %v5397_v2 = vsub.f32 %v5395_v7, %v5396_v37  ;;  %v36697_v0 = vpop.permute.xlu1 %13060  ;;  %v36700_v4 = vpop.permute.xlu0 %10079 }
 0x4a1   : > { %41673 = vst [vmem:[#allocation91_spill] sm:$0xff] %v36697_v0  ;;  %13719 = vrot.lane.b32.xlu0 %v34957_v29, %s41601_s13  ;;  %s34764_s13 = smov 50  }
 0x4a2   : > { %31746 = vmatprep.subr.bf16.mxu0 %v36685_v36  ;;  %v5403_v45 = vand.u32 4294901760, %v5402_v11  ;;  %v36689_v43 = vand.u32 4294901760, %v5409_v15  ;;  %v31753_v22 = vpack.c.bf16 %v5402_v11, %v5395_v7  ;;  %v5398_v40 = vand.u32 4294901760, %v5397_v2 }
 0x4a3   : > { %31748 = vmatpush3.bf16.msra.mxu0 %v36685_v36 }
 0x4a4   : > { %29535 = vmatprep.subr.mxu0 %v36677_v19  ;;  %v5404_v30 = vsub.f32 %v5402_v11, %v5403_v45  ;;  %v31761_v51 = vpack.c.bf16 %v5403_v45, %v5396_v37  ;;  %v5411_v42 = vsub.f32 %v5409_v15, %v36689_v43  ;;  %v36708_v11 = vpop.permute.xlu0 %10097  ;;  %v36712_v2 = vpop.permute.xlu1 %13697 }
 0x4a5   : > { %41674 = vst [vmem:[#allocation92_spill] sm:$0xff] %v36712_v2  ;;  %13100 = vrot.lane.b32.xlu0 %v34981_v33, %s41602_s29  ;;  %s34759_s29 = smov 111   ;;  %v41679_v2 = vld [vmem:[#allocation22_spill] sm:$0xff] }
 0x4a6   : > { %v5405_v20 = vand.u32 4294901760, %v5404_v30  ;;  %v5412_v37 = vand.u32 4294901760, %v5411_v42 }
 0x4a7   : > { %29536 = vmatpush3.msra.mxu0 %v36677_v19 }
 0x4a8   : > { %29538 = vmatmul.mubr.f32.vlgmr.msra.gmra.mrb[20].mxu0 %v35508_v61  ;;  %v31749_v7 = vpack.c.bf16 %v5405_v20, %v5398_v40  ;;  %v36714_v45 = vpop.permute.xlu0 %10106  ;;  %v36721_v26 = vpop.permute.xlu1 %13078 }
 0x4a9   : > { %29546 = vmatprep.mubr.msk.f32.mxu0 %vm1678_vm12, %v35439_v50  ;;  %41675 = vst [vmem:[#allocation93_spill] sm:$0xff] %v36721_v26  ;;  %14865 = vrot.lane.b32.xlu0 %v36409_v60, %s34758_s15 }
 0x4aa   : > { %31750 = vmatprep.subr.bf16.mxu0 %v31749_v7 }
 0x4ab   : > { %31752 = vmatpush3.bf16.msra.mxu0 %v31749_v7 }
 0x4ac   : > { %29544 = vmatprep.subr.mxu0 %v5412_v37  ;;  %v36723_v20 = vpop.permute.xlu0 %10115  ;;  %v36735_v30 = vpop.permute.xlu1 %13087 }
 0x4ad   : > { %15502 = vrot.lane.b32.xlu0 %v36409_v60, %s34759_s29  ;;  %41676 = vst [vmem:[#allocation94_spill] sm:$0xff] %v36735_v30  ;;  %v41680_v30 = vld [vmem:[#allocation25_spill] sm:$0xff] }
 0x4af   : > { %29545 = vmatpush3.msra.mxu0 %v5412_v37 }
 0x4b0   : > { %29547 = vmatmul.mubr.msk.f32.vlgmr.msra.gmra.mrb[20].mxu0 %vm1678_vm12, %v35471_v8  ;;  %31754 = vmatprep.subr.bf16.mxu0 %v31753_v22  ;;  %v36728_v42 = vpop.permute.xlu0 %11258  ;;  %v36753_v37 = vpop.permute.xlu1 %13727 }
 0x4b1   : > { %31756 = vmatpush3.bf16.msra.mxu0 %v31753_v22  ;;  %29555 = vmatprep.mubr.f32.mxu0 %v35447_v1  ;;  %v6504_v22 = vsel %vm417_vm6, %v36318_v44, %v35867_v18  ;;  %v6505_v18 = vsel %vm417_vm6, %v36370_v14, %v35910_v41  ;;  %v41677_v44 = vld [vmem:[#allocation20_spill] sm:$0xff]  ;;  %v6506_v41 = vsel %vm417_vm6, %v36418_v38, %v41680_v30  ;;  %v41681_v14 = vld [vmem:[#allocation21_spill] sm:$0xff] }
 0x4b2   : > { %29553 = vmatprep.subr.mxu0 %v5409_v15  ;;  %14883 = vrot.lane.b32.xlu0 %v34899_v10, %s41647_s17  ;;  %41678 = vst [vmem:[#allocation20_spill] sm:$0xff] %v36753_v37 }
 0x4b4   : > { %v36743_v40 = vpop.permute.xlu0 %11895 }
 0x4b5   : > { %29554 = vmatpush3.msra.mxu0 %v5409_v15  ;;  %v6507_v15 = vsel %vm421_vm7, %v6504_v22, %v35875_v24  ;;  %v6508_v24 = vsel %vm421_vm7, %v6505_v18, %v41679_v2  ;;  %v41683_v2 = vld [vmem:[#allocation26_spill] sm:$0xff] }
 0x4b6   : > { %31758 = vmatprep.subr.bf16.mxu0 %v36685_v36  ;;  %v6510_v7 = vsel %vm425_vm8, %v6507_v15, %v41677_v44  ;;  %14892 = vrot.lane.b32.xlu0 %v34921_v21, %s41570_s9  ;;  %v41682_v44 = vld [vmem:[#allocation23_spill] sm:$0xff]  ;;  %v6509_v18 = vsel %vm421_vm7, %v6506_v41, %v41683_v2 }
 0x4b7   : > { %v6513_v15 = vsel %vm429_vm9, %v6510_v7, %v41681_v14  ;;  %v6511_v37 = vsel %vm425_vm8, %v6508_v24, %v41682_v44  ;;  %v36779_v7 = vpop.permute.xlu1 %13071  ;;  %v41686_v14 = vld [vmem:[#allocation24_spill] sm:$0xff]  ;;  %v41687_v24 = vld [vmem:[#allocation27_spill] sm:$0xff] }
 0x4b8   : > { %29556 = vmatmul.mubr.f32.vlgmr.msra.gmra.mrb[20].mxu0 %v35476_v46  ;;  %v36757_v22 = vpop.permute.xlu0 %11904  ;;  %v6517_v30 = vsel %vm433_vm10, %v6513_v15, 0  ;;  %41685 = vst [vmem:[#allocation25_spill] sm:$0xff] %v36779_v7  ;;  %v6512_v44 = vsel %vm425_vm8, %v6509_v18, %v41687_v24  ;;  %v41689_v7 = vld [vmem:[#allocation28_spill] sm:$0xff] }
 0x4b9   : > { %31760 = vmatpush3.bf16.msra.mxu0 %v36685_v36  ;;  %29564 = vmatprep.mubr.f32.mxu0 %v35453_v58  ;;  %v36786_v41 = vand.u32 4294901760, %v6517_v30  ;;  %v6515_v26 = vsel %vm429_vm9, %v6512_v44, %v41689_v7 }
 0x4ba   : > { %29562 = vmatprep.subr.mxu0 %v36677_v19  ;;  %14901 = vrot.lane.b32.xlu0 %v34942_v27, %s41576_s14  ;;  %v6523_v7 = vsel %vm433_vm10, %v6515_v26, 0 }
 0x4bc   : > { %v36774_v38 = vpop.permute.xlu0 %11913 }
 0x4bd   : > { %29563 = vmatpush3.msra.mxu0 %v36677_v19  ;;  %41684 = vst [vmem:[#allocation22_spill] sm:$0xff] %v36774_v38 }
 0x4be   : > { %31762 = vmatprep.subr.bf16.mxu0 %v31761_v51  ;;  %14867 = vrot.lane.b32.xlu0 %v36438_v3, %s34758_s15 }
 0x4c0   : > { %29565 = vmatmul.mubr.f32.vlgmr.msra.gmra.mrb[20].mxu0 %v35482_v5  ;;  %v36789_v2 = vpop.permute.xlu0 %11922 }
 0x4c1   : > { %31764 = vmatpush3.bf16.msra.mxu0 %v31761_v51  ;;  %29573 = vmatprep.mubr.msk.f32.mxu0 %vm1678_vm12, %v35439_v50  ;;  %v6514_v51 = vsel %vm429_vm9, %v6511_v37, %v41686_v14  ;;  %41688 = vst [vmem:[#allocation21_spill] sm:$0xff] %v36789_v2  ;;  %v36804_v37 = vpop.permute.xlu1 %13708 }
 0x4c2   : > { %29571 = vmatprep.subr.mxu0 %v36689_v43  ;;  %v6520_v15 = vsel %vm433_vm10, %v6514_v51, 0  ;;  %41690 = vst [vmem:[#allocation23_spill] sm:$0xff] %v36804_v37  ;;  %15504 = vrot.lane.b32.xlu0 %v36438_v3, %s34759_s29 }
 0x4c3   : > { %v36806_v18 = vand.u32 4294901760, %v6520_v15 }
 0x4c4   : > { %v36809_v14 = vpop.permute.xlu0 %11260 }
 0x4c5   : > { %29572 = vmatpush3.msra.mxu0 %v36689_v43  ;;  %v36802_v43 = vsub.f32 %v6517_v30, %v36786_v41  ;;  %v36820_v51 = vsub.f32 %v6520_v15, %v36806_v18  ;;  %v36826_v26 = vpop.permute.xlu1 %13717 }
 0x4c6   : > { %31766 = vmatprep.subr.bf16.mxu0 %v36685_v36  ;;  %14885 = vrot.lane.b32.xlu0 %v34974_v32, %s41647_s17  ;;  %41691 = vst [vmem:[#allocation26_spill] sm:$0xff] %v36826_v26 }
 0x4c7   : > { %v41330_v30 = vand.u32 4294901760, %v36802_v43  ;;  %v41331_v44 = vand.u32 4294901760, %v36820_v51 }
 0x4c8   : > { %29574 = vmatmul.mubr.msk.f32.vlgmr.msra.gmra.mrb[20].mxu0 %vm1678_vm12, %v35471_v8  ;;  %v36822_v24 = vpop.permute.xlu0 %11897 }
 0x4c9   : > { %31768 = vmatpush3.bf16.msra.mxu0 %v36685_v36  ;;  %29582 = vmatprep.mubr.msk.f32.mxu0 %vm1678_vm12, %v35439_v50  ;;  %v36815_v36 = vand.u32 4294901760, %v6523_v7  ;;  %v36846_v37 = vpop.permute.xlu1 %13098 }
 0x4ca   : > { %29580 = vmatprep.subr.mxu0 %v36677_v19  ;;  %14894 = vrot.lane.b32.xlu0 %v34985_v34, %s41570_s9  ;;  %41693 = vst [vmem:[#allocation27_spill] sm:$0xff] %v36846_v37 }
 0x4cb   : > { %v36839_v15 = vsub.f32 %v6523_v7, %v36815_v36 }
 0x4cc   : > { %v36841_v26 = vpop.permute.xlu0 %11906 }
 0x4cd   : > { %29581 = vmatpush3.msra.mxu0 %v36677_v19  ;;  %v6597_v19 = vsub.f32 %v36802_v43, %v41330_v30  ;;  %41692 = vst [vmem:[#allocation24_spill] sm:$0xff] %v36841_v26  ;;  %v6607_v30 = vsub.f32 %v36820_v51, %v41331_v44  ;;  %v41332_v2 = vand.u32 4294901760, %v36839_v15  ;;  %v41709_v26 = vld [vmem:[#allocation29_spill] sm:$0xff] }
 0x4ce   : > { %31805 = vmatprep.subr.bf16.mxu0 %v41620_v62  ;;  %14903 = vrot.lane.b32.xlu0 %v34993_v35, %s41576_s14  ;;  %v7678_v38 = vsel %vm417_vm6, %v36550_v47, %v41709_v26  ;;  %v41711_v47 = vand.u32 4294901760, %v36820_v51 }
 0x4cf   : > { %v6598_v0 = vand.u32 4294901760, %v6597_v19  ;;  %v6608_v19 = vand.u32 4294901760, %v6607_v30  ;;  %v6617_v44 = vsub.f32 %v36839_v15, %v41332_v2 }
 0x4d0   : > { %29583 = vmatmul.mubr.msk.f32.vlgmr.msra.gmra.mrb[20].mxu0 %vm1678_vm12, %v35471_v8  ;;  %v36853_v7 = vpop.permute.xlu0 %11915 }
 0x4d1   : > { %31807 = vmatpush3.bf16.msra.mxu0 %v34910_v16  ;;  %29695 = vmatprep.mubr.msk.f32.mxu0 %vm34727_vm5, %v41621_v39  ;;  %41694 = vst [vmem:[#allocation28_spill] sm:$0xff] %v36853_v7  ;;  %v36868_v7 = vpop.permute.xlu1 %13064 }
 0x4d2   : > { %31808 = vmatprep.subr.bf16.mxu0 %v41620_v62  ;;  %14869 = vrot.lane.b32.xlu0 %v36463_v17, %s34758_s15  ;;  %41696 = vst [vmem:[#allocation96_spill] sm:$0xff] %v36868_v7 }
 0x4d4   : > { %v36864_v37 = vpop.permute.xlu0 %11924 }
 0x4d5   : > { %31810 = vmatpush3.bf16.msra.mxu0 %v34931_v25  ;;  %41695 = vst [vmem:[#allocation95_spill] sm:$0xff] %v36864_v37  ;;  %v36880_v2 = vpop.permute.xlu1 %13701 }
 0x4d6   : > { %31811 = vmatprep.subr.bf16.mxu0 %v41620_v62  ;;  %15506 = vrot.lane.b32.xlu0 %v36463_v17, %s34759_s29  ;;  %41697 = vst [vmem:[#allocation97_spill] sm:$0xff] %v36880_v2 }
 0x4d8   : > { %29696 = vmatmul.mubr.f32.vlgmr.msra.gmra.mrb[22].mxu0 %v6598_v0  ;;  %v6618_v0 = vand.u32 4294901760, %v6617_v44  ;;  %v36874_v30 = vpop.permute.xlu0 %11262 }
 0x4d9   : > { %29698 = vmatprep.mubr.msk.f32.mxu0 %vm34727_vm5, %v41621_v39  ;;  %31813 = vmatpush3.bf16.msra.mxu0 %v35015_v48 }
 0x4da   : > { %31814 = vmatprep.subr.bf16.mxu0 %v41620_v62  ;;  %14887 = vrot.lane.b32.xlu0 %v34957_v29, %s41647_s17  ;;  %s34769_s17 = smov 32  }
 0x4dc   : > { %29699 = vmatmul.mubr.f32.gmra.mrb[24].mxu0 %v6608_v19  ;;  %v36882_v19 = vpop.permute.xlu0 %11899 }
 0x4dd   : > { %29701 = vmatprep.mubr.msk.f32.mxu0 %vm34727_vm5, %v41621_v39  ;;  %31816 = vmatpush3.bf16.msra.mxu0 %v35021_v53  ;;  %41698 = vst [vmem:[#allocation98_spill] sm:$0xff] %v36882_v19 }
 0x4de   : > { %31817 = vmatprep.subr.bf16.mxu0 %v41620_v62  ;;  %14896 = vrot.lane.b32.xlu0 %v34968_v31, %s41570_s9 }
 0x4e0   : > { %29702 = vmatmul.mubr.f32.gmra.mrb[26].mxu0 %v6618_v0  ;;  %v36891_v44 = vpop.permute.xlu0 %11908  ;;  %v36895_v0 = vpop.permute.xlu1 %13082 }
 0x4e1   : > { %29712 = vmatprep.mubr.msk.f32.mxu0 %vm34727_vm5, %v41621_v39  ;;  %41699 = vst [vmem:[#allocation99_spill] sm:$0xff] %v36891_v44  ;;  %41700 = vst [vmem:[#allocation100_spill] sm:$0xff] %v36895_v0 }
 0x4e2   : > { %14905 = vrot.lane.b32.xlu0 %v34981_v33, %s41576_s14  ;;  %s34763_s14 = smov 100  }
 0x4e4   : > { %29713 = vmatmul.mubr.f32.vlgmr.msra.gmra.mrb[22].mxu0 %v36786_v41  ;;  %v36902_v2 = vpop.permute.xlu0 %11917  ;;  %v36909_v0 = vpop.permute.xlu1 %13091 }
 0x4e5   : > { %29715 = vmatprep.mubr.msk.f32.mxu0 %vm34727_vm5, %v41621_v39  ;;  %31819 = vmatpush3.bf16.msra.mxu0 %v35027_v54  ;;  %41701 = vst [vmem:[#allocation101_spill] sm:$0xff] %v36902_v2  ;;  %41702 = vst [vmem:[#allocation102_spill] sm:$0xff] %v36909_v0 }
 0x4e6   : > { %31820 = vmatprep.subr.bf16.mxu0 %v41620_v62  ;;  %16676 = vrot.lane.b32.xlu0 %v36409_v60, %s34760_s20 }
 0x4e8   : > { %29716 = vmatmul.mubr.f32.gmra.mrb[24].mxu0 %v36806_v18  ;;  %v36911_v7 = vpop.permute.xlu0 %11926  ;;  %v36924_v0 = vpop.permute.xlu1 %13731 }
 0x4e9   : > { %29718 = vmatprep.mubr.msk.f32.mxu0 %vm34727_vm5, %v41621_v39  ;;  %31822 = vmatpush3.bf16.msra.mxu0 %v35029_v55  ;;  %41703 = vst [vmem:[#allocation103_spill] sm:$0xff] %v36911_v7  ;;  %41705 = vst [vmem:[#allocation105_spill] sm:$0xff] %v36924_v0  ;;  %v36927_v7 = vpop.f32.mrb[20].mxu1 }
 0x4ea   : > { %31823 = vmatprep.subr.bf16.mxu0 %v41620_v62  ;;  %17313 = vrot.lane.b32.xlu0 %v36409_v60, %s34761_s22  ;;  %v29680_v37 = vpop.f32.mrb[21].mxu1 }
 0x4eb   : > { %v41708_v37 = vand.u32 4294901760, %v36802_v43 }
 0x4ec   : > { %29719 = vmatmul.mubr.f32.gmra.mrb[26].mxu0 %v36815_v36  ;;  %v36920_v2 = vpop.permute.xlu0 %13069  ;;  %v36938_v60 = vpop.f32.mrb[22].mxu1 }
 0x4ed   : > { %29729 = vmatprep.mubr.msk.f32.mxu0 %vm34727_vm5, %v41621_v39  ;;  %41704 = vst [vmem:[#allocation104_spill] sm:$0xff] %v36920_v2  ;;  %v29683_v0 = vpop.f32.mrb[23].mxu1  ;;  %v36942_v2 = vpop.permute.xlu1 %14874 }
 0x4ee   : > { %16694 = vrot.lane.b32.xlu0 %v34899_v10, %s41645_s30  ;;  %41707 = vst [vmem:[#allocation107_spill] sm:$0xff] %v36942_v2 }
 0x4f0   : > { %29730 = vmatmul.mubr.f32.vlgmr.msra.gmra.mrb[22].mxu0 %v36802_v43  ;;  %v36933_v44 = vpop.permute.xlu0 %13706 }
 0x4f1   : > { %29732 = vmatprep.mubr.msk.f32.mxu0 %vm34727_vm5, %v41621_v39  ;;  %31825 = vmatpush3.bf16.msra.mxu0 %v34910_v16  ;;  %41706 = vst [vmem:[#allocation106_spill] sm:$0xff] %v36933_v44  ;;  %v36950_v44 = vpop.f32.mrb[24].mxu1  ;;  %v36963_v43 = vpop.permute.xlu1 %15511 }
 0x4f2   : > { %31826 = vmatprep.subr.bf16.mxu0 %v41620_v62  ;;  %16703 = vrot.lane.b32.xlu0 %v34921_v21, %s41571_s19  ;;  %v29686_v0 = vpop.f32.mrb[25].mxu1  ;;  %41710 = vst [vmem:[#allocation29_spill] sm:$0xff] %v36963_v43 }
 0x4f4   : > { %29733 = vmatmul.mubr.f32.gmra.mrb[24].mxu0 %v36820_v51  ;;  %v36944_v19 = vpop.permute.xlu0 %13715 }
 0x4f5   : > { %29735 = vmatprep.mubr.msk.f32.mxu0 %vm34727_vm5, %v41621_v39  ;;  %31828 = vmatpush3.bf16.msra.mxu0 %v34931_v25 }
 0x4f6   : > { %31829 = vmatprep.subr.bf16.mxu0 %v41620_v62  ;;  %16712 = vrot.lane.b32.xlu0 %v34942_v27, %s41642_s0 }
 0x4f8   : > { %29736 = vmatmul.mubr.f32.gmra.mrb[26].mxu0 %v36839_v15  ;;  %v36959_v2 = vpop.permute.xlu0 %13096 }
 0x4f9   : > { %29746 = vmatprep.mubr.msk.f32.mxu0 %vm34727_vm5, %v41621_v39 }
 0x4fa   : > { %16678 = vrot.lane.b32.xlu0 %v36438_v3, %s34760_s20 }
 0x4fc   : > { %29747 = vmatmul.mubr.f32.vlgmr.msra.gmra.mrb[22].mxu0 %v41708_v37  ;;  %v7681_v37 = vsel %vm421_vm7, %v7678_v38, %v36558_v12  ;;  %v36973_v26 = vpop.permute.xlu0 %13062  ;;  %v41712_v12 = vand.u32 4294901760, %v36839_v15  ;;  %v36983_v38 = vpop.permute.xlu1 %15520 }
 0x4fd   : > { %29749 = vmatprep.mubr.msk.f32.mxu0 %vm34727_vm5, %v41621_v39  ;;  %31831 = vmatpush3.bf16.msra.mxu0 %v35031_v56  ;;  %v7684_v27 = vsel %vm425_vm8, %v7681_v37, %v36575_v59  ;;  %41713 = vst [vmem:[#allocation108_spill] sm:$0xff] %v36983_v38  ;;  %v41721_v38 = vld [vmem:[#allocation36_spill] sm:$0xff] }
 0x4fe   : > { %31832 = vmatprep.subr.bf16.mxu0 %v41620_v62  ;;  %v7687_v51 = vsel %vm429_vm9, %v7684_v27, %v36582_v49  ;;  %17315 = vrot.lane.b32.xlu0 %v36438_v3, %s34761_s22  ;;  %v7679_v43 = vsel %vm417_vm6, %v36593_v28, %v41721_v38 }
 0x4ff   : > { %v7691_v59 = vsel %vm433_vm10, %v7687_v51, 0 }
 0x500   : > { %29750 = vmatmul.mubr.f32.gmra.mrb[24].mxu0 %v41711_v47  ;;  %v36987_v0 = vpop.permute.xlu0 %13699  ;;  %v37001_v49 = vpop.permute.xlu1 %15529  ;;  %v37003_v37 = vand.u32 4294901760, %v7691_v59 }
 0x501   : > { %29752 = vmatprep.mubr.msk.f32.mxu0 %vm34727_vm5, %v41621_v39  ;;  %31834 = vmatpush3.bf16.msra.mxu0 %v35033_v57  ;;  %41714 = vst [vmem:[#allocation109_spill] sm:$0xff] %v37001_v49 }
 0x502   : > { %31835 = vmatprep.subr.bf16.mxu0 %v41620_v62  ;;  %16696 = vrot.lane.b32.xlu0 %v34974_v32, %s41645_s30  ;;  %v37015_v47 = vsub.f32 %v7691_v59, %v37003_v37 }
 0x504   : > { %29753 = vmatmul.mubr.f32.gmra.mrb[26].mxu0 %v41712_v12  ;;  %v36997_v15 = vpop.permute.xlu0 %13080  ;;  %v37020_v27 = vpop.permute.xlu1 %15538  ;;  %v41333_v51 = vand.u32 4294901760, %v37015_v47 }
 0x505   : > { %29763 = vmatprep.mubr.msk.f32.mxu0 %vm34727_vm5, %v41621_v39  ;;  %41715 = vst [vmem:[#allocation110_spill] sm:$0xff] %v37020_v27 }
 0x506   : > { %16705 = vrot.lane.b32.xlu0 %v34985_v34, %s41571_s19 }
 0x508   : > { %29764 = vmatmul.mubr.f32.vlgmr.msra.gmra.mrb[22].mxu0 %v36786_v41  ;;  %v37009_v3 = vpop.permute.xlu0 %13089  ;;  %v37036_v27 = vpop.permute.xlu1 %14876 }
 0x509   : > { %29766 = vmatprep.mubr.msk.f32.mxu0 %vm34727_vm5, %v41621_v39  ;;  %31837 = vmatpush3.bf16.msra.mxu0 %v34910_v16  ;;  %41717 = vst [vmem:[#allocation112_spill] sm:$0xff] %v37036_v27  ;;  %v41722_v27 = vld [vmem:[#allocation41_spill] sm:$0xff] }
 0x50a   : > { %31838 = vmatprep.subr.bf16.mxu0 %v41620_v62  ;;  %16714 = vrot.lane.b32.xlu0 %v34993_v35, %s41642_s0  ;;  %v7771_v35 = vsub.f32 %v37015_v47, %v41333_v51 }
 0x50c   : > { %29767 = vmatmul.mubr.f32.gmra.mrb[24].mxu0 %v36806_v18  ;;  %v37022_v12 = vpop.permute.xlu0 %13729  ;;  %v7772_v49 = vand.u32 4294901760, %v7771_v35  ;;  %v37053_v51 = vpop.permute.xlu1 %15513  ;;  %v7682_v35 = vsel %vm421_vm7, %v7679_v43, %v36605_v9  ;;  %v41725_v9 = vld [vmem:[#allocation77_spill] sm:$0xff]  ;;  %v41726_v43 = vld [vmem:[#allocation79_spill] sm:$0xff] }
 0x50d   : > { %29769 = vmatprep.mubr.msk.f32.mxu0 %vm34727_vm5, %v41621_v39  ;;  %31840 = vmatpush3.bf16.msra.mxu0 %v34931_v25  ;;  %41716 = vst [vmem:[#allocation111_spill] sm:$0xff] %v37022_v12  ;;  %41719 = vst [vmem:[#allocation114_spill] sm:$0xff] %v37053_v51  ;;  %v7685_v38 = vsel %vm425_vm8, %v7682_v35, %v36609_v63 }
 0x50e   : > { %31865 = vmatprep.subr.bf16.mxu0 %v41620_v62  ;;  %16680 = vrot.lane.b32.xlu0 %v36463_v17, %s34760_s20 }
 0x510   : > { %29770 = vmatmul.mubr.f32.gmra.mrb[26].mxu0 %v36815_v36  ;;  %v37031_v59 = vpop.permute.xlu0 %13073 }
 0x511   : > { %29780 = vmatprep.mubr.msk.f32.mxu0 %vm34727_vm5, %v41621_v39 }
 0x512   : > { %17317 = vrot.lane.b32.xlu0 %v36463_v17, %s34761_s22  ;;  %v7680_v17 = vsel %vm417_vm6, %v36617_v52, %v41722_v27  ;;  %v37077_v52 = vpop.permute.xlu1 %15522 }
 0x513   : > { %v7683_v28 = vsel %vm421_vm7, %v7680_v17, %v36625_v13  ;;  %41723 = vst [vmem:[#allocation36_spill] sm:$0xff] %v37077_v52  ;;  %v7688_v13 = vsel %vm429_vm9, %v7685_v38, %v41725_v9 }
 0x514   : > { %29781 = vmatmul.mubr.f32.vlgmr.msra.gmra.mrb[22].mxu0 %v36786_v41  ;;  %v37045_v41 = vpop.permute.xlu0 %13710  ;;  %v7694_v63 = vsel %vm433_vm10, %v7688_v13, 0 }
 0x515   : > { %29783 = vmatprep.mubr.msk.f32.mxu0 %vm34727_vm5, %v41621_v39  ;;  %31867 = vmatpush3.bf16.msra.mxu0 %v34910_v16  ;;  %41718 = vst [vmem:[#allocation113_spill] sm:$0xff] %v37045_v41 }
 0x516   : > { %31868 = vmatprep.subr.bf16.mxu0 %v41620_v62  ;;  %16698 = vrot.lane.b32.xlu0 %v34957_v29, %s41645_s30  ;;  %v37093_v52 = vpop.permute.xlu1 %15531 }
 0x517   : > { %41727 = vst [vmem:[#allocation77_spill] sm:$0xff] %v37093_v52 }
 0x518   : > { %29784 = vmatmul.mubr.f32.gmra.mrb[24].mxu0 %v36806_v18  ;;  %v37055_v18 = vpop.permute.xlu0 %13719 }
 0x519   : > { %29786 = vmatprep.mubr.msk.f32.mxu0 %vm34727_vm5, %v41621_v39  ;;  %31870 = vmatpush3.bf16.msra.mxu0 %v34931_v25  ;;  %41720 = vst [vmem:[#allocation115_spill] sm:$0xff] %v37055_v18 }
 0x51a   : > { %31871 = vmatprep.subr.bf16.mxu0 %v41620_v62  ;;  %16707 = vrot.lane.b32.xlu0 %v34968_v31, %s41571_s19 }
 0x51c   : > { %29787 = vmatmul.mubr.f32.gmra.mrb[26].mxu0 %v36815_v36  ;;  %v37068_v36 = vpop.permute.xlu0 %13100 }
 0x51d   : > { %29851 = vmatprep.mubr.msk.f32.mxu0 %vm34727_vm5, %v41621_v39 }
 0x51e   : > { %16716 = vrot.lane.b32.xlu0 %v34981_v33, %s41642_s0  ;;  %v37105_v33 = vpop.permute.xlu1 %15540 }
 0x51f   : > { %41730 = vst [vmem:[#allocation117_spill] sm:$0xff] %v37105_v33 }
 0x520   : > { %29852 = vmatmul.mubr.f32.vlgmr.msra.gmra.mrb[28].mxu0 %v7772_v49  ;;  %v7686_v49 = vsel %vm425_vm8, %v7683_v28, %v36629_v23  ;;  %v37084_v27 = vpop.permute.xlu0 %14865  ;;  %v37101_v28 = vand.u32 4294901760, %v7694_v63 }
 0x521   : > { %29854 = vmatprep.mubr.msk.f32.mxu0 %vm34727_vm5, %v41621_v39  ;;  %31873 = vmatpush3.bf16.msra.mxu0 %v35015_v48  ;;  %41724 = vst [vmem:[#allocation41_spill] sm:$0xff] %v37084_v27  ;;  %v7689_v17 = vsel %vm429_vm9, %v7686_v49, %v41726_v43 }
 0x522   : > { %31874 = vmatprep.subr.bf16.mxu0 %v41620_v62  ;;  %v7697_v23 = vsel %vm433_vm10, %v7689_v17, 0  ;;  %v7779_v49 = vsub.f32 %v7694_v63, %v37101_v28  ;;  %v37111_v43 = vpop.permute.xlu1 %14878 }
 0x523   : > { %v37103_v27 = vand.u32 4294901760, %v7697_v23  ;;  %41732 = vst [vmem:[#allocation119_spill] sm:$0xff] %v37111_v43 }
 0x524   : > { %v37095_v51 = vpop.permute.xlu0 %15502  ;;  %v7780_v13 = vand.u32 4294901760, %v7779_v49 }
 0x525   : > { %31876 = vmatpush3.bf16.msra.mxu0 %v35021_v53  ;;  %41728 = vst [vmem:[#allocation79_spill] sm:$0xff] %v37095_v51  ;;  %v7789_v9 = vsub.f32 %v7697_v23, %v37103_v27 }
 0x526   : > { %31877 = vmatprep.subr.bf16.mxu0 %v41620_v62  ;;  %v7781_v51 = vsub.f32 %v7779_v49, %v7780_v13  ;;  %v37117_v18 = vpop.permute.xlu1 %15515 }
 0x527   : > { %v7790_v17 = vand.u32 4294901760, %v7789_v9  ;;  %41735 = vst [vmem:[#allocation122_spill] sm:$0xff] %v37117_v18 }
 0x528   : > { %v37099_v35 = vpop.permute.xlu0 %14883  ;;  %v7782_v12 = vand.u32 4294901760, %v7781_v51 }
 0x529   : > { %41729 = vst [vmem:[#allocation116_spill] sm:$0xff] %v37099_v35  ;;  %v7791_v35 = vsub.f32 %v7789_v9, %v7790_v17 }
 0x52a   : > { %29855 = vmatmul.mubr.f32.gmra.mrb[30].mxu0 %v7782_v12  ;;  %v37123_v63 = vpop.permute.xlu1 %15524 }
 0x52b   : > { %v7792_v33 = vand.u32 4294901760, %v7791_v35  ;;  %29857 = vmatprep.mubr.msk.f32.mxu0 %vm34727_vm5, %v41621_v39  ;;  %41737 = vst [vmem:[#allocation124_spill] sm:$0xff] %v37123_v63 }
 0x52c   : > { %v37107_v38 = vpop.permute.xlu0 %14892 }
 0x52d   : > { %41731 = vst [vmem:[#allocation118_spill] sm:$0xff] %v37107_v38 }
 0x52e   : > { %29858 = vmatmul.mubr.f32.gmra.mrb[32].mxu0 %v7792_v33  ;;  %v37136_v12 = vpop.permute.xlu1 %15533 }
 0x52f   : > { %29868 = vmatprep.mubr.msk.f32.mxu0 %vm34727_vm5, %v41621_v39  ;;  %41740 = vst [vmem:[#allocation127_spill] sm:$0xff] %v37136_v12 }
 0x530   : > { %v37113_v52 = vpop.permute.xlu0 %14901 }
 0x531   : > { %41733 = vst [vmem:[#allocation120_spill] sm:$0xff] %v37113_v52 }
 0x532   : > { %29869 = vmatmul.mubr.f32.vlgmr.msra.gmra.mrb[28].mxu0 %v37003_v37  ;;  %v37146_v33 = vpop.permute.xlu1 %15542 }
 0x533   : > { %29871 = vmatprep.mubr.msk.f32.mxu0 %vm34727_vm5, %v41621_v39  ;;  %31879 = vmatpush3.bf16.msra.mxu0 %v35027_v54  ;;  %41742 = vst [vmem:[#allocation129_spill] sm:$0xff] %v37146_v33 }
 0x534   : > { %v37115_v31 = vpop.permute.xlu0 %14867  ;;  %31880 = vmatprep.subr.bf16.mxu0 %v41620_v62 }
 0x535   : > { %41734 = vst [vmem:[#allocation121_spill] sm:$0xff] %v37115_v31 }
 0x536   : > { %29872 = vmatmul.mubr.f32.gmra.mrb[30].mxu0 %v37101_v28  ;;  %v16686_v18 = vpop.permute.xlu1 %16685 }
 0x537   : > { %29874 = vmatprep.mubr.msk.f32.mxu0 %vm34727_vm5, %v41621_v39  ;;  %31882 = vmatpush3.bf16.msra.mxu0 %v35029_v55 }
 0x538   : > { %v37119_v38 = vpop.permute.xlu0 %15504  ;;  %31883 = vmatprep.subr.bf16.mxu0 %v41620_v62 }
 0x539   : > { %41736 = vst [vmem:[#allocation123_spill] sm:$0xff] %v37119_v38 }
 0x53a   : > { %29875 = vmatmul.mubr.f32.gmra.mrb[32].mxu0 %v37103_v27  ;;  %v37165_v33 = vpop.permute.xlu1 %17322 }
 0x53b   : > { %29885 = vmatprep.mubr.msk.f32.mxu0 %vm34727_vm5, %v41621_v39  ;;  %41746 = vst [vmem:[#allocation133_spill] sm:$0xff] %v37165_v33 }
 0x53c   : > { %v37125_v23 = vpop.permute.xlu0 %14885 }
 0x53d   : > { %41738 = vst [vmem:[#allocation125_spill] sm:$0xff] %v37125_v23 }
 0x53e   : > { %29886 = vmatmul.mubr.f32.vlgmr.msra.gmra.mrb[28].mxu0 %v37015_v47 }
 0x53f   : > { %29888 = vmatprep.mubr.msk.f32.mxu0 %vm34727_vm5, %v41621_v39  ;;  %31885 = vmatpush3.bf16.msra.mxu0 %v34910_v16 }
 0x540   : > { %v37130_v51 = vpop.permute.xlu0 %14894  ;;  %31886 = vmatprep.subr.bf16.mxu0 %v41620_v62 }
 0x541   : > { %41739 = vst [vmem:[#allocation126_spill] sm:$0xff] %v37130_v51 }
 0x542   : > { %29889 = vmatmul.mubr.f32.gmra.mrb[30].mxu0 %v7779_v49 }
 0x543   : > { %29891 = vmatprep.mubr.msk.f32.mxu0 %vm34727_vm5, %v41621_v39  ;;  %31888 = vmatpush3.bf16.msra.mxu0 %v34931_v25 }
 0x544   : > { %v37139_v35 = vpop.permute.xlu0 %14903  ;;  %31889 = vmatprep.subr.bf16.mxu0 %v41620_v62 }
 0x545   : > { %41741 = vst [vmem:[#allocation128_spill] sm:$0xff] %v37139_v35  ;;  %v41748_v35 = vand.u32 4294901760, %v37015_v47 }
 0x546   : > { %29892 = vmatmul.mubr.f32.gmra.mrb[32].mxu0 %v7789_v9  ;;  %v37179_v9 = vpop.permute.xlu1 %17331 }
 0x547   : > { %29902 = vmatprep.mubr.msk.f32.mxu0 %vm34727_vm5, %v41621_v39  ;;  %41750 = vst [vmem:[#allocation136_spill] sm:$0xff] %v37179_v9 }
 0x548   : > { %v37148_v63 = vpop.permute.xlu0 %14869 }
 0x549   : > { %41743 = vst [vmem:[#allocation130_spill] sm:$0xff] %v37148_v63  ;;  %v41764_v63 = vld [vmem:[#allocation70_spill] sm:$0xff] }
 0x54a   : > { %29903 = vmatmul.mubr.f32.vlgmr.msra.gmra.mrb[28].mxu0 %v41748_v35  ;;  %v37185_v47 = vpop.permute.xlu1 %17340 }
 0x54b   : > { %29905 = vmatprep.mubr.msk.f32.mxu0 %vm34727_vm5, %v41621_v39  ;;  %31891 = vmatpush3.bf16.msra.mxu0 %v35031_v56  ;;  %41751 = vst [vmem:[#allocation137_spill] sm:$0xff] %v37185_v47 }
 0x54c   : > { %v37153_v12 = vpop.permute.xlu0 %15506  ;;  %31892 = vmatprep.subr.bf16.mxu0 %v41620_v62 }
 0x54d   : > { %41744 = vst [vmem:[#allocation131_spill] sm:$0xff] %v37153_v12 }
 0x54e   : > { %29906 = vmatmul.mubr.f32.gmra.mrb[30].mxu0 %v7780_v13  ;;  %v37196_v13 = vpop.permute.xlu1 %17349 }
 0x54f   : > { %29908 = vmatprep.mubr.msk.f32.mxu0 %vm34727_vm5, %v41621_v39  ;;  %31894 = vmatpush3.bf16.msra.mxu0 %v35033_v57  ;;  %41753 = vst [vmem:[#allocation139_spill] sm:$0xff] %v37196_v13 }
 0x550   : > { %v37159_v38 = vpop.permute.xlu0 %14887  ;;  %31895 = vmatprep.subr.bf16.mxu0 %v41620_v62 }
 0x551   : > { %41745 = vst [vmem:[#allocation132_spill] sm:$0xff] %v37159_v38 }
 0x552   : > { %29909 = vmatmul.mubr.f32.gmra.mrb[32].mxu0 %v7790_v17 }
 0x553   : > { %29919 = vmatprep.mubr.msk.f32.mxu0 %vm34727_vm5, %v41621_v39 }
 0x554   : > { %v37167_v12 = vpop.permute.xlu0 %14896 }
 0x555   : > { %41747 = vst [vmem:[#allocation134_spill] sm:$0xff] %v37167_v12 }
 0x556   : > { %29920 = vmatmul.mubr.f32.vlgmr.msra.gmra.mrb[28].mxu0 %v37003_v37 }
 0x557   : > { %29922 = vmatprep.mubr.msk.f32.mxu0 %vm34727_vm5, %v41621_v39  ;;  %31897 = vmatpush3.bf16.msra.mxu0 %v34910_v16 }
 0x558   : > { %v37173_v49 = vpop.permute.xlu0 %14905  ;;  %31898 = vmatprep.subr.bf16.mxu0 %v41620_v62 }
 0x559   : > { %41749 = vst [vmem:[#allocation135_spill] sm:$0xff] %v37173_v49 }
 0x55a   : > { %29923 = vmatmul.mubr.f32.gmra.mrb[30].mxu0 %v37101_v28 }
 0x55b   : > { %29925 = vmatprep.mubr.msk.f32.mxu0 %vm34727_vm5, %v41621_v39  ;;  %31900 = vmatpush3.bf16.msra.mxu0 %v34931_v25 }
 0x55c   : > { %v16677_v33 = vpop.permute.xlu0 %16676 }
 0x55d   : > { %v16721_v47 = vsel %vm417_vm6, %v16677_v33, %v16686_v18 }
 0x55e   : > { %29926 = vmatmul.mubr.f32.gmra.mrb[32].mxu0 %v37103_v27 }
 0x55f   : > { %29936 = vmatprep.mubr.msk.f32.mxu0 %vm34727_vm5, %v41621_v39 }
 0x560   : > { %v37187_v35 = vpop.permute.xlu0 %17313 }
 0x561   : > { %41752 = vst [vmem:[#allocation138_spill] sm:$0xff] %v37187_v35  ;;  %v16688_v35 = vpop.permute.xlu1 %16687 }
 0x562   : > { %29937 = vmatmul.mubr.f32.vlgmr.msra.gmra.mrb[28].mxu0 %v37003_v37 }
 0x563   : > { %29939 = vmatprep.mubr.msk.f32.mxu0 %vm34727_vm5, %v41621_v39 }
 0x564   : > { %v16695_v9 = vpop.permute.xlu0 %16694 }
 0x565   : > { %v16724_v49 = vsel %vm421_vm7, %v16721_v47, %v16695_v9  ;;  %v37211_v38 = vpop.permute.xlu1 %17324  ;;  %v41758_v47 = vld [vmem:[#allocation15_spill] sm:$0xff] }
 0x566   : > { %41754 = vst [vmem:[#allocation140_spill] sm:$0xff] %v37211_v38  ;;  %29940 = vmatmul.mubr.f32.gmra.mrb[30].mxu0 %v37101_v28 }
 0x567   : > { %29942 = vmatprep.mubr.msk.f32.mxu0 %vm34727_vm5, %v41621_v39 }
 0x568   : > { %v16704_v17 = vpop.permute.xlu0 %16703 }
 0x569   : > { %v16727_v13 = vsel %vm425_vm8, %v16724_v49, %v16704_v17  ;;  %v37223_v37 = vpop.permute.xlu1 %17333 }
 0x56a   : > { %29943 = vmatmul.mubr.f32.gmra.mrb[32].mxu0 %v37103_v27  ;;  %41757 = vst [vmem:[#allocation143_spill] sm:$0xff] %v37223_v37 }
 0x56b   : > { %30053 = vmatprep.mubr.f32.mxu0 %v41758_v47 }
 0x56c   : > { %v16713_v12 = vpop.permute.xlu0 %16712 }
 0x56d   : > { %v37214_v18 = vsel %vm429_vm9, %v16727_v13, %v16713_v12  ;;  %v37228_v28 = vpop.permute.xlu1 %17342 }
 0x56e   : > { %41755 = vst [vmem:[#allocation141_spill] sm:$0xff] %v37214_v18  ;;  %41759 = vst [vmem:[#allocation15_spill] sm:$0xff] %v37228_v28 }
 0x570   : > { %v16679_v51 = vpop.permute.xlu0 %16678 }
 0x571   : > { %v16722_v49 = vsel %vm417_vm6, %v16679_v51, %v16688_v35  ;;  %v37233_v18 = vpop.permute.xlu1 %17351 }
 0x572   : > { %41761 = vst [vmem:[#allocation145_spill] sm:$0xff] %v37233_v18 }
 0x574   : > { %v37217_v33 = vpop.permute.xlu0 %17315 }
 0x575   : > { %41756 = vst [vmem:[#allocation142_spill] sm:$0xff] %v37217_v33  ;;  %v16690_v35 = vpop.permute.xlu1 %16689 }
 0x578   : > { %v16697_v9 = vpop.permute.xlu0 %16696 }
 0x579   : > { %v16725_v17 = vsel %vm421_vm7, %v16722_v49, %v16697_v9 }
 0x57c   : > { %v16706_v12 = vpop.permute.xlu0 %16705 }
 0x57d   : > { %v16728_v13 = vsel %vm425_vm8, %v16725_v17, %v16706_v12 }
 0x580   : > { %v16715_v33 = vpop.permute.xlu0 %16714 }
 0x581   : > { %v37231_v38 = vsel %vm429_vm9, %v16728_v13, %v16715_v33 }
 0x582   : > { %41760 = vst [vmem:[#allocation144_spill] sm:$0xff] %v37231_v38 }
 0x584   : > { %v16681_v51 = vpop.permute.xlu0 %16680 }
 0x585   : > { %v16723_v37 = vsel %vm417_vm6, %v16681_v51, %v16690_v35 }
 0x588   : > { %v37235_v27 = vpop.permute.xlu0 %17317 }
 0x589   : > { %41762 = vst [vmem:[#allocation146_spill] sm:$0xff] %v37235_v27 }
 0x58c   : > { %v16699_v23 = vpop.permute.xlu0 %16698 }
 0x58d   : > { %v16726_v49 = vsel %vm421_vm7, %v16723_v37, %v16699_v23 }
 0x590   : > { %v16708_v9 = vpop.permute.xlu0 %16707 }
 0x591   : > { %v37240_v17 = vsel %vm425_vm8, %v16726_v49, %v16708_v9 }
 0x592   : > { %41763 = vst [vmem:[#allocation147_spill] sm:$0xff] %v37240_v17 }
 0x5a3   : > { %v29584_v12 = vpop.f32.mrb[20].mxu0 }
 0x5a4   : > { %v5810_v28 = vpop.f32.mrb[21].mxu0  ;;  %v33795_v13 = vadd.f32 %v29584_v12, %v41764_v63 }
 0x5a5   : > { %v33796_v33 = vadd.f32 %v41764_v63, %v5810_v28 }
 0x5a6   : > { %v5821_v38 = vmax.f32 %v33795_v13, 0.0 }
 0x5a7   : > { %v37244_v18 = vmax.f32 %v33796_v33, 0.0 }
 0x5a8   : > { %v18552_v23 = vrot.slane %v5821_v38, 3  ;;  %v18558_v35 = vrot.slane %v5821_v38, 4 }
 0x5a9   : > { %v18542_v27 = vrot.slane %v37244_v18, 1  ;;  %v18546_v51 = vrot.slane %v37244_v18, 2  ;;  %v18551_v37 = vrot.slane %v37244_v18, 3  ;;  %v18557_v28 = vrot.slane %v37244_v18, 4 }
 0x5ab   : > { %18543 = vrot.lane.b32.xlu0 %v18542_v27, %s41648_s12  ;;  %v18553_v49 = vsel %vm387_vm2, %v18551_v37, %v18552_v23  ;;  %v18559_v63 = vsel %vm402_vm4, %v18557_v28, %v18558_v35 }
 0x5af   : > { %18547 = vrot.lane.b32.xlu0 %v18546_v51, %s41655_s24 }
 0x5b3   : > { %18554 = vrot.lane.b32.xlu0 %v18553_v49, %s34757_s21 }
 0x5b7   : > { %18560 = vrot.lane.b32.xlu0 %v18559_v63, %s34762_s18 }
 0x5e7   : > { %v7080_v27 = vpop.f32.mrb[22].mxu0 }
 0x5e8   : > { %v7096_v9 = vmax.f32 %v36927_v7, %v7080_v27  ;;  %v29782_v12 = vpop.f32.mrb[23].mxu0 }
 0x5ea   : > { %v7102_v38 = vrot.slane %v7096_v9, 1 }
 0x5eb   : > { %v7086_v33 = vpop.f32.mrb[24].mxu0 }
 0x5ec   : > { %v7097_v13 = vmax.f32 %v36938_v60, %v7086_v33  ;;  %v29785_v51 = vpop.f32.mrb[25].mxu0 }
 0x5ee   : > { %v7103_v17 = vrot.slane %v7097_v13, 1 }
 0x5ef   : > { %v7092_v23 = vpop.f32.mrb[26].mxu0 }
 0x5f0   : > { %v7104_v37 = vsel %vm357_vm0, %v7102_v38, %v7103_v17  ;;  %v7098_v49 = vmax.f32 %v36950_v44, %v7092_v23  ;;  %v29788_v43 = vpop.f32.mrb[27].mxu0 }
 0x5f1   : > { %v7110_v35 = vmax.f32 %v7096_v9, %v7104_v37 }
 0x5f2   : > { %v7105_v28 = vrot.slane %v7098_v49, 1 }
 0x5f3   : > { %v7117_v31 = vand.u32 4294901760, %v7110_v35 }
 0x5f4   : > { %v7106_v63 = vsel %vm357_vm0, %v7103_v17, %v7105_v28  ;;  %v7112_v52 = vmax.f32 %v7098_v49, %v7105_v28  ;;  %v41766_v28 = vld [vmem:[#allocation69_spill] sm:$0xff] }
 0x5f5   : > { %v7206_v7 = vsub.f32 %v7110_v35, %v7117_v31  ;;  %v7111_v27 = vmax.f32 %v7097_v13, %v7106_v63 }
 0x5f6   : > { %v7114_v12 = vsel %vm1685_vm14, %v7112_v52, 0 }
 0x5f7   : > { %v7120_v60 = vand.u32 4294901760, %v7111_v27  ;;  %v37262_v33 = vand.u32 4294901760, %v7114_v12  ;;  %v7207_v51 = vand.u32 4294901760, %v7206_v7 }
 0x5f9   : > { %v31841_v34 = vpack.c.bf16 %v7120_v60, %v7117_v31  ;;  %v7213_v41 = vsub.f32 %v7111_v27, %v7120_v60  ;;  %v7220_v38 = vsub.f32 %v7114_v12, %v37262_v33  ;;  %v7208_v44 = vsub.f32 %v7206_v7, %v7207_v51  ;;  %v41768_v12 = vld [vmem:[#allocation37_spill] sm:$0xff]  ;;  %v41769_v60 = vld [vmem:[#allocation76_spill] sm:$0xff] }
 0x5fb   : > { %31842 = vmatprep.subr.bf16.mxu1 %v31841_v34  ;;  %v7214_v43 = vand.u32 4294901760, %v7213_v41  ;;  %v7221_v9 = vand.u32 4294901760, %v7220_v38  ;;  %v31849_v23 = vpack.c.bf16 %v7213_v41, %v7206_v7  ;;  %v7209_v37 = vand.u32 4294901760, %v7208_v44  ;;  %v41767_v7 = vld [vmem:[#allocation33_spill] sm:$0xff] }
 0x5fc   : > { %31844 = vmatpush3.bf16.msra.mxu1 %v31841_v34 }
 0x5fd   : > { %29793 = vmatprep.subr.mxu1 %v37262_v33  ;;  %v7215_v17 = vsub.f32 %v7213_v41, %v7214_v43  ;;  %v31857_v13 = vpack.c.bf16 %v7214_v43, %v7207_v51  ;;  %v7222_v49 = vsub.f32 %v7220_v38, %v7221_v9  ;;  %v41765_v41 = vld [vmem:[#allocation32_spill] sm:$0xff]  ;;  %v8316_v51 = vsel %vm417_vm6, %v41769_v60, %v41768_v12  ;;  %v41771_v43 = vld [vmem:[#allocation38_spill] sm:$0xff] }
 0x5fe   : > { %v8315_v63 = vsel %vm417_vm6, %v41766_v28, %v41765_v41  ;;  %v41776_v28 = vld [vmem:[#allocation43_spill] sm:$0xff]  ;;  %v41778_v60 = vld [vmem:[#allocation44_spill] sm:$0xff] }
 0x5ff   : > { %v7216_v52 = vand.u32 4294901760, %v7215_v17  ;;  %v7223_v35 = vand.u32 4294901760, %v7222_v49  ;;  %v8318_v27 = vsel %vm421_vm7, %v8315_v63, %v41767_v7  ;;  %v41772_v17 = vld [vmem:[#allocation42_spill] sm:$0xff]  ;;  %v41774_v49 = vld [vmem:[#allocation35_spill] sm:$0xff] }
 0x600   : > { %29794 = vmatpush3.msra.mxu1 %v37262_v33 }
 0x601   : > { %29796 = vmatmul.mubr.f32.vlgmr.msra.gmra.mrb[26].mxu1 %v35508_v61  ;;  %v31845_v31 = vpack.c.bf16 %v7216_v52, %v7209_v37  ;;  %v41773_v37 = vld [vmem:[#allocation78_spill] sm:$0xff] }
 0x602   : > { %29804 = vmatprep.mubr.msk.f32.mxu1 %vm1678_vm12, %v35439_v50  ;;  %v8317_v52 = vsel %vm417_vm6, %v41773_v37, %v41772_v17 }
 0x603   : > { %31846 = vmatprep.subr.bf16.mxu1 %v31845_v31  ;;  %v8320_v63 = vsel %vm421_vm7, %v8317_v52, %v41776_v28 }
 0x604   : > { %31848 = vmatpush3.bf16.msra.mxu1 %v31845_v31 }
 0x605   : > { %29802 = vmatprep.subr.mxu1 %v7223_v35 }
 0x608   : > { %29803 = vmatpush3.msra.mxu1 %v7223_v35  ;;  %v41775_v35 = vld [vmem:[#allocation39_spill] sm:$0xff] }
 0x609   : > { %29805 = vmatmul.mubr.msk.f32.vlgmr.msra.gmra.mrb[26].mxu1 %vm1678_vm12, %v35471_v8  ;;  %31850 = vmatprep.subr.bf16.mxu1 %v31849_v23 }
 0x60a   : > { %31852 = vmatpush3.bf16.msra.mxu1 %v31849_v23  ;;  %29813 = vmatprep.mubr.f32.mxu1 %v35447_v1  ;;  %v8319_v23 = vsel %vm421_vm7, %v8316_v51, %v41771_v43  ;;  %v8323_v51 = vsel %vm425_vm8, %v8320_v63, %v41778_v60 }
 0x60b   : > { %29811 = vmatprep.subr.mxu1 %v7220_v38  ;;  %v8322_v41 = vsel %vm425_vm8, %v8319_v23, %v41775_v35 }
 0x60e   : > { %29812 = vmatpush3.msra.mxu1 %v7220_v38  ;;  %v41770_v38 = vld [vmem:[#allocation34_spill] sm:$0xff] }
 0x60f   : > { %31854 = vmatprep.subr.bf16.mxu1 %v31841_v34  ;;  %v8321_v44 = vsel %vm425_vm8, %v8318_v27, %v41770_v38  ;;  %v41777_v27 = vld [vmem:[#allocation40_spill] sm:$0xff] }
 0x610   : > { %v8324_v31 = vsel %vm429_vm9, %v8321_v44, %v41774_v49  ;;  %v8325_v12 = vsel %vm429_vm9, %v8322_v41, %v41777_v27  ;;  %v41779_v44 = vld [vmem:[#allocation45_spill] sm:$0xff] }
 0x611   : > { %29814 = vmatmul.mubr.f32.vlgmr.msra.gmra.mrb[26].mxu1 %v35476_v46  ;;  %v8328_v7 = vsel %vm433_vm10, %v8324_v31, 0  ;;  %v8326_v43 = vsel %vm429_vm9, %v8323_v51, %v41779_v44 }
 0x612   : > { %31856 = vmatpush3.bf16.msra.mxu1 %v31841_v34  ;;  %29822 = vmatprep.mubr.f32.mxu1 %v35453_v58  ;;  %v37306_v38 = vand.u32 4294901760, %v8328_v7 }
 0x613   : > { %29820 = vmatprep.subr.mxu1 %v37262_v33 }
 0x614   : > { %v8406_v23 = vsub.f32 %v8328_v7, %v37306_v38 }
 0x616   : > { %29821 = vmatpush3.msra.mxu1 %v37262_v33  ;;  %v8407_v52 = vand.u32 4294901760, %v8406_v23 }
 0x617   : > { %31858 = vmatprep.subr.bf16.mxu1 %v31857_v13 }
 0x618   : > { %v8408_v49 = vsub.f32 %v8406_v23, %v8407_v52 }
 0x619   : > { %29823 = vmatmul.mubr.f32.vlgmr.msra.gmra.mrb[26].mxu1 %v35482_v5 }
 0x61a   : > { %31860 = vmatpush3.bf16.msra.mxu1 %v31857_v13  ;;  %29831 = vmatprep.mubr.msk.f32.mxu1 %vm1678_vm12, %v35439_v50  ;;  %v8331_v13 = vsel %vm433_vm10, %v8325_v12, 0  ;;  %v8409_v35 = vand.u32 4294901760, %v8408_v49 }
 0x61b   : > { %29829 = vmatprep.subr.mxu1 %v7221_v9  ;;  %v37316_v17 = vand.u32 4294901760, %v8331_v13 }
 0x61e   : > { %29830 = vmatpush3.msra.mxu1 %v7221_v9  ;;  %v8334_v9 = vsel %vm433_vm10, %v8326_v43, 0 }
 0x61f   : > { %31862 = vmatprep.subr.bf16.mxu1 %v31841_v34  ;;  %v37321_v37 = vand.u32 4294901760, %v8334_v9 }
 0x621   : > { %29832 = vmatmul.mubr.msk.f32.vlgmr.msra.gmra.mrb[26].mxu1 %vm1678_vm12, %v35471_v8 }
 0x622   : > { %31864 = vmatpush3.bf16.msra.mxu1 %v31841_v34  ;;  %29840 = vmatprep.mubr.msk.f32.mxu1 %vm1678_vm12, %v35439_v50  ;;  %v8416_v34 = vsub.f32 %v8331_v13, %v37316_v17 }
 0x623   : > { %29838 = vmatprep.subr.mxu1 %v37262_v33 }
 0x624   : > { %v8417_v31 = vand.u32 4294901760, %v8416_v34 }
 0x626   : > { %29839 = vmatpush3.msra.mxu1 %v37262_v33  ;;  %v8426_v33 = vsub.f32 %v8334_v9, %v37321_v37  ;;  %v8418_v41 = vsub.f32 %v8416_v34, %v8417_v31 }
 0x627   : > { %31901 = vmatprep.subr.bf16.mxu1 %v41620_v62 }
 0x628   : > { %v8427_v28 = vand.u32 4294901760, %v8426_v33  ;;  %v8419_v63 = vand.u32 4294901760, %v8418_v41 }
 0x629   : > { %29841 = vmatmul.mubr.msk.f32.vlgmr.msra.gmra.mrb[26].mxu1 %vm1678_vm12, %v35471_v8 }
 0x62a   : > { %31903 = vmatpush3.bf16.msra.mxu1 %v34910_v16  ;;  %29953 = vmatprep.mubr.msk.f32.mxu1 %vm34727_vm5, %v41621_v39  ;;  %v8428_v7 = vsub.f32 %v8426_v33, %v8427_v28 }
 0x62b   : > { %31904 = vmatprep.subr.bf16.mxu1 %v41620_v62 }
 0x62c   : > { %v8429_v27 = vand.u32 4294901760, %v8428_v7  ;;  %v41787_v7 = vld [vmem:[#allocation55_spill] sm:$0xff] }
 0x62e   : > { %31906 = vmatpush3.bf16.msra.mxu1 %v34931_v25 }
 0x62f   : > { %31907 = vmatprep.subr.bf16.mxu1 %v41620_v62 }
 0x631   : > { %29954 = vmatmul.mubr.f32.vlgmr.msra.gmra.mrb[28].mxu1 %v8409_v35  ;;  %v41785_v35 = vld [vmem:[#allocation49_spill] sm:$0xff] }
 0x632   : > { %29956 = vmatprep.mubr.msk.f32.mxu1 %vm34727_vm5, %v41621_v39  ;;  %31909 = vmatpush3.bf16.msra.mxu1 %v35015_v48 }
 0x633   : > { %31910 = vmatprep.subr.bf16.mxu1 %v41620_v62 }
 0x635   : > { %29957 = vmatmul.mubr.f32.gmra.mrb[30].mxu1 %v8419_v63  ;;  %v37357_v12 = vpop.f32.mrb[28].mxu0 }
 0x636   : > { %29959 = vmatprep.mubr.msk.f32.mxu1 %vm34727_vm5, %v41621_v39  ;;  %31912 = vmatpush3.bf16.msra.mxu1 %v35021_v53  ;;  %v29938_v60 = vpop.f32.mrb[29].mxu0 }
 0x637   : > { %31913 = vmatprep.subr.bf16.mxu1 %v41620_v62  ;;  %v41788_v60 = vld [vmem:[#allocation89_spill] sm:$0xff] }
 0x639   : > { %29960 = vmatmul.mubr.f32.gmra.mrb[32].mxu1 %v8429_v27  ;;  %v37363_v51 = vpop.f32.mrb[30].mxu0 }
 0x63a   : > { %29970 = vmatprep.mubr.msk.f32.mxu1 %vm34727_vm5, %v41621_v39  ;;  %v29941_v13 = vpop.f32.mrb[31].mxu0 }
 0x63d   : > { %29971 = vmatmul.mubr.f32.vlgmr.msra.gmra.mrb[28].mxu1 %v37306_v38  ;;  %v37369_v44 = vpop.f32.mrb[32].mxu0 }
 0x63e   : > { %29973 = vmatprep.mubr.msk.f32.mxu1 %vm34727_vm5, %v41621_v39  ;;  %31915 = vmatpush3.bf16.msra.mxu1 %v35027_v54  ;;  %v29944_v43 = vpop.f32.mrb[33].mxu0 }
 0x63f   : > { %31916 = vmatprep.subr.bf16.mxu1 %v41620_v62 }
 0x641   : > { %29974 = vmatmul.mubr.f32.gmra.mrb[30].mxu1 %v37316_v17 }
 0x642   : > { %29976 = vmatprep.mubr.msk.f32.mxu1 %vm34727_vm5, %v41621_v39  ;;  %31918 = vmatpush3.bf16.msra.mxu1 %v35029_v55 }
 0x643   : > { %31919 = vmatprep.subr.bf16.mxu1 %v41620_v62 }
 0x645   : > { %29977 = vmatmul.mubr.f32.gmra.mrb[32].mxu1 %v37321_v37 }
 0x646   : > { %29987 = vmatprep.mubr.msk.f32.mxu1 %vm34727_vm5, %v41621_v39 }
 0x649   : > { %29988 = vmatmul.mubr.f32.vlgmr.msra.gmra.mrb[28].mxu1 %v8406_v23  ;;  %v41781_v23 = vld [vmem:[#allocation80_spill] sm:$0xff] }
 0x64a   : > { %29990 = vmatprep.mubr.msk.f32.mxu1 %vm34727_vm5, %v41621_v39  ;;  %31921 = vmatpush3.bf16.msra.mxu1 %v34910_v16 }
 0x64b   : > { %31922 = vmatprep.subr.bf16.mxu1 %v41620_v62 }
 0x64d   : > { %29991 = vmatmul.mubr.f32.gmra.mrb[30].mxu1 %v8416_v34  ;;  %v41783_v34 = vld [vmem:[#allocation50_spill] sm:$0xff] }
 0x64e   : > { %29993 = vmatprep.mubr.msk.f32.mxu1 %vm34727_vm5, %v41621_v39  ;;  %31924 = vmatpush3.bf16.msra.mxu1 %v34931_v25 }
 0x64f   : > { %31925 = vmatprep.subr.bf16.mxu1 %v41620_v62 }
 0x651   : > { %29994 = vmatmul.mubr.f32.gmra.mrb[32].mxu1 %v8426_v33 }
 0x652   : > { %30004 = vmatprep.mubr.msk.f32.mxu1 %vm34727_vm5, %v41621_v39 }
 0x655   : > { %30005 = vmatmul.mubr.f32.vlgmr.msra.gmra.mrb[28].mxu1 %v8407_v52 }
 0x656   : > { %30007 = vmatprep.mubr.msk.f32.mxu1 %vm34727_vm5, %v41621_v39  ;;  %31927 = vmatpush3.bf16.msra.mxu1 %v35031_v56 }
 0x657   : > { %31928 = vmatprep.subr.bf16.mxu1 %v41620_v62 }
 0x659   : > { %30008 = vmatmul.mubr.f32.gmra.mrb[30].mxu1 %v8417_v31  ;;  %v41784_v31 = vld [vmem:[#allocation48_spill] sm:$0xff] }
 0x65a   : > { %30010 = vmatprep.mubr.msk.f32.mxu1 %vm34727_vm5, %v41621_v39  ;;  %31930 = vmatpush3.bf16.msra.mxu1 %v35033_v57 }
 0x65b   : > { %31931 = vmatprep.subr.bf16.mxu1 %v41620_v62 }
 0x65d   : > { %30011 = vmatmul.mubr.f32.gmra.mrb[32].mxu1 %v8427_v28  ;;  %v41786_v28 = vld [vmem:[#allocation88_spill] sm:$0xff] }
 0x65e   : > { %30021 = vmatprep.mubr.msk.f32.mxu1 %vm34727_vm5, %v41621_v39 }
 0x661   : > { %30022 = vmatmul.mubr.f32.vlgmr.msra.gmra.mrb[28].mxu1 %v37306_v38 }
 0x662   : > { %30024 = vmatprep.mubr.msk.f32.mxu1 %vm34727_vm5, %v41621_v39  ;;  %31933 = vmatpush3.bf16.msra.mxu1 %v34910_v16 }
 0x663   : > { %31934 = vmatprep.subr.bf16.mxu1 %v41620_v62 }
 0x665   : > { %30025 = vmatmul.mubr.f32.gmra.mrb[30].mxu1 %v37316_v17 }
 0x666   : > { %30027 = vmatprep.mubr.msk.f32.mxu1 %vm34727_vm5, %v41621_v39  ;;  %31936 = vmatpush3.bf16.msra.mxu1 %v34931_v25 }
 0x667   : > { %31961 = vmatprep.subr.bf16.mxu1 %v41620_v62 }
 0x669   : > { %30028 = vmatmul.mubr.f32.gmra.mrb[32].mxu1 %v37321_v37 }
 0x66a   : > { %30038 = vmatprep.mubr.msk.f32.mxu1 %vm34727_vm5, %v41621_v39 }
 0x66d   : > { %30039 = vmatmul.mubr.f32.vlgmr.msra.gmra.mrb[28].mxu1 %v37306_v38  ;;  %v41780_v38 = vld [vmem:[#allocation46_spill] sm:$0xff] }
 0x66e   : > { %30041 = vmatprep.mubr.msk.f32.mxu1 %vm34727_vm5, %v41621_v39  ;;  %31963 = vmatpush3.bf16.msra.mxu1 %v34910_v16  ;;  %v9483_v9 = vsel %vm417_vm6, %v41781_v23, %v41780_v38  ;;  %v41789_v23 = vld [vmem:[#allocation57_spill] sm:$0xff] }
 0x66f   : > { %31964 = vmatprep.subr.bf16.mxu1 %v41620_v62  ;;  %v9486_v52 = vsel %vm421_vm7, %v9483_v9, %v34899_v10  ;;  %v9485_v10 = vsel %vm417_vm6, %v36691_v6, %v41787_v7  ;;  %v41790_v6 = vld [vmem:[#allocation58_spill] sm:$0xff] }
 0x670   : > { %v9489_v33 = vsel %vm425_vm8, %v9486_v52, %v41784_v31  ;;  %v9488_v43 = vsel %vm421_vm7, %v9485_v10, %v34957_v29 }
 0x671   : > { %30042 = vmatmul.mubr.f32.gmra.mrb[30].mxu1 %v37316_v17  ;;  %v41782_v17 = vld [vmem:[#allocation85_spill] sm:$0xff]  ;;  %v9492_v41 = vsel %vm429_vm9, %v9489_v33, %v41785_v35  ;;  %v9491_v9 = vsel %vm425_vm8, %v9488_v43, %v41789_v23 }
 0x672   : > { %30044 = vmatprep.mubr.msk.f32.mxu1 %vm34727_vm5, %v41621_v39  ;;  %31966 = vmatpush3.bf16.msra.mxu1 %v34931_v25  ;;  %v9484_v49 = vsel %vm417_vm6, %v41783_v34, %v41782_v17  ;;  %v9496_v27 = vsel %vm433_vm10, %v9492_v41, 0  ;;  %v9494_v34 = vsel %vm429_vm9, %v9491_v9, %v41790_v6  ;;  %v37518_v9 = vpop.permute.xlu0 %16716 }
 0x673   : > { %31967 = vmatprep.subr.bf16.mxu1 %v41620_v62  ;;  %v37433_v38 = vand.u32 4294901760, %v9496_v27  ;;  %41791 = vst [vmem:[#allocation70_spill] sm:$0xff] %v37518_v9 }
 0x675   : > { %30045 = vmatmul.mubr.f32.gmra.mrb[32].mxu1 %v37321_v37  ;;  %v9487_v37 = vsel %vm421_vm7, %v9484_v49, %v34974_v32  ;;  %v9574_v52 = vsub.f32 %v9496_v27, %v37433_v38  ;;  %v9502_v49 = vsel %vm433_vm10, %v9494_v34, 0 }
 0x676   : > { %30109 = vmatprep.mubr.msk.f32.mxu1 %vm34727_vm5, %v41621_v39  ;;  %v9490_v63 = vsel %vm425_vm8, %v9487_v37, %v41786_v28  ;;  %v37445_v29 = vand.u32 4294901760, %v9502_v49  ;;  %v18544_v34 = vpop.permute.xlu0 %18543 }
 0x677   : > { %v9493_v13 = vsel %vm429_vm9, %v9490_v63, %v41788_v60  ;;  %v9575_v33 = vand.u32 4294901760, %v9574_v52 }
 0x678   : > { %v9499_v32 = vsel %vm433_vm10, %v9493_v13, 0  ;;  %v9594_v63 = vsub.f32 %v9502_v49, %v37445_v29 }
 0x679   : > { %v37439_v17 = vand.u32 4294901760, %v9499_v32  ;;  %v9576_v37 = vsub.f32 %v9574_v52, %v9575_v33 }
 0x67a   : > { %v9595_v10 = vand.u32 4294901760, %v9594_v63 }
 0x67b   : > { %v9584_v31 = vsub.f32 %v9499_v32, %v37439_v17  ;;  %v9577_v35 = vand.u32 4294901760, %v9576_v37  ;;  %v37514_v32 = vld [vmem:[%s41251_s2] ss:$0 sm:$0xff] }
 0x67c   : > { %v9596_v27 = vsub.f32 %v9594_v63, %v9595_v10 }
 0x67d   : > { %v9585_v41 = vand.u32 4294901760, %v9584_v31  ;;  %30110 = vmatmul.mubr.f32.vlgmr.msra.gmra.mrb[34].mxu1 %v9577_v35 }
 0x67e   : > { %30112 = vmatprep.mubr.msk.f32.mxu1 %vm34727_vm5, %v41621_v39  ;;  %31969 = vmatpush3.bf16.msra.mxu1 %v35015_v48  ;;  %v9597_v60 = vand.u32 4294901760, %v9596_v27 }
 0x67f   : > { %v9586_v28 = vsub.f32 %v9584_v31, %v9585_v41  ;;  %31970 = vmatprep.subr.bf16.mxu1 %v41620_v62 }
 0x681   : > { %v9587_v7 = vand.u32 4294901760, %v9586_v28  ;;  %v41792_v28 = vld [vmem:[#allocation31_spill] sm:$0xff] }
 0x682   : > { %31972 = vmatpush3.bf16.msra.mxu1 %v35021_v53 }
 0x683   : > { %30113 = vmatmul.mubr.f32.gmra.mrb[36].mxu1 %v9587_v7  ;;  %31973 = vmatprep.subr.bf16.mxu1 %v41620_v62  ;;  %v41793_v7 = vld [vmem:[#allocation71_spill] sm:$0xff] }
 0x684   : > { %30115 = vmatprep.mubr.msk.f32.mxu1 %vm34727_vm5, %v41621_v39 }
 0x687   : > { %30116 = vmatmul.mubr.f32.gmra.mrb[38].mxu1 %v9597_v60 }
 0x688   : > { %30126 = vmatprep.mubr.msk.f32.mxu1 %vm34727_vm5, %v41621_v39 }
 0x68b   : > { %30127 = vmatmul.mubr.f32.vlgmr.msra.gmra.mrb[34].mxu1 %v37433_v38 }
 0x68c   : > { %30129 = vmatprep.mubr.msk.f32.mxu1 %vm34727_vm5, %v41621_v39  ;;  %31975 = vmatpush3.bf16.msra.mxu1 %v35027_v54 }
 0x68d   : > { %31976 = vmatprep.subr.bf16.mxu1 %v41620_v62 }
 0x68f   : > { %30130 = vmatmul.mubr.f32.gmra.mrb[36].mxu1 %v37439_v17 }
 0x690   : > { %30132 = vmatprep.mubr.msk.f32.mxu1 %vm34727_vm5, %v41621_v39  ;;  %31978 = vmatpush3.bf16.msra.mxu1 %v35029_v55 }
 0x691   : > { %31979 = vmatprep.subr.bf16.mxu1 %v41620_v62 }
 0x693   : > { %30133 = vmatmul.mubr.f32.gmra.mrb[38].mxu1 %v37445_v29 }
 0x694   : > { %30143 = vmatprep.mubr.msk.f32.mxu1 %vm34727_vm5, %v41621_v39 }
 0x697   : > { %30144 = vmatmul.mubr.f32.vlgmr.msra.gmra.mrb[34].mxu1 %v9574_v52 }
 0x698   : > { %30146 = vmatprep.mubr.msk.f32.mxu1 %vm34727_vm5, %v41621_v39  ;;  %31981 = vmatpush3.bf16.msra.mxu1 %v34910_v16 }
 0x699   : > { %31982 = vmatprep.subr.bf16.mxu1 %v41620_v62 }
 0x69b   : > { %30147 = vmatmul.mubr.f32.gmra.mrb[36].mxu1 %v9584_v31 }
 0x69c   : > { %30149 = vmatprep.mubr.msk.f32.mxu1 %vm34727_vm5, %v41621_v39  ;;  %31984 = vmatpush3.bf16.msra.mxu1 %v34931_v25 }
 0x69d   : > { %31985 = vmatprep.subr.bf16.mxu1 %v41620_v62 }
 0x69f   : > { %30150 = vmatmul.mubr.f32.gmra.mrb[38].mxu1 %v9594_v63  ;;  %v33792_v63 = vadd.f32 %v37514_v32, %v41792_v28 }
 0x6a0   : > { %30160 = vmatprep.mubr.msk.f32.mxu1 %vm34727_vm5, %v41621_v39 }
 0x6a3   : > { %30161 = vmatmul.mubr.f32.vlgmr.msra.gmra.mrb[34].mxu1 %v9575_v33 }
 0x6a4   : > { %30163 = vmatprep.mubr.msk.f32.mxu1 %vm34727_vm5, %v41621_v39  ;;  %31987 = vmatpush3.bf16.msra.mxu1 %v35031_v56 }
 0x6a5   : > { %31988 = vmatprep.subr.bf16.mxu1 %v41620_v62 }
 0x6a7   : > { %30164 = vmatmul.mubr.f32.gmra.mrb[36].mxu1 %v9585_v41  ;;  %v18548_v41 = vpop.permute.xlu0 %18547 }
 0x6a8   : > { %30166 = vmatprep.mubr.msk.f32.mxu1 %vm34727_vm5, %v41621_v39  ;;  %31990 = vmatpush3.bf16.msra.mxu1 %v35033_v57 }
 0x6a9   : > { %31991 = vmatprep.subr.bf16.mxu1 %v41620_v62 }
 0x6ab   : > { %30167 = vmatmul.mubr.f32.gmra.mrb[38].mxu1 %v9595_v10  ;;  %v41794_v10 = vmax.f32 %v41793_v7, 0.0 }
 0x6ac   : > { %30177 = vmatprep.mubr.msk.f32.mxu1 %vm34727_vm5, %v41621_v39 }
 0x6ad   : > { %v18532_v27 = vrot.slane %v41794_v10, 4 }
 0x6af   : > { %30178 = vmatmul.mubr.f32.vlgmr.msra.gmra.mrb[34].mxu1 %v37433_v38 }
 0x6b0   : > { %30180 = vmatprep.mubr.msk.f32.mxu1 %vm34727_vm5, %v41621_v39  ;;  %31993 = vmatpush3.bf16.msra.mxu1 %v34910_v16 }
 0x6b1   : > { %31994 = vmatprep.subr.bf16.mxu1 %v41620_v62 }
 0x6b3   : > { %30181 = vmatmul.mubr.f32.gmra.mrb[36].mxu1 %v37439_v17 }
 0x6b4   : > { %30183 = vmatprep.mubr.msk.f32.mxu1 %vm34727_vm5, %v41621_v39  ;;  %31996 = vmatpush3.bf16.msra.mxu1 %v34931_v25 }
 0x6b7   : > { %30184 = vmatmul.mubr.f32.gmra.mrb[38].mxu1 %v37445_v29 }
 0x6b8   : > { %30194 = vmatprep.mubr.msk.f32.mxu1 %vm34727_vm5, %v41621_v39 }
 0x6bb   : > { %30195 = vmatmul.mubr.f32.vlgmr.msra.gmra.mrb[34].mxu1 %v37433_v38 }
 0x6bc   : > { %30197 = vmatprep.mubr.msk.f32.mxu1 %vm34727_vm5, %v41621_v39 }
 0x6bf   : > { %30198 = vmatmul.mubr.f32.gmra.mrb[36].mxu1 %v37439_v17 }
 0x6c0   : > { %30200 = vmatprep.mubr.msk.f32.mxu1 %vm34727_vm5, %v41621_v39 }
 0x6c3   : > { %30201 = vmatmul.mubr.f32.gmra.mrb[38].mxu1 %v37445_v29 }
 0x6c4   : > { %30311 = vmatprep.mubr.f32.mxu1 %v41758_v47 }
 0x6fc   : > { %v29842_v13 = vpop.f32.mrb[26].mxu1 }
 0x6fd   : > { %v7621_v43 = vpop.f32.mrb[27].mxu1  ;;  %v33797_v23 = vadd.f32 %v37514_v32, %v29842_v13  ;;  %v41795_v13 = vld [vmem:[#allocation73_spill] sm:$0xff] }
 0x6fe   : > { %v33798_v38 = vadd.f32 %v37514_v32, %v7621_v43  ;;  %v18531_v43 = vrot.slane %v41795_v13, 4 }
 0x6ff   : > { %v7632_v6 = vmax.f32 %v33797_v23, 0.0  ;;  %v18555_v23 = vpop.permute.xlu0 %18554 }
 0x700   : > { %v37520_v52 = vmax.f32 %v33798_v38, 0.0  ;;  %v37537_v38 = vmax.f32 %v33792_v63, 0.0 }
 0x701   : > { %v18578_v31 = vrot.slane %v7632_v6, 3  ;;  %v18584_v29 = vrot.slane %v7632_v6, 4 }
 0x702   : > { %v18568_v17 = vrot.slane %v37520_v52, 1  ;;  %v18572_v49 = vrot.slane %v37520_v52, 2  ;;  %v18577_v33 = vrot.slane %v37520_v52, 3  ;;  %v18583_v35 = vrot.slane %v37520_v52, 4 }
 0x703   : > { %v18503_v10 = vrot.slane %v37537_v38, 4 }
 0x704   : > { %18569 = vrot.lane.b32.xlu1 %v18568_v17, %s41648_s12  ;;  %v18579_v37 = vsel %vm387_vm2, %v18577_v33, %v18578_v31  ;;  %v18585_v60 = vsel %vm402_vm4, %v18583_v35, %v18584_v29  ;;  %v41796_v17 = vld [vmem:[#allocation30_spill] sm:$0xff]  ;;  %v18492_v31 = vrot.slane %v37537_v38, 2  ;;  %v18563_v29 = vsel %vm421_vm7, %v37244_v18, %v18544_v34 }
 0x705   : > { %v37541_v6 = vadd.f32 %v37514_v32, %v41796_v17  ;;  %v18564_v35 = vsel %vm429_vm9, %v18563_v29, %v18548_v41 }
 0x706   : > { %v18565_v28 = vsel %vm18511_vm1, %v18564_v35, %v18555_v23 }
 0x707   : > { %v41336_v33 = vmax.f32 %v37541_v6, 0.0 }
 0x708   : > { %18573 = vrot.lane.b32.xlu1 %v18572_v49, %s41655_s24  ;;  %v18533_v49 = vsel %vm402_vm4, %v18531_v43, %v18532_v27 }
 0x709   : > { %v18504_v63 = vrot.slane %v41336_v33, 4 }
 0x70b   : > { %v18505_v18 = vsel %vm402_vm4, %v18503_v10, %v18504_v63 }
 0x70c   : > { %18580 = vrot.lane.b32.xlu1 %v18579_v37, %s34757_s21  ;;  %v18561_v37 = vpop.permute.xlu0 %18560 }
 0x70d   : > { %v37555_v7 = vsel %vm18513_vm15, %v18565_v28, %v18561_v37 }
 0x70e   : > { %41797 = vst [vmem:[#allocation32_spill] sm:$0xff] %v37555_v7 }
 0x710   : > { %18586 = vrot.lane.b32.xlu1 %v18585_v60, %s34762_s18 }
 0x714   : > { %18534 = vrot.lane.b32.xlu1 %v18533_v49, %s34762_s18 }
 0x718   : > { %18493 = vrot.lane.b32.xlu1 %v18492_v31, %s41655_s24 }
 0x71c   : > { %18624 = vrot.lane.b32.xlu1 %v37555_v7, %s34763_s14 }
 0x720   : > { %18506 = vrot.lane.b32.xlu1 %v18505_v18, %s34762_s18 }
 0x740   : > { %v8891_v34 = vpop.f32.mrb[28].mxu1 }
 0x741   : > { %v8907_v41 = vmax.f32 %v37357_v12, %v8891_v34  ;;  %v30040_v27 = vpop.f32.mrb[29].mxu1  ;;  %v37567_v12 = vpop.permute.xlu1 %17326 }
 0x743   : > { %v8913_v17 = vrot.slane %v8907_v41, 1 }
 0x744   : > { %v8897_v60 = vpop.f32.mrb[30].mxu1 }
 0x745   : > { %v8908_v43 = vmax.f32 %v37363_v51, %v8897_v60  ;;  %v30043_v23 = vpop.f32.mrb[31].mxu1 }
 0x747   : > { %v8914_v49 = vrot.slane %v8908_v43, 1 }
 0x748   : > { %v8903_v31 = vpop.f32.mrb[32].mxu1 }
 0x749   : > { %v8915_v29 = vsel %vm357_vm0, %v8913_v17, %v8914_v49  ;;  %v8909_v37 = vmax.f32 %v37369_v44, %v8903_v31  ;;  %v30046_v35 = vpop.f32.mrb[33].mxu1  ;;  %v37575_v31 = vpop.permute.xlu1 %17335 }
 0x74a   : > { %v8921_v28 = vmax.f32 %v8907_v41, %v8915_v29 }
 0x74b   : > { %v8916_v63 = vrot.slane %v8909_v37, 1 }
 0x74c   : > { %v8928_v10 = vand.u32 4294901760, %v8921_v28 }
 0x74d   : > { %v8917_v18 = vsel %vm357_vm0, %v8914_v49, %v8916_v63  ;;  %v8923_v33 = vmax.f32 %v8909_v37, %v8916_v63 }
 0x74e   : > { %v9017_v34 = vsub.f32 %v8921_v28, %v8928_v10  ;;  %v8922_v27 = vmax.f32 %v8908_v43, %v8917_v18  ;;  %v37581_v18 = vpop.permute.xlu1 %17344 }
 0x74f   : > { %v8925_v51 = vsel %vm1685_vm14, %v8923_v33, 0  ;;  %41798 = vst [vmem:[#allocation69_spill] sm:$0xff] %v37581_v18 }
 0x750   : > { %v8931_v60 = vand.u32 4294901760, %v8922_v27  ;;  %v37570_v23 = vand.u32 4294901760, %v8925_v51  ;;  %v9018_v9 = vand.u32 4294901760, %v9017_v34 }
 0x752   : > { %v37572_v17 = vpack.c.bf16 %v8931_v60, %v8928_v10  ;;  %v9024_v44 = vsub.f32 %v8922_v27, %v8931_v60  ;;  %v9031_v41 = vsub.f32 %v8925_v51, %v37570_v23  ;;  %v9019_v49 = vsub.f32 %v9017_v34, %v9018_v9  ;;  %v37586_v51 = vpop.permute.xlu1 %17353  ;;  %v41800_v60 = vld [vmem:[#allocation47_spill] sm:$0xff] }
 0x753   : > { %41799 = vst [vmem:[#allocation33_spill] sm:$0xff] %v37586_v51 }
 0x754   : > { %31938 = vmatprep.subr.bf16.mxu0 %v37572_v17  ;;  %v9025_v29 = vand.u32 4294901760, %v9024_v44  ;;  %v9032_v37 = vand.u32 4294901760, %v9031_v41  ;;  %v31945_v35 = vpack.c.bf16 %v9024_v44, %v9017_v34  ;;  %v9020_v28 = vand.u32 4294901760, %v9019_v49 }
 0x755   : > { %31940 = vmatpush3.bf16.msra.mxu0 %v37572_v17 }
 0x756   : > { %30051 = vmatprep.subr.mxu0 %v37570_v23  ;;  %v9026_v33 = vsub.f32 %v9024_v44, %v9025_v29  ;;  %v31953_v43 = vpack.c.bf16 %v9025_v29, %v9018_v9  ;;  %v9033_v10 = vsub.f32 %v9031_v41, %v9032_v37  ;;  %v18518_v9 = vpop.permute.xlu1 %18517  ;;  %v41801_v44 = vld [vmem:[#allocation81_spill] sm:$0xff] }
 0x757   : > { %v10120_v49 = vsel %vm417_vm6, %v41801_v44, %v41800_v60  ;;  %v41807_v44 = vld [vmem:[#allocation56_spill] sm:$0xff] }
 0x758   : > { %v9027_v63 = vand.u32 4294901760, %v9026_v33  ;;  %v9034_v34 = vand.u32 4294901760, %v9033_v10  ;;  %v41802_v33 = vld [vmem:[#allocation82_spill] sm:$0xff]  ;;  %v41805_v10 = vld [vmem:[#allocation83_spill] sm:$0xff]  ;;  %v10122_v51 = vsel %vm417_vm6, %v36700_v4, %v41807_v44 }
 0x759   : > { %30052 = vmatpush3.msra.mxu0 %v37570_v23  ;;  %v41810_v4 = vld [vmem:[#allocation54_spill] sm:$0xff] }
 0x75a   : > { %30054 = vmatmul.mubr.f32.vlgmr.msra.gmra.mrb[34].mxu0 %v35508_v61  ;;  %v31941_v27 = vpack.c.bf16 %v9027_v63, %v9020_v28  ;;  %v18522_v29 = vpop.permute.xlu1 %18521  ;;  %v41803_v28 = vld [vmem:[#allocation86_spill] sm:$0xff] }
 0x75b   : > { %30062 = vmatprep.mubr.msk.f32.mxu0 %vm1678_vm12, %v35439_v50 }
 0x75c   : > { %31942 = vmatprep.subr.bf16.mxu0 %v31941_v27 }
 0x75d   : > { %31944 = vmatpush3.bf16.msra.mxu0 %v31941_v27 }
 0x75e   : > { %30060 = vmatprep.subr.mxu0 %v9034_v34 }
 0x761   : > { %30061 = vmatpush3.msra.mxu0 %v9034_v34  ;;  %v41806_v34 = vld [vmem:[#allocation52_spill] sm:$0xff] }
 0x762   : > { %30063 = vmatmul.mubr.msk.f32.vlgmr.msra.gmra.mrb[34].mxu0 %vm1678_vm12, %v35471_v8  ;;  %31946 = vmatprep.subr.bf16.mxu0 %v31945_v35 }
 0x763   : > { %31948 = vmatpush3.bf16.msra.mxu0 %v31945_v35  ;;  %30071 = vmatprep.mubr.f32.mxu0 %v35447_v1  ;;  %v10123_v35 = vsel %vm421_vm7, %v10120_v49, %v41802_v33  ;;  %v18529_v49 = vpop.permute.xlu1 %18528  ;;  %v41808_v33 = vld [vmem:[#allocation84_spill] sm:$0xff] }
 0x764   : > { %30069 = vmatprep.subr.mxu0 %v9031_v41  ;;  %v10126_v27 = vsel %vm425_vm8, %v10123_v35, %v41805_v10  ;;  %v10125_v35 = vsel %vm421_vm7, %v10122_v51, %v36708_v11 }
 0x765   : > { %v10129_v18 = vsel %vm429_vm9, %v10126_v27, %v41808_v33  ;;  %v10128_v27 = vsel %vm425_vm8, %v10125_v35, %v36714_v45 }
 0x766   : > { %v10131_v11 = vsel %vm429_vm9, %v10128_v27, %v36723_v20 }
 0x767   : > { %30070 = vmatpush3.msra.mxu0 %v9031_v41  ;;  %v41804_v41 = vld [vmem:[#allocation51_spill] sm:$0xff]  ;;  %v10139_v20 = vsel %vm433_vm10, %v10131_v11, 0 }
 0x768   : > { %31950 = vmatprep.subr.bf16.mxu0 %v37572_v17  ;;  %v10121_v63 = vsel %vm417_vm6, %v41804_v41, %v41803_v28  ;;  %v41809_v28 = vld [vmem:[#allocation53_spill] sm:$0xff] }
 0x769   : > { %v10124_v60 = vsel %vm421_vm7, %v10121_v63, %v41806_v34  ;;  %v10133_v63 = vsel %vm433_vm10, %v10129_v18, 0 }
 0x76a   : > { %30072 = vmatmul.mubr.f32.vlgmr.msra.gmra.mrb[34].mxu0 %v35476_v46  ;;  %v10127_v41 = vsel %vm425_vm8, %v10124_v60, %v41809_v28  ;;  %v37626_v44 = vand.u32 4294901760, %v10133_v63  ;;  %v37650_v28 = vand.u32 4294901760, %v10139_v20 }
 0x76b   : > { %31952 = vmatpush3.bf16.msra.mxu0 %v37572_v17  ;;  %30080 = vmatprep.mubr.f32.mxu0 %v35453_v58  ;;  %v10130_v10 = vsel %vm429_vm9, %v10127_v41, %v41810_v4 }
 0x76c   : > { %30078 = vmatprep.subr.mxu0 %v37570_v23  ;;  %v10231_v4 = vsub.f32 %v10139_v20, %v37650_v28 }
 0x76f   : > { %30079 = vmatpush3.msra.mxu0 %v37570_v23 }
 0x770   : > { %31954 = vmatprep.subr.bf16.mxu0 %v31953_v43 }
 0x772   : > { %30081 = vmatmul.mubr.f32.vlgmr.msra.gmra.mrb[34].mxu0 %v35482_v5 }
 0x773   : > { %31956 = vmatpush3.bf16.msra.mxu0 %v31953_v43  ;;  %30089 = vmatprep.mubr.msk.f32.mxu0 %vm1678_vm12, %v35439_v50  ;;  %v10136_v43 = vsel %vm433_vm10, %v10130_v10, 0 }
 0x774   : > { %30087 = vmatprep.subr.mxu0 %v9032_v37  ;;  %v37643_v60 = vand.u32 4294901760, %v10136_v43 }
 0x776   : > { %v18570_v34 = vpop.permute.xlu1 %18569  ;;  %v37654_v41 = vsub.f32 %v10136_v43, %v37643_v60 }
 0x777   : > { %30088 = vmatpush3.msra.mxu0 %v9032_v37  ;;  %v18589_v18 = vsel %vm421_vm7, %v37520_v52, %v18570_v34  ;;  %v37641_v37 = vsub.f32 %v10133_v63, %v37626_v44 }
 0x778   : > { %31958 = vmatprep.subr.bf16.mxu0 %v37572_v17  ;;  %v10222_v34 = vand.u32 4294901760, %v37654_v41 }
 0x77a   : > { %30090 = vmatmul.mubr.msk.f32.vlgmr.msra.gmra.mrb[34].mxu0 %vm1678_vm12, %v35471_v8  ;;  %v18574_v51 = vpop.permute.xlu1 %18573 }
 0x77b   : > { %31960 = vmatpush3.bf16.msra.mxu0 %v37572_v17  ;;  %v18590_v45 = vsel %vm429_vm9, %v18589_v18, %v18574_v51  ;;  %30098 = vmatprep.mubr.msk.f32.mxu0 %vm1678_vm12, %v35439_v50  ;;  %v10212_v17 = vand.u32 4294901760, %v37641_v37 }
 0x77c   : > { %30096 = vmatprep.subr.mxu0 %v37570_v23 }
 0x77d   : > { %v10213_v10 = vsub.f32 %v37641_v37, %v10212_v17 }
 0x77e   : > { %v18581_v52 = vpop.permute.xlu1 %18580 }
 0x77f   : > { %30097 = vmatpush3.msra.mxu0 %v37570_v23  ;;  %v18591_v33 = vsel %vm18511_vm1, %v18590_v45, %v18581_v52  ;;  %v18537_v23 = vsel %vm421_vm7, %v41795_v13, %v18518_v9  ;;  %v10214_v51 = vand.u32 4294901760, %v10213_v10  ;;  %v10223_v13 = vsub.f32 %v37654_v41, %v10222_v34 }
 0x780   : > { %31997 = vmatprep.subr.bf16.mxu0 %v41620_v62  ;;  %v18538_v27 = vsel %vm429_vm9, %v18537_v23, %v18522_v29  ;;  %v10232_v9 = vand.u32 4294901760, %v10231_v4  ;;  %v41814_v23 = vld [vmem:[#allocation61_spill] sm:$0xff] }
 0x781   : > { %v18539_v43 = vsel %vm18511_vm1, %v18538_v27, %v18529_v49  ;;  %v10224_v29 = vand.u32 4294901760, %v10223_v13  ;;  %v41819_v13 = vld [vmem:[#allocation72_spill] sm:$0xff] }
 0x782   : > { %30099 = vmatmul.mubr.msk.f32.vlgmr.msra.gmra.mrb[34].mxu0 %vm1678_vm12, %v35471_v8  ;;  %v18587_v35 = vpop.permute.xlu1 %18586  ;;  %v10233_v49 = vsub.f32 %v10231_v4, %v10232_v9 }
 0x783   : > { %31999 = vmatpush3.bf16.msra.mxu0 %v34910_v16  ;;  %v37660_v63 = vsel %vm18513_vm15, %v18591_v33, %v18587_v35  ;;  %30211 = vmatprep.mubr.msk.f32.mxu0 %vm34727_vm5, %v41621_v39 }
 0x784   : > { %41811 = vst [vmem:[#allocation37_spill] sm:$0xff] %v37660_v63  ;;  %32000 = vmatprep.subr.bf16.mxu0 %v41620_v62  ;;  %v10234_v45 = vand.u32 4294901760, %v10233_v49 }
 0x786   : > { %v18535_v11 = vpop.permute.xlu1 %18534 }
 0x787   : > { %32002 = vmatpush3.bf16.msra.mxu0 %v34931_v25  ;;  %v37674_v18 = vsel %vm18513_vm15, %v18539_v43, %v18535_v11  ;;  %v41817_v43 = vld [vmem:[#allocation63_spill] sm:$0xff]  ;;  %v41818_v11 = vld [vmem:[#allocation66_spill] sm:$0xff] }
 0x788   : > { %41812 = vst [vmem:[#allocation76_spill] sm:$0xff] %v37674_v18  ;;  %18620 = vrot.lane.b32.xlu1 %v37674_v18, %s34764_s13  ;;  %32003 = vmatprep.subr.bf16.mxu0 %v41620_v62 }
 0x78a   : > { %30212 = vmatmul.mubr.f32.vlgmr.msra.gmra.mrb[36].mxu0 %v10214_v51 }
 0x78b   : > { %30214 = vmatprep.mubr.msk.f32.mxu0 %vm34727_vm5, %v41621_v39  ;;  %32005 = vmatpush3.bf16.msra.mxu0 %v35015_v48 }
 0x78c   : > { %32006 = vmatprep.subr.bf16.mxu0 %v41620_v62 }
 0x78e   : > { %30215 = vmatmul.mubr.f32.gmra.mrb[38].mxu0 %v10224_v29  ;;  %v37713_v20 = vpop.f32.mrb[34].mxu1  ;;  %v41820_v29 = vld [vmem:[#allocation67_spill] sm:$0xff] }
 0x78f   : > { %30217 = vmatprep.mubr.msk.f32.mxu0 %vm34727_vm5, %v41621_v39  ;;  %32008 = vmatpush3.bf16.msra.mxu0 %v35021_v53 }
 0x790   : > { %32009 = vmatprep.subr.bf16.mxu0 %v41620_v62 }
 0x792   : > { %30218 = vmatmul.mubr.f32.gmra.mrb[40].mxu0 %v10234_v45  ;;  %v41821_v45 = vld [vmem:[#allocation75_spill] sm:$0xff] }
 0x793   : > { %30228 = vmatprep.mubr.msk.f32.mxu0 %vm34727_vm5, %v41621_v39 }
 0x796   : > { %30229 = vmatmul.mubr.f32.vlgmr.msra.gmra.mrb[36].mxu0 %v37626_v44 }
 0x797   : > { %30231 = vmatprep.mubr.msk.f32.mxu0 %vm34727_vm5, %v41621_v39  ;;  %32011 = vmatpush3.bf16.msra.mxu0 %v35027_v54 }
 0x798   : > { %32012 = vmatprep.subr.bf16.mxu0 %v41620_v62 }
 0x79a   : > { %30232 = vmatmul.mubr.f32.gmra.mrb[38].mxu0 %v37643_v60 }
 0x79b   : > { %30234 = vmatprep.mubr.msk.f32.mxu0 %vm34727_vm5, %v41621_v39  ;;  %32014 = vmatpush3.bf16.msra.mxu0 %v35029_v55 }
 0x79c   : > { %32015 = vmatprep.subr.bf16.mxu0 %v41620_v62 }
 0x79e   : > { %30235 = vmatmul.mubr.f32.gmra.mrb[40].mxu0 %v37650_v28 }
 0x79f   : > { %30245 = vmatprep.mubr.msk.f32.mxu0 %vm34727_vm5, %v41621_v39 }
 0x7a2   : > { %30246 = vmatmul.mubr.f32.vlgmr.msra.gmra.mrb[36].mxu0 %v37641_v37  ;;  %v30196_v37 = vpop.f32.mrb[35].mxu1 }
 0x7a3   : > { %30248 = vmatprep.mubr.msk.f32.mxu0 %vm34727_vm5, %v41621_v39  ;;  %32017 = vmatpush3.bf16.msra.mxu0 %v34910_v16  ;;  %v37717_v52 = vpop.f32.mrb[36].mxu1 }
 0x7a4   : > { %32018 = vmatprep.subr.bf16.mxu0 %v41620_v62  ;;  %v30199_v33 = vpop.f32.mrb[37].mxu1 }
 0x7a6   : > { %30249 = vmatmul.mubr.f32.gmra.mrb[38].mxu0 %v37654_v41  ;;  %v37723_v41 = vpop.f32.mrb[38].mxu1 }
 0x7a7   : > { %30251 = vmatprep.mubr.msk.f32.mxu0 %vm34727_vm5, %v41621_v39  ;;  %32020 = vmatpush3.bf16.msra.mxu0 %v34931_v25  ;;  %v30202_v35 = vpop.f32.mrb[39].mxu1 }
 0x7a8   : > { %32021 = vmatprep.subr.bf16.mxu0 %v41620_v62 }
 0x7aa   : > { %30252 = vmatmul.mubr.f32.gmra.mrb[40].mxu0 %v10231_v4 }
 0x7ab   : > { %30262 = vmatprep.mubr.msk.f32.mxu0 %vm34727_vm5, %v41621_v39 }
 0x7ae   : > { %30263 = vmatmul.mubr.f32.vlgmr.msra.gmra.mrb[36].mxu0 %v10212_v17 }
 0x7af   : > { %30265 = vmatprep.mubr.msk.f32.mxu0 %vm34727_vm5, %v41621_v39  ;;  %32023 = vmatpush3.bf16.msra.mxu0 %v35031_v56 }
 0x7b0   : > { %32024 = vmatprep.subr.bf16.mxu0 %v41620_v62 }
 0x7b2   : > { %30266 = vmatmul.mubr.f32.gmra.mrb[38].mxu0 %v10222_v34  ;;  %v41816_v34 = vld [vmem:[#allocation64_spill] sm:$0xff] }
 0x7b3   : > { %30268 = vmatprep.mubr.msk.f32.mxu0 %vm34727_vm5, %v41621_v39  ;;  %32026 = vmatpush3.bf16.msra.mxu0 %v35033_v57  ;;  %v11295_v27 = vsel %vm417_vm6, %v41816_v34, %v36809_v14  ;;  %v41822_v14 = vld [vmem:[#allocation68_spill] sm:$0xff] }
 0x7b4   : > { %32027 = vmatprep.subr.bf16.mxu0 %v41620_v62  ;;  %v11298_v51 = vsel %vm421_vm7, %v11295_v27, %v41818_v11 }
 0x7b5   : > { %v11301_v49 = vsel %vm425_vm8, %v11298_v51, %v41820_v29 }
 0x7b6   : > { %30269 = vmatmul.mubr.f32.gmra.mrb[40].mxu0 %v10232_v9  ;;  %v11304_v35 = vsel %vm429_vm9, %v11301_v49, %v41822_v14 }
 0x7b7   : > { %30279 = vmatprep.mubr.msk.f32.mxu0 %vm34727_vm5, %v41621_v39 }
 0x7ba   : > { %30280 = vmatmul.mubr.f32.vlgmr.msra.gmra.mrb[36].mxu0 %v37626_v44 }
 0x7bb   : > { %30282 = vmatprep.mubr.msk.f32.mxu0 %vm34727_vm5, %v41621_v39  ;;  %32029 = vmatpush3.bf16.msra.mxu0 %v34910_v16 }
 0x7bc   : > { %32030 = vmatprep.subr.bf16.mxu0 %v41620_v62 }
 0x7be   : > { %30283 = vmatmul.mubr.f32.gmra.mrb[38].mxu0 %v37643_v60 }
 0x7bf   : > { %30285 = vmatprep.mubr.msk.f32.mxu0 %vm34727_vm5, %v41621_v39  ;;  %32032 = vmatpush3.bf16.msra.mxu0 %v34931_v25 }
 0x7c0   : > { %32057 = vmatprep.subr.bf16.mxu0 %v41620_v62 }
 0x7c2   : > { %30286 = vmatmul.mubr.f32.gmra.mrb[40].mxu0 %v37650_v28 }
 0x7c3   : > { %30296 = vmatprep.mubr.msk.f32.mxu0 %vm34727_vm5, %v41621_v39 }
 0x7c6   : > { %30297 = vmatmul.mubr.f32.vlgmr.msra.gmra.mrb[36].mxu0 %v37626_v44  ;;  %v41813_v44 = vld [vmem:[#allocation59_spill] sm:$0xff] }
 0x7c7   : > { %30299 = vmatprep.mubr.msk.f32.mxu0 %vm34727_vm5, %v41621_v39  ;;  %32059 = vmatpush3.bf16.msra.mxu0 %v34910_v16  ;;  %v11294_v17 = vsel %vm417_vm6, %v41813_v44, %v36728_v42  ;;  %v11296_v42 = vsel %vm417_vm6, %v41819_v13, %v36874_v30  ;;  %v41823_v44 = vld [vmem:[#allocation87_spill] sm:$0xff] }
 0x7c8   : > { %32060 = vmatprep.subr.bf16.mxu0 %v41620_v62  ;;  %v11297_v4 = vsel %vm421_vm7, %v11294_v17, %v41814_v23  ;;  %v11299_v37 = vsel %vm421_vm7, %v11296_v42, %v41821_v45  ;;  %v11310_v23 = vsel %vm433_vm10, %v11304_v35, 0 }
 0x7c9   : > { %v11302_v17 = vsel %vm425_vm8, %v11299_v37, %v41823_v44 }
 0x7ca   : > { %30300 = vmatmul.mubr.f32.gmra.mrb[38].mxu0 %v37643_v60  ;;  %v41815_v60 = vld [vmem:[#allocation62_spill] sm:$0xff] }
 0x7cb   : > { %30302 = vmatprep.mubr.msk.f32.mxu0 %vm34727_vm5, %v41621_v39  ;;  %32062 = vmatpush3.bf16.msra.mxu0 %v34931_v25  ;;  %v11300_v10 = vsel %vm425_vm8, %v11297_v4, %v41815_v60  ;;  %v41824_v4 = vld [vmem:[#allocation90_spill] sm:$0xff] }
 0x7cc   : > { %32063 = vmatprep.subr.bf16.mxu0 %v41620_v62  ;;  %v11305_v60 = vsel %vm429_vm9, %v11302_v17, %v41824_v4 }
 0x7cd   : > { %v11313_v34 = vsel %vm433_vm10, %v11305_v60, 0 }
 0x7ce   : > { %30303 = vmatmul.mubr.f32.gmra.mrb[40].mxu0 %v37650_v28  ;;  %v11303_v28 = vsel %vm429_vm9, %v11300_v10, %v41817_v43  ;;  %v37789_v10 = vand.u32 4294901760, %v11310_v23  ;;  %v37792_v43 = vand.u32 4294901760, %v11313_v34 }
 0x7cf   : > { %30367 = vmatprep.mubr.msk.f32.mxu0 %vm34727_vm5, %v41621_v39  ;;  %v11307_v9 = vsel %vm433_vm10, %v11303_v28, 0 }
 0x7d0   : > { %v37779_v33 = vand.u32 4294901760, %v11307_v9  ;;  %v11395_v11 = vsub.f32 %v11310_v23, %v37789_v10  ;;  %v11405_v29 = vsub.f32 %v11313_v34, %v37792_v43 }
 0x7d2   : > { %v11385_v30 = vsub.f32 %v11307_v9, %v37779_v33  ;;  %v11396_v13 = vand.u32 4294901760, %v11395_v11  ;;  %v11406_v49 = vand.u32 4294901760, %v11405_v29 }
 0x7d4   : > { %v11386_v27 = vand.u32 4294901760, %v11385_v30  ;;  %v11397_v42 = vsub.f32 %v11395_v11, %v11396_v13  ;;  %v11407_v45 = vsub.f32 %v11405_v29, %v11406_v49 }
 0x7d6   : > { %v11387_v28 = vsub.f32 %v11385_v30, %v11386_v27  ;;  %v11398_v9 = vand.u32 4294901760, %v11397_v42  ;;  %v11408_v37 = vand.u32 4294901760, %v11407_v45 }
 0x7d8   : > { %v11388_v51 = vand.u32 4294901760, %v11387_v28  ;;  %v18488_v28 = vrot.slane %v37537_v38, 1 }
 0x7da   : > { %30368 = vmatmul.mubr.f32.vlgmr.msra.gmra.mrb[42].mxu0 %v11388_v51 }
 0x7db   : > { %30370 = vmatprep.mubr.msk.f32.mxu0 %vm34727_vm5, %v41621_v39  ;;  %32065 = vmatpush3.bf16.msra.mxu0 %v35015_v48 }
 0x7dc   : > { %32066 = vmatprep.subr.bf16.mxu0 %v41620_v62 }
 0x7de   : > { %30371 = vmatmul.mubr.f32.gmra.mrb[44].mxu0 %v11398_v9 }
 0x7df   : > { %30373 = vmatprep.mubr.msk.f32.mxu0 %vm34727_vm5, %v41621_v39  ;;  %32068 = vmatpush3.bf16.msra.mxu0 %v35021_v53 }
 0x7e0   : > { %32069 = vmatprep.subr.bf16.mxu0 %v41620_v62 }
 0x7e2   : > { %30374 = vmatmul.mubr.f32.gmra.mrb[46].mxu0 %v11408_v37 }
 0x7e3   : > { %30384 = vmatprep.mubr.msk.f32.mxu0 %vm34727_vm5, %v41621_v39 }
 0x7e6   : > { %30385 = vmatmul.mubr.f32.vlgmr.msra.gmra.mrb[42].mxu0 %v37779_v33 }
 0x7e7   : > { %30387 = vmatprep.mubr.msk.f32.mxu0 %vm34727_vm5, %v41621_v39  ;;  %32071 = vmatpush3.bf16.msra.mxu0 %v35027_v54 }
 0x7e8   : > { %32072 = vmatprep.subr.bf16.mxu0 %v41620_v62 }
 0x7ea   : > { %30388 = vmatmul.mubr.f32.gmra.mrb[44].mxu0 %v37789_v10 }
 0x7eb   : > { %30390 = vmatprep.mubr.msk.f32.mxu0 %vm34727_vm5, %v41621_v39  ;;  %32074 = vmatpush3.bf16.msra.mxu0 %v35029_v55 }
 0x7ec   : > { %32075 = vmatprep.subr.bf16.mxu0 %v41620_v62 }
 0x7ee   : > { %30391 = vmatmul.mubr.f32.gmra.mrb[46].mxu0 %v37792_v43 }
 0x7ef   : > { %30401 = vmatprep.mubr.msk.f32.mxu0 %vm34727_vm5, %v41621_v39 }
 0x7f2   : > { %30402 = vmatmul.mubr.f32.vlgmr.msra.gmra.mrb[42].mxu0 %v11385_v30 }
 0x7f3   : > { %30404 = vmatprep.mubr.msk.f32.mxu0 %vm34727_vm5, %v41621_v39  ;;  %32077 = vmatpush3.bf16.msra.mxu0 %v34910_v16 }
 0x7f4   : > { %32078 = vmatprep.subr.bf16.mxu0 %v41620_v62 }
 0x7f6   : > { %30405 = vmatmul.mubr.f32.gmra.mrb[44].mxu0 %v11395_v11  ;;  %v41825_v11 = vmax.f32 %v37541_v6, 0.0 }
 0x7f7   : > { %30407 = vmatprep.mubr.msk.f32.mxu0 %vm34727_vm5, %v41621_v39  ;;  %32080 = vmatpush3.bf16.msra.mxu0 %v34931_v25 }
 0x7f8   : > { %32081 = vmatprep.subr.bf16.mxu0 %v41620_v62  ;;  %v18498_v51 = vrot.slane %v41825_v11, 3 }
 0x7fa   : > { %30408 = vmatmul.mubr.f32.gmra.mrb[46].mxu0 %v11405_v29 }
 0x7fb   : > { %30418 = vmatprep.mubr.msk.f32.mxu0 %vm34727_vm5, %v41621_v39 }
 0x7fe   : > { %30419 = vmatmul.mubr.f32.vlgmr.msra.gmra.mrb[42].mxu0 %v11386_v27 }
 0x7ff   : > { %30421 = vmatprep.mubr.msk.f32.mxu0 %vm34727_vm5, %v41621_v39  ;;  %32083 = vmatpush3.bf16.msra.mxu0 %v35031_v56 }
 0x800   : > { %32084 = vmatprep.subr.bf16.mxu0 %v41620_v62 }
 0x802   : > { %30422 = vmatmul.mubr.f32.gmra.mrb[44].mxu0 %v11396_v13  ;;  %v18497_v13 = vrot.slane %v37537_v38, 3 }
 0x803   : > { %30424 = vmatprep.mubr.msk.f32.mxu0 %vm34727_vm5, %v41621_v39  ;;  %32086 = vmatpush3.bf16.msra.mxu0 %v35033_v57 }
 0x804   : > { %32087 = vmatprep.subr.bf16.mxu0 %v41620_v62  ;;  %v18499_v42 = vsel %vm387_vm2, %v18497_v13, %v18498_v51 }
 0x806   : > { %30425 = vmatmul.mubr.f32.gmra.mrb[46].mxu0 %v11406_v49 }
 0x807   : > { %30435 = vmatprep.mubr.msk.f32.mxu0 %vm34727_vm5, %v41621_v39 }
 0x80a   : > { %30436 = vmatmul.mubr.f32.vlgmr.msra.gmra.mrb[42].mxu0 %v37779_v33 }
 0x80b   : > { %30438 = vmatprep.mubr.msk.f32.mxu0 %vm34727_vm5, %v41621_v39  ;;  %32089 = vmatpush3.bf16.msra.mxu0 %v34910_v16 }
 0x80c   : > { %32090 = vmatprep.subr.bf16.mxu0 %v41620_v62 }
 0x80e   : > { %30439 = vmatmul.mubr.f32.gmra.mrb[44].mxu0 %v37789_v10 }
 0x80f   : > { %30441 = vmatprep.mubr.msk.f32.mxu0 %vm34727_vm5, %v41621_v39  ;;  %32092 = vmatpush3.bf16.msra.mxu0 %v34931_v25 }
 0x812   : > { %30442 = vmatmul.mubr.f32.gmra.mrb[46].mxu0 %v37792_v43 }
 0x813   : > { %30452 = vmatprep.mubr.msk.f32.mxu0 %vm34727_vm5, %v41621_v39 }
 0x816   : > { %30453 = vmatmul.mubr.f32.vlgmr.msra.gmra.mrb[42].mxu0 %v37779_v33 }
 0x817   : > { %30455 = vmatprep.mubr.msk.f32.mxu0 %vm34727_vm5, %v41621_v39 }
 0x81a   : > { %30456 = vmatmul.mubr.f32.gmra.mrb[44].mxu0 %v37789_v10 }
 0x81b   : > { %30458 = vmatprep.mubr.msk.f32.mxu0 %vm34727_vm5, %v41621_v39 }
 0x81e   : > { %30459 = vmatmul.mubr.f32.gmra.mrb[46].mxu0 %v37792_v43 }
 0x81f   : > { %30569 = vmatprep.mubr.f32.mxu0 %v41758_v47 }
 0x855   : > { %v30100_v14 = vpop.f32.mrb[34].mxu0 }
 0x856   : > { %v9432_v35 = vpop.f32.mrb[35].mxu0  ;;  %v33799_v17 = vadd.f32 %v37514_v32, %v30100_v14 }
 0x857   : > { %v33800_v44 = vadd.f32 %v37514_v32, %v9432_v35 }
 0x858   : > { %v9443_v30 = vmax.f32 %v33799_v17, 0.0 }
 0x859   : > { %v37861_v23 = vmax.f32 %v33800_v44, 0.0 }
 0x85a   : > { %v18604_v60 = vrot.slane %v9443_v30, 3  ;;  %v18610_v34 = vrot.slane %v9443_v30, 4 }
 0x85b   : > { %v18594_v33 = vrot.slane %v37861_v23, 1  ;;  %v18598_v4 = vrot.slane %v37861_v23, 2  ;;  %v18603_v10 = vrot.slane %v37861_v23, 3  ;;  %v18609_v43 = vrot.slane %v37861_v23, 4 }
 0x85d   : > { %18595 = vrot.lane.b32.xlu0 %v18594_v33, %s41648_s12  ;;  %v18605_v27 = vsel %vm387_vm2, %v18603_v10, %v18604_v60  ;;  %v18611_v32 = vsel %vm402_vm4, %v18609_v43, %v18610_v34 }
 0x861   : > { %18599 = vrot.lane.b32.xlu0 %v18598_v4, %s41655_s24 }
 0x865   : > { %18606 = vrot.lane.b32.xlu0 %v18605_v27, %s34757_s21 }
 0x869   : > { %18612 = vrot.lane.b32.xlu0 %v18611_v32, %s34762_s18 }
 0x86d   : > { %18489 = vrot.lane.b32.xlu0 %v18488_v28, %s41648_s12 }
 0x871   : > { %18500 = vrot.lane.b32.xlu0 %v18499_v42, %s34757_s21 }
 0x875   : > { %18628 = vrot.lane.b32.xlu0 %v37660_v63, %s34765_s10 }
 0x899   : > { %v10696_v29 = vpop.f32.mrb[36].mxu0 }
 0x89a   : > { %v10712_v9 = vmax.f32 %v37713_v20, %v10696_v29  ;;  %v30298_v49 = vpop.f32.mrb[37].mxu0 }
 0x89c   : > { %v10718_v14 = vrot.slane %v10712_v9, 1 }
 0x89d   : > { %v10702_v45 = vpop.f32.mrb[38].mxu0 }
 0x89e   : > { %v10713_v6 = vmax.f32 %v37717_v52, %v10702_v45  ;;  %v30301_v37 = vpop.f32.mrb[39].mxu0 }
 0x8a0   : > { %v10719_v35 = vrot.slane %v10713_v6, 1 }
 0x8a1   : > { %v10708_v44 = vpop.f32.mrb[40].mxu0 }
 0x8a2   : > { %v10720_v17 = vsel %vm357_vm0, %v10718_v14, %v10719_v35  ;;  %v10714_v33 = vmax.f32 %v37723_v41, %v10708_v44  ;;  %v30304_v30 = vpop.f32.mrb[41].mxu0 }
 0x8a3   : > { %v10726_v4 = vmax.f32 %v10712_v9, %v10720_v17 }
 0x8a4   : > { %v10721_v60 = vrot.slane %v10714_v33, 1 }
 0x8a5   : > { %v10733_v10 = vand.u32 4294901760, %v10726_v4 }
 0x8a6   : > { %v10722_v34 = vsel %vm357_vm0, %v10719_v35, %v10721_v60  ;;  %v10728_v27 = vmax.f32 %v10714_v33, %v10721_v60  ;;  %v41826_v33 = vld [vmem:[#allocation60_spill] sm:$0xff]  ;;  %v41827_v60 = vld [vmem:[#allocation65_spill] sm:$0xff] }
 0x8a7   : > { %v10822_v20 = vsub.f32 %v10726_v4, %v10733_v10  ;;  %v10727_v43 = vmax.f32 %v10713_v6, %v10722_v34  ;;  %v11931_v30 = vsel %vm417_vm6, %v41826_v33, %v36743_v40  ;;  %v41828_v34 = vld [vmem:[#allocation22_spill] sm:$0xff]  ;;  %v41829_v40 = vld [vmem:[#allocation24_spill] sm:$0xff] }
 0x8a8   : > { %v10730_v32 = vsel %vm1685_vm14, %v10728_v27, 0  ;;  %v11934_v4 = vsel %vm421_vm7, %v11931_v30, %v36757_v22  ;;  %v41832_v22 = vld [vmem:[#allocation21_spill] sm:$0xff] }
 0x8a9   : > { %v10736_v52 = vand.u32 4294901760, %v10727_v43  ;;  %v37888_v28 = vand.u32 4294901760, %v10730_v32  ;;  %v10823_v11 = vand.u32 4294901760, %v10822_v20  ;;  %v11937_v27 = vsel %vm425_vm8, %v11934_v4, %v41828_v34 }
 0x8ab   : > { %v32033_v51 = vpack.c.bf16 %v10736_v52, %v10733_v10  ;;  %v10829_v13 = vsub.f32 %v10727_v43, %v10736_v52  ;;  %v10836_v42 = vsub.f32 %v10730_v32, %v37888_v28  ;;  %v10824_v41 = vsub.f32 %v10822_v20, %v10823_v11  ;;  %v41830_v43 = vld [vmem:[#allocation98_spill] sm:$0xff] }
 0x8ac   : > { %v11932_v10 = vsel %vm417_vm6, %v41827_v60, %v36822_v24  ;;  %v41831_v32 = vld [vmem:[#allocation74_spill] sm:$0xff] }
 0x8ad   : > { %32034 = vmatprep.subr.bf16.mxu1 %v32033_v51  ;;  %v10830_v29 = vand.u32 4294901760, %v10829_v13  ;;  %v10837_v9 = vand.u32 4294901760, %v10836_v42  ;;  %v32041_v49 = vpack.c.bf16 %v10829_v13, %v10822_v20  ;;  %v10825_v37 = vand.u32 4294901760, %v10824_v41 }
 0x8ae   : > { %32036 = vmatpush3.bf16.msra.mxu1 %v32033_v51  ;;  %v11935_v20 = vsel %vm421_vm7, %v11932_v10, %v41829_v40  ;;  %v11933_v52 = vsel %vm417_vm6, %v41831_v32, %v41830_v43 }
 0x8af   : > { %30309 = vmatprep.subr.mxu1 %v37888_v28  ;;  %v10831_v45 = vsub.f32 %v10829_v13, %v10830_v29  ;;  %v32049_v6 = vpack.c.bf16 %v10830_v29, %v10823_v11  ;;  %v10838_v35 = vsub.f32 %v10836_v42, %v10837_v9  ;;  %v11940_v11 = vsel %vm429_vm9, %v11937_v27, %v41832_v22  ;;  %v41833_v13 = vld [vmem:[#allocation28_spill] sm:$0xff] }
 0x8b0   : > { %v11938_v24 = vsel %vm425_vm8, %v11935_v20, %v41833_v13  ;;  %v11944_v29 = vsel %vm433_vm10, %v11940_v11, 0 }
 0x8b1   : > { %v10832_v14 = vand.u32 4294901760, %v10831_v45  ;;  %v10839_v17 = vand.u32 4294901760, %v10838_v35 }
 0x8b2   : > { %30310 = vmatpush3.msra.mxu1 %v37888_v28 }
 0x8b3   : > { %30312 = vmatmul.mubr.f32.vlgmr.msra.gmra.mrb[40].mxu1 %v35508_v61  ;;  %v32037_v44 = vpack.c.bf16 %v10832_v14, %v10825_v37  ;;  %v41836_v14 = vld [vmem:[#allocation101_spill] sm:$0xff] }
 0x8b4   : > { %30320 = vmatprep.mubr.msk.f32.mxu1 %vm1678_vm12, %v35439_v50 }
 0x8b5   : > { %32038 = vmatprep.subr.bf16.mxu1 %v32037_v44 }
 0x8b6   : > { %32040 = vmatpush3.bf16.msra.mxu1 %v32037_v44  ;;  %v37932_v44 = vand.u32 4294901760, %v11944_v29 }
 0x8b7   : > { %30318 = vmatprep.subr.mxu1 %v10839_v17 }
 0x8b8   : > { %v37942_v4 = vsub.f32 %v11944_v29, %v37932_v44  ;;  %v18494_v29 = vpop.permute.xlu1 %18493 }
 0x8ba   : > { %30319 = vmatpush3.msra.mxu1 %v10839_v17  ;;  %v41837_v17 = vld [vmem:[#allocation103_spill] sm:$0xff]  ;;  %v12023_v34 = vand.u32 4294901760, %v37942_v4 }
 0x8bb   : > { %30321 = vmatmul.mubr.msk.f32.vlgmr.msra.gmra.mrb[40].mxu1 %vm1678_vm12, %v35471_v8  ;;  %32042 = vmatprep.subr.bf16.mxu1 %v32041_v49 }
 0x8bc   : > { %32044 = vmatpush3.bf16.msra.mxu1 %v32041_v49  ;;  %30329 = vmatprep.mubr.f32.mxu1 %v35447_v1  ;;  %v41835_v49 = vld [vmem:[#allocation95_spill] sm:$0xff] }
 0x8bd   : > { %30327 = vmatprep.subr.mxu1 %v10836_v42  ;;  %v11941_v45 = vsel %vm429_vm9, %v11938_v24, %v41835_v49 }
 0x8c0   : > { %30328 = vmatpush3.msra.mxu1 %v10836_v42  ;;  %v41834_v42 = vld [vmem:[#allocation99_spill] sm:$0xff] }
 0x8c1   : > { %32046 = vmatprep.subr.bf16.mxu1 %v32033_v51  ;;  %v11936_v41 = vsel %vm421_vm7, %v11933_v52, %v41834_v42  ;;  %v12024_v52 = vsub.f32 %v37942_v4, %v12023_v34 }
 0x8c2   : > { %v11939_v35 = vsel %vm425_vm8, %v11936_v41, %v41836_v14 }
 0x8c3   : > { %30330 = vmatmul.mubr.f32.vlgmr.msra.gmra.mrb[40].mxu1 %v35476_v46  ;;  %v11942_v33 = vsel %vm429_vm9, %v11939_v35, %v41837_v17  ;;  %v12025_v24 = vand.u32 4294901760, %v12024_v52 }
 0x8c4   : > { %32048 = vmatpush3.bf16.msra.mxu1 %v32033_v51  ;;  %30338 = vmatprep.mubr.f32.mxu1 %v35453_v58  ;;  %v11950_v60 = vsel %vm433_vm10, %v11942_v33, 0 }
 0x8c5   : > { %30336 = vmatprep.subr.mxu1 %v37888_v28 }
 0x8c8   : > { %30337 = vmatpush3.msra.mxu1 %v37888_v28 }
 0x8c9   : > { %32050 = vmatprep.subr.bf16.mxu1 %v32049_v6 }
 0x8cb   : > { %30339 = vmatmul.mubr.f32.vlgmr.msra.gmra.mrb[40].mxu1 %v35482_v5 }
 0x8cc   : > { %32052 = vmatpush3.bf16.msra.mxu1 %v32049_v6  ;;  %30347 = vmatprep.mubr.msk.f32.mxu1 %vm1678_vm12, %v35439_v50  ;;  %v11947_v6 = vsel %vm433_vm10, %v11941_v45, 0 }
 0x8cd   : > { %30345 = vmatprep.subr.mxu1 %v10837_v9 }
 0x8cf   : > { %v18596_v37 = vpop.permute.xlu0 %18595 }
 0x8d0   : > { %30346 = vmatpush3.msra.mxu1 %v10837_v9  ;;  %v37944_v9 = vand.u32 4294901760, %v11947_v6  ;;  %v18615_v40 = vsel %vm421_vm7, %v37861_v23, %v18596_v37 }
 0x8d1   : > { %32054 = vmatprep.subr.bf16.mxu1 %v32033_v51 }
 0x8d2   : > { %v37951_v27 = vsub.f32 %v11947_v6, %v37944_v9 }
 0x8d3   : > { %30348 = vmatmul.mubr.msk.f32.vlgmr.msra.gmra.mrb[40].mxu1 %vm1678_vm12, %v35471_v8  ;;  %v18600_v30 = vpop.permute.xlu0 %18599 }
 0x8d4   : > { %32056 = vmatpush3.bf16.msra.mxu1 %v32033_v51  ;;  %30356 = vmatprep.mubr.msk.f32.mxu1 %vm1678_vm12, %v35439_v50  ;;  %v37953_v51 = vand.u32 4294901760, %v11950_v60  ;;  %v18616_v20 = vsel %vm429_vm9, %v18615_v40, %v18600_v30  ;;  %v12033_v22 = vand.u32 4294901760, %v37951_v27 }
 0x8d5   : > { %30354 = vmatprep.subr.mxu1 %v37888_v28 }
 0x8d6   : > { %v37969_v23 = vsub.f32 %v11950_v60, %v37953_v51  ;;  %v12034_v42 = vsub.f32 %v37951_v27, %v12033_v22 }
 0x8d7   : > { %v18607_v10 = vpop.permute.xlu0 %18606 }
 0x8d8   : > { %30355 = vmatpush3.msra.mxu1 %v37888_v28  ;;  %v18617_v43 = vsel %vm18511_vm1, %v18616_v20, %v18607_v10  ;;  %v12043_v41 = vand.u32 4294901760, %v37969_v23  ;;  %v41839_v10 = vld [vmem:[#allocation104_spill] sm:$0xff] }
 0x8d9   : > { %32093 = vmatprep.subr.bf16.mxu1 %v41620_v62 }
 0x8da   : > { %v12044_v14 = vsub.f32 %v37969_v23, %v12043_v41 }
 0x8db   : > { %30357 = vmatmul.mubr.msk.f32.vlgmr.msra.gmra.mrb[40].mxu1 %vm1678_vm12, %v35471_v8  ;;  %v18613_v28 = vpop.permute.xlu0 %18612 }
 0x8dc   : > { %32095 = vmatpush3.bf16.msra.mxu1 %v34910_v16  ;;  %v37964_v32 = vsel %vm18513_vm15, %v18617_v43, %v18613_v28  ;;  %30469 = vmatprep.mubr.msk.f32.mxu1 %vm34727_vm5, %v41621_v39  ;;  %v12045_v35 = vand.u32 4294901760, %v12044_v14  ;;  %v41841_v43 = vld [vmem:[#allocation93_spill] sm:$0xff] }
 0x8dd   : > { %41838 = vst [vmem:[#allocation34_spill] sm:$0xff] %v37964_v32  ;;  %32096 = vmatprep.subr.bf16.mxu1 %v41620_v62  ;;  %18632 = vrot.lane.b32.xlu0 %v37964_v32, %s34766_s23 }
 0x8df   : > { %v18490_v11 = vpop.permute.xlu0 %18489 }
 0x8e0   : > { %32098 = vmatpush3.bf16.msra.mxu1 %v34931_v25  ;;  %v18509_v13 = vsel %vm421_vm7, %v37537_v38, %v18490_v11  ;;  %v12035_v38 = vand.u32 4294901760, %v12034_v42 }
 0x8e1   : > { %32099 = vmatprep.subr.bf16.mxu1 %v41620_v62  ;;  %v18510_v49 = vsel %vm429_vm9, %v18509_v13, %v18494_v29  ;;  %v41845_v29 = vld [vmem:[#allocation100_spill] sm:$0xff] }
 0x8e3   : > { %30470 = vmatmul.mubr.f32.vlgmr.msra.gmra.mrb[42].mxu1 %v12025_v24  ;;  %v18501_v45 = vpop.permute.xlu0 %18500  ;;  %v41843_v24 = vld [vmem:[#allocation25_spill] sm:$0xff] }
 0x8e4   : > { %v37986_v37 = vsel %vm18511_vm1, %v18510_v49, %v18501_v45  ;;  %30472 = vmatprep.mubr.msk.f32.mxu1 %vm34727_vm5, %v41621_v39  ;;  %32101 = vmatpush3.bf16.msra.mxu1 %v35015_v48  ;;  %v13106_v42 = vsel %vm417_vm6, %v36973_v26, %v41843_v24 }
 0x8e5   : > { %32102 = vmatprep.subr.bf16.mxu1 %v41620_v62 }
 0x8e7   : > { %30473 = vmatmul.mubr.f32.gmra.mrb[44].mxu1 %v12035_v38  ;;  %v41847_v38 = vld [vmem:[#allocation27_spill] sm:$0xff] }
 0x8e8   : > { %30475 = vmatprep.mubr.msk.f32.mxu1 %vm34727_vm5, %v41621_v39  ;;  %32104 = vmatpush3.bf16.msra.mxu1 %v35021_v53 }
 0x8e9   : > { %32105 = vmatprep.subr.bf16.mxu1 %v41620_v62  ;;  %v38018_v6 = vpop.f32.mrb[42].mxu0 }
 0x8ea   : > { %v30454_v17 = vpop.f32.mrb[43].mxu0 }
 0x8eb   : > { %30476 = vmatmul.mubr.f32.gmra.mrb[46].mxu1 %v12045_v35 }
 0x8ec   : > { %30486 = vmatprep.mubr.msk.f32.mxu1 %vm34727_vm5, %v41621_v39 }
 0x8ed   : > { %v38025_v33 = vpop.f32.mrb[44].mxu0 }
 0x8ee   : > { %v30457_v30 = vpop.f32.mrb[45].mxu0 }
 0x8ef   : > { %30487 = vmatmul.mubr.f32.vlgmr.msra.gmra.mrb[42].mxu1 %v37932_v44 }
 0x8f0   : > { %30489 = vmatprep.mubr.msk.f32.mxu1 %vm34727_vm5, %v41621_v39  ;;  %32107 = vmatpush3.bf16.msra.mxu1 %v35027_v54 }
 0x8f1   : > { %32108 = vmatprep.subr.bf16.mxu1 %v41620_v62  ;;  %v38031_v60 = vpop.f32.mrb[46].mxu0 }
 0x8f2   : > { %v30460_v20 = vpop.f32.mrb[47].mxu0 }
 0x8f3   : > { %30490 = vmatmul.mubr.f32.gmra.mrb[44].mxu1 %v37944_v9 }
 0x8f4   : > { %30492 = vmatprep.mubr.msk.f32.mxu1 %vm34727_vm5, %v41621_v39  ;;  %32110 = vmatpush3.bf16.msra.mxu1 %v35029_v55 }
 0x8f5   : > { %32111 = vmatprep.subr.bf16.mxu1 %v41620_v62 }
 0x8f7   : > { %30493 = vmatmul.mubr.f32.gmra.mrb[46].mxu1 %v37953_v51 }
 0x8f8   : > { %30503 = vmatprep.mubr.msk.f32.mxu1 %vm34727_vm5, %v41621_v39 }
 0x8fb   : > { %30504 = vmatmul.mubr.f32.vlgmr.msra.gmra.mrb[42].mxu1 %v37942_v4  ;;  %v41842_v4 = vld [vmem:[#allocation94_spill] sm:$0xff] }
 0x8fc   : > { %30506 = vmatprep.mubr.msk.f32.mxu1 %vm34727_vm5, %v41621_v39  ;;  %32113 = vmatpush3.bf16.msra.mxu1 %v34910_v16 }
 0x8fd   : > { %32114 = vmatprep.subr.bf16.mxu1 %v41620_v62 }
 0x8ff   : > { %30507 = vmatmul.mubr.f32.gmra.mrb[44].mxu1 %v37951_v27  ;;  %v41840_v27 = vld [vmem:[#allocation91_spill] sm:$0xff] }
 0x900   : > { %30509 = vmatprep.mubr.msk.f32.mxu1 %vm34727_vm5, %v41621_v39  ;;  %32116 = vmatpush3.bf16.msra.mxu1 %v34931_v25  ;;  %v13105_v40 = vsel %vm417_vm6, %v41840_v27, %v41839_v10 }
 0x901   : > { %32117 = vmatprep.subr.bf16.mxu1 %v41620_v62  ;;  %v13108_v28 = vsel %vm421_vm7, %v13105_v40, %v41841_v43 }
 0x903   : > { %30510 = vmatmul.mubr.f32.gmra.mrb[46].mxu1 %v37969_v23 }
 0x904   : > { %30520 = vmatprep.mubr.msk.f32.mxu1 %vm34727_vm5, %v41621_v39 }
 0x907   : > { %30521 = vmatmul.mubr.f32.vlgmr.msra.gmra.mrb[42].mxu1 %v12023_v34  ;;  %v13111_v34 = vsel %vm425_vm8, %v13108_v28, %v41842_v4 }
 0x908   : > { %30523 = vmatprep.mubr.msk.f32.mxu1 %vm34727_vm5, %v41621_v39  ;;  %32119 = vmatpush3.bf16.msra.mxu1 %v35031_v56  ;;  %v13114_v23 = vsel %vm429_vm9, %v13111_v34, %v36959_v2 }
 0x909   : > { %32120 = vmatprep.subr.bf16.mxu1 %v41620_v62  ;;  %v13118_v52 = vsel %vm433_vm10, %v13114_v23, 0  ;;  %v38171_v23 = vld [vmem:[%s41251_s2] ss:$0 sm:$0xff] }
 0x90b   : > { %30524 = vmatmul.mubr.f32.gmra.mrb[44].mxu1 %v12033_v22  ;;  %v38058_v22 = vand.u32 4294901760, %v13118_v52 }
 0x90c   : > { %30526 = vmatprep.mubr.msk.f32.mxu1 %vm34727_vm5, %v41621_v39  ;;  %32122 = vmatpush3.bf16.msra.mxu1 %v35033_v57 }
 0x90d   : > { %32123 = vmatprep.subr.bf16.mxu1 %v41620_v62  ;;  %v38066_v2 = vsub.f32 %v13118_v52, %v38058_v22 }
 0x90f   : > { %30527 = vmatmul.mubr.f32.gmra.mrb[46].mxu1 %v12043_v41  ;;  %v13197_v11 = vand.u32 4294901760, %v38066_v2  ;;  %v41844_v41 = vld [vmem:[#allocation96_spill] sm:$0xff] }
 0x910   : > { %30537 = vmatprep.mubr.msk.f32.mxu1 %vm34727_vm5, %v41621_v39 }
 0x911   : > { %v13198_v13 = vsub.f32 %v38066_v2, %v13197_v11 }
 0x913   : > { %30538 = vmatmul.mubr.f32.vlgmr.msra.gmra.mrb[42].mxu1 %v37932_v44 }
 0x914   : > { %30540 = vmatprep.mubr.msk.f32.mxu1 %vm34727_vm5, %v41621_v39  ;;  %32125 = vmatpush3.bf16.msra.mxu1 %v34910_v16 }
 0x915   : > { %32126 = vmatprep.subr.bf16.mxu1 %v41620_v62 }
 0x917   : > { %30541 = vmatmul.mubr.f32.gmra.mrb[44].mxu1 %v37944_v9 }
 0x918   : > { %30543 = vmatprep.mubr.msk.f32.mxu1 %vm34727_vm5, %v41621_v39  ;;  %32128 = vmatpush3.bf16.msra.mxu1 %v34931_v25 }
 0x919   : > { %32153 = vmatprep.subr.bf16.mxu1 %v41620_v62 }
 0x91b   : > { %30544 = vmatmul.mubr.f32.gmra.mrb[46].mxu1 %v37953_v51 }
 0x91c   : > { %30554 = vmatprep.mubr.msk.f32.mxu1 %vm34727_vm5, %v41621_v39 }
 0x91f   : > { %30555 = vmatmul.mubr.f32.vlgmr.msra.gmra.mrb[42].mxu1 %v37932_v44  ;;  %v13199_v44 = vand.u32 4294901760, %v13198_v13 }
 0x920   : > { %30557 = vmatprep.mubr.msk.f32.mxu1 %vm34727_vm5, %v41621_v39  ;;  %32155 = vmatpush3.bf16.msra.mxu1 %v34910_v16 }
 0x921   : > { %32156 = vmatprep.subr.bf16.mxu1 %v41620_v62 }
 0x923   : > { %30558 = vmatmul.mubr.f32.gmra.mrb[44].mxu1 %v37944_v9  ;;  %v13107_v9 = vsel %vm417_vm6, %v41844_v41, %v37031_v59  ;;  %v41846_v59 = vld [vmem:[#allocation102_spill] sm:$0xff] }
 0x924   : > { %30560 = vmatprep.mubr.msk.f32.mxu1 %vm34727_vm5, %v41621_v39  ;;  %32158 = vmatpush3.bf16.msra.mxu1 %v34931_v25  ;;  %v13110_v49 = vsel %vm421_vm7, %v13107_v9, %v41845_v29 }
 0x925   : > { %32159 = vmatprep.subr.bf16.mxu1 %v41620_v62  ;;  %v13113_v45 = vsel %vm425_vm8, %v13110_v49, %v41846_v59 }
 0x926   : > { %v13116_v35 = vsel %vm429_vm9, %v13113_v45, %v37068_v36 }
 0x927   : > { %30561 = vmatmul.mubr.f32.gmra.mrb[46].mxu1 %v37953_v51  ;;  %v13109_v51 = vsel %vm421_vm7, %v13106_v42, %v36997_v15  ;;  %v13124_v17 = vsel %vm433_vm10, %v13116_v35, 0 }
 0x928   : > { %30625 = vmatprep.mubr.msk.f32.mxu1 %vm34727_vm5, %v41621_v39  ;;  %v13112_v26 = vsel %vm425_vm8, %v13109_v51, %v37009_v3  ;;  %v13215_v10 = vand.u32 4294901760, %v13124_v17 }
 0x929   : > { %v13115_v14 = vsel %vm429_vm9, %v13112_v26, %v41847_v38 }
 0x92a   : > { %v13121_v15 = vsel %vm433_vm10, %v13115_v14, 0  ;;  %v13216_v40 = vsub.f32 %v13124_v17, %v13215_v10 }
 0x92b   : > { %30626 = vmatmul.mubr.f32.vlgmr.msra.gmra.mrb[48].mxu1 %v13199_v44  ;;  %v13205_v30 = vand.u32 4294901760, %v13121_v15 }
 0x92c   : > { %30628 = vmatprep.mubr.msk.f32.mxu1 %vm34727_vm5, %v41621_v39  ;;  %32161 = vmatpush3.bf16.msra.mxu1 %v35015_v48  ;;  %v13217_v20 = vand.u32 4294901760, %v13216_v40 }
 0x92d   : > { %32162 = vmatprep.subr.bf16.mxu1 %v41620_v62  ;;  %v13206_v27 = vsub.f32 %v13121_v15, %v13205_v30 }
 0x92e   : > { %v13218_v28 = vsub.f32 %v13216_v40, %v13217_v20 }
 0x92f   : > { %v13207_v3 = vand.u32 4294901760, %v13206_v27 }
 0x930   : > { %32164 = vmatpush3.bf16.msra.mxu1 %v35021_v53  ;;  %v13219_v34 = vand.u32 4294901760, %v13218_v28 }
 0x931   : > { %32165 = vmatprep.subr.bf16.mxu1 %v41620_v62  ;;  %v13208_v43 = vsub.f32 %v13206_v27, %v13207_v3 }
 0x933   : > { %v13209_v4 = vand.u32 4294901760, %v13208_v43 }
 0x935   : > { %30629 = vmatmul.mubr.f32.gmra.mrb[50].mxu1 %v13209_v4 }
 0x936   : > { %30631 = vmatprep.mubr.msk.f32.mxu1 %vm34727_vm5, %v41621_v39 }
 0x939   : > { %30632 = vmatmul.mubr.f32.gmra.mrb[52].mxu1 %v13219_v34 }
 0x93a   : > { %30642 = vmatprep.mubr.msk.f32.mxu1 %vm34727_vm5, %v41621_v39 }
 0x93d   : > { %30643 = vmatmul.mubr.f32.vlgmr.msra.gmra.mrb[48].mxu1 %v38058_v22 }
 0x93e   : > { %30645 = vmatprep.mubr.msk.f32.mxu1 %vm34727_vm5, %v41621_v39  ;;  %32167 = vmatpush3.bf16.msra.mxu1 %v35027_v54 }
 0x93f   : > { %32168 = vmatprep.subr.bf16.mxu1 %v41620_v62 }
 0x941   : > { %30646 = vmatmul.mubr.f32.gmra.mrb[50].mxu1 %v13205_v30 }
 0x942   : > { %30648 = vmatprep.mubr.msk.f32.mxu1 %vm34727_vm5, %v41621_v39  ;;  %32170 = vmatpush3.bf16.msra.mxu1 %v35029_v55 }
 0x943   : > { %32171 = vmatprep.subr.bf16.mxu1 %v41620_v62 }
 0x945   : > { %30649 = vmatmul.mubr.f32.gmra.mrb[52].mxu1 %v13215_v10 }
 0x946   : > { %30659 = vmatprep.mubr.msk.f32.mxu1 %vm34727_vm5, %v41621_v39 }
 0x949   : > { %30660 = vmatmul.mubr.f32.vlgmr.msra.gmra.mrb[48].mxu1 %v38066_v2 }
 0x94a   : > { %30662 = vmatprep.mubr.msk.f32.mxu1 %vm34727_vm5, %v41621_v39  ;;  %32173 = vmatpush3.bf16.msra.mxu1 %v34910_v16 }
 0x94b   : > { %32174 = vmatprep.subr.bf16.mxu1 %v41620_v62 }
 0x94d   : > { %30663 = vmatmul.mubr.f32.gmra.mrb[50].mxu1 %v13206_v27 }
 0x94e   : > { %30665 = vmatprep.mubr.msk.f32.mxu1 %vm34727_vm5, %v41621_v39  ;;  %32176 = vmatpush3.bf16.msra.mxu1 %v34931_v25 }
 0x94f   : > { %32177 = vmatprep.subr.bf16.mxu1 %v41620_v62 }
 0x951   : > { %30666 = vmatmul.mubr.f32.gmra.mrb[52].mxu1 %v13216_v40 }
 0x952   : > { %30676 = vmatprep.mubr.msk.f32.mxu1 %vm34727_vm5, %v41621_v39 }
 0x955   : > { %30677 = vmatmul.mubr.f32.vlgmr.msra.gmra.mrb[48].mxu1 %v13197_v11 }
 0x956   : > { %30679 = vmatprep.mubr.msk.f32.mxu1 %vm34727_vm5, %v41621_v39  ;;  %32179 = vmatpush3.bf16.msra.mxu1 %v35031_v56 }
 0x957   : > { %32180 = vmatprep.subr.bf16.mxu1 %v41620_v62 }
 0x959   : > { %30680 = vmatmul.mubr.f32.gmra.mrb[50].mxu1 %v13207_v3 }
 0x95a   : > { %30682 = vmatprep.mubr.msk.f32.mxu1 %vm34727_vm5, %v41621_v39  ;;  %32182 = vmatpush3.bf16.msra.mxu1 %v35033_v57 }
 0x95b   : > { %32183 = vmatprep.subr.bf16.mxu1 %v41620_v62 }
 0x95d   : > { %30683 = vmatmul.mubr.f32.gmra.mrb[52].mxu1 %v13217_v20 }
 0x95e   : > { %30693 = vmatprep.mubr.msk.f32.mxu1 %vm34727_vm5, %v41621_v39 }
 0x961   : > { %30694 = vmatmul.mubr.f32.vlgmr.msra.gmra.mrb[48].mxu1 %v38058_v22 }
 0x962   : > { %30696 = vmatprep.mubr.msk.f32.mxu1 %vm34727_vm5, %v41621_v39  ;;  %32185 = vmatpush3.bf16.msra.mxu1 %v34910_v16 }
 0x963   : > { %32186 = vmatprep.subr.bf16.mxu1 %v41620_v62 }
 0x965   : > { %30697 = vmatmul.mubr.f32.gmra.mrb[50].mxu1 %v13205_v30 }
 0x966   : > { %30699 = vmatprep.mubr.msk.f32.mxu1 %vm34727_vm5, %v41621_v39  ;;  %32188 = vmatpush3.bf16.msra.mxu1 %v34931_v25 }
 0x969   : > { %30700 = vmatmul.mubr.f32.gmra.mrb[52].mxu1 %v13215_v10 }
 0x96a   : > { %30710 = vmatprep.mubr.msk.f32.mxu1 %vm34727_vm5, %v41621_v39 }
 0x96d   : > { %30711 = vmatmul.mubr.f32.vlgmr.msra.gmra.mrb[48].mxu1 %v38058_v22 }
 0x96e   : > { %30713 = vmatprep.mubr.msk.f32.mxu1 %vm34727_vm5, %v41621_v39 }
 0x971   : > { %30714 = vmatmul.mubr.f32.gmra.mrb[50].mxu1 %v13205_v30 }
 0x972   : > { %30716 = vmatprep.mubr.msk.f32.mxu1 %vm34727_vm5, %v41621_v39 }
 0x975   : > { %30717 = vmatmul.mubr.f32.gmra.mrb[52].mxu1 %v13215_v10 }
 0x976   : > { %30827 = vmatprep.mubr.f32.mxu1 %v41758_v47 }
 0x9ae   : > { %v30358_v36 = vpop.f32.mrb[40].mxu1 }
 0x9af   : > { %v33801_v52 = vadd.f32 %v38171_v23, %v30358_v36  ;;  %v11237_v2 = vpop.f32.mrb[41].mxu1 }
 0x9b0   : > { %v33802_v22 = vadd.f32 %v38171_v23, %v11237_v2 }
 0x9b1   : > { %v11248_v11 = vmax.f32 %v33801_v52, 0.0 }
 0x9b2   : > { %v38175_v13 = vmax.f32 %v33802_v22, 0.0 }
 0x9b3   : > { %v19524_v42 = vrot.slane %v11248_v11, 3  ;;  %v19530_v41 = vrot.slane %v11248_v11, 4 }
 0x9b4   : > { %v19518_v44 = vrot.slane %v38175_v13, 2  ;;  %v19514_v24 = vrot.slane %v38175_v13, 1  ;;  %v19529_v9 = vrot.slane %v38175_v13, 4  ;;  %v19523_v51 = vrot.slane %v38175_v13, 3 }
 0x9b6   : > { %19519 = vrot.lane.b32.xlu1 %v19518_v44, %s41655_s24  ;;  %19515 = vrot.lane.b32.xlu0 %v19514_v24, %s41648_s12  ;;  %v19531_v29 = vsel %vm402_vm4, %v19529_v9, %v19530_v41  ;;  %v19525_v49 = vsel %vm387_vm2, %v19523_v51, %v19524_v42 }
 0x9ba   : > { %19532 = vrot.lane.b32.xlu1 %v19531_v29, %s34762_s18  ;;  %19526 = vrot.lane.b32.xlu0 %v19525_v49, %s34757_s21 }
 0x9be   : > { %19545 = vrot.lane.b32.xlu1 %v37964_v32, %s34765_s10  ;;  %19542 = vrot.lane.b32.xlu0 %v37660_v63, %s34763_s14 }
 0x9c2   : > { %19539 = vrot.lane.b32.xlu1 %v37555_v7, %s34764_s13 }
 0x9f2   : > { %v12507_v26 = vpop.f32.mrb[42].mxu1 }
 0x9f3   : > { %v12523_v59 = vmax.f32 %v38018_v6, %v12507_v26  ;;  %v30556_v45 = vpop.f32.mrb[43].mxu1 }
 0x9f5   : > { %v12529_v15 = vrot.slane %v12523_v59, 1 }
 0x9f6   : > { %v12513_v38 = vpop.f32.mrb[44].mxu1 }
 0x9f7   : > { %v12524_v14 = vmax.f32 %v38025_v33, %v12513_v38  ;;  %v30559_v35 = vpop.f32.mrb[45].mxu1  ;;  %v38214_v38 = vpop.permute.xlu1 %18624 }
 0x9f8   : > { %v41849_v35 = vld [vmem:[#allocation92_spill] sm:$0xff] }
 0x9f9   : > { %v12530_v17 = vrot.slane %v12524_v14, 1 }
 0x9fa   : > { %v12519_v30 = vpop.f32.mrb[46].mxu1 }
 0x9fb   : > { %v12531_v10 = vsel %vm357_vm0, %v12529_v15, %v12530_v17  ;;  %v12525_v27 = vmax.f32 %v38031_v60, %v12519_v30  ;;  %v30562_v40 = vpop.f32.mrb[47].mxu1  ;;  %v41850_v30 = vld [vmem:[#allocation23_spill] sm:$0xff] }
 0x9fc   : > { %v12537_v3 = vmax.f32 %v12523_v59, %v12531_v10  ;;  %v13737_v10 = vsel %vm417_vm6, %v36987_v0, %v41850_v30  ;;  %v38231_v40 = vpop.permute.xlu0 %18628 }
 0x9fd   : > { %v12532_v20 = vrot.slane %v12525_v27, 1 }
 0x9fe   : > { %v12544_v43 = vand.u32 4294901760, %v12537_v3 }
 0x9ff   : > { %v12533_v28 = vsel %vm357_vm0, %v12530_v17, %v12532_v20  ;;  %v12539_v4 = vmax.f32 %v12525_v27, %v12532_v20  ;;  %v38229_v27 = vpop.permute.xlu1 %18506  ;;  %v41851_v20 = vld [vmem:[#allocation26_spill] sm:$0xff] }
 0xa00   : > { %v12633_v6 = vsub.f32 %v12537_v3, %v12544_v43  ;;  %v12538_v34 = vmax.f32 %v12524_v14, %v12533_v28  ;;  %v41848_v14 = vld [vmem:[#allocation106_spill] sm:$0xff]  ;;  %v41853_v28 = vld [vmem:[#allocation97_spill] sm:$0xff] }
 0xa01   : > { %v12541_v36 = vsel %vm1685_vm14, %v12539_v4, 0  ;;  %v13736_v15 = vsel %vm417_vm6, %v41849_v35, %v41848_v14 }
 0xa02   : > { %v12547_v33 = vand.u32 4294901760, %v12538_v34  ;;  %v38199_v52 = vand.u32 4294901760, %v12541_v36  ;;  %v12634_v2 = vand.u32 4294901760, %v12633_v6  ;;  %v13739_v17 = vsel %vm421_vm7, %v13736_v15, %v36944_v19  ;;  %v41852_v19 = vld [vmem:[#allocation113_spill] sm:$0xff] }
 0xa03   : > { %v13742_v3 = vsel %vm425_vm8, %v13739_v17, %v34921_v21  ;;  %v13738_v4 = vsel %vm417_vm6, %v41853_v28, %v41852_v19  ;;  %v41855_v21 = vld [vmem:[#allocation11_spill] sm:$0xff] }
 0xa04   : > { %v38201_v22 = vpack.c.bf16 %v12547_v33, %v12544_v43  ;;  %v12640_v11 = vsub.f32 %v12538_v34, %v12547_v33  ;;  %v12647_v60 = vsub.f32 %v12541_v36, %v38199_v52  ;;  %v12635_v44 = vsub.f32 %v12633_v6, %v12634_v2  ;;  %v38243_v34 = vpop.permute.xlu1 %18620  ;;  %v38245_v36 = vpop.permute.xlu0 %18632 }
 0xa05   : > { %v13740_v43 = vsel %vm421_vm7, %v13737_v10, %v41851_v20 }
 0xa06   : > { %32130 = vmatprep.subr.bf16.mxu0 %v38201_v22  ;;  %v12641_v24 = vand.u32 4294901760, %v12640_v11  ;;  %v12648_v42 = vand.u32 4294901760, %v12647_v60  ;;  %v32137_v41 = vpack.c.bf16 %v12640_v11, %v12633_v6  ;;  %v12636_v29 = vand.u32 4294901760, %v12635_v44  ;;  %v41854_v6 = vld [vmem:[#allocation20_spill] sm:$0xff]  ;;  %v41857_v44 = vld [vmem:[#allocation111_spill] sm:$0xff] }
 0xa07   : > { %32132 = vmatpush3.bf16.msra.mxu0 %v38201_v22  ;;  %v13745_v0 = vsel %vm429_vm9, %v13742_v3, %v41854_v6  ;;  %v13743_v33 = vsel %vm425_vm8, %v13740_v43, %v41855_v21 }
 0xa08   : > { %30567 = vmatprep.subr.mxu0 %v38199_v52  ;;  %v12642_v9 = vsub.f32 %v12640_v11, %v12641_v24  ;;  %v32145_v51 = vpack.c.bf16 %v12641_v24, %v12634_v2  ;;  %v12649_v26 = vsub.f32 %v12647_v60, %v12648_v42  ;;  %v41856_v2 = vld [vmem:[#allocation115_spill] sm:$0xff]  ;;  %v13746_v24 = vsel %vm429_vm9, %v13743_v33, %v41857_v44 }
 0xa09   : > { %v13741_v11 = vsel %vm421_vm7, %v13738_v4, %v41856_v2 }
 0xa0a   : > { %v12643_v49 = vand.u32 4294901760, %v12642_v9  ;;  %v12650_v45 = vand.u32 4294901760, %v12649_v26 }
 0xa0b   : > { %30568 = vmatpush3.msra.mxu0 %v38199_v52 }
 0xa0c   : > { %30570 = vmatmul.mubr.f32.vlgmr.msra.gmra.mrb[48].mxu0 %v35508_v61  ;;  %v32133_v59 = vpack.c.bf16 %v12643_v49, %v12636_v29  ;;  %v41858_v29 = vld [vmem:[#allocation10_spill] sm:$0xff] }
 0xa0d   : > { %30578 = vmatprep.mubr.msk.f32.mxu0 %vm1678_vm12, %v35439_v50  ;;  %v13744_v49 = vsel %vm425_vm8, %v13741_v11, %v41858_v29  ;;  %v41861_v29 = vld [vmem:[#allocation107_spill] sm:$0xff] }
 0xa0e   : > { %32134 = vmatprep.subr.bf16.mxu0 %v32133_v59 }
 0xa0f   : > { %32136 = vmatpush3.bf16.msra.mxu0 %v32133_v59  ;;  %v13752_v59 = vsel %vm433_vm10, %v13746_v24, 0 }
 0xa10   : > { %30576 = vmatprep.subr.mxu0 %v12650_v45  ;;  %v38275_v30 = vand.u32 4294901760, %v13752_v59 }
 0xa13   : > { %30577 = vmatpush3.msra.mxu0 %v12650_v45  ;;  %v41859_v45 = vld [vmem:[#allocation105_spill] sm:$0xff] }
 0xa14   : > { %30579 = vmatmul.mubr.msk.f32.vlgmr.msra.gmra.mrb[48].mxu0 %vm1678_vm12, %v35471_v8  ;;  %32138 = vmatprep.subr.bf16.mxu0 %v32137_v41  ;;  %v13747_v14 = vsel %vm429_vm9, %v13744_v49, %v41859_v45  ;;  %v41862_v49 = vld [vmem:[#allocation41_spill] sm:$0xff] }
 0xa15   : > { %32140 = vmatpush3.bf16.msra.mxu0 %v32137_v41  ;;  %30587 = vmatprep.mubr.f32.mxu0 %v35447_v1  ;;  %v13755_v3 = vsel %vm433_vm10, %v13747_v14, 0  ;;  %v41864_v14 = vld [vmem:[#allocation118_spill] sm:$0xff] }
 0xa16   : > { %30585 = vmatprep.subr.mxu0 %v12647_v60  ;;  %v38286_v20 = vand.u32 4294901760, %v13755_v3 }
 0xa18   : > { %v13847_v19 = vsub.f32 %v13755_v3, %v38286_v20 }
 0xa19   : > { %30586 = vmatpush3.msra.mxu0 %v12647_v60  ;;  %v13749_v60 = vsel %vm433_vm10, %v13745_v0, 0 }
 0xa1a   : > { %32142 = vmatprep.subr.bf16.mxu0 %v38201_v22  ;;  %v38261_v26 = vand.u32 4294901760, %v13749_v60  ;;  %v13848_v0 = vand.u32 4294901760, %v13847_v19 }
 0xa1c   : > { %30588 = vmatmul.mubr.f32.vlgmr.msra.gmra.mrb[48].mxu0 %v35476_v46  ;;  %v13849_v33 = vsub.f32 %v13847_v19, %v13848_v0 }
 0xa1d   : > { %32144 = vmatpush3.bf16.msra.mxu0 %v38201_v22  ;;  %30596 = vmatprep.mubr.f32.mxu0 %v35453_v58 }
 0xa1e   : > { %30594 = vmatprep.subr.mxu0 %v38199_v52  ;;  %v13850_v2 = vand.u32 4294901760, %v13849_v33 }
 0xa21   : > { %30595 = vmatpush3.msra.mxu0 %v38199_v52 }
 0xa22   : > { %32146 = vmatprep.subr.bf16.mxu0 %v32145_v51 }
 0xa24   : > { %30597 = vmatmul.mubr.f32.vlgmr.msra.gmra.mrb[48].mxu0 %v35482_v5 }
 0xa25   : > { %32148 = vmatpush3.bf16.msra.mxu0 %v32145_v51  ;;  %30605 = vmatprep.mubr.msk.f32.mxu0 %vm1678_vm12, %v35439_v50 }
 0xa26   : > { %30603 = vmatprep.subr.mxu0 %v12648_v42 }
 0xa28   : > { %v19520_v41 = vpop.permute.xlu1 %19519  ;;  %v19516_v9 = vpop.permute.xlu0 %19515 }
 0xa29   : > { %30604 = vmatpush3.msra.mxu0 %v12648_v42  ;;  %v19535_v51 = vsel %vm421_vm7, %v38175_v13, %v19516_v9  ;;  %v13827_v42 = vsub.f32 %v13749_v60, %v38261_v26 }
 0xa2a   : > { %32150 = vmatprep.subr.bf16.mxu0 %v38201_v22  ;;  %v19536_v15 = vsel %vm429_vm9, %v19535_v51, %v19520_v41  ;;  %v14910_v51 = vsel %vm417_vm6, %v41862_v49, %v41861_v29  ;;  %v41874_v29 = vld [vmem:[#allocation128_spill] sm:$0xff] }
 0xa2b   : > { %v13828_v43 = vand.u32 4294901760, %v13827_v42 }
 0xa2c   : > { %30606 = vmatmul.mubr.msk.f32.vlgmr.msra.gmra.mrb[48].mxu0 %vm1678_vm12, %v35471_v8  ;;  %v19533_v35 = vpop.permute.xlu1 %19532  ;;  %v19527_v17 = vpop.permute.xlu0 %19526 }
 0xa2d   : > { %32152 = vmatpush3.bf16.msra.mxu0 %v38201_v22  ;;  %v19537_v13 = vsel %vm18511_vm1, %v19536_v15, %v19527_v17  ;;  %30614 = vmatprep.mubr.msk.f32.mxu0 %vm1678_vm12, %v35439_v50  ;;  %v13837_v22 = vsub.f32 %v13752_v59, %v38275_v30  ;;  %v41863_v59 = vld [vmem:[#allocation116_spill] sm:$0xff] }
 0xa2e   : > { %30612 = vmatprep.subr.mxu0 %v38199_v52  ;;  %v38279_v10 = vsel %vm18513_vm15, %v19537_v13, %v19533_v35  ;;  %v14913_v45 = vsel %vm421_vm7, %v14910_v51, %v41863_v59  ;;  %v41865_v15 = vld [vmem:[#allocation120_spill] sm:$0xff]  ;;  %v41875_v51 = vld [vmem:[#allocation135_spill] sm:$0xff] }
 0xa2f   : > { %41860 = vst [vmem:[#allocation38_spill] sm:$0xff] %v38279_v10  ;;  %19549 = vrot.lane.b32.xlu0 %v38279_v10, %s34766_s23  ;;  %v13838_v28 = vand.u32 4294901760, %v13837_v22  ;;  %v14916_v35 = vsel %vm425_vm8, %v14913_v45, %v41864_v14 }
 0xa30   : > { %v14919_v17 = vsel %vm429_vm9, %v14916_v35, %v41865_v15 }
 0xa31   : > { %30613 = vmatpush3.msra.mxu0 %v38199_v52  ;;  %v13829_v52 = vsub.f32 %v13827_v42, %v13828_v43  ;;  %v13839_v6 = vsub.f32 %v13837_v22, %v13838_v28  ;;  %v14923_v13 = vsel %vm433_vm10, %v14919_v17, 0 }
 0xa32   : > { %32189 = vmatprep.subr.bf16.mxu0 %v41620_v62 }
 0xa33   : > { %v13830_v4 = vand.u32 4294901760, %v13829_v52  ;;  %v13840_v21 = vand.u32 4294901760, %v13839_v6  ;;  %v41867_v52 = vld [vmem:[#allocation121_spill] sm:$0xff]  ;;  %v41869_v6 = vld [vmem:[#allocation130_spill] sm:$0xff] }
 0xa34   : > { %30615 = vmatmul.mubr.msk.f32.vlgmr.msra.gmra.mrb[48].mxu0 %vm1678_vm12, %v35471_v8 }
 0xa35   : > { %32191 = vmatpush3.bf16.msra.mxu0 %v34910_v16  ;;  %30727 = vmatprep.mubr.msk.f32.mxu0 %vm34727_vm5, %v41621_v39 }
 0xa36   : > { %32192 = vmatprep.subr.bf16.mxu0 %v41620_v62 }
 0xa39   : > { %32194 = vmatpush3.bf16.msra.mxu0 %v34931_v25 }
 0xa3a   : > { %32195 = vmatprep.subr.bf16.mxu0 %v41620_v62 }
 0xa3c   : > { %30728 = vmatmul.mubr.f32.vlgmr.msra.gmra.mrb[50].mxu0 %v13830_v4  ;;  %v41868_v4 = vld [vmem:[#allocation119_spill] sm:$0xff] }
 0xa3d   : > { %30730 = vmatprep.mubr.msk.f32.mxu0 %vm34727_vm5, %v41621_v39  ;;  %32197 = vmatpush3.bf16.msra.mxu0 %v35015_v48 }
 0xa3e   : > { %32198 = vmatprep.subr.bf16.mxu0 %v41620_v62 }
 0xa40   : > { %30731 = vmatmul.mubr.f32.gmra.mrb[52].mxu0 %v13840_v21  ;;  %v38321_v11 = vpop.f32.mrb[48].mxu1  ;;  %v41871_v21 = vld [vmem:[#allocation132_spill] sm:$0xff] }
 0xa41   : > { %30733 = vmatprep.mubr.msk.f32.mxu0 %vm34727_vm5, %v41621_v39  ;;  %32200 = vmatpush3.bf16.msra.mxu0 %v35021_v53  ;;  %v30712_v60 = vpop.f32.mrb[49].mxu1 }
 0xa42   : > { %32201 = vmatprep.subr.bf16.mxu0 %v41620_v62 }
 0xa44   : > { %30734 = vmatmul.mubr.f32.gmra.mrb[54].mxu0 %v13850_v2  ;;  %v38327_v44 = vpop.f32.mrb[50].mxu1  ;;  %v41872_v2 = vld [vmem:[#allocation126_spill] sm:$0xff] }
 0xa45   : > { %30744 = vmatprep.mubr.msk.f32.mxu0 %vm34727_vm5, %v41621_v39  ;;  %v30715_v24 = vpop.f32.mrb[51].mxu1 }
 0xa46   : > { %v41873_v24 = vld [vmem:[#allocation134_spill] sm:$0xff] }
 0xa48   : > { %30745 = vmatmul.mubr.f32.vlgmr.msra.gmra.mrb[50].mxu0 %v38261_v26  ;;  %v38333_v41 = vpop.f32.mrb[52].mxu1 }
 0xa49   : > { %30747 = vmatprep.mubr.msk.f32.mxu0 %vm34727_vm5, %v41621_v39  ;;  %32203 = vmatpush3.bf16.msra.mxu0 %v35027_v54  ;;  %v30718_v9 = vpop.f32.mrb[53].mxu1 }
 0xa4a   : > { %32204 = vmatprep.subr.bf16.mxu0 %v41620_v62 }
 0xa4c   : > { %30748 = vmatmul.mubr.f32.gmra.mrb[52].mxu0 %v38275_v30 }
 0xa4d   : > { %30750 = vmatprep.mubr.msk.f32.mxu0 %vm34727_vm5, %v41621_v39  ;;  %32206 = vmatpush3.bf16.msra.mxu0 %v35029_v55 }
 0xa4e   : > { %32207 = vmatprep.subr.bf16.mxu0 %v41620_v62 }
 0xa50   : > { %30751 = vmatmul.mubr.f32.gmra.mrb[54].mxu0 %v38286_v20 }
 0xa51   : > { %30761 = vmatprep.mubr.msk.f32.mxu0 %vm34727_vm5, %v41621_v39 }
 0xa54   : > { %30762 = vmatmul.mubr.f32.vlgmr.msra.gmra.mrb[50].mxu0 %v13827_v42  ;;  %v38362_v42 = vand.u32 4294901760, %v14923_v13 }
 0xa55   : > { %30764 = vmatprep.mubr.msk.f32.mxu0 %vm34727_vm5, %v41621_v39  ;;  %32209 = vmatpush3.bf16.msra.mxu0 %v34910_v16 }
 0xa56   : > { %32210 = vmatprep.subr.bf16.mxu0 %v41620_v62  ;;  %v38370_v3 = vsub.f32 %v14923_v13, %v38362_v42 }
 0xa58   : > { %30765 = vmatmul.mubr.f32.gmra.mrb[52].mxu0 %v13837_v22  ;;  %v15002_v22 = vand.u32 4294901760, %v38370_v3 }
 0xa59   : > { %30767 = vmatprep.mubr.msk.f32.mxu0 %vm34727_vm5, %v41621_v39  ;;  %32212 = vmatpush3.bf16.msra.mxu0 %v34931_v25 }
 0xa5a   : > { %32213 = vmatprep.subr.bf16.mxu0 %v41620_v62 }
 0xa5c   : > { %30768 = vmatmul.mubr.f32.gmra.mrb[54].mxu0 %v13847_v19  ;;  %v41866_v19 = vld [vmem:[#allocation112_spill] sm:$0xff] }
 0xa5d   : > { %30778 = vmatprep.mubr.msk.f32.mxu0 %vm34727_vm5, %v41621_v39 }
 0xa60   : > { %30779 = vmatmul.mubr.f32.vlgmr.msra.gmra.mrb[50].mxu0 %v13828_v43  ;;  %v15003_v43 = vsub.f32 %v38370_v3, %v15002_v22 }
 0xa61   : > { %30781 = vmatprep.mubr.msk.f32.mxu0 %vm34727_vm5, %v41621_v39  ;;  %32215 = vmatpush3.bf16.msra.mxu0 %v35031_v56 }
 0xa62   : > { %32216 = vmatprep.subr.bf16.mxu0 %v41620_v62 }
 0xa64   : > { %30782 = vmatmul.mubr.f32.gmra.mrb[52].mxu0 %v13838_v28  ;;  %v14911_v28 = vsel %vm417_vm6, %v41867_v52, %v41866_v19 }
 0xa65   : > { %30784 = vmatprep.mubr.msk.f32.mxu0 %vm34727_vm5, %v41621_v39  ;;  %32218 = vmatpush3.bf16.msra.mxu0 %v35033_v57 }
 0xa66   : > { %32219 = vmatprep.subr.bf16.mxu0 %v41620_v62 }
 0xa68   : > { %30785 = vmatmul.mubr.f32.gmra.mrb[54].mxu0 %v13848_v0 }
 0xa69   : > { %30795 = vmatprep.mubr.msk.f32.mxu0 %vm34727_vm5, %v41621_v39 }
 0xa6c   : > { %30796 = vmatmul.mubr.f32.vlgmr.msra.gmra.mrb[50].mxu0 %v38261_v26 }
 0xa6d   : > { %30798 = vmatprep.mubr.msk.f32.mxu0 %vm34727_vm5, %v41621_v39  ;;  %32221 = vmatpush3.bf16.msra.mxu0 %v34910_v16 }
 0xa6e   : > { %32222 = vmatprep.subr.bf16.mxu0 %v41620_v62 }
 0xa70   : > { %30799 = vmatmul.mubr.f32.gmra.mrb[52].mxu0 %v38275_v30 }
 0xa71   : > { %30801 = vmatprep.mubr.msk.f32.mxu0 %vm34727_vm5, %v41621_v39  ;;  %32224 = vmatpush3.bf16.msra.mxu0 %v34931_v25 }
 0xa72   : > { %32249 = vmatprep.subr.bf16.mxu0 %v41620_v62 }
 0xa74   : > { %30802 = vmatmul.mubr.f32.gmra.mrb[54].mxu0 %v38286_v20 }
 0xa75   : > { %30812 = vmatprep.mubr.msk.f32.mxu0 %vm34727_vm5, %v41621_v39 }
 0xa78   : > { %30813 = vmatmul.mubr.f32.vlgmr.msra.gmra.mrb[50].mxu0 %v38261_v26  ;;  %v15004_v26 = vand.u32 4294901760, %v15003_v43 }
 0xa79   : > { %30815 = vmatprep.mubr.msk.f32.mxu0 %vm34727_vm5, %v41621_v39  ;;  %32251 = vmatpush3.bf16.msra.mxu0 %v34910_v16 }
 0xa7a   : > { %32252 = vmatprep.subr.bf16.mxu0 %v41620_v62 }
 0xa7c   : > { %30816 = vmatmul.mubr.f32.gmra.mrb[52].mxu0 %v38275_v30  ;;  %v14912_v30 = vsel %vm417_vm6, %v41869_v6, %v41868_v4 }
 0xa7d   : > { %30818 = vmatprep.mubr.msk.f32.mxu0 %vm34727_vm5, %v41621_v39  ;;  %32254 = vmatpush3.bf16.msra.mxu0 %v34931_v25  ;;  %v14915_v33 = vsel %vm421_vm7, %v14912_v30, %v41871_v21 }
 0xa7e   : > { %32255 = vmatprep.subr.bf16.mxu0 %v41620_v62  ;;  %v14918_v9 = vsel %vm425_vm8, %v14915_v33, %v41873_v24 }
 0xa7f   : > { %v14921_v59 = vsel %vm429_vm9, %v14918_v9, %v41875_v51 }
 0xa80   : > { %30819 = vmatmul.mubr.f32.gmra.mrb[54].mxu0 %v38286_v20  ;;  %v41870_v20 = vld [vmem:[#allocation125_spill] sm:$0xff]  ;;  %v14929_v14 = vsel %vm433_vm10, %v14921_v59, 0 }
 0xa81   : > { %30883 = vmatprep.mubr.msk.f32.mxu0 %vm34727_vm5, %v41621_v39  ;;  %v14914_v0 = vsel %vm421_vm7, %v14911_v28, %v41870_v20  ;;  %v15020_v15 = vand.u32 4294901760, %v14929_v14 }
 0xa82   : > { %v14917_v60 = vsel %vm425_vm8, %v14914_v0, %v41872_v2 }
 0xa83   : > { %v14920_v49 = vsel %vm429_vm9, %v14917_v60, %v41874_v29  ;;  %v15021_v13 = vsub.f32 %v14929_v14, %v15020_v15 }
 0xa84   : > { %30884 = vmatmul.mubr.f32.vlgmr.msra.gmra.mrb[56].mxu0 %v15004_v26  ;;  %v14926_v45 = vsel %vm433_vm10, %v14920_v49, 0 }
 0xa85   : > { %30886 = vmatprep.mubr.msk.f32.mxu0 %vm34727_vm5, %v41621_v39  ;;  %32257 = vmatpush3.bf16.msra.mxu0 %v35015_v48  ;;  %v15010_v35 = vand.u32 4294901760, %v14926_v45  ;;  %v15022_v26 = vand.u32 4294901760, %v15021_v13 }
 0xa86   : > { %32258 = vmatprep.subr.bf16.mxu0 %v41620_v62 }
 0xa87   : > { %v15011_v17 = vsub.f32 %v14926_v45, %v15010_v35  ;;  %v15023_v52 = vsub.f32 %v15021_v13, %v15022_v26 }
 0xa89   : > { %32260 = vmatpush3.bf16.msra.mxu0 %v35021_v53  ;;  %v15012_v43 = vand.u32 4294901760, %v15011_v17  ;;  %v15024_v4 = vand.u32 4294901760, %v15023_v52 }
 0xa8a   : > { %32261 = vmatprep.subr.bf16.mxu0 %v41620_v62 }
 0xa8b   : > { %v15013_v19 = vsub.f32 %v15011_v17, %v15012_v43 }
 0xa8d   : > { %v15014_v28 = vand.u32 4294901760, %v15013_v19 }
 0xa8f   : > { %30887 = vmatmul.mubr.f32.gmra.mrb[58].mxu0 %v15014_v28 }
 0xa90   : > { %30889 = vmatprep.mubr.msk.f32.mxu0 %vm34727_vm5, %v41621_v39 }
 0xa93   : > { %30890 = vmatmul.mubr.f32.gmra.mrb[60].mxu0 %v15024_v4 }
 0xa94   : > { %30900 = vmatprep.mubr.msk.f32.mxu0 %vm34727_vm5, %v41621_v39 }
 0xa97   : > { %30901 = vmatmul.mubr.f32.vlgmr.msra.gmra.mrb[56].mxu0 %v38362_v42 }
 0xa98   : > { %30903 = vmatprep.mubr.msk.f32.mxu0 %vm34727_vm5, %v41621_v39  ;;  %32263 = vmatpush3.bf16.msra.mxu0 %v35027_v54 }
 0xa99   : > { %32264 = vmatprep.subr.bf16.mxu0 %v41620_v62 }
 0xa9b   : > { %30904 = vmatmul.mubr.f32.gmra.mrb[58].mxu0 %v15010_v35 }
 0xa9c   : > { %30906 = vmatprep.mubr.msk.f32.mxu0 %vm34727_vm5, %v41621_v39  ;;  %32266 = vmatpush3.bf16.msra.mxu0 %v35029_v55 }
 0xa9d   : > { %32267 = vmatprep.subr.bf16.mxu0 %v41620_v62 }
 0xa9f   : > { %30907 = vmatmul.mubr.f32.gmra.mrb[60].mxu0 %v15020_v15 }
 0xaa0   : > { %30917 = vmatprep.mubr.msk.f32.mxu0 %vm34727_vm5, %v41621_v39 }
 0xaa3   : > { %30918 = vmatmul.mubr.f32.vlgmr.msra.gmra.mrb[56].mxu0 %v38370_v3 }
 0xaa4   : > { %30920 = vmatprep.mubr.msk.f32.mxu0 %vm34727_vm5, %v41621_v39  ;;  %32269 = vmatpush3.bf16.msra.mxu0 %v34910_v16 }
 0xaa5   : > { %32270 = vmatprep.subr.bf16.mxu0 %v41620_v62 }
 0xaa7   : > { %30921 = vmatmul.mubr.f32.gmra.mrb[58].mxu0 %v15011_v17 }
 0xaa8   : > { %30923 = vmatprep.mubr.msk.f32.mxu0 %vm34727_vm5, %v41621_v39  ;;  %32272 = vmatpush3.bf16.msra.mxu0 %v34931_v25 }
 0xaa9   : > { %32273 = vmatprep.subr.bf16.mxu0 %v41620_v62 }
 0xaab   : > { %30924 = vmatmul.mubr.f32.gmra.mrb[60].mxu0 %v15021_v13 }
 0xaac   : > { %30934 = vmatprep.mubr.msk.f32.mxu0 %vm34727_vm5, %v41621_v39 }
 0xaaf   : > { %30935 = vmatmul.mubr.f32.vlgmr.msra.gmra.mrb[56].mxu0 %v15002_v22 }
 0xab0   : > { %30937 = vmatprep.mubr.msk.f32.mxu0 %vm34727_vm5, %v41621_v39  ;;  %32275 = vmatpush3.bf16.msra.mxu0 %v35031_v56 }
 0xab1   : > { %32276 = vmatprep.subr.bf16.mxu0 %v41620_v62 }
 0xab3   : > { %30938 = vmatmul.mubr.f32.gmra.mrb[58].mxu0 %v15012_v43 }
 0xab4   : > { %30940 = vmatprep.mubr.msk.f32.mxu0 %vm34727_vm5, %v41621_v39  ;;  %32278 = vmatpush3.bf16.msra.mxu0 %v35033_v57 }
 0xab5   : > { %32279 = vmatprep.subr.bf16.mxu0 %v41620_v62 }
 0xab7   : > { %30941 = vmatmul.mubr.f32.gmra.mrb[60].mxu0 %v15022_v26 }
 0xab8   : > { %30951 = vmatprep.mubr.msk.f32.mxu0 %vm34727_vm5, %v41621_v39 }
 0xabb   : > { %30952 = vmatmul.mubr.f32.vlgmr.msra.gmra.mrb[56].mxu0 %v38362_v42 }
 0xabc   : > { %30954 = vmatprep.mubr.msk.f32.mxu0 %vm34727_vm5, %v41621_v39  ;;  %32281 = vmatpush3.bf16.msra.mxu0 %v34910_v16 }
 0xabd   : > { %32282 = vmatprep.subr.bf16.mxu0 %v41620_v62 }
 0xabf   : > { %30955 = vmatmul.mubr.f32.gmra.mrb[58].mxu0 %v15010_v35 }
 0xac0   : > { %30957 = vmatprep.mubr.msk.f32.mxu0 %vm34727_vm5, %v41621_v39  ;;  %32284 = vmatpush3.bf16.msra.mxu0 %v34931_v25 }
 0xac3   : > { %30958 = vmatmul.mubr.f32.gmra.mrb[60].mxu0 %v15020_v15 }
 0xac4   : > { %30968 = vmatprep.mubr.msk.f32.mxu0 %vm34727_vm5, %v41621_v39 }
 0xac7   : > { %30969 = vmatmul.mubr.f32.vlgmr.msra.gmra.mrb[56].mxu0 %v38362_v42 }
 0xac8   : > { %30971 = vmatprep.mubr.msk.f32.mxu0 %vm34727_vm5, %v41621_v39 }
 0xacb   : > { %30972 = vmatmul.mubr.f32.gmra.mrb[58].mxu0 %v15010_v35 }
 0xacc   : > { %30974 = vmatprep.mubr.msk.f32.mxu0 %vm34727_vm5, %v41621_v39 }
 0xacf   : > { %30975 = vmatmul.mubr.f32.gmra.mrb[60].mxu0 %v15020_v15 }
 0xad0   : > { %31085 = vmatprep.mubr.f32.mxu0 %v41758_v47 }
 0xb07   : > { %v30616_v3 = vpop.f32.mrb[48].mxu0 }
 0xb08   : > { %v33803_v22 = vadd.f32 %v38171_v23, %v30616_v3  ;;  %v13048_v6 = vpop.f32.mrb[49].mxu0 }
 0xb09   : > { %v33804_v30 = vadd.f32 %v38171_v23, %v13048_v6 }
 0xb0a   : > { %v13059_v20 = vmax.f32 %v33803_v22, 0.0 }
 0xb0b   : > { %v38474_v0 = vmax.f32 %v33804_v30, 0.0 }
 0xb0c   : > { %v20895_v33 = vrot.slane %v13059_v20, 3  ;;  %v20901_v2 = vrot.slane %v13059_v20, 4 }
 0xb0d   : > { %v20889_v42 = vrot.slane %v38474_v0, 2  ;;  %v20885_v21 = vrot.slane %v38474_v0, 1  ;;  %v20900_v60 = vrot.slane %v38474_v0, 4  ;;  %v20894_v24 = vrot.slane %v38474_v0, 3 }
 0xb0f   : > { %20890 = vrot.lane.b32.xlu1 %v20889_v42, %s41655_s24  ;;  %20886 = vrot.lane.b32.xlu0 %v20885_v21, %s41648_s12  ;;  %v20902_v9 = vsel %vm402_vm4, %v20900_v60, %v20901_v2  ;;  %v20896_v23 = vsel %vm387_vm2, %v20894_v24, %v20895_v33 }
 0xb13   : > { %20903 = vrot.lane.b32.xlu1 %v20902_v9, %s34762_s18  ;;  %20897 = vrot.lane.b32.xlu0 %v20896_v23, %s34757_s21 }
 0xb17   : > { %20916 = vrot.lane.b32.xlu1 %v38279_v10, %s34765_s10  ;;  %20913 = vrot.lane.b32.xlu0 %v37964_v32, %s34763_s14 }
 0xb1b   : > { %20910 = vrot.lane.b32.xlu1 %v37660_v63, %s34764_s13  ;;  %v39098_v63 = vld [vmem:[%s41252_s3 + $0x10] sm:$0xff] }
 0xb4b   : > { %v14312_v29 = vpop.f32.mrb[50].mxu0 }
 0xb4c   : > { %v14328_v49 = vmax.f32 %v38321_v11, %v14312_v29  ;;  %v30814_v51 = vpop.f32.mrb[51].mxu0 }
 0xb4e   : > { %v14334_v35 = vrot.slane %v14328_v49, 1 }
 0xb4f   : > { %v14318_v59 = vpop.f32.mrb[52].mxu0 }
 0xb50   : > { %v14329_v45 = vmax.f32 %v38327_v44, %v14318_v59  ;;  %v30817_v14 = vpop.f32.mrb[53].mxu0 }
 0xb51   : > { %v41876_v14 = vld [vmem:[#allocation29_spill] sm:$0xff] }
 0xb52   : > { %v14335_v15 = vrot.slane %v14329_v45, 1 }
 0xb53   : > { %v14324_v17 = vpop.f32.mrb[54].mxu0 }
 0xb54   : > { %v14336_v13 = vsel %vm357_vm0, %v14334_v35, %v14335_v15  ;;  %v14330_v43 = vmax.f32 %v38333_v41, %v14324_v17  ;;  %v30820_v26 = vpop.f32.mrb[55].mxu0  ;;  %v41877_v35 = vld [vmem:[#allocation79_spill] sm:$0xff]  ;;  %v41878_v17 = vld [vmem:[#allocation108_spill] sm:$0xff] }
 0xb55   : > { %v14342_v19 = vmax.f32 %v14328_v49, %v14336_v13  ;;  %v41879_v26 = vld [vmem:[#allocation114_spill] sm:$0xff] }
 0xb56   : > { %v14337_v52 = vrot.slane %v14330_v43, 1 }
 0xb57   : > { %v14349_v28 = vand.u32 4294901760, %v14342_v19 }
 0xb58   : > { %v14338_v4 = vsel %vm357_vm0, %v14335_v15, %v14337_v52  ;;  %v14344_v3 = vmax.f32 %v14330_v43, %v14337_v52  ;;  %v15547_v15 = vsel %vm417_vm6, %v41877_v35, %v41876_v14  ;;  %v38522_v43 = vpop.permute.xlu1 %19545 }
 0xb59   : > { %v14438_v11 = vsub.f32 %v14342_v19, %v14349_v28  ;;  %v14343_v22 = vmax.f32 %v14329_v45, %v14338_v4  ;;  %v15550_v13 = vsel %vm421_vm7, %v15547_v15, %v41878_v17  ;;  %v41880_v19 = vld [vmem:[#allocation123_spill] sm:$0xff]  ;;  %v41881_v4 = vld [vmem:[#allocation109_spill] sm:$0xff] }
 0xb5a   : > { %v14346_v6 = vsel %vm1685_vm14, %v14344_v3, 0  ;;  %v15548_v52 = vsel %vm417_vm6, %v41880_v19, %v41879_v26  ;;  %v15553_v3 = vsel %vm425_vm8, %v15550_v13, %v41881_v4  ;;  %v41890_v15 = vld [vmem:[#allocation127_spill] sm:$0xff]  ;;  %v41891_v19 = vld [vmem:[#allocation129_spill] sm:$0xff] }
 0xb5b   : > { %v14352_v44 = vand.u32 4294901760, %v14343_v22  ;;  %v38498_v30 = vand.u32 4294901760, %v14346_v6  ;;  %v14439_v20 = vand.u32 4294901760, %v14438_v11 }
 0xb5d   : > { %v38500_v42 = vpack.c.bf16 %v14352_v44, %v14349_v28  ;;  %v14445_v21 = vsub.f32 %v14343_v22, %v14352_v44  ;;  %v14452_v41 = vsub.f32 %v14346_v6, %v38498_v30  ;;  %v14440_v33 = vsub.f32 %v14438_v11, %v14439_v20  ;;  %v38528_v28 = vpop.permute.xlu0 %19542  ;;  %v41883_v6 = vld [vmem:[#allocation122_spill] sm:$0xff]  ;;  %v41884_v44 = vld [vmem:[#allocation131_spill] sm:$0xff] }
 0xb5f   : > { %32226 = vmatprep.subr.bf16.mxu1 %v38500_v42  ;;  %v14446_v2 = vand.u32 4294901760, %v14445_v21  ;;  %v14453_v60 = vand.u32 4294901760, %v14452_v41  ;;  %v32233_v24 = vpack.c.bf16 %v14445_v21, %v14438_v11  ;;  %v14441_v29 = vand.u32 4294901760, %v14440_v33  ;;  %v41882_v11 = vld [vmem:[#allocation36_spill] sm:$0xff]  ;;  %v38540_v33 = vpop.permute.xlu1 %19539 }
 0xb60   : > { %32228 = vmatpush3.bf16.msra.mxu1 %v38500_v42  ;;  %v15551_v22 = vsel %vm421_vm7, %v15548_v52, %v41882_v11  ;;  %41886 = vst [vmem:[#allocation42_spill] sm:$0xff] %v38540_v33 }
 0xb61   : > { %30825 = vmatprep.subr.mxu1 %v38498_v30  ;;  %v14447_v9 = vsub.f32 %v14445_v21, %v14446_v2  ;;  %v32241_v23 = vpack.c.bf16 %v14446_v2, %v14439_v20  ;;  %v14454_v51 = vsub.f32 %v14452_v41, %v14453_v60  ;;  %v15549_v20 = vsel %vm417_vm6, %v41884_v44, %v41883_v6  ;;  %v41885_v21 = vld [vmem:[#allocation110_spill] sm:$0xff]  ;;  %v38542_v2 = vpop.permute.xlu0 %19549 }
 0xb63   : > { %v14448_v49 = vand.u32 4294901760, %v14447_v9  ;;  %v14455_v45 = vand.u32 4294901760, %v14454_v51 }
 0xb64   : > { %30826 = vmatpush3.msra.mxu1 %v38498_v30 }
 0xb65   : > { %30828 = vmatmul.mubr.f32.vlgmr.msra.gmra.mrb[54].mxu1 %v35508_v61  ;;  %v32229_v59 = vpack.c.bf16 %v14448_v49, %v14441_v29  ;;  %v41888_v29 = vld [vmem:[#allocation124_spill] sm:$0xff] }
 0xb66   : > { %30836 = vmatprep.mubr.msk.f32.mxu1 %vm1678_vm12, %v35439_v50  ;;  %v15552_v49 = vsel %vm421_vm7, %v15549_v20, %v41888_v29 }
 0xb67   : > { %32230 = vmatprep.subr.bf16.mxu1 %v32229_v59  ;;  %v15555_v17 = vsel %vm425_vm8, %v15552_v49, %v41890_v15 }
 0xb68   : > { %32232 = vmatpush3.bf16.msra.mxu1 %v32229_v59  ;;  %v41889_v59 = vld [vmem:[#allocation117_spill] sm:$0xff]  ;;  %v15558_v52 = vsel %vm429_vm9, %v15555_v17, %v41891_v19 }
 0xb69   : > { %30834 = vmatprep.subr.mxu1 %v14455_v45  ;;  %v15566_v44 = vsel %vm433_vm10, %v15558_v52, 0  ;;  %v41893_v19 = vld [vmem:[#allocation141_spill] sm:$0xff] }
 0xb6a   : > { %v16734_v52 = vsel %vm433_vm10, %v41893_v19, 0 }
 0xb6c   : > { %30835 = vmatpush3.msra.mxu1 %v14455_v45 }
 0xb6d   : > { %30837 = vmatmul.mubr.msk.f32.vlgmr.msra.gmra.mrb[54].mxu1 %vm1678_vm12, %v35471_v8  ;;  %32234 = vmatprep.subr.bf16.mxu1 %v32233_v24 }
 0xb6e   : > { %32236 = vmatpush3.bf16.msra.mxu1 %v32233_v24  ;;  %30845 = vmatprep.mubr.f32.mxu1 %v35447_v1  ;;  %v41887_v24 = vld [vmem:[#allocation77_spill] sm:$0xff] }
 0xb6f   : > { %30843 = vmatprep.subr.mxu1 %v14452_v41  ;;  %v15554_v9 = vsel %vm425_vm8, %v15551_v22, %v41887_v24 }
 0xb70   : > { %v15557_v45 = vsel %vm429_vm9, %v15554_v9, %v41889_v59 }
 0xb71   : > { %v15563_v26 = vsel %vm433_vm10, %v15557_v45, 0 }
 0xb72   : > { %30844 = vmatpush3.msra.mxu1 %v14452_v41  ;;  %v15556_v41 = vsel %vm429_vm9, %v15553_v3, %v41885_v21  ;;  %v38572_v22 = vand.u32 4294901760, %v15563_v26 }
 0xb73   : > { %32238 = vmatprep.subr.bf16.mxu1 %v38500_v42  ;;  %v15560_v51 = vsel %vm433_vm10, %v15556_v41, 0 }
 0xb74   : > { %v38558_v13 = vand.u32 4294901760, %v15560_v51  ;;  %v15648_v21 = vsub.f32 %v15563_v26, %v38572_v22 }
 0xb75   : > { %30846 = vmatmul.mubr.f32.vlgmr.msra.gmra.mrb[54].mxu1 %v35476_v46 }
 0xb76   : > { %32240 = vmatpush3.bf16.msra.mxu1 %v38500_v42  ;;  %30854 = vmatprep.mubr.f32.mxu1 %v35453_v58  ;;  %v15649_v24 = vand.u32 4294901760, %v15648_v21 }
 0xb77   : > { %30852 = vmatprep.subr.mxu1 %v38498_v30 }
 0xb78   : > { %v15650_v29 = vsub.f32 %v15648_v21, %v15649_v24 }
 0xb7a   : > { %30853 = vmatpush3.msra.mxu1 %v38498_v30 }
 0xb7b   : > { %32242 = vmatprep.subr.bf16.mxu1 %v32241_v23 }
 0xb7d   : > { %30855 = vmatmul.mubr.f32.vlgmr.msra.gmra.mrb[54].mxu1 %v35482_v5 }
 0xb7e   : > { %32244 = vmatpush3.bf16.msra.mxu1 %v32241_v23  ;;  %30863 = vmatprep.mubr.msk.f32.mxu1 %vm1678_vm12, %v35439_v50 }
 0xb7f   : > { %30861 = vmatprep.subr.mxu1 %v14453_v60 }
 0xb81   : > { %v20891_v14 = vpop.permute.xlu1 %20890  ;;  %v20887_v35 = vpop.permute.xlu0 %20886 }
 0xb82   : > { %30862 = vmatpush3.msra.mxu1 %v14453_v60  ;;  %v20906_v23 = vsel %vm421_vm7, %v38474_v0, %v20887_v35  ;;  %v15638_v60 = vsub.f32 %v15560_v51, %v38558_v13  ;;  %v15651_v51 = vand.u32 4294901760, %v15650_v29 }
 0xb83   : > { %32246 = vmatprep.subr.bf16.mxu1 %v38500_v42  ;;  %v20907_v3 = vsel %vm429_vm9, %v20906_v23, %v20891_v14 }
 0xb84   : > { %v15639_v20 = vand.u32 4294901760, %v15638_v60 }
 0xb85   : > { %30864 = vmatmul.mubr.msk.f32.vlgmr.msra.gmra.mrb[54].mxu1 %vm1678_vm12, %v35471_v8  ;;  %v20904_v4 = vpop.permute.xlu1 %20903  ;;  %v20898_v11 = vpop.permute.xlu0 %20897 }
 0xb86   : > { %32248 = vmatpush3.bf16.msra.mxu1 %v38500_v42  ;;  %v20908_v0 = vsel %vm18511_vm1, %v20907_v3, %v20898_v11  ;;  %30872 = vmatprep.mubr.msk.f32.mxu1 %vm1678_vm12, %v35439_v50  ;;  %v38582_v42 = vand.u32 4294901760, %v15566_v44  ;;  %v15640_v41 = vsub.f32 %v15638_v60, %v15639_v20 }
 0xb87   : > { %30870 = vmatprep.subr.mxu1 %v38498_v30  ;;  %v38576_v6 = vsel %vm18513_vm15, %v20908_v0, %v20904_v4  ;;  %v38651_v4 = vand.u32 4294901760, %v16734_v52 }
 0xb88   : > { %41892 = vst [vmem:[#allocation78_spill] sm:$0xff] %v38576_v6  ;;  %20920 = vrot.lane.b32.xlu0 %v38576_v6, %s34766_s23  ;;  %v15641_v9 = vand.u32 4294901760, %v15640_v41 }
 0xb89   : > { %v16812_v3 = vsub.f32 %v16734_v52, %v38651_v4 }
 0xb8a   : > { %30871 = vmatpush3.msra.mxu1 %v38498_v30  ;;  %v15658_v30 = vsub.f32 %v15566_v44, %v38582_v42 }
 0xb8b   : > { %32285 = vmatprep.subr.bf16.mxu1 %v41620_v62  ;;  %v16813_v11 = vand.u32 4294901760, %v16812_v3 }
 0xb8c   : > { %v15659_v49 = vand.u32 4294901760, %v15658_v30 }
 0xb8d   : > { %30873 = vmatmul.mubr.msk.f32.vlgmr.msra.gmra.mrb[54].mxu1 %vm1678_vm12, %v35471_v8  ;;  %v16814_v0 = vsub.f32 %v16812_v3, %v16813_v11 }
 0xb8e   : > { %32287 = vmatpush3.bf16.msra.mxu1 %v34910_v16  ;;  %30985 = vmatprep.mubr.msk.f32.mxu1 %vm34727_vm5, %v41621_v39  ;;  %v15660_v59 = vsub.f32 %v15658_v30, %v15659_v49 }
 0xb8f   : > { %32288 = vmatprep.subr.bf16.mxu1 %v41620_v62 }
 0xb90   : > { %v15661_v45 = vand.u32 4294901760, %v15660_v59 }
 0xb92   : > { %32290 = vmatpush3.bf16.msra.mxu1 %v34931_v25 }
 0xb93   : > { %32291 = vmatprep.subr.bf16.mxu1 %v41620_v62 }
 0xb95   : > { %30986 = vmatmul.mubr.f32.vlgmr.msra.gmra.mrb[56].mxu1 %v15641_v9 }
 0xb96   : > { %30988 = vmatprep.mubr.msk.f32.mxu1 %vm34727_vm5, %v41621_v39  ;;  %32293 = vmatpush3.bf16.msra.mxu1 %v35015_v48 }
 0xb97   : > { %32294 = vmatprep.subr.bf16.mxu1 %v41620_v62 }
 0xb99   : > { %30989 = vmatmul.mubr.f32.gmra.mrb[58].mxu1 %v15651_v51 }
 0xb9a   : > { %30991 = vmatprep.mubr.msk.f32.mxu1 %vm34727_vm5, %v41621_v39  ;;  %32296 = vmatpush3.bf16.msra.mxu1 %v35021_v53  ;;  %v38618_v14 = vpop.f32.mrb[56].mxu0 }
 0xb9b   : > { %32297 = vmatprep.subr.bf16.mxu1 %v41620_v62  ;;  %v30970_v35 = vpop.f32.mrb[57].mxu0 }
 0xb9d   : > { %30992 = vmatmul.mubr.f32.gmra.mrb[60].mxu1 %v15661_v45 }
 0xb9e   : > { %31002 = vmatprep.mubr.msk.f32.mxu1 %vm34727_vm5, %v41621_v39  ;;  %v38624_v15 = vpop.f32.mrb[58].mxu0 }
 0xb9f   : > { %v30973_v17 = vpop.f32.mrb[59].mxu0 }
 0xba1   : > { %31003 = vmatmul.mubr.f32.vlgmr.msra.gmra.mrb[56].mxu1 %v38558_v13 }
 0xba2   : > { %31005 = vmatprep.mubr.msk.f32.mxu1 %vm34727_vm5, %v41621_v39  ;;  %32299 = vmatpush3.bf16.msra.mxu1 %v35027_v54  ;;  %v38630_v23 = vpop.f32.mrb[60].mxu0 }
 0xba3   : > { %32300 = vmatprep.subr.bf16.mxu1 %v41620_v62  ;;  %v30976_v26 = vpop.f32.mrb[61].mxu0 }
 0xba4   : > { %v34652_v26 = vld [vmem:[%s41251_s2] ss:$0 sm:$0xff] }
 0xba5   : > { %31006 = vmatmul.mubr.f32.gmra.mrb[58].mxu1 %v38572_v22 }
 0xba6   : > { %31008 = vmatprep.mubr.msk.f32.mxu1 %vm34727_vm5, %v41621_v39  ;;  %32302 = vmatpush3.bf16.msra.mxu1 %v35029_v55 }
 0xba7   : > { %32303 = vmatprep.subr.bf16.mxu1 %v41620_v62 }
 0xba9   : > { %31009 = vmatmul.mubr.f32.gmra.mrb[60].mxu1 %v38582_v42 }
 0xbaa   : > { %31019 = vmatprep.mubr.msk.f32.mxu1 %vm34727_vm5, %v41621_v39 }
 0xbad   : > { %31020 = vmatmul.mubr.f32.vlgmr.msra.gmra.mrb[56].mxu1 %v15638_v60  ;;  %v16815_v60 = vand.u32 4294901760, %v16814_v0 }
 0xbae   : > { %31022 = vmatprep.mubr.msk.f32.mxu1 %vm34727_vm5, %v41621_v39  ;;  %32305 = vmatpush3.bf16.msra.mxu1 %v34910_v16 }
 0xbaf   : > { %32306 = vmatprep.subr.bf16.mxu1 %v41620_v62 }
 0xbb1   : > { %31023 = vmatmul.mubr.f32.gmra.mrb[58].mxu1 %v15648_v21 }
 0xbb2   : > { %31025 = vmatprep.mubr.msk.f32.mxu1 %vm34727_vm5, %v41621_v39  ;;  %32308 = vmatpush3.bf16.msra.mxu1 %v34931_v25 }
 0xbb3   : > { %32309 = vmatprep.subr.bf16.mxu1 %v41620_v62 }
 0xbb5   : > { %31026 = vmatmul.mubr.f32.gmra.mrb[60].mxu1 %v15658_v30 }
 0xbb6   : > { %31036 = vmatprep.mubr.msk.f32.mxu1 %vm34727_vm5, %v41621_v39 }
 0xbb9   : > { %31037 = vmatmul.mubr.f32.vlgmr.msra.gmra.mrb[56].mxu1 %v15639_v20 }
 0xbba   : > { %31039 = vmatprep.mubr.msk.f32.mxu1 %vm34727_vm5, %v41621_v39  ;;  %32311 = vmatpush3.bf16.msra.mxu1 %v35031_v56 }
 0xbbb   : > { %32312 = vmatprep.subr.bf16.mxu1 %v41620_v62 }
 0xbbd   : > { %31040 = vmatmul.mubr.f32.gmra.mrb[58].mxu1 %v15649_v24 }
 0xbbe   : > { %31042 = vmatprep.mubr.msk.f32.mxu1 %vm34727_vm5, %v41621_v39  ;;  %32314 = vmatpush3.bf16.msra.mxu1 %v35033_v57 }
 0xbbf   : > { %32315 = vmatprep.subr.bf16.mxu1 %v41620_v62 }
 0xbc1   : > { %31043 = vmatmul.mubr.f32.gmra.mrb[60].mxu1 %v15659_v49 }
 0xbc2   : > { %31053 = vmatprep.mubr.msk.f32.mxu1 %vm34727_vm5, %v41621_v39 }
 0xbc5   : > { %31054 = vmatmul.mubr.f32.vlgmr.msra.gmra.mrb[56].mxu1 %v38558_v13 }
 0xbc6   : > { %31056 = vmatprep.mubr.msk.f32.mxu1 %vm34727_vm5, %v41621_v39  ;;  %32317 = vmatpush3.bf16.msra.mxu1 %v34910_v16 }
 0xbc7   : > { %32318 = vmatprep.subr.bf16.mxu1 %v41620_v62 }
 0xbc9   : > { %31057 = vmatmul.mubr.f32.gmra.mrb[58].mxu1 %v38572_v22 }
 0xbca   : > { %31059 = vmatprep.mubr.msk.f32.mxu1 %vm34727_vm5, %v41621_v39  ;;  %32320 = vmatpush3.bf16.msra.mxu1 %v34931_v25 }
 0xbcb   : > { %32345 = vmatprep.subr.bf16.mxu1 %v41620_v62 }
 0xbcd   : > { %31060 = vmatmul.mubr.f32.gmra.mrb[60].mxu1 %v38582_v42 }
 0xbce   : > { %31070 = vmatprep.mubr.msk.f32.mxu1 %vm34727_vm5, %v41621_v39 }
 0xbd1   : > { %31071 = vmatmul.mubr.f32.vlgmr.msra.gmra.mrb[56].mxu1 %v38558_v13  ;;  %v41894_v13 = vld [vmem:[#allocation70_spill] sm:$0xff] }
 0xbd2   : > { %31073 = vmatprep.mubr.msk.f32.mxu1 %vm34727_vm5, %v41621_v39  ;;  %32347 = vmatpush3.bf16.msra.mxu1 %v34910_v16 }
 0xbd3   : > { %32348 = vmatprep.subr.bf16.mxu1 %v41620_v62 }
 0xbd5   : > { %31074 = vmatmul.mubr.f32.gmra.mrb[58].mxu1 %v38572_v22  ;;  %v41895_v22 = vld [vmem:[#allocation147_spill] sm:$0xff] }
 0xbd6   : > { %31076 = vmatprep.mubr.msk.f32.mxu1 %vm34727_vm5, %v41621_v39  ;;  %32350 = vmatpush3.bf16.msra.mxu1 %v34931_v25  ;;  %v16732_v44 = vsel %vm429_vm9, %v41895_v22, %v41894_v13 }
 0xbd7   : > { %32351 = vmatprep.subr.bf16.mxu1 %v41620_v62  ;;  %v16740_v21 = vsel %vm433_vm10, %v16732_v44, 0 }
 0xbd8   : > { %v16831_v24 = vand.u32 4294901760, %v16740_v21 }
 0xbd9   : > { %31077 = vmatmul.mubr.f32.gmra.mrb[60].mxu1 %v38582_v42  ;;  %v41896_v42 = vld [vmem:[#allocation144_spill] sm:$0xff] }
 0xbda   : > { %31141 = vmatprep.mubr.msk.f32.mxu1 %vm34727_vm5, %v41621_v39  ;;  %v16737_v20 = vsel %vm433_vm10, %v41896_v42, 0  ;;  %v16832_v9 = vsub.f32 %v16740_v21, %v16831_v24 }
 0xbdb   : > { %v16821_v41 = vand.u32 4294901760, %v16737_v20 }
 0xbdc   : > { %v16833_v49 = vand.u32 4294901760, %v16832_v9 }
 0xbdd   : > { %31142 = vmatmul.mubr.f32.vlgmr.msra.gmra.mrb[62].mxu1 %v16815_v60  ;;  %v16822_v30 = vsub.f32 %v16737_v20, %v16821_v41 }
 0xbde   : > { %31144 = vmatprep.mubr.msk.f32.mxu1 %vm34727_vm5, %v41621_v39  ;;  %32353 = vmatpush3.bf16.msra.mxu1 %v35015_v48  ;;  %v16834_v59 = vsub.f32 %v16832_v9, %v16833_v49 }
 0xbdf   : > { %32354 = vmatprep.subr.bf16.mxu1 %v41620_v62  ;;  %v16823_v29 = vand.u32 4294901760, %v16822_v30 }
 0xbe0   : > { %v16835_v35 = vand.u32 4294901760, %v16834_v59 }
 0xbe1   : > { %v16824_v51 = vsub.f32 %v16822_v30, %v16823_v29 }
 0xbe2   : > { %32356 = vmatpush3.bf16.msra.mxu1 %v35021_v53 }
 0xbe3   : > { %32357 = vmatprep.subr.bf16.mxu1 %v41620_v62  ;;  %v16825_v45 = vand.u32 4294901760, %v16824_v51 }
 0xbe5   : > { %31145 = vmatmul.mubr.f32.gmra.mrb[64].mxu1 %v16825_v45 }
 0xbe6   : > { %31147 = vmatprep.mubr.msk.f32.mxu1 %vm34727_vm5, %v41621_v39 }
 0xbe9   : > { %31148 = vmatmul.mubr.f32.gmra.mrb[66].mxu1 %v16835_v35 }
 0xbea   : > { %31158 = vmatprep.mubr.msk.f32.mxu1 %vm34727_vm5, %v41621_v39 }
 0xbed   : > { %31159 = vmatmul.mubr.f32.vlgmr.msra.gmra.mrb[62].mxu1 %v38651_v4 }
 0xbee   : > { %31161 = vmatprep.mubr.msk.f32.mxu1 %vm34727_vm5, %v41621_v39  ;;  %32359 = vmatpush3.bf16.msra.mxu1 %v35027_v54 }
 0xbef   : > { %32360 = vmatprep.subr.bf16.mxu1 %v41620_v62 }
 0xbf1   : > { %31162 = vmatmul.mubr.f32.gmra.mrb[64].mxu1 %v16821_v41 }
 0xbf2   : > { %31164 = vmatprep.mubr.msk.f32.mxu1 %vm34727_vm5, %v41621_v39  ;;  %32362 = vmatpush3.bf16.msra.mxu1 %v35029_v55 }
 0xbf3   : > { %32363 = vmatprep.subr.bf16.mxu1 %v41620_v62 }
 0xbf5   : > { %31165 = vmatmul.mubr.f32.gmra.mrb[66].mxu1 %v16831_v24 }
 0xbf6   : > { %31175 = vmatprep.mubr.msk.f32.mxu1 %vm34727_vm5, %v41621_v39 }
 0xbf9   : > { %31176 = vmatmul.mubr.f32.vlgmr.msra.gmra.mrb[62].mxu1 %v16812_v3 }
 0xbfa   : > { %31178 = vmatprep.mubr.msk.f32.mxu1 %vm34727_vm5, %v41621_v39  ;;  %32365 = vmatpush3.bf16.msra.mxu1 %v34910_v16 }
 0xbfb   : > { %32366 = vmatprep.subr.bf16.mxu1 %v41620_v62 }
 0xbfd   : > { %31179 = vmatmul.mubr.f32.gmra.mrb[64].mxu1 %v16822_v30 }
 0xbfe   : > { %31181 = vmatprep.mubr.msk.f32.mxu1 %vm34727_vm5, %v41621_v39  ;;  %32368 = vmatpush3.bf16.msra.mxu1 %v34931_v25 }
 0xbff   : > { %32369 = vmatprep.subr.bf16.mxu1 %v41620_v62 }
 0xc01   : > { %31182 = vmatmul.mubr.f32.gmra.mrb[66].mxu1 %v16832_v9 }
 0xc02   : > { %31192 = vmatprep.mubr.msk.f32.mxu1 %vm34727_vm5, %v41621_v39 }
 0xc05   : > { %31193 = vmatmul.mubr.f32.vlgmr.msra.gmra.mrb[62].mxu1 %v16813_v11 }
 0xc06   : > { %31195 = vmatprep.mubr.msk.f32.mxu1 %vm34727_vm5, %v41621_v39  ;;  %32371 = vmatpush3.bf16.msra.mxu1 %v35031_v56 }
 0xc07   : > { %32372 = vmatprep.subr.bf16.mxu1 %v41620_v62 }
 0xc09   : > { %31196 = vmatmul.mubr.f32.gmra.mrb[64].mxu1 %v16823_v29 }
 0xc0a   : > { %31198 = vmatprep.mubr.msk.f32.mxu1 %vm34727_vm5, %v41621_v39  ;;  %32374 = vmatpush3.bf16.msra.mxu1 %v35033_v57 }
 0xc0b   : > { %32375 = vmatprep.subr.bf16.mxu1 %v41620_v62 }
 0xc0d   : > { %31199 = vmatmul.mubr.f32.gmra.mrb[66].mxu1 %v16833_v49 }
 0xc0e   : > { %31209 = vmatprep.mubr.msk.f32.mxu1 %vm34727_vm5, %v41621_v39 }
 0xc11   : > { %31210 = vmatmul.mubr.f32.vlgmr.msra.gmra.mrb[62].mxu1 %v38651_v4 }
 0xc12   : > { %31212 = vmatprep.mubr.msk.f32.mxu1 %vm34727_vm5, %v41621_v39  ;;  %32377 = vmatpush3.bf16.msra.mxu1 %v34910_v16 }
 0xc13   : > { %32378 = vmatprep.subr.bf16.mxu1 %v41620_v62 }
 0xc15   : > { %31213 = vmatmul.mubr.f32.gmra.mrb[64].mxu1 %v16821_v41 }
 0xc16   : > { %31215 = vmatprep.mubr.msk.f32.mxu1 %vm34727_vm5, %v41621_v39  ;;  %32380 = vmatpush3.bf16.msra.mxu1 %v34931_v25 }
 0xc19   : > { %31216 = vmatmul.mubr.f32.gmra.mrb[66].mxu1 %v16831_v24 }
 0xc1a   : > { %31226 = vmatprep.mubr.msk.f32.mxu1 %vm34727_vm5, %v41621_v39 }
 0xc1d   : > { %31227 = vmatmul.mubr.f32.vlgmr.msra.gmra.mrb[62].mxu1 %v38651_v4 }
 0xc1e   : > { %31229 = vmatprep.mubr.msk.f32.mxu1 %vm34727_vm5, %v41621_v39 }
 0xc21   : > { %31230 = vmatmul.mubr.f32.gmra.mrb[64].mxu1 %v16821_v41 }
 0xc22   : > { %31232 = vmatprep.mubr.msk.f32.mxu1 %vm34727_vm5, %v41621_v39 }
 0xc25   : > { %31233 = vmatmul.mubr.f32.gmra.mrb[66].mxu1 %v16831_v24 }
 0xc26   : > { %31343 = vmatprep.mubr.f32.mxu1 %v41758_v47 }
 0xc60   : > { %v30874_v17 = vpop.f32.mrb[54].mxu1 }
 0xc61   : > { %v33805_v19 = vadd.f32 %v34652_v26, %v30874_v17  ;;  %v14853_v52 = vpop.f32.mrb[55].mxu1 }
 0xc62   : > { %v33806_v3 = vadd.f32 %v34652_v26, %v14853_v52 }
 0xc63   : > { %v14864_v11 = vmax.f32 %v33805_v19, 0.0 }
 0xc64   : > { %v38741_v4 = vmax.f32 %v33806_v3, 0.0 }
 0xc65   : > { %v21803_v13 = vrot.slane %v14864_v11, 3  ;;  %v21809_v22 = vrot.slane %v14864_v11, 4 }
 0xc66   : > { %v21797_v0 = vrot.slane %v38741_v4, 2  ;;  %v21793_v60 = vrot.slane %v38741_v4, 1  ;;  %v21808_v44 = vrot.slane %v38741_v4, 4  ;;  %v21802_v47 = vrot.slane %v38741_v4, 3 }
 0xc68   : > { %21798 = vrot.lane.b32.xlu1 %v21797_v0, %s41655_s24  ;;  %21794 = vrot.lane.b32.xlu0 %v21793_v60, %s41648_s12  ;;  %v21810_v42 = vsel %vm402_vm4, %v21808_v44, %v21809_v22  ;;  %v21804_v20 = vsel %vm387_vm2, %v21802_v47, %v21803_v13 }
 0xc6c   : > { %21811 = vrot.lane.b32.xlu1 %v21810_v42, %s34762_s18  ;;  %21805 = vrot.lane.b32.xlu0 %v21804_v20, %s34757_s21 }
 0xc70   : > { %21824 = vrot.lane.b32.xlu1 %v38576_v6, %s34765_s10  ;;  %21821 = vrot.lane.b32.xlu0 %v38279_v10, %s34763_s14  ;;  %v39239_v6 = vld [vmem:[%s41252_s3 + $0xd0] sm:$0xff] }
 0xc74   : > { %21818 = vrot.lane.b32.xlu1 %v37964_v32, %s34764_s13  ;;  %v39122_v32 = vld [vmem:[%s41252_s3 + $0xa8] sm:$0xff] }
 0xca4   : > { %v16123_v21 = vpop.f32.mrb[56].mxu1 }
 0xca5   : > { %v16139_v41 = vmax.f32 %v38618_v14, %v16123_v21  ;;  %v31072_v24 = vpop.f32.mrb[57].mxu1 }
 0xca7   : > { %v16145_v49 = vrot.slane %v16139_v41, 1 }
 0xca8   : > { %v16129_v30 = vpop.f32.mrb[58].mxu1 }
 0xca9   : > { %v16140_v9 = vmax.f32 %v38624_v15, %v16129_v30  ;;  %v31075_v29 = vpop.f32.mrb[59].mxu1 }
 0xcab   : > { %v16146_v51 = vrot.slane %v16140_v9, 1 }
 0xcac   : > { %v16135_v59 = vpop.f32.mrb[60].mxu1 }
 0xcad   : > { %v16147_v45 = vsel %vm357_vm0, %v16145_v49, %v16146_v51  ;;  %v16141_v35 = vmax.f32 %v38630_v23, %v16135_v59  ;;  %v31078_v17 = vpop.f32.mrb[61].mxu1 }
 0xcae   : > { %v16153_v26 = vmax.f32 %v16139_v41, %v16147_v45  ;;  %v41897_v45 = vld [vmem:[#allocation133_spill] sm:$0xff] }
 0xcaf   : > { %v16148_v19 = vrot.slane %v16141_v35, 1 }
 0xcb0   : > { %v16160_v52 = vand.u32 4294901760, %v16153_v26 }
 0xcb1   : > { %v16149_v3 = vsel %vm357_vm0, %v16146_v51, %v16148_v19  ;;  %v16155_v11 = vmax.f32 %v16141_v35, %v16148_v19  ;;  %v41898_v35 = vld [vmem:[#allocation138_spill] sm:$0xff] }
 0xcb2   : > { %v16249_v14 = vsub.f32 %v16153_v26, %v16160_v52  ;;  %v16154_v0 = vmax.f32 %v16140_v9, %v16149_v3  ;;  %v17358_v17 = vsel %vm417_vm6, %v41898_v35, %v41897_v45  ;;  %v41899_v26 = vld [vmem:[#allocation136_spill] sm:$0xff] }
 0xcb3   : > { %v16157_v60 = vsel %vm1685_vm14, %v16155_v11, 0  ;;  %v17361_v19 = vsel %vm421_vm7, %v17358_v17, %v41899_v26  ;;  %v41901_v3 = vld [vmem:[#allocation140_spill] sm:$0xff]  ;;  %v41902_v11 = vld [vmem:[#allocation142_spill] sm:$0xff]  ;;  %v41912_v26 = vld [vmem:[#allocation69_spill] sm:$0xff] }
 0xcb4   : > { %v16163_v15 = vand.u32 4294901760, %v16154_v0  ;;  %v38765_v13 = vand.u32 4294901760, %v16157_v60  ;;  %v16250_v22 = vand.u32 4294901760, %v16249_v14 }
 0xcb6   : > { %v38767_v44 = vpack.c.bf16 %v16163_v15, %v16160_v52  ;;  %v16256_v47 = vsub.f32 %v16154_v0, %v16163_v15  ;;  %v16263_v23 = vsub.f32 %v16157_v60, %v38765_v13  ;;  %v16251_v42 = vsub.f32 %v16249_v14, %v16250_v22  ;;  %v38789_v52 = vpop.permute.xlu1 %20916  ;;  %v38795_v0 = vpop.permute.xlu0 %20913  ;;  %v41904_v60 = vld [vmem:[#allocation137_spill] sm:$0xff] }
 0xcb7   : > { %41900 = vst [vmem:[#allocation35_spill] sm:$0xff] %v38789_v52  ;;  %41903 = vst [vmem:[#allocation39_spill] sm:$0xff] %v38795_v0  ;;  %v17364_v15 = vsel %vm425_vm8, %v17361_v19, %v41904_v60 }
 0xcb8   : > { %32322 = vmatprep.subr.bf16.mxu0 %v38767_v44  ;;  %v16257_v20 = vand.u32 4294901760, %v16256_v47  ;;  %v16264_v21 = vand.u32 4294901760, %v16263_v23  ;;  %v32329_v41 = vpack.c.bf16 %v16256_v47, %v16249_v14  ;;  %v16252_v9 = vand.u32 4294901760, %v16251_v42 }
 0xcb9   : > { %32324 = vmatpush3.bf16.msra.mxu0 %v38767_v44  ;;  %v17359_v14 = vsel %vm417_vm6, %v41902_v11, %v41901_v3  ;;  %v41913_v11 = vld [vmem:[#allocation33_spill] sm:$0xff] }
 0xcba   : > { %31083 = vmatprep.subr.mxu0 %v38765_v13  ;;  %v16258_v24 = vsub.f32 %v16256_v47, %v16257_v20  ;;  %v32337_v30 = vpack.c.bf16 %v16257_v20, %v16250_v22  ;;  %v16265_v49 = vsub.f32 %v16263_v23, %v16264_v21  ;;  %v41905_v22 = vld [vmem:[#allocation143_spill] sm:$0xff] }
 0xcbb   : > { %v17362_v47 = vsel %vm421_vm7, %v17359_v14, %v41905_v22  ;;  %v41907_v20 = vld [vmem:[#allocation139_spill] sm:$0xff] }
 0xcbc   : > { %v16259_v29 = vand.u32 4294901760, %v16258_v24  ;;  %v16266_v59 = vand.u32 4294901760, %v16265_v49  ;;  %v38807_v24 = vpop.permute.xlu1 %20910 }
 0xcbd   : > { %31084 = vmatpush3.msra.mxu0 %v38765_v13  ;;  %41908 = vst [vmem:[#allocation43_spill] sm:$0xff] %v38807_v24 }
 0xcbe   : > { %31086 = vmatmul.mubr.f32.vlgmr.msra.gmra.mrb[62].mxu0 %v35508_v61  ;;  %v32325_v51 = vpack.c.bf16 %v16259_v29, %v16252_v9  ;;  %v38809_v9 = vpop.permute.xlu0 %20920  ;;  %v41910_v29 = vld [vmem:[#allocation15_spill] sm:$0xff] }
 0xcbf   : > { %31094 = vmatprep.mubr.msk.f32.mxu0 %vm1678_vm12, %v35439_v50  ;;  %41909 = vst [vmem:[#allocation40_spill] sm:$0xff] %v38809_v9  ;;  %v17365_v49 = vsel %vm425_vm8, %v17362_v47, %v41910_v29  ;;  %v41367_v9 = vand.u32 4294901760, %v39098_v63 }
 0xcc0   : > { %32326 = vmatprep.subr.bf16.mxu0 %v32325_v51 }
 0xcc1   : > { %32328 = vmatpush3.bf16.msra.mxu0 %v32325_v51 }
 0xcc2   : > { %31092 = vmatprep.subr.mxu0 %v16266_v59 }
 0xcc5   : > { %31093 = vmatpush3.msra.mxu0 %v16266_v59  ;;  %v41911_v59 = vld [vmem:[#allocation145_spill] sm:$0xff] }
 0xcc6   : > { %31095 = vmatmul.mubr.msk.f32.vlgmr.msra.gmra.mrb[62].mxu0 %vm1678_vm12, %v35471_v8  ;;  %32330 = vmatprep.subr.bf16.mxu0 %v32329_v41  ;;  %v17368_v45 = vsel %vm429_vm9, %v17365_v49, %v41911_v59 }
 0xcc7   : > { %32332 = vmatpush3.bf16.msra.mxu0 %v32329_v41  ;;  %31103 = vmatprep.mubr.f32.mxu0 %v35447_v1  ;;  %v17367_v41 = vsel %vm429_vm9, %v17364_v15, %v41907_v20 }
 0xcc8   : > { %31101 = vmatprep.subr.mxu0 %v16263_v23 }
 0xccb   : > { %31102 = vmatpush3.msra.mxu0 %v16263_v23  ;;  %v41906_v23 = vld [vmem:[#allocation146_spill] sm:$0xff] }
 0xccc   : > { %32334 = vmatprep.subr.bf16.mxu0 %v38767_v44  ;;  %v17360_v42 = vsel %vm417_vm6, %v41906_v23, %v37567_v12  ;;  %v17371_v12 = vsel %vm433_vm10, %v17367_v41, 0 }
 0xccd   : > { %v17363_v51 = vsel %vm421_vm7, %v17360_v42, %v37575_v31  ;;  %v38825_v3 = vand.u32 4294901760, %v17371_v12  ;;  %v17374_v31 = vsel %vm433_vm10, %v17368_v45, 0 }
 0xcce   : > { %31104 = vmatmul.mubr.f32.vlgmr.msra.gmra.mrb[62].mxu0 %v35476_v46  ;;  %v17366_v19 = vsel %vm425_vm8, %v17363_v51, %v41912_v26  ;;  %v38839_v47 = vand.u32 4294901760, %v17374_v31  ;;  %vm18647_vm8 = vcmask 1041408   ;;  %v39148_v46 = vld [vmem:[%s41252_s3 + $0x20] sm:$0xff] }
 0xccf   : > { %32336 = vmatpush3.bf16.msra.mxu0 %v38767_v44  ;;  %31112 = vmatprep.mubr.f32.mxu0 %v35453_v58  ;;  %v17369_v14 = vsel %vm429_vm9, %v17366_v19, %v41913_v11  ;;  %v41937_v61 = vand.u32 4294901760, %v39148_v46 }
 0xcd0   : > { %31110 = vmatprep.subr.mxu0 %v38765_v13  ;;  %v17377_v42 = vsel %vm433_vm10, %v17369_v14, 0  ;;  %v17459_v41 = vsub.f32 %v17374_v31, %v38839_v47  ;;  %v38928_v31 = vld [vmem:[%s41252_s3 + $0x68] sm:$0xff]  ;;  %vm18641_vm10 = vcmask 588800  }
 0xcd2   : > { %v17460_v49 = vand.u32 4294901760, %v17459_v41 }
 0xcd3   : > { %31111 = vmatpush3.msra.mxu0 %v38765_v13 }
 0xcd4   : > { %32338 = vmatprep.subr.bf16.mxu0 %v32337_v30 }
 0xcd6   : > { %31113 = vmatmul.mubr.f32.vlgmr.msra.gmra.mrb[62].mxu0 %v35482_v5 }
 0xcd7   : > { %32340 = vmatpush3.bf16.msra.mxu0 %v32337_v30  ;;  %31121 = vmatprep.mubr.msk.f32.mxu0 %vm1678_vm12, %v35439_v50 }
 0xcd8   : > { %31119 = vmatprep.subr.mxu0 %v16264_v21 }
 0xcda   : > { %v21799_v35 = vpop.permute.xlu1 %21798  ;;  %v21795_v17 = vpop.permute.xlu0 %21794 }
 0xcdb   : > { %31120 = vmatpush3.msra.mxu0 %v16264_v21  ;;  %v21814_v30 = vsel %vm421_vm7, %v38741_v4, %v21795_v17  ;;  %v17449_v21 = vsub.f32 %v17371_v12, %v38825_v3  ;;  %v17461_v12 = vsub.f32 %v17459_v41, %v17460_v49 }
 0xcdc   : > { %32342 = vmatprep.subr.bf16.mxu0 %v38767_v44  ;;  %v21815_v15 = vsel %vm429_vm9, %v21814_v30, %v21799_v35  ;;  %v38923_v30 = vld [vmem:[%s41252_s3 + $0x60] sm:$0xff] }
 0xcdd   : > { %v17450_v20 = vand.u32 4294901760, %v17449_v21  ;;  %v17462_v45 = vand.u32 4294901760, %v17461_v12 }
 0xcde   : > { %31122 = vmatmul.mubr.msk.f32.vlgmr.msra.gmra.mrb[62].mxu0 %vm1678_vm12, %v35471_v8  ;;  %v21812_v60 = vpop.permute.xlu1 %21811  ;;  %v21806_v22 = vpop.permute.xlu0 %21805 }
 0xcdf   : > { %32344 = vmatpush3.bf16.msra.mxu0 %v38767_v44  ;;  %v21816_v4 = vsel %vm18511_vm1, %v21815_v15, %v21806_v22  ;;  %31130 = vmatprep.mubr.msk.f32.mxu0 %vm1678_vm12, %v35439_v50  ;;  %v38849_v44 = vand.u32 4294901760, %v17377_v42  ;;  %v17451_v29 = vsub.f32 %v17449_v21, %v17450_v20  ;;  %v38953_v15 = vld [vmem:[%s41252_s3 + $0x80] sm:$0xff]  ;;  %v41338_v22 = vand.u32 4294901760, %v38923_v30  ;;  %v39212_v50 = vld [vmem:[%s41252_s3 + $0xc8] sm:$0xff] }
 0xce0   : > { %31128 = vmatprep.subr.mxu0 %v38765_v13  ;;  %v38843_v23 = vsel %vm18513_vm15, %v21816_v4, %v21812_v60  ;;  %v18640_v60 = vsel %vm18639_vm3, %v38214_v38, %v38231_v40  ;;  %v41337_v4 = vand.u32 4294901760, %v38928_v31 }
 0xce1   : > { %41914 = vst [vmem:[#allocation44_spill] sm:$0xff] %v38843_v23  ;;  %21828 = vrot.lane.b32.xlu0 %v38843_v23, %s34766_s23  ;;  %v17452_v51 = vand.u32 4294901760, %v17451_v29  ;;  %v18642_v40 = vsel %vm18641_vm10, %v18640_v60, %v38245_v36  ;;  %v39244_v23 = vld [vmem:[%s41252_s3 + $0xd8] sm:$0xff] }
 0xce3   : > { %31129 = vmatpush3.msra.mxu0 %v38765_v13  ;;  %v38860_v13 = vsub.f32 %v17377_v42, %v38849_v44  ;;  %v38969_v42 = vld [vmem:[%s41252_s3 + $0x88] sm:$0xff] }
 0xce4   : > { %32381 = vmatprep.subr.bf16.mxu0 %v41620_v62 }
 0xce5   : > { %v17470_v59 = vand.u32 4294901760, %v38860_v13 }
 0xce6   : > { %31131 = vmatmul.mubr.msk.f32.vlgmr.msra.gmra.mrb[62].mxu0 %vm1678_vm12, %v35471_v8  ;;  %v39218_v8 = vld [vmem:[%s41252_s3 + $0x40] sm:$0xff] }
 0xce7   : > { %32383 = vmatpush3.bf16.msra.mxu0 %v34910_v16  ;;  %31243 = vmatprep.mubr.msk.f32.mxu0 %vm34727_vm5, %v41621_v39  ;;  %v17471_v35 = vsub.f32 %v38860_v13, %v17470_v59 }
 0xce8   : > { %32384 = vmatprep.subr.bf16.mxu0 %v41620_v62 }
 0xce9   : > { %v17472_v17 = vand.u32 4294901760, %v17471_v35 }
 0xceb   : > { %32386 = vmatpush3.bf16.msra.mxu0 %v34931_v25 }
 0xcec   : > { %32387 = vmatprep.subr.bf16.mxu0 %v41620_v62 }
 0xcee   : > { %31244 = vmatmul.mubr.f32.vlgmr.msra.gmra.mrb[64].mxu0 %v17452_v51  ;;  %v38993_v51 = vsub.f32 %v38928_v31, %v41337_v4 }
 0xcef   : > { %31246 = vmatprep.mubr.msk.f32.mxu0 %vm34727_vm5, %v41621_v39  ;;  %32389 = vmatpush3.bf16.msra.mxu0 %v35015_v48 }
 0xcf0   : > { %32390 = vmatprep.subr.bf16.mxu0 %v41620_v62  ;;  %v38898_v48 = vpop.f32.mrb[62].mxu1 }
 0xcf1   : > { %41915 = vst [vmem:[#allocation45_spill] sm:$0xff] %v38898_v48  ;;  %v41945_v48 = vand.u32 4294901760, %v38969_v42 }
 0xcf2   : > { %31247 = vmatmul.mubr.f32.gmra.mrb[66].mxu0 %v17462_v45  ;;  %v41347_v45 = vand.u32 4294901760, %v38969_v42 }
 0xcf3   : > { %31249 = vmatprep.mubr.msk.f32.mxu0 %vm34727_vm5, %v41621_v39  ;;  %32392 = vmatpush3.bf16.msra.mxu0 %v35021_v53  ;;  %v31228_v53 = vpop.f32.mrb[63].mxu1 }
 0xcf4   : > { %32393 = vmatprep.subr.bf16.mxu0 %v41620_v62 }
 0xcf6   : > { %31250 = vmatmul.mubr.f32.gmra.mrb[68].mxu0 %v17472_v17 }
 0xcf7   : > { %31260 = vmatprep.mubr.msk.f32.mxu0 %vm34727_vm5, %v41621_v39 }
 0xcfa   : > { %31261 = vmatmul.mubr.f32.vlgmr.msra.gmra.mrb[64].mxu0 %v38825_v3 }
 0xcfb   : > { %31263 = vmatprep.mubr.msk.f32.mxu0 %vm34727_vm5, %v41621_v39  ;;  %32395 = vmatpush3.bf16.msra.mxu0 %v35027_v54  ;;  %v38907_v54 = vld [vmem:[%s41252_s3 + $0x50] sm:$0xff] }
 0xcfc   : > { %32396 = vmatprep.subr.bf16.mxu0 %v41620_v62  ;;  %v41346_v26 = vand.u32 4294901760, %v38907_v54 }
 0xcfe   : > { %31264 = vmatmul.mubr.f32.gmra.mrb[66].mxu0 %v38839_v47  ;;  %v38936_v11 = vsub.f32 %v38907_v54, %v41346_v26 }
 0xcff   : > { %31266 = vmatprep.mubr.msk.f32.mxu0 %vm34727_vm5, %v41621_v39  ;;  %32398 = vmatpush3.bf16.msra.mxu0 %v35029_v55  ;;  %v38912_v55 = vld [vmem:[%s41252_s3 + $0x58] sm:$0xff] }
 0xd00   : > { %32399 = vmatprep.subr.bf16.mxu0 %v41620_v62  ;;  %v41339_v19 = vand.u32 4294901760, %v38912_v55  ;;  %v41341_v36 = vand.u32 4294901760, %v38936_v11 }
 0xd02   : > { %31267 = vmatmul.mubr.f32.gmra.mrb[68].mxu0 %v38849_v44  ;;  %v38941_v14 = vsub.f32 %v38912_v55, %v41339_v19  ;;  %v41350_v19 = vand.u32 4294901760, %v38993_v51 }
 0xd03   : > { %31277 = vmatprep.mubr.msk.f32.mxu0 %vm34727_vm5, %v41621_v39 }
 0xd04   : > { %v41340_v29 = vand.u32 4294901760, %v38941_v14 }
 0xd06   : > { %31278 = vmatmul.mubr.f32.vlgmr.msra.gmra.mrb[64].mxu0 %v17449_v21  ;;  %v38960_v21 = vld [vmem:[%s41252_s3 + $0xf0] sm:$0xff]  ;;  %v39007_v53 = vpack.c.bf16 %v41340_v29, %v41341_v36  ;;  %v39036_v36 = vpop.f32.mrb[64].mxu1 }
 0xd07   : > { %31280 = vmatprep.mubr.msk.f32.mxu0 %vm34727_vm5, %v41621_v39  ;;  %32401 = vmatpush3.bf16.msra.mxu0 %v34910_v16  ;;  %v41345_v12 = vand.u32 4294901760, %v38960_v21  ;;  %41917 = vst [vmem:[#allocation80_spill] sm:$0xff] %v39036_v36 }
 0xd08   : > { %32402 = vmatprep.subr.bf16.mxu0 %v41620_v62  ;;  %41916 = vst [vmem:[#allocation46_spill] sm:$0xff] %v39007_v53 }
 0xd09   : > { %v39013_v60 = vsub.f32 %v38960_v21, %v41345_v12 }
 0xd0a   : > { %31281 = vmatmul.mubr.f32.gmra.mrb[66].mxu0 %v17459_v41  ;;  %v38979_v41 = vld [vmem:[%s41252_s3 + $0x78] sm:$0xff] }
 0xd0b   : > { %31283 = vmatprep.mubr.msk.f32.mxu0 %vm34727_vm5, %v41621_v39  ;;  %32404 = vmatpush3.bf16.msra.mxu0 %v34931_v25  ;;  %v41343_v17 = vand.u32 4294901760, %v38979_v41 }
 0xd0c   : > { %32405 = vmatprep.subr.bf16.mxu0 %v41620_v62 }
 0xd0d   : > { %v39031_v29 = vsub.f32 %v38979_v41, %v41343_v17  ;;  %v39048_v17 = vld [vmem:[%s41252_s3] sm:$0xff] }
 0xd0e   : > { %31284 = vmatmul.mubr.f32.gmra.mrb[68].mxu0 %v38860_v13  ;;  %v41348_v13 = vand.u32 4294901760, %v38953_v15 }
 0xd0f   : > { %31294 = vmatprep.mubr.msk.f32.mxu0 %vm34727_vm5, %v41621_v39 }
 0xd12   : > { %31295 = vmatmul.mubr.f32.vlgmr.msra.gmra.mrb[64].mxu0 %v17450_v20  ;;  %v38974_v20 = vld [vmem:[%s41252_s3 + $0x70] sm:$0xff] }
 0xd13   : > { %31297 = vmatprep.mubr.msk.f32.mxu0 %vm34727_vm5, %v41621_v39  ;;  %32407 = vmatpush3.bf16.msra.mxu0 %v35031_v56  ;;  %v315_v56 = vld [vmem:[%s41252_s3 + $0xf8] sm:$0x3]  ;;  %v41342_v35 = vand.u32 4294901760, %v38974_v20 }
 0xd14   : > { %32408 = vmatprep.subr.bf16.mxu0 %v41620_v62 }
 0xd16   : > { %31298 = vmatmul.mubr.f32.gmra.mrb[66].mxu0 %v17460_v49  ;;  %v38988_v49 = vsub.f32 %v38923_v30, %v41338_v22 }
 0xd17   : > { %31300 = vmatprep.mubr.msk.f32.mxu0 %vm34727_vm5, %v41621_v39  ;;  %32410 = vmatpush3.bf16.msra.mxu0 %v35033_v57  ;;  %v38962_v57 = vsel %vm18647_vm8, %v315_v56, 0  ;;  %v18645_v56 = vsel %vm18643_vm11, %v18642_v40, 0  ;;  %v39026_v40 = vsub.f32 %v38974_v20, %v41342_v35  ;;  %v39043_v35 = vpack.c.bf16 %v41347_v45, %v41348_v13  ;;  %v39066_v45 = vld [vmem:[%s41252_s3 + $0x90] sm:$0xff]  ;;  %v39071_v13 = vld [vmem:[%s41252_s3 + $0x98] sm:$0xff] }
 0xd18   : > { %32411 = vmatprep.subr.bf16.mxu0 %v41620_v62  ;;  %v41351_v22 = vand.u32 4294901760, %v38988_v49  ;;  %v39061_v26 = vand.u32 4294901760, %v18645_v56  ;;  %vm18637_vm8 = vcmask 818176   ;;  %v41928_v52 = vand.u32 4294901760, %v39066_v45 }
 0xd19   : > { %41918 = vst [vmem:[#allocation85_spill] sm:$0xff] %v39043_v35  ;;  %v41929_v5 = vand.u32 4294901760, %v39071_v13 }
 0xd1a   : > { %31301 = vmatmul.mubr.f32.gmra.mrb[68].mxu0 %v17470_v59  ;;  %v41344_v59 = vand.u32 4294901760, %v38962_v57  ;;  %v39059_v12 = vpack.c.bf16 %v41350_v19, %v41351_v22  ;;  %41920 = vst [vmem:[#allocation48_spill] sm:$0xff] %v39061_v26  ;;  %v18514_v22 = vsel %vm18513_vm15, %v37986_v37, %v38229_v27  ;;  %v41923_v37 = vand.u32 4294901760, %v39031_v29 }
 0xd1b   : > { %31311 = vmatprep.mubr.msk.f32.mxu0 %vm34727_vm5, %v41621_v39  ;;  %v39112_v19 = vsub.f32 %v18645_v56, %v39061_v26  ;;  %v41925_v56 = vand.u32 4294901760, %v39048_v17  ;;  %v39141_v58 = vpack.c.bf16 %v41929_v5, %v41928_v52  ;;  %v39159_v5 = vld [vmem:[%s41252_s3 + $0xb0] sm:$0xff]  ;;  %v39164_v52 = vld [vmem:[%s41252_s3 + $0xb8] sm:$0xff] }
 0xd1c   : > { %v39018_v4 = vsub.f32 %v38962_v57, %v41344_v59  ;;  %v39053_v59 = vld [vmem:[%s41252_s3 + $0x8] sm:$0xff]  ;;  %41919 = vst [vmem:[#allocation50_spill] sm:$0xff] %v39059_v12 }
 0xd1d   : > { %41930 = vst [vmem:[#allocation89_spill] sm:$0xff] %v39141_v58 }
 0xd1e   : > { %31312 = vmatmul.mubr.f32.vlgmr.msra.gmra.mrb[64].mxu0 %v38825_v3 }
 0xd1f   : > { %31314 = vmatprep.mubr.msk.f32.mxu0 %vm34727_vm5, %v41621_v39  ;;  %32413 = vmatpush3.bf16.msra.mxu0 %v34910_v16  ;;  %v31231_v16 = vpop.f32.mrb[65].mxu1 }
 0xd20   : > { %32414 = vmatprep.subr.bf16.mxu0 %v41620_v62  ;;  %v41356_v16 = vand.u32 4294901760, %v39013_v60  ;;  %v41355_v62 = vand.u32 4294901760, %v39018_v4 }
 0xd22   : > { %31315 = vmatmul.mubr.f32.gmra.mrb[66].mxu0 %v38839_v47  ;;  %v39087_v7 = vpack.c.bf16 %v41355_v62, %v41356_v16  ;;  %v39103_v62 = vld [vmem:[%s41252_s3 + $0x18] sm:$0xff]  ;;  %v41922_v16 = vand.u32 4294901760, %v39026_v40 }
 0xd23   : > { %31317 = vmatprep.mubr.msk.f32.mxu0 %vm34727_vm5, %v41621_v39  ;;  %32416 = vmatpush3.bf16.msra.mxu0 %v34931_v25  ;;  %v39117_v25 = vld [vmem:[%s41252_s3 + $0xa0] sm:$0xff]  ;;  %v41366_v0 = vand.u32 4294901760, %v39103_v62 }
 0xd24   : > { %41921 = vst [vmem:[#allocation49_spill] sm:$0xff] %v39087_v7  ;;  %32442 = vmatprep.subr.bf16.mxu0 %v39043_v35  ;;  %v39109_v27 = vpack.c.bf16 %v41923_v37, %v41922_v16  ;;  %v18636_v16 = vsel %vm18635_vm13, %v18514_v22, %v38243_v34  ;;  %v41926_v37 = vand.u32 4294901760, %v39053_v59  ;;  %v41936_v34 = vand.u32 4294901760, %v39112_v19 }
 0xd25   : > { %v18638_v22 = vsel %vm18637_vm8, %v18636_v16, %v38214_v38  ;;  %v41932_v38 = vand.u32 4294901760, %v39117_v25  ;;  %v41959_v35 = vand.u32 4294901760, %v39066_v45  ;;  %v41979_v7 = vand.u32 4294901760, %v39148_v46 }
 0xd26   : > { %41924 = vst [vmem:[#allocation88_spill] sm:$0xff] %v39109_v27  ;;  %31318 = vmatmul.mubr.f32.gmra.mrb[68].mxu0 %v38849_v44  ;;  %v39133_v24 = vpack.c.bf16 %v41926_v37, %v41925_v56  ;;  %v39153_v56 = vld [vmem:[%s41252_s3 + $0x28] sm:$0xff]  ;;  %v39176_v37 = vpack.c.bf16 %v41366_v0, %v41367_v9  ;;  %v39192_v0 = vld [vmem:[%s41252_s3 + $0x30] sm:$0xff]  ;;  %v39197_v9 = vld [vmem:[%s41252_s3 + $0x38] sm:$0xff]  ;;  %v39199_v1 = vand.u32 4294901760, %v18638_v22 }
 0xd27   : > { %31328 = vmatprep.mubr.msk.f32.mxu0 %vm34727_vm5, %v41621_v39  ;;  %v41938_v36 = vand.u32 4294901760, %v39153_v56  ;;  %v39406_v12 = vsub.f32 %v39148_v46, %v41979_v7 }
 0xd28   : > { %41927 = vst [vmem:[#allocation55_spill] sm:$0xff] %v39133_v24  ;;  %41931 = vst [vmem:[#allocation57_spill] sm:$0xff] %v39176_v37  ;;  %v39256_v18 = vsub.f32 %v18638_v22, %v39199_v1  ;;  %v39271_v22 = vsub.f32 %v38969_v42, %v41945_v48  ;;  %v39290_v48 = vpop.f32.mrb[66].mxu1 }
 0xd29   : > { %41935 = vst [vmem:[#allocation31_spill] sm:$0xff] %v39199_v1  ;;  %41951 = vst [vmem:[#allocation81_spill] sm:$0xff] %v39290_v48  ;;  %v41965_v48 = vand.u32 4294901760, %v38907_v54 }
 0xd2a   : > { %31329 = vmatmul.mubr.f32.vlgmr.msra.gmra.mrb[64].mxu0 %v38825_v3  ;;  %v41933_v3 = vand.u32 4294901760, %v39122_v32  ;;  %41943 = vst [vmem:[#allocation30_spill] sm:$0xff] %v39256_v18 }
 0xd2b   : > { %32444 = vmatpush3.bf16.msra.mxu0 %v39133_v24  ;;  %31331 = vmatprep.mubr.msk.f32.mxu0 %vm34727_vm5, %v41621_v39  ;;  %v41949_v24 = vand.u32 4294901760, %v39048_v17 }
 0xd2c   : > { %32446 = vmatprep.subr.bf16.mxu0 %v39141_v58  ;;  %v39185_v16 = vpack.c.bf16 %v41933_v3, %v41932_v38  ;;  %v18750_v38 = vsub.f32 %v39112_v19, %v41936_v34  ;;  %v39207_v3 = vld [vmem:[%s41252_s3 + $0xc0] sm:$0xff]  ;;  %v39223_v34 = vld [vmem:[%s41252_s3 + $0x48] sm:$0xff] }
 0xd2d   : > { %v41385_v10 = vand.u32 4294901760, %v39207_v3  ;;  %v39283_v58 = vsub.f32 %v39048_v17, %v41949_v24  ;;  %v39303_v24 = vld [vmem:[%s41252_s3 + $0xe0] sm:$0xff]  ;;  %v41954_v17 = vand.u32 4294901760, %v39223_v34 }
 0xd2e   : > { %41934 = vst [vmem:[#allocation58_spill] sm:$0xff] %v39185_v16  ;;  %31332 = vmatmul.mubr.f32.gmra.mrb[66].mxu0 %v38839_v47  ;;  %v39232_v47 = vpack.c.bf16 %v41938_v36, %v41937_v61  ;;  %v41941_v61 = vand.u32 4294901760, %v39164_v52  ;;  %v18751_v33 = vand.u32 4294901760, %v18750_v38  ;;  %v41946_v38 = vand.u32 4294901760, %v39192_v0 }
 0xd2f   : > { %32448 = vmatpush3.bf16.msra.mxu0 %v39176_v37  ;;  %31334 = vmatprep.mubr.msk.f32.mxu0 %vm34727_vm5, %v41621_v39  ;;  %v41940_v39 = vand.u32 4294901760, %v39159_v5  ;;  %v41392_v37 = vand.u32 4294901760, %v39218_v8  ;;  %v41971_v54 = vand.u32 4294901760, %v39283_v58 }
 0xd30   : > { %41939 = vst [vmem:[#allocation71_spill] sm:$0xff] %v39232_v47  ;;  %32450 = vmatprep.subr.bf16.mxu0 %v39185_v16 }
 0xd31   : > { %v39251_v36 = vpack.c.bf16 %v41941_v61, %v41940_v39  ;;  %v41944_v39 = vand.u32 4294901760, %v38953_v15 }
 0xd32   : > { %31335 = vmatmul.mubr.f32.gmra.mrb[68].mxu0 %v38849_v44  ;;  %v41947_v44 = vand.u32 4294901760, %v39197_v9 }
 0xd33   : > { %41942 = vst [vmem:[#allocation73_spill] sm:$0xff] %v39251_v36  ;;  %v39266_v61 = vsub.f32 %v38953_v15, %v41944_v39  ;;  %32452 = vmatpush3.bf16.msra.mxu0 %v39232_v47  ;;  %18752 = vmatprep.mubr.f32.mxu0 %v18751_v33  ;;  %v41950_v15 = vand.u32 4294901760, %v39053_v59  ;;  %v41952_v33 = vand.u32 4294901760, %v39212_v50 }
 0xd34   : > { %v39278_v16 = vpack.c.bf16 %v41947_v44, %v41946_v38  ;;  %32454 = vmatprep.subr.bf16.mxu0 %v39251_v36  ;;  %v31234_v38 = vpop.f32.mrb[67].mxu1  ;;  %v41961_v36 = vand.u32 4294901760, %v39098_v63  ;;  %v41962_v44 = vand.u32 4294901760, %v39103_v62 }
 0xd35   : > { %v39288_v39 = vsub.f32 %v39053_v59, %v41950_v15  ;;  %v39297_v42 = vpack.c.bf16 %v41952_v33, %v41385_v10  ;;  %v39308_v59 = vld [vmem:[%s41252_s3 + $0xe8] sm:$0xff]  ;;  %v39314_v15 = vpack.c.bf16 %v41954_v17, %v41392_v37  ;;  %v41956_v33 = vand.u32 4294901760, %v39239_v6 }
 0xd36   : > { %41948 = vst [vmem:[#allocation47_spill] sm:$0xff] %v39278_v16  ;;  %v41957_v38 = vand.u32 4294901760, %v39244_v23  ;;  %v39330_v17 = vsub.f32 %v39066_v45, %v41959_v35  ;;  %v41960_v37 = vand.u32 4294901760, %v39071_v13  ;;  %v39343_v47 = vsub.f32 %v39098_v63, %v41961_v36 }
 0xd37   : > { %41953 = vst [vmem:[#allocation82_spill] sm:$0xff] %v39297_v42  ;;  %41955 = vst [vmem:[#allocation86_spill] sm:$0xff] %v39314_v15  ;;  %32456 = vmatpush3.bf16.msra.mxu0 %v39278_v16  ;;  %v39348_v45 = vsub.f32 %v39103_v62, %v41962_v44  ;;  %v41963_v35 = vand.u32 4294901760, %v39117_v25  ;;  %v41966_v63 = vand.u32 4294901760, %v38912_v55  ;;  %v41969_v44 = vand.u32 4294901760, %v39266_v61 }
 0xd38   : > { %v39320_v10 = vpack.c.bf16 %v41957_v38, %v41956_v33  ;;  %v39335_v33 = vsub.f32 %v39071_v13, %v41960_v37  ;;  %32458 = vmatprep.subr.bf16.mxu0 %v39297_v42  ;;  %v41964_v37 = vand.u32 4294901760, %v39122_v32  ;;  %v41968_v42 = vand.u32 4294901760, %v39256_v18 }
 0xd39   : > { %v39353_v13 = vsub.f32 %v39117_v25, %v41963_v35  ;;  %v39364_v36 = vpack.c.bf16 %v41966_v63, %v41965_v48  ;;  %v18879_v25 = vsub.f32 %v39266_v61, %v41969_v44  ;;  %v41970_v35 = vand.u32 4294901760, %v39271_v22 }
 0xd3a   : > { %41958 = vst [vmem:[#allocation51_spill] sm:$0xff] %v39320_v10  ;;  %v39358_v38 = vsub.f32 %v39122_v32, %v41964_v37  ;;  %v39369_v62 = vsub.f32 %v39256_v18, %v41968_v42  ;;  %v18767_v55 = vsub.f32 %v39283_v58, %v41971_v54  ;;  %v41972_v48 = vand.u32 4294901760, %v39288_v39 }
 0xd3b   : > { %41967 = vst [vmem:[#allocation83_spill] sm:$0xff] %v39364_v36  ;;  %v18886_v32 = vsub.f32 %v39271_v22, %v41970_v35  ;;  %32460 = vmatpush3.bf16.msra.mxu0 %v39314_v15  ;;  %v41973_v44 = vand.u32 4294901760, %v39303_v24  ;;  %v41974_v35 = vand.u32 4294901760, %v39308_v59  ;;  %v41976_v15 = vand.u32 4294901760, %v38923_v30 }
 0xd3c   : > { %v18774_v37 = vsub.f32 %v39288_v39, %v41972_v48  ;;  %32462 = vmatprep.subr.bf16.mxu0 %v39320_v10  ;;  %v41977_v54 = vand.u32 4294901760, %v38928_v31  ;;  %v41404_v48 = vand.u32 4294901760, %v39343_v47  ;;  %v18880_v31 = vand.u32 4294901760, %v18879_v25 }
 0xd3d   : > { %v39391_v16 = vpack.c.bf16 %v41974_v35, %v41973_v44  ;;  %v41980_v44 = vand.u32 4294901760, %v39153_v56  ;;  %v41981_v35 = vand.u32 4294901760, %v39159_v5  ;;  %v41982_v63 = vand.u32 4294901760, %v39164_v52 }
 0xd3e   : > { %v39397_v27 = vpack.c.bf16 %v41977_v54, %v41976_v15  ;;  %v18887_v15 = vand.u32 4294901760, %v18886_v32  ;;  %v18768_v46 = vand.u32 4294901760, %v18767_v55  ;;  %v18775_v7 = vand.u32 4294901760, %v18774_v37 }
 0xd3f   : > { %41975 = vst [vmem:[#allocation52_spill] sm:$0xff] %v39391_v16  ;;  %v39411_v30 = vsub.f32 %v39153_v56, %v41980_v44  ;;  %v39416_v54 = vsub.f32 %v39159_v5, %v41981_v35  ;;  %v39421_v10 = vsub.f32 %v39164_v52, %v41982_v63  ;;  %32464 = vmatpush3.bf16.msra.mxu0 %v39364_v36  ;;  %v41983_v42 = vand.u32 4294901760, %v39330_v17 }
 0xd40   : > { %41978 = vst [vmem:[#allocation56_spill] sm:$0xff] %v39397_v27  ;;  %v41984_v25 = vand.u32 4294901760, %v39335_v33  ;;  %32466 = vmatprep.subr.bf16.mxu0 %v39391_v16  ;;  %v41985_v5 = vand.u32 4294901760, %v38960_v21  ;;  %v41986_v44 = vand.u32 4294901760, %v38962_v57  ;;  %v41988_v63 = vand.u32 4294901760, %v38974_v20 }
 0xd41   : > { %v18893_v56 = vsub.f32 %v39330_v17, %v41983_v42  ;;  %v41989_v55 = vand.u32 4294901760, %v38979_v41  ;;  %v18781_v42 = vsub.f32 %v39343_v47, %v41404_v48  ;;  %v41991_v35 = vand.u32 4294901760, %v39348_v45 }
 0xd42   : > { %v18900_v32 = vsub.f32 %v39335_v33, %v41984_v25  ;;  %v39435_v52 = vpack.c.bf16 %v41986_v44, %v41985_v5  ;;  %v41992_v21 = vand.u32 4294901760, %v39353_v13  ;;  %v41993_v5 = vand.u32 4294901760, %v39358_v38 }
 0xd43   : > { %v39441_v37 = vpack.c.bf16 %v41989_v55, %v41988_v63  ;;  %v18788_v25 = vsub.f32 %v39348_v45, %v41991_v35  ;;  %v41994_v48 = vand.u32 4294901760, %v39192_v0  ;;  %v41995_v16 = vand.u32 4294901760, %v39197_v9  ;;  %32468 = vmatpush3.bf16.msra.mxu0 %v39397_v27 }
 0xd44   : > { %41987 = vst [vmem:[#allocation84_spill] sm:$0xff] %v39435_v52  ;;  %v18907_v57 = vsub.f32 %v39353_v13, %v41992_v21  ;;  %v18914_v20 = vsub.f32 %v39358_v38, %v41993_v5  ;;  %v39470_v5 = vpack.c.bf16 %v18887_v15, %v18880_v31  ;;  %v39472_v41 = vpack.c.bf16 %v18775_v7, %v18768_v46 }
 0xd45   : > { %41990 = vst [vmem:[#allocation53_spill] sm:$0xff] %v39441_v37  ;;  %v39462_v35 = vsub.f32 %v39192_v0, %v41994_v48  ;;  %v39467_v21 = vsub.f32 %v39197_v9, %v41995_v16  ;;  %v18894_v44 = vand.u32 4294901760, %v18893_v56  ;;  %v18901_v63 = vand.u32 4294901760, %v18900_v32  ;;  %32470 = vmatprep.subr.bf16.mxu0 %v39435_v52 }
 0xd46   : > { %41996 = vst [vmem:[#allocation54_spill] sm:$0xff] %v39470_v5  ;;  %41997 = vst [vmem:[#allocation59_spill] sm:$0xff] %v39472_v41  ;;  %v18782_v55 = vand.u32 4294901760, %v18781_v42  ;;  %v18789_v36 = vand.u32 4294901760, %v18788_v25  ;;  %v41998_v0 = vand.u32 4294901760, %v39207_v3  ;;  %v41999_v9 = vand.u32 4294901760, %v39212_v50 }
 0xd47   : > { %v18908_v31 = vand.u32 4294901760, %v18907_v57  ;;  %v18915_v15 = vand.u32 4294901760, %v18914_v20  ;;  %v42000_v46 = vand.u32 4294901760, %v39406_v12  ;;  %v42001_v56 = vand.u32 4294901760, %v39411_v30  ;;  %32472 = vmatpush3.bf16.msra.mxu0 %v39441_v37 }
 0xd48   : > { %v39478_v48 = vsub.f32 %v39207_v3, %v41998_v0  ;;  %v39483_v16 = vsub.f32 %v39212_v50, %v41999_v9  ;;  %v42002_v42 = vand.u32 4294901760, %v39416_v54  ;;  %v42003_v25 = vand.u32 4294901760, %v39421_v10  ;;  %32474 = vmatprep.subr.bf16.mxu0 %v39470_v5 }
 0xd49   : > { %v18795_v7 = vsub.f32 %v39406_v12, %v42000_v46  ;;  %v18802_v32 = vsub.f32 %v39411_v30, %v42001_v56  ;;  %v42004_v20 = vand.u32 4294901760, %v39218_v8  ;;  %v42005_v46 = vand.u32 4294901760, %v39223_v34 }
 0xd4a   : > { %v18921_v3 = vsub.f32 %v39416_v54, %v42002_v42  ;;  %v18928_v0 = vsub.f32 %v39421_v10, %v42003_v25  ;;  %v42006_v42 = vand.u32 4294901760, %v39239_v6  ;;  %v42007_v50 = vand.u32 4294901760, %v39244_v23 }
 0xd4b   : > { %v39503_v9 = vsub.f32 %v39218_v8, %v42004_v20  ;;  %v39508_v56 = vsub.f32 %v39223_v34, %v42005_v46  ;;  %v18757_v37 = vand.u32 4294901760, %v39369_v62  ;;  %v39522_v8 = vpack.c.bf16 %v18901_v63, %v18894_v44 }
 0xd4c   : > { %v39513_v25 = vsub.f32 %v39239_v6, %v42006_v42  ;;  %v39518_v57 = vsub.f32 %v39244_v23, %v42007_v50  ;;  %v41415_v20 = vand.u32 4294901760, %v39478_v48  ;;  %v41416_v34 = vand.u32 4294901760, %v39483_v16 }
 0xd4d   : > { %42008 = vst [vmem:[#allocation61_spill] sm:$0xff] %v39522_v8  ;;  %v39526_v46 = vpack.c.bf16 %v18789_v36, %v18782_v55  ;;  %v39528_v52 = vpack.c.bf16 %v18915_v15, %v18908_v31  ;;  %v18796_v6 = vand.u32 4294901760, %v18795_v7  ;;  %v18803_v42 = vand.u32 4294901760, %v18802_v32  ;;  %18758 = vmatmul.mubr.f32.vlgmr.msra.gmra.mrb[70].mxu0 %v18757_v37 }
 0xd4e   : > { %v18922_v27 = vand.u32 4294901760, %v18921_v3  ;;  %v18929_v23 = vand.u32 4294901760, %v18928_v0  ;;  %v42011_v50 = vand.u32 4294901760, %v39462_v35  ;;  %v42012_v44 = vand.u32 4294901760, %v39467_v21  ;;  %32476 = vmatpush3.bf16.msra.mxu0 %v39472_v41  ;;  %18988 = vmatprep.mubr.f32.mxu0 %v39061_v26 }
 0xd4f   : > { %42009 = vst [vmem:[#allocation62_spill] sm:$0xff] %v39526_v46  ;;  %42010 = vst [vmem:[#allocation64_spill] sm:$0xff] %v39528_v52  ;;  %v41418_v36 = vand.u32 4294901760, %v39503_v9  ;;  %v41417_v55 = vand.u32 4294901760, %v39508_v56  ;;  %32478 = vmatprep.subr.bf16.mxu0 %v39522_v8  ;;  %v18935_v15 = vsub.f32 %v39478_v48, %v41415_v20  ;;  %v18942_v7 = vsub.f32 %v39483_v16, %v41416_v34 }
 0xd50   : > { %v18809_v62 = vsub.f32 %v39462_v35, %v42011_v50  ;;  %v18816_v63 = vsub.f32 %v39467_v21, %v42012_v44  ;;  %v42013_v32 = vand.u32 4294901760, %v39303_v24  ;;  %v42014_v0 = vand.u32 4294901760, %v39308_v59 }
 0xd51   : > { %v39559_v44 = vpack.c.bf16 %v18803_v42, %v18796_v6  ;;  %v39561_v31 = vpack.c.bf16 %v18929_v23, %v18922_v27  ;;  %v18823_v34 = vsub.f32 %v39503_v9, %v41418_v36  ;;  %v42018_v6 = vand.u32 4294901760, %v39518_v57 }
 0xd52   : > { %v39552_v3 = vsub.f32 %v39303_v24, %v42013_v32  ;;  %v39557_v50 = vsub.f32 %v39308_v59, %v42014_v0  ;;  %v18810_v37 = vand.u32 4294901760, %v18809_v62  ;;  %v18817_v20 = vand.u32 4294901760, %v18816_v63  ;;  %32480 = vmatpush3.bf16.msra.mxu0 %v39526_v46 }
 0xd53   : > { %42015 = vst [vmem:[#allocation63_spill] sm:$0xff] %v39559_v44  ;;  %42016 = vst [vmem:[#allocation66_spill] sm:$0xff] %v39561_v31  ;;  %v18830_v24 = vsub.f32 %v39508_v56, %v41417_v55  ;;  %v42017_v32 = vand.u32 4294901760, %v39513_v25  ;;  %v18956_v27 = vsub.f32 %v39518_v57, %v42018_v6  ;;  %32482 = vmatprep.subr.bf16.mxu0 %v39528_v52  ;;  %v18936_v42 = vand.u32 4294901760, %v18935_v15 }
 0xd54   : > { %v18943_v23 = vand.u32 4294901760, %v18942_v7  ;;  %v41425_v63 = vand.u32 4294901760, %v39557_v50  ;;  %v39579_v0 = vpack.c.bf16 %v18817_v20, %v18810_v37  ;;  %v42020_v55 = vand.u32 4294901760, %v38936_v11 }
 0xd55   : > { %v18949_v59 = vsub.f32 %v39513_v25, %v42017_v32  ;;  %v42021_v32 = vand.u32 4294901760, %v38941_v14  ;;  %v18824_v6 = vand.u32 4294901760, %v18823_v34  ;;  %v18831_v52 = vand.u32 4294901760, %v18830_v24 }
 0xd56   : > { %42019 = vst [vmem:[#allocation72_spill] sm:$0xff] %v39579_v0  ;;  %v18837_v36 = vsub.f32 %v38936_v11, %v42020_v55  ;;  %32484 = vmatpush3.bf16.msra.mxu0 %v39559_v44  ;;  %v18957_v7 = vand.u32 4294901760, %v18956_v27  ;;  %v39589_v62 = vpack.c.bf16 %v18943_v23, %v18936_v42  ;;  %v42023_v20 = vand.u32 4294901760, %v39552_v3 }
 0xd57   : > { %v18844_v46 = vsub.f32 %v38941_v14, %v42021_v32  ;;  %v18950_v15 = vand.u32 4294901760, %v18949_v59  ;;  %32486 = vmatprep.subr.bf16.mxu0 %v39561_v31  ;;  %v18970_v55 = vsub.f32 %v39557_v50, %v41425_v63  ;;  %v39598_v34 = vpack.c.bf16 %v18831_v52, %v18824_v6  ;;  %v42097_v31 = vld [vmem:[#allocation83_spill] sm:$0xff] }
 0xd58   : > { %42022 = vst [vmem:[#allocation67_spill] sm:$0xff] %v39589_v62  ;;  %v18963_v37 = vsub.f32 %v39552_v3, %v42023_v20  ;;  %v18838_v8 = vand.u32 4294901760, %v18837_v36  ;;  %v42026_v59 = vand.u32 4294901760, %v38988_v49  ;;  %v42027_v42 = vand.u32 4294901760, %v38993_v51 }
 0xd59   : > { %v18845_v32 = vand.u32 4294901760, %v18844_v46  ;;  %42024 = vst [vmem:[#allocation75_spill] sm:$0xff] %v39598_v34  ;;  %v39600_v24 = vpack.c.bf16 %v18957_v7, %v18950_v15  ;;  %v18971_v63 = vand.u32 4294901760, %v18970_v55  ;;  %v42028_v46 = vand.u32 4294901760, %v39013_v60 }
 0xd5a   : > { %32488 = vmatpush3.bf16.msra.mxu0 %v39579_v0  ;;  %v18851_v27 = vsub.f32 %v38988_v49, %v42026_v59  ;;  %v18858_v23 = vsub.f32 %v38993_v51, %v42027_v42  ;;  %v18964_v20 = vand.u32 4294901760, %v18963_v37  ;;  %v42029_v52 = vand.u32 4294901760, %v39018_v4 }
 0xd5b   : > { %42025 = vst [vmem:[#allocation68_spill] sm:$0xff] %v39600_v24  ;;  %32490 = vmatprep.subr.bf16.mxu0 %v39589_v62  ;;  %v18977_v36 = vsub.f32 %v39013_v60, %v42028_v46  ;;  %v39615_v15 = vpack.c.bf16 %v18845_v32, %v18838_v8  ;;  %v42031_v42 = vand.u32 4294901760, %v39026_v40  ;;  %v42032_v37 = vand.u32 4294901760, %v39031_v29 }
 0xd5c   : > { %v18984_v6 = vsub.f32 %v39018_v4, %v42029_v52  ;;  %v18852_v7 = vand.u32 4294901760, %v18851_v27  ;;  %v18859_v59 = vand.u32 4294901760, %v18858_v23  ;;  %v39625_v46 = vpack.c.bf16 %v18971_v63, %v18964_v20 }
 0xd5d   : > { %42030 = vst [vmem:[#allocation87_spill] sm:$0xff] %v39615_v15  ;;  %v18865_v62 = vsub.f32 %v39026_v40, %v42031_v42  ;;  %v18872_v55 = vsub.f32 %v39031_v29, %v42032_v37  ;;  %v18978_v0 = vand.u32 4294901760, %v18977_v36  ;;  %v39639_v63 = vpack.c.bf16 %v39271_v22, %v39266_v61 }
 0xd5e   : > { %32492 = vmatpush3.bf16.msra.mxu0 %v39598_v34  ;;  %42033 = vst [vmem:[#allocation90_spill] sm:$0xff] %v39625_v46  ;;  %v18985_v52 = vand.u32 4294901760, %v18984_v6  ;;  %v39628_v8 = vpack.c.bf16 %v18859_v59, %v18852_v7  ;;  %v39656_v20 = vpack.c.bf16 %v39348_v45, %v39343_v47  ;;  %v39661_v36 = vpack.c.bf16 %v39358_v38, %v39353_v13 }
 0xd5f   : > { %32494 = vmatprep.subr.bf16.mxu0 %v39600_v24  ;;  %v18866_v32 = vand.u32 4294901760, %v18865_v62  ;;  %v18873_v27 = vand.u32 4294901760, %v18872_v55  ;;  %v39644_v62 = vpack.c.bf16 %v39288_v39, %v39283_v58  ;;  %v39666_v6 = vpack.c.bf16 %v39411_v30, %v39406_v12 }
 0xd60   : > { %42034 = vst [vmem:[#allocation60_spill] sm:$0xff] %v39628_v8  ;;  %v39631_v23 = vpack.c.bf16 %v18985_v52, %v18978_v0  ;;  %v39649_v0 = vpack.c.bf16 %v39335_v33, %v39330_v17  ;;  %v39671_v7 = vpack.c.bf16 %v39421_v10, %v39416_v54  ;;  %v39676_v59 = vpack.c.bf16 %v39467_v21, %v39462_v35 }
 0xd61   : > { %v39634_v42 = vpack.c.bf16 %v18873_v27, %v18866_v32  ;;  %v39681_v37 = vpack.c.bf16 %v39483_v16, %v39478_v48  ;;  %v39686_v55 = vpack.c.bf16 %v39508_v56, %v39503_v9  ;;  %v39691_v52 = vpack.c.bf16 %v39518_v57, %v39513_v25 }
 0xd62   : > { %32496 = vmatpush3.bf16.msra.mxu0 %v39615_v15  ;;  %42035 = vst [vmem:[#allocation65_spill] sm:$0xff] %v39631_v23  ;;  %v39696_v32 = vpack.c.bf16 %v38941_v14, %v38936_v11  ;;  %v39701_v27 = vpack.c.bf16 %v39557_v50, %v39552_v3  ;;  %v39716_v11 = vpack.c.bf16 %v39031_v29, %v39026_v40  ;;  %v42044_v14 = vand.u32 4294901760, %v39266_v61  ;;  %v42096_v15 = vld [vmem:[#allocation51_spill] sm:$0xff] }
 0xd63   : > { %32498 = vmatprep.subr.bf16.mxu0 %v39625_v46  ;;  %42036 = vst [vmem:[#allocation22_spill] sm:$0xff] %v39634_v42  ;;  %42037 = vst [vmem:[#allocation24_spill] sm:$0xff] %v39686_v55  ;;  %v42050_v29 = vand.u32 4294901760, %v39330_v17  ;;  %v42051_v40 = vand.u32 4294901760, %v39335_v33  ;;  %v42054_v61 = vand.u32 4294901760, %v39348_v45  ;;  %v42057_v17 = vand.u32 4294901760, %v39358_v38 }
 0xd64   : > { %42038 = vst [vmem:[#allocation98_spill] sm:$0xff] %v39691_v52  ;;  %42039 = vst [vmem:[#allocation74_spill] sm:$0xff] %v39696_v32  ;;  %v42063_v45 = vand.u32 4294901760, %v39421_v10  ;;  %v19554_v38 = vsel %vm18639_vm3, %v38528_v28, %v38522_v43  ;;  %v42068_v10 = vand.u32 4294901760, %v39478_v48  ;;  %v42075_v48 = vand.u32 4294901760, %v39518_v57 }
 0xd65   : > { %42040 = vst [vmem:[#allocation21_spill] sm:$0xff] %v39701_v27  ;;  %42043 = vst [vmem:[#allocation95_spill] sm:$0xff] %v39716_v11  ;;  %v39737_v46 = vpack.c.bf16 %v42051_v40, %v42050_v29 }
 0xd66   : > { %32500 = vmatpush3.bf16.msra.mxu0 %v39628_v8  ;;  %v42045_v8 = vand.u32 4294901760, %v39271_v22 }
 0xd67   : > { %32502 = vmatprep.subr.bf16.mxu0 %v39631_v23  ;;  %v39711_v23 = vpack.c.bf16 %v39018_v4, %v39013_v60  ;;  %v42048_v4 = vand.u32 4294901760, %v39288_v39  ;;  %42052 = vst [vmem:[#allocation104_spill] sm:$0xff] %v39737_v46  ;;  %v42056_v39 = vand.u32 4294901760, %v39353_v13  ;;  %v19555_v13 = vsel %vm18641_vm10, %v19554_v38, %v38542_v2  ;;  %v42085_v38 = vld [vmem:[#allocation89_spill] sm:$0xff] }
 0xd68   : > { %v19557_v43 = vsel %vm18643_vm11, %v19555_v13, 0  ;;  %v42071_v2 = vand.u32 4294901760, %v39503_v9  ;;  %v42077_v9 = vand.u32 4294901760, %v39552_v3  ;;  %v42086_v13 = vld [vmem:[#allocation57_spill] sm:$0xff] }
 0xd69   : > { %42042 = vst [vmem:[#allocation99_spill] sm:$0xff] %v39711_v23  ;;  %v39753_v33 = vpack.c.bf16 %v42057_v17, %v42056_v39 }
 0xd6a   : > { %32504 = vmatpush3.bf16.msra.mxu0 %v39634_v42  ;;  %v39706_v42 = vpack.c.bf16 %v38993_v51, %v38988_v49  ;;  %v39723_v49 = vpack.c.bf16 %v42045_v8, %v42044_v14  ;;  %v42047_v51 = vand.u32 4294901760, %v39283_v58  ;;  %v42053_v58 = vand.u32 4294901760, %v39343_v47 }
 0xd6b   : > { %32506 = vmatprep.subr.bf16.mxu0 %v39639_v63  ;;  %42058 = vst [vmem:[#allocation93_spill] sm:$0xff] %v39753_v33  ;;  %v42059_v8 = vand.u32 4294901760, %v39406_v12  ;;  %v42060_v14 = vand.u32 4294901760, %v39411_v30  ;;  %v42062_v47 = vand.u32 4294901760, %v39416_v54  ;;  %v42065_v12 = vand.u32 4294901760, %v39462_v35 }
 0xd6c   : > { %42041 = vst [vmem:[#allocation28_spill] sm:$0xff] %v39706_v42  ;;  %42046 = vst [vmem:[#allocation101_spill] sm:$0xff] %v39723_v49  ;;  %v39730_v60 = vpack.c.bf16 %v42048_v4, %v42047_v51  ;;  %v39746_v22 = vpack.c.bf16 %v42054_v61, %v42053_v58  ;;  %v42066_v30 = vand.u32 4294901760, %v39467_v21  ;;  %v42069_v54 = vand.u32 4294901760, %v39483_v16 }
 0xd6d   : > { %18990 = vmatmul.mubr.f32.vlgmr.msra.gmra.mrb[72].mxu0 %v39199_v1  ;;  %v39760_v51 = vpack.c.bf16 %v42060_v14, %v42059_v8  ;;  %v39767_v4 = vpack.c.bf16 %v42063_v45, %v42062_v47  ;;  %v42072_v35 = vand.u32 4294901760, %v39508_v56  ;;  %v42074_v21 = vand.u32 4294901760, %v39513_v25  ;;  %v42080_v25 = vld [vmem:[#allocation50_spill] sm:$0xff]  ;;  %v42081_v8 = vld [vmem:[#allocation49_spill] sm:$0xff]  ;;  %v42084_v45 = vld [vmem:[#allocation55_spill] sm:$0xff] }
 0xd6e   : > { %32508 = vmatpush3.bf16.msra.mxu0 %v39644_v62  ;;  %19125 = vmatprep.mubr.f32.mxu0 %v39112_v19  ;;  %42049 = vst [vmem:[#allocation103_spill] sm:$0xff] %v39730_v60  ;;  %42055 = vst [vmem:[#allocation91_spill] sm:$0xff] %v39746_v22  ;;  %v39779_v29 = vpack.c.bf16 %v42066_v30, %v42065_v12  ;;  %v39786_v40 = vpack.c.bf16 %v42069_v54, %v42068_v10  ;;  %v39803_v16 = vand.u32 4294901760, %v19557_v43  ;;  %v42083_v14 = vld [vmem:[#allocation85_spill] sm:$0xff]  ;;  %v42087_v12 = vld [vmem:[#allocation58_spill] sm:$0xff] }
 0xd6f   : > { %32510 = vmatprep.subr.bf16.mxu0 %v39649_v0  ;;  %42061 = vst [vmem:[#allocation94_spill] sm:$0xff] %v39760_v51  ;;  %42064 = vst [vmem:[#allocation25_spill] sm:$0xff] %v39767_v4  ;;  %v39794_v58 = vpack.c.bf16 %v42072_v35, %v42071_v2  ;;  %v39801_v61 = vpack.c.bf16 %v42075_v48, %v42074_v21  ;;  %v42078_v56 = vand.u32 4294901760, %v39557_v50  ;;  %v42082_v50 = vld [vmem:[#allocation88_spill] sm:$0xff]  ;;  %v42088_v30 = vld [vmem:[#allocation42_spill] sm:$0xff] }
 0xd70   : > { %42067 = vst [vmem:[#allocation96_spill] sm:$0xff] %v39779_v29  ;;  %42070 = vst [vmem:[#allocation100_spill] sm:$0xff] %v39786_v40  ;;  %v39814_v17 = vsub.f32 %v19557_v43, %v39803_v16  ;;  %v42089_v10 = vld [vmem:[#allocation76_spill] sm:$0xff]  ;;  %v42090_v43 = vld [vmem:[#allocation71_spill] sm:$0xff] }
 0xd71   : > { %42073 = vst [vmem:[#allocation102_spill] sm:$0xff] %v39794_v58  ;;  %42076 = vst [vmem:[#allocation27_spill] sm:$0xff] %v39801_v61  ;;  %v39811_v39 = vpack.c.bf16 %v42078_v56, %v42077_v9  ;;  %v19552_v54 = vsel %vm18635_vm13, %v42089_v10, %v42088_v30  ;;  %v42091_v35 = vld [vmem:[#allocation73_spill] sm:$0xff]  ;;  %v42092_v48 = vld [vmem:[#allocation47_spill] sm:$0xff] }
 0xd72   : > { %32512 = vmatpush3.bf16.msra.mxu0 %v39656_v20  ;;  %v41438_v57 = vand.u32 4294901760, %v39814_v17  ;;  %v19553_v2 = vsel %vm18637_vm8, %v19552_v54, %v38528_v28  ;;  %v42093_v9 = vld [vmem:[#allocation82_spill] sm:$0xff] }
 0xd73   : > { %32514 = vmatprep.subr.bf16.mxu0 %v39661_v36  ;;  %42079 = vst [vmem:[#allocation106_spill] sm:$0xff] %v39811_v39  ;;  %v39838_v21 = vand.u32 4294901760, %v19553_v2  ;;  %v42095_v28 = vld [vmem:[#allocation86_spill] sm:$0xff] }
 0xd74   : > { %v19658_v3 = vsub.f32 %v39814_v17, %v41438_v57 }
 0xd75   : > { %v39849_v10 = vsub.f32 %v19553_v2, %v39838_v21 }
 0xd76   : > { %32516 = vmatpush3.bf16.msra.mxu0 %v39666_v6  ;;  %v19659_v47 = vand.u32 4294901760, %v19658_v3  ;;  %v39845_v3 = vld [vmem:[%s41251_s2] ss:$0 sm:$0xff] }
 0xd77   : > { %32518 = vmatprep.subr.bf16.mxu0 %v39671_v7  ;;  %42094 = vst [vmem:[#allocation92_spill] sm:$0xff] %v39845_v3 }
 0xd7a   : > { %32520 = vmatpush3.bf16.msra.mxu0 %v39676_v59 }
 0xd7b   : > { %32522 = vmatprep.subr.bf16.mxu0 %v39681_v37 }
 0xd7e   : > { %32524 = vmatpush3.bf16.msra.mxu0 %v39686_v55 }
 0xd7f   : > { %32526 = vmatprep.subr.bf16.mxu0 %v39691_v52 }
 0xd82   : > { %32528 = vmatpush3.bf16.msra.mxu0 %v39696_v32 }
 0xd83   : > { %32530 = vmatprep.subr.bf16.mxu0 %v39701_v27 }
 0xd86   : > { %32532 = vmatpush3.bf16.msra.mxu0 %v39706_v42 }
 0xd87   : > { %32534 = vmatprep.subr.bf16.mxu0 %v39711_v23 }
 0xd8a   : > { %32536 = vmatpush3.bf16.msra.mxu0 %v39716_v11 }
 0xd8b   : > { %32570 = vmatprep.subr.bf16.mxu0 %v39723_v49 }
 0xd8d   : > { %19128 = vmatmul.mubr.f32.vlgmr.msra.gmra.mrb[74].mxu0 %v39256_v18  ;;  %v42102_v18 = vld [vmem:[#allocation53_spill] sm:$0xff] }
 0xd8e   : > { %32572 = vmatpush3.bf16.msra.mxu0 %v39730_v60  ;;  %19402 = vmatprep.mubr.f32.mxu0 %v39061_v26 }
 0xd8f   : > { %32574 = vmatprep.subr.bf16.mxu0 %v39737_v46 }
 0xd92   : > { %32576 = vmatpush3.bf16.msra.mxu0 %v39746_v22 }
 0xd93   : > { %32578 = vmatprep.subr.bf16.mxu0 %v39753_v33 }
 0xd96   : > { %32580 = vmatpush3.bf16.msra.mxu0 %v39760_v51 }
 0xd97   : > { %32582 = vmatprep.subr.bf16.mxu0 %v39767_v4 }
 0xd9a   : > { %32584 = vmatpush3.bf16.msra.mxu0 %v39779_v29 }
 0xd9b   : > { %32586 = vmatprep.subr.bf16.mxu0 %v39786_v40 }
 0xd9e   : > { %32588 = vmatpush3.bf16.msra.mxu0 %v39794_v58 }
 0xd9f   : > { %32590 = vmatprep.subr.bf16.mxu0 %v39801_v61 }
 0xda2   : > { %32592 = vmatpush3.bf16.msra.mxu0 %v39007_v53 }
 0xda3   : > { %32594 = vmatprep.subr.bf16.mxu0 %v39811_v39 }
 0xda6   : > { %32596 = vmatpush3.bf16.msra.mxu0 %v42080_v25 }
 0xda7   : > { %32598 = vmatprep.subr.bf16.mxu0 %v42081_v8 }
 0xdaa   : > { %32600 = vmatpush3.bf16.msra.mxu0 %v42082_v50 }
 0xdab   : > { %32634 = vmatprep.subr.bf16.mxu0 %v42083_v14 }
 0xdad   : > { %19404 = vmatmul.mubr.f32.vlgmr.msra.gmra.mrb[76].mxu0 %v39199_v1  ;;  %v42098_v1 = vld [vmem:[#allocation52_spill] sm:$0xff] }
 0xdae   : > { %32636 = vmatpush3.bf16.msra.mxu0 %v42084_v45  ;;  %19660 = vmatprep.mubr.f32.mxu0 %v19659_v47 }
 0xdaf   : > { %32638 = vmatprep.subr.bf16.mxu0 %v42085_v38 }
 0xdb2   : > { %32640 = vmatpush3.bf16.msra.mxu0 %v42086_v13 }
 0xdb3   : > { %32642 = vmatprep.subr.bf16.mxu0 %v42087_v12 }
 0xdb6   : > { %32644 = vmatpush3.bf16.msra.mxu0 %v42090_v43 }
 0xdb7   : > { %32646 = vmatprep.subr.bf16.mxu0 %v42091_v35 }
 0xdb9   : > { %v31132_v56 = vpop.f32.mrb[62].mxu0 }
 0xdba   : > { %32648 = vmatpush3.bf16.msra.mxu0 %v42092_v48  ;;  %v33807_v47 = vadd.f32 %v39845_v3, %v31132_v56  ;;  %v16664_v30 = vpop.f32.mrb[63].mxu0 }
 0xdbb   : > { %32650 = vmatprep.subr.bf16.mxu0 %v42093_v9  ;;  %v33808_v54 = vadd.f32 %v39845_v3, %v16664_v30  ;;  %v42099_v30 = vld [vmem:[#allocation56_spill] sm:$0xff] }
 0xdbc   : > { %v16675_v57 = vmax.f32 %v33807_v47, 0.0 }
 0xdbd   : > { %v39854_v24 = vmax.f32 %v33808_v54, 0.0  ;;  %v42100_v54 = vld [vmem:[#allocation84_spill] sm:$0xff] }
 0xdbe   : > { %32652 = vmatpush3.bf16.msra.mxu0 %v42095_v28  ;;  %v23166_v41 = vrot.slane %v16675_v57, 3  ;;  %v23172_v2 = vrot.slane %v16675_v57, 4  ;;  %v42101_v57 = vand.u32 4294901760, %v39849_v10 }
 0xdbf   : > { %32654 = vmatprep.subr.bf16.mxu0 %v42096_v15  ;;  %v23160_v44 = vrot.slane %v39854_v24, 2  ;;  %v23156_v56 = vrot.slane %v39854_v24, 1  ;;  %v23171_v5 = vrot.slane %v39854_v24, 4  ;;  %v23165_v47 = vrot.slane %v39854_v24, 3 }
 0xdc0   : > { %v19664_v26 = vsub.f32 %v39849_v10, %v42101_v57  ;;  %v42107_v57 = vld [vmem:[#allocation80_spill] sm:$0xff] }
 0xdc1   : > { %23161 = vrot.lane.b32.xlu1 %v23160_v44, %s41655_s24  ;;  %23157 = vrot.lane.b32.xlu0 %v23156_v56, %s41648_s12  ;;  %v23173_v34 = vsel %vm402_vm4, %v23171_v5, %v23172_v2  ;;  %v23167_v3 = vsel %vm387_vm2, %v23165_v47, %v23166_v41  ;;  %v42103_v56 = vld [vmem:[#allocation44_spill] sm:$0xff]  ;;  %v42104_v5 = vld [vmem:[#allocation78_spill] sm:$0xff] }
 0xdc2   : > { %32656 = vmatpush3.bf16.msra.mxu0 %v42097_v31  ;;  %v19665_v44 = vand.u32 4294901760, %v19664_v26  ;;  %v42105_v41 = vld [vmem:[#allocation38_spill] sm:$0xff] }
 0xdc3   : > { %32658 = vmatprep.subr.bf16.mxu0 %v42098_v1 }
 0xdc5   : > { %23174 = vrot.lane.b32.xlu1 %v23173_v34, %s34762_s18  ;;  %23168 = vrot.lane.b32.xlu0 %v23167_v3, %s34757_s21  ;;  %v42106_v34 = vld [vmem:[#allocation45_spill] sm:$0xff] }
 0xdc6   : > { %32660 = vmatpush3.bf16.msra.mxu0 %v42099_v30 }
 0xdc7   : > { %32662 = vmatprep.subr.bf16.mxu0 %v42100_v54 }
 0xdc9   : > { %23187 = vrot.lane.b32.xlu1 %v42103_v56, %s34765_s10  ;;  %23184 = vrot.lane.b32.xlu0 %v42104_v5, %s34763_s14  ;;  %v42110_v5 = vld [vmem:[#allocation19_spill] sm:$0xff] }
 0xdca   : > { %32664 = vmatpush3.bf16.msra.mxu0 %v42102_v18 }
 0xdcb   : > { %32698 = vmatprep.subr.bf16.mxu0 %v39639_v63 }
 0xdcd   : > { %19666 = vmatmul.mubr.f32.vlgmr.msra.gmra.mrb[78].mxu0 %v19665_v44  ;;  %23181 = vrot.lane.b32.xlu1 %v42105_v41, %s34764_s13 }
 0xdce   : > { %32700 = vmatpush3.bf16.msra.mxu0 %v39644_v62  ;;  %20033 = vmatprep.mubr.f32.mxu0 %v39814_v17 }
 0xdcf   : > { %32702 = vmatprep.subr.bf16.mxu0 %v39649_v0 }
 0xdd2   : > { %32704 = vmatpush3.bf16.msra.mxu0 %v39656_v20 }
 0xdd3   : > { %32706 = vmatprep.subr.bf16.mxu0 %v39661_v36 }
 0xdd6   : > { %32708 = vmatpush3.bf16.msra.mxu0 %v39666_v6 }
 0xdd7   : > { %32710 = vmatprep.subr.bf16.mxu0 %v39671_v7 }
 0xdda   : > { %32712 = vmatpush3.bf16.msra.mxu0 %v39676_v59 }
 0xddb   : > { %32714 = vmatprep.subr.bf16.mxu0 %v39681_v37 }
 0xdde   : > { %32716 = vmatpush3.bf16.msra.mxu0 %v39686_v55 }
 0xddf   : > { %32718 = vmatprep.subr.bf16.mxu0 %v39691_v52 }
 0xde2   : > { %32720 = vmatpush3.bf16.msra.mxu0 %v39696_v32 }
 0xde3   : > { %32722 = vmatprep.subr.bf16.mxu0 %v39701_v27 }
 0xde6   : > { %32724 = vmatpush3.bf16.msra.mxu0 %v39706_v42 }
 0xde7   : > { %32726 = vmatprep.subr.bf16.mxu0 %v39711_v23 }
 0xdea   : > { %32728 = vmatpush3.bf16.msra.mxu0 %v39716_v11 }
 0xdeb   : > { %32762 = vmatprep.subr.bf16.mxu0 %v39723_v49 }
 0xded   : > { %20036 = vmatmul.mubr.f32.vlgmr.msra.gmra.mrb[80].mxu0 %v39849_v10 }
 0xdee   : > { %32764 = vmatpush3.bf16.msra.mxu0 %v39730_v60  ;;  %20310 = vmatprep.mubr.f32.mxu0 %v39803_v16 }
 0xdef   : > { %32766 = vmatprep.subr.bf16.mxu0 %v39737_v46 }
 0xdf2   : > { %32768 = vmatpush3.bf16.msra.mxu0 %v39746_v22 }
 0xdf3   : > { %32770 = vmatprep.subr.bf16.mxu0 %v39753_v33 }
 0xdf6   : > { %32772 = vmatpush3.bf16.msra.mxu0 %v39760_v51 }
 0xdf7   : > { %32774 = vmatprep.subr.bf16.mxu0 %v39767_v4  ;;  %v42108_v4 = vld [vmem:[#allocation81_spill] sm:$0xff] }
 0xdfa   : > { %32776 = vmatpush3.bf16.msra.mxu0 %v39779_v29 }
 0xdfb   : > { %32778 = vmatprep.subr.bf16.mxu0 %v39786_v40 }
 0xdfd   : > { %v17934_v26 = vpop.f32.mrb[64].mxu0 }
 0xdfe   : > { %32780 = vmatpush3.bf16.msra.mxu0 %v39794_v58  ;;  %v17950_v3 = vmax.f32 %v42106_v34, %v17934_v26  ;;  %v31330_v2 = vpop.f32.mrb[65].mxu0 }
 0xdff   : > { %32782 = vmatprep.subr.bf16.mxu0 %v39801_v61 }
 0xe00   : > { %v17956_v29 = vrot.slane %v17950_v3, 1 }
 0xe01   : > { %v17940_v47 = vpop.f32.mrb[66].mxu0 }
 0xe02   : > { %32784 = vmatpush3.bf16.msra.mxu0 %v39007_v53  ;;  %v17951_v44 = vmax.f32 %v42107_v57, %v17940_v47  ;;  %v31333_v41 = vpop.f32.mrb[67].mxu0  ;;  %v42109_v53 = vmov 0.0  }
 0xe03   : > { %32786 = vmatprep.subr.bf16.mxu0 %v39811_v39 }
 0xe04   : > { %v17957_v40 = vrot.slane %v17951_v44, 1 }
 0xe05   : > { %v17946_v58 = vpop.f32.mrb[68].mxu0 }
 0xe06   : > { %32788 = vmatpush3.bf16.msra.mxu0 %v42080_v25  ;;  %v17958_v61 = vsel %vm357_vm0, %v17956_v29, %v17957_v40  ;;  %v17952_v26 = vmax.f32 %v42108_v4, %v17946_v58  ;;  %v31336_v34 = vpop.f32.mrb[69].mxu0 }
 0xe07   : > { %32790 = vmatprep.subr.bf16.mxu0 %v42081_v8  ;;  %v17964_v2 = vmax.f32 %v17950_v3, %v17958_v61 }
 0xe08   : > { %v17959_v39 = vrot.slane %v17952_v26, 1 }
 0xe09   : > { %v17971_v47 = vand.u32 4294901760, %v17964_v2 }
 0xe0a   : > { %32792 = vmatpush3.bf16.msra.mxu0 %v42082_v50  ;;  %v17960_v41 = vsel %vm357_vm0, %v17957_v40, %v17959_v39  ;;  %v17966_v57 = vmax.f32 %v17952_v26, %v17959_v39  ;;  %vm25461_vm0 = vcmask 490496  }
 0xe0b   : > { %31391 = vmatprep.subr.mxu0 %v42109_v53  ;;  %v18060_v25 = vsub.f32 %v17964_v2, %v17971_v47  ;;  %v17965_v8 = vmax.f32 %v17951_v44, %v17960_v41 }
 0xe0c   : > { %v17968_v4 = vsel %vm1685_vm14, %v17966_v57, 0 }
 0xe0d   : > { %20312 = vmatmul.mubr.f32.vlgmr.msra.gmra.mrb[82].mxu0 %v39838_v21  ;;  %v17974_v29 = vand.u32 4294901760, %v17965_v8  ;;  %v39926_v58 = vand.u32 4294901760, %v17968_v4  ;;  %v18061_v61 = vand.u32 4294901760, %v18060_v25 }
 0xe0e   : > { %31393 = vmatprep.mubr.msk.f32.mxu0 %vm34727_vm5, %v42109_v53 }
 0xe0f   : > { %v32417_v3 = vpack.c.bf16 %v17974_v29, %v17971_v47  ;;  %v18067_v34 = vsub.f32 %v17965_v8, %v17974_v29  ;;  %v18074_v50 = vsub.f32 %v17968_v4, %v39926_v58  ;;  %v18062_v40 = vsub.f32 %v18060_v25, %v18061_v61  ;;  %v42111_v47 = vld [vmem:[#allocation12_spill] sm:$0xff] }
 0xe11   : > { %32418 = vmatprep.subr.bf16.mxu1 %v32417_v3  ;;  %v18068_v39 = vand.u32 4294901760, %v18067_v34  ;;  %v18075_v26 = vand.u32 4294901760, %v18074_v50  ;;  %v32425_v51 = vpack.c.bf16 %v18067_v34, %v18060_v25  ;;  %v18063_v41 = vand.u32 4294901760, %v18062_v40  ;;  %v42113_v40 = vld [vmem:[#allocation13_spill] sm:$0xff] }
 0xe12   : > { %32420 = vmatpush3.bf16.msra.mxu1 %v32417_v3 }
 0xe13   : > { %31341 = vmatprep.subr.mxu1 %v39926_v58  ;;  %v18069_v44 = vsub.f32 %v18067_v34, %v18068_v39  ;;  %v32433_v2 = vpack.c.bf16 %v18068_v39, %v18061_v61  ;;  %v18076_v53 = vsub.f32 %v18074_v50, %v18075_v26  ;;  %v42112_v61 = vld [vmem:[#allocation16_spill] sm:$0xff]  ;;  %v39939_v39 = vpop.permute.xlu1 %21824 }
 0xe15   : > { %v18070_v57 = vand.u32 4294901760, %v18069_v44  ;;  %v18077_v4 = vand.u32 4294901760, %v18076_v53  ;;  %v42115_v53 = vld [vmem:[#allocation14_spill] sm:$0xff]  ;;  %v39942_v44 = vpop.permute.xlu0 %21821 }
 0xe16   : > { %31342 = vmatpush3.msra.mxu1 %v39926_v58 }
 0xe17   : > { %31344 = vmatmul.mubr.f32.vlgmr.msra.gmra.mrb[68].mxu1 %v42110_v5  ;;  %v32421_v8 = vpack.c.bf16 %v18070_v57, %v18063_v41  ;;  %v42114_v5 = vld [vmem:[#allocation17_spill] sm:$0xff] }
 0xe18   : > { %31352 = vmatprep.mubr.msk.f32.mxu1 %vm1678_vm12, %v42111_v47 }
 0xe19   : > { %32422 = vmatprep.subr.bf16.mxu1 %v32421_v8  ;;  %v39947_v41 = vpop.permute.xlu0 %21828 }
 0xe1a   : > { %32424 = vmatpush3.bf16.msra.mxu1 %v32421_v8 }
 0xe1b   : > { %31350 = vmatprep.subr.mxu1 %v18077_v4 }
 0xe1e   : > { %31351 = vmatpush3.msra.mxu1 %v18077_v4 }
 0xe1f   : > { %31353 = vmatmul.mubr.msk.f32.vlgmr.msra.gmra.mrb[68].mxu1 %vm1678_vm12, %v42112_v61  ;;  %32426 = vmatprep.subr.bf16.mxu1 %v32425_v51 }
 0xe20   : > { %v27547_v25 = vpop.f32.mrb[70].mxu0  ;;  %32428 = vmatpush3.bf16.msra.mxu1 %v32425_v51  ;;  %31361 = vmatprep.mubr.f32.mxu1 %v42113_v40  ;;  %v39945_v51 = vpop.permute.xlu1 %21818 }
 0xe21   : > { %v27548_v29 = vpop.f32.mrb[71].mxu0  ;;  %31359 = vmatprep.subr.mxu1 %v18074_v50 }
 0xe22   : > { %v27549_v34 = vadd.f32 %v27548_v29, %v27547_v25 }
 0xe24   : > { %31360 = vmatpush3.msra.mxu1 %v18074_v50  ;;  %v42116_v50 = vld [vmem:[#allocation18_spill] sm:$0xff] }
 0xe25   : > { %32430 = vmatprep.subr.bf16.mxu1 %v32417_v3 }
 0xe27   : > { %31362 = vmatmul.mubr.f32.vlgmr.msra.gmra.mrb[68].mxu1 %v42114_v5 }
 0xe28   : > { %32432 = vmatpush3.bf16.msra.mxu1 %v32417_v3  ;;  %31370 = vmatprep.mubr.f32.mxu1 %v42115_v53  ;;  %v42117_v53 = vand.u32 4294901760, %v39112_v19 }
 0xe29   : > { %31368 = vmatprep.subr.mxu1 %v39926_v58 }
 0xe2c   : > { %31369 = vmatpush3.msra.mxu1 %v39926_v58 }
 0xe2d   : > { %32434 = vmatprep.subr.bf16.mxu1 %v32433_v2 }
 0xe2f   : > { %31371 = vmatmul.mubr.f32.vlgmr.msra.gmra.mrb[68].mxu1 %v42116_v50 }
 0xe30   : > { %32436 = vmatpush3.bf16.msra.mxu1 %v32433_v2  ;;  %31379 = vmatprep.mubr.msk.f32.mxu1 %vm1678_vm12, %v42111_v47 }
 0xe31   : > { %31377 = vmatprep.subr.mxu1 %v18075_v26 }
 0xe33   : > { %v23162_v57 = vpop.permute.xlu1 %23161  ;;  %v23158_v8 = vpop.permute.xlu0 %23157 }
 0xe34   : > { %31378 = vmatpush3.msra.mxu1 %v18075_v26  ;;  %v23177_v4 = vsel %vm421_vm7, %v39854_v24, %v23158_v8  ;;  %v42120_v8 = vld [vmem:[#allocation48_spill] sm:$0xff] }
 0xe35   : > { %32438 = vmatprep.subr.bf16.mxu1 %v32417_v3  ;;  %v23178_v29 = vsel %vm429_vm9, %v23177_v4, %v23162_v57 }
 0xe37   : > { %31380 = vmatmul.mubr.msk.f32.vlgmr.msra.gmra.mrb[68].mxu1 %vm1678_vm12, %v42112_v61  ;;  %v23175_v25 = vpop.permute.xlu1 %23174  ;;  %v23169_v40 = vpop.permute.xlu0 %23168 }
 0xe38   : > { %32440 = vmatpush3.bf16.msra.mxu1 %v32417_v3  ;;  %v23179_v2 = vsel %vm18511_vm1, %v23178_v29, %v23169_v40  ;;  %31388 = vmatprep.mubr.msk.f32.mxu1 %vm1678_vm12, %v42111_v47  ;;  %v42121_v29 = vld [vmem:[#allocation54_spill] sm:$0xff] }
 0xe39   : > { %31386 = vmatprep.subr.mxu1 %v39926_v58  ;;  %v39962_v26 = vsel %vm18513_vm15, %v23179_v2, %v23175_v25 }
 0xe3a   : > { %23191 = vrot.lane.b32.xlu0 %v39962_v26, %s34766_s23 }
 0xe3c   : > { %31387 = vmatpush3.msra.mxu1 %v39926_v58 }
 0xe3d   : > { %32538 = vmatprep.subr.bf16.mxu1 %v42083_v14 }
 0xe3f   : > { %31389 = vmatmul.mubr.msk.f32.vlgmr.msra.gmra.mrb[68].mxu1 %vm1678_vm12, %v42112_v61  ;;  %v42118_v61 = vld [vmem:[#allocation30_spill] sm:$0xff] }
 0xe40   : > { %v27582_v24 = vpop.f32.mrb[72].mxu0  ;;  %32540 = vmatpush3.bf16.msra.mxu1 %v42084_v45  ;;  %19232 = vmatprep.mubr.f32.mxu1 %v42117_v53  ;;  %v42119_v57 = vand.u32 4294901760, %v42118_v61  ;;  %v42125_v53 = vld [vmem:[#allocation62_spill] sm:$0xff]  ;;  %v42130_v61 = vld [vmem:[#allocation67_spill] sm:$0xff] }
 0xe41   : > { %v27583_v5 = vpop.f32.mrb[73].mxu0  ;;  %32542 = vmatprep.subr.bf16.mxu1 %v42085_v38 }
 0xe42   : > { %v27584_v3 = vadd.f32 %v27583_v5, %v27582_v24  ;;  %v42122_v24 = vld [vmem:[#allocation31_spill] sm:$0xff] }
 0xe43   : > { %v42123_v5 = vld [vmem:[#allocation59_spill] sm:$0xff] }
 0xe44   : > { %v18992_v50 = vadd.f32 %v27584_v3, %v27549_v34  ;;  %32544 = vmatpush3.bf16.msra.mxu1 %v42086_v13  ;;  %v42124_v3 = vld [vmem:[#allocation61_spill] sm:$0xff] }
 0xe45   : > { %32546 = vmatprep.subr.bf16.mxu1 %v42087_v12 }
 0xe48   : > { %32548 = vmatpush3.bf16.msra.mxu1 %v42090_v43 }
 0xe49   : > { %32550 = vmatprep.subr.bf16.mxu1 %v42091_v35 }
 0xe4c   : > { %32552 = vmatpush3.bf16.msra.mxu1 %v42092_v48 }
 0xe4d   : > { %32554 = vmatprep.subr.bf16.mxu1 %v42093_v9 }
 0xe50   : > { %32556 = vmatpush3.bf16.msra.mxu1 %v42095_v28 }
 0xe51   : > { %32558 = vmatprep.subr.bf16.mxu1 %v42096_v15 }
 0xe54   : > { %32560 = vmatpush3.bf16.msra.mxu1 %v42097_v31 }
 0xe55   : > { %32562 = vmatprep.subr.bf16.mxu1 %v42098_v1 }
 0xe58   : > { %32564 = vmatpush3.bf16.msra.mxu1 %v42099_v30 }
 0xe59   : > { %32566 = vmatprep.subr.bf16.mxu1 %v42100_v54 }
 0xe5c   : > { %32568 = vmatpush3.bf16.msra.mxu1 %v42102_v18 }
 0xe5d   : > { %32602 = vmatprep.subr.bf16.mxu1 %v42083_v14 }
 0xe5f   : > { %19236 = vmatmul.mubr.f32.vlgmr.msra.gmra.mrb[70].mxu1 %v42119_v57  ;;  %v42131_v57 = vld [vmem:[#allocation75_spill] sm:$0xff] }
 0xe60   : > { %v27617_v19 = vpop.f32.mrb[74].mxu0  ;;  %32604 = vmatpush3.bf16.msra.mxu1 %v42084_v45  ;;  %19506 = vmatprep.mubr.f32.mxu1 %v42120_v8  ;;  %v42132_v8 = vld [vmem:[#allocation68_spill] sm:$0xff] }
 0xe61   : > { %v27618_v58 = vpop.f32.mrb[75].mxu0  ;;  %32606 = vmatprep.subr.bf16.mxu1 %v42085_v38 }
 0xe62   : > { %v27619_v34 = vadd.f32 %v27618_v58, %v27617_v19  ;;  %v42127_v19 = vld [vmem:[#allocation63_spill] sm:$0xff]  ;;  %v42128_v58 = vld [vmem:[#allocation66_spill] sm:$0xff] }
 0xe64   : > { %v39992_v4 = vadd.f32 %v27619_v34, %v18992_v50  ;;  %32608 = vmatpush3.bf16.msra.mxu1 %v42086_v13  ;;  %v42126_v50 = vld [vmem:[#allocation64_spill] sm:$0xff] }
 0xe65   : > { %32610 = vmatprep.subr.bf16.mxu1 %v42087_v12  ;;  %v42129_v34 = vld [vmem:[#allocation72_spill] sm:$0xff] }
 0xe68   : > { %32612 = vmatpush3.bf16.msra.mxu1 %v42090_v43 }
 0xe69   : > { %32614 = vmatprep.subr.bf16.mxu1 %v42091_v35 }
 0xe6c   : > { %32616 = vmatpush3.bf16.msra.mxu1 %v42092_v48 }
 0xe6d   : > { %32618 = vmatprep.subr.bf16.mxu1 %v42093_v9 }
 0xe70   : > { %32620 = vmatpush3.bf16.msra.mxu1 %v42095_v28 }
 0xe71   : > { %32622 = vmatprep.subr.bf16.mxu1 %v42096_v15 }
 0xe74   : > { %32624 = vmatpush3.bf16.msra.mxu1 %v42097_v31 }
 0xe75   : > { %32626 = vmatprep.subr.bf16.mxu1 %v42098_v1 }
 0xe78   : > { %32628 = vmatpush3.bf16.msra.mxu1 %v42099_v30 }
 0xe79   : > { %32630 = vmatprep.subr.bf16.mxu1 %v42100_v54 }
 0xe7c   : > { %32632 = vmatpush3.bf16.msra.mxu1 %v42102_v18 }
 0xe7d   : > { %32666 = vmatprep.subr.bf16.mxu1 %v42121_v29  ;;  %v42159_v29 = vld [vmem:[#allocation50_spill] sm:$0xff] }
 0xe7f   : > { %19508 = vmatmul.mubr.f32.vlgmr.msra.gmra.mrb[72].mxu1 %v42122_v24  ;;  %v42135_v24 = vld [vmem:[#allocation60_spill] sm:$0xff] }
 0xe80   : > { %v27687_v25 = vpop.f32.mrb[76].mxu0  ;;  %32668 = vmatpush3.bf16.msra.mxu1 %v42123_v5  ;;  %19896 = vmatprep.mubr.f32.mxu1 %v39803_v16 }
 0xe81   : > { %v27688_v40 = vpop.f32.mrb[77].mxu0  ;;  %32670 = vmatprep.subr.bf16.mxu1 %v42124_v3 }
 0xe82   : > { %v40009_v2 = vadd.f32 %v27688_v40, %v27687_v25  ;;  %v42133_v25 = vld [vmem:[#allocation87_spill] sm:$0xff]  ;;  %v42134_v40 = vld [vmem:[#allocation90_spill] sm:$0xff] }
 0xe84   : > { %32672 = vmatpush3.bf16.msra.mxu1 %v42125_v53  ;;  %v42136_v53 = vld [vmem:[#allocation65_spill] sm:$0xff] }
 0xe85   : > { %32674 = vmatprep.subr.bf16.mxu1 %v42126_v50  ;;  %v42137_v50 = vld [vmem:[#allocation22_spill] sm:$0xff] }
 0xe88   : > { %32676 = vmatpush3.bf16.msra.mxu1 %v42127_v19 }
 0xe89   : > { %32678 = vmatprep.subr.bf16.mxu1 %v42128_v58 }
 0xe8c   : > { %32680 = vmatpush3.bf16.msra.mxu1 %v42129_v34 }
 0xe8d   : > { %32682 = vmatprep.subr.bf16.mxu1 %v42130_v61 }
 0xe90   : > { %32684 = vmatpush3.bf16.msra.mxu1 %v42131_v57 }
 0xe91   : > { %32686 = vmatprep.subr.bf16.mxu1 %v42132_v8  ;;  %v42147_v8 = vld [vmem:[#allocation32_spill] sm:$0xff] }
 0xe94   : > { %32688 = vmatpush3.bf16.msra.mxu1 %v42133_v25  ;;  %v42138_v25 = vand.u32 4294901760, %v39814_v17 }
 0xe95   : > { %32690 = vmatprep.subr.bf16.mxu1 %v42134_v40  ;;  %v42142_v40 = vld [vmem:[#allocation40_spill] sm:$0xff] }
 0xe98   : > { %32692 = vmatpush3.bf16.msra.mxu1 %v42135_v24 }
 0xe99   : > { %32694 = vmatprep.subr.bf16.mxu1 %v42136_v53  ;;  %v42141_v53 = vld [vmem:[#allocation39_spill] sm:$0xff] }
 0xe9c   : > { %32696 = vmatpush3.bf16.msra.mxu1 %v42137_v50  ;;  %v42140_v50 = vld [vmem:[#allocation35_spill] sm:$0xff] }
 0xe9d   : > { %32730 = vmatprep.subr.bf16.mxu1 %v42083_v14  ;;  %v20925_v24 = vsel %vm18639_vm3, %v42141_v53, %v42140_v50 }
 0xe9f   : > { %19898 = vmatmul.mubr.f32.vlgmr.msra.gmra.mrb[74].mxu1 %v39838_v21 }
 0xea0   : > { %v27757_v19 = vpop.f32.mrb[78].mxu0  ;;  %32732 = vmatpush3.bf16.msra.mxu1 %v42084_v45  ;;  %20140 = vmatprep.mubr.f32.mxu1 %v42138_v25  ;;  %v42139_v25 = vand.u32 4294901760, %v39849_v10 }
 0xea1   : > { %v27758_v34 = vpop.f32.mrb[79].mxu0  ;;  %32734 = vmatprep.subr.bf16.mxu1 %v42085_v38 }
 0xea2   : > { %v40029_v58 = vadd.f32 %v27758_v34, %v27757_v19 }
 0xea4   : > { %32736 = vmatpush3.bf16.msra.mxu1 %v42086_v13 }
 0xea5   : > { %32738 = vmatprep.subr.bf16.mxu1 %v42087_v12 }
 0xea8   : > { %32740 = vmatpush3.bf16.msra.mxu1 %v42090_v43 }
 0xea9   : > { %32742 = vmatprep.subr.bf16.mxu1 %v42091_v35 }
 0xeac   : > { %32744 = vmatpush3.bf16.msra.mxu1 %v42092_v48 }
 0xead   : > { %32746 = vmatprep.subr.bf16.mxu1 %v42093_v9 }
 0xeb0   : > { %32748 = vmatpush3.bf16.msra.mxu1 %v42095_v28 }
 0xeb1   : > { %32750 = vmatprep.subr.bf16.mxu1 %v42096_v15 }
 0xeb4   : > { %32752 = vmatpush3.bf16.msra.mxu1 %v42097_v31 }
 0xeb5   : > { %32754 = vmatprep.subr.bf16.mxu1 %v42098_v1 }
 0xeb8   : > { %32756 = vmatpush3.bf16.msra.mxu1 %v42099_v30 }
 0xeb9   : > { %32758 = vmatprep.subr.bf16.mxu1 %v42100_v54 }
 0xebc   : > { %32760 = vmatpush3.bf16.msra.mxu1 %v42102_v18 }
 0xebd   : > { %32794 = vmatprep.subr.bf16.mxu1 %v42083_v14 }
 0xebf   : > { %20144 = vmatmul.mubr.f32.vlgmr.msra.gmra.mrb[76].mxu1 %v42139_v25 }
 0xec0   : > { %v27827_v17 = vpop.f32.mrb[80].mxu0  ;;  %32796 = vmatpush3.bf16.msra.mxu1 %v42084_v45  ;;  %20414 = vmatprep.mubr.f32.mxu1 %v39803_v16 }
 0xec1   : > { %v27828_v19 = vpop.f32.mrb[81].mxu0  ;;  %32798 = vmatprep.subr.bf16.mxu1 %v42085_v38 }
 0xec2   : > { %v40050_v34 = vadd.f32 %v27828_v19, %v27827_v17  ;;  %v20926_v17 = vsel %vm18641_vm10, %v20925_v24, %v42142_v40 }
 0xec3   : > { %v20928_v10 = vsel %vm18643_vm11, %v20926_v17, 0 }
 0xec4   : > { %32800 = vmatpush3.bf16.msra.mxu1 %v42086_v13  ;;  %v40069_v16 = vand.u32 4294901760, %v20928_v10 }
 0xec5   : > { %32802 = vmatprep.subr.bf16.mxu1 %v42087_v12 }
 0xec6   : > { %42143 = vst [vmem:[#allocation23_spill] sm:$0xff] %v40069_v16  ;;  %v40074_v50 = vsub.f32 %v20928_v10, %v40069_v16 }
 0xec8   : > { %32804 = vmatpush3.bf16.msra.mxu1 %v42090_v43  ;;  %42144 = vst [vmem:[#allocation26_spill] sm:$0xff] %v40074_v50  ;;  %v41478_v40 = vand.u32 4294901760, %v40074_v50 }
 0xec9   : > { %32806 = vmatprep.subr.bf16.mxu1 %v42091_v35 }
 0xeca   : > { %v21029_v24 = vsub.f32 %v40074_v50, %v41478_v40  ;;  %v42146_v40 = vld [vmem:[#allocation43_spill] sm:$0xff] }
 0xecb   : > { %v20923_v57 = vsel %vm18635_vm13, %v42147_v8, %v42146_v40 }
 0xecc   : > { %32808 = vmatpush3.bf16.msra.mxu1 %v42092_v48  ;;  %v21030_v17 = vand.u32 4294901760, %v21029_v24 }
 0xecd   : > { %32810 = vmatprep.subr.bf16.mxu1 %v42093_v9 }
 0xed0   : > { %32812 = vmatpush3.bf16.msra.mxu1 %v42095_v28 }
 0xed1   : > { %32814 = vmatprep.subr.bf16.mxu1 %v42096_v15 }
 0xed4   : > { %32816 = vmatpush3.bf16.msra.mxu1 %v42097_v31 }
 0xed5   : > { %32818 = vmatprep.subr.bf16.mxu1 %v42098_v1 }
 0xed8   : > { %32820 = vmatpush3.bf16.msra.mxu1 %v42099_v30 }
 0xed9   : > { %32822 = vmatprep.subr.bf16.mxu1 %v42100_v54 }
 0xedc   : > { %32824 = vmatpush3.bf16.msra.mxu1 %v42102_v18 }
 0xedd   : > { %32826 = vmatprep.subr.bf16.mxu1 %v42083_v14 }
 0xedf   : > { %20416 = vmatmul.mubr.f32.vlgmr.msra.gmra.mrb[78].mxu1 %v39838_v21  ;;  %v20924_v21 = vsel %vm18637_vm8, %v20923_v57, %v42141_v53 }
 0xee0   : > { %v27897_v19 = vpop.f32.mrb[82].mxu0  ;;  %32828 = vmatpush3.bf16.msra.mxu1 %v42084_v45  ;;  %21031 = vmatprep.mubr.f32.mxu1 %v21030_v17  ;;  %v40101_v24 = vand.u32 4294901760, %v20924_v21 }
 0xee1   : > { %v27898_v25 = vpop.f32.mrb[83].mxu0  ;;  %32830 = vmatprep.subr.bf16.mxu1 %v42085_v38 }
 0xee2   : > { %v40086_v10 = vadd.f32 %v27898_v25, %v27897_v19  ;;  %v40106_v19 = vsub.f32 %v20924_v21, %v40101_v24  ;;  %v42149_v25 = vld [vmem:[#allocation92_spill] sm:$0xff] }
 0xee4   : > { %42145 = vst [vmem:[#allocation113_spill] sm:$0xff] %v40086_v10  ;;  %32832 = vmatpush3.bf16.msra.mxu1 %v42086_v13  ;;  %42148 = vst [vmem:[#allocation97_spill] sm:$0xff] %v40106_v19  ;;  %v41479_v8 = vand.u32 4294901760, %v40106_v19  ;;  %v42160_v10 = vld [vmem:[#allocation49_spill] sm:$0xff] }
 0xee5   : > { %32834 = vmatprep.subr.bf16.mxu1 %v42087_v12 }
 0xee6   : > { %v21035_v53 = vsub.f32 %v40106_v19, %v41479_v8 }
 0xee8   : > { %32836 = vmatpush3.bf16.msra.mxu1 %v42090_v43  ;;  %v21036_v57 = vand.u32 4294901760, %v21035_v53 }
 0xee9   : > { %32838 = vmatprep.subr.bf16.mxu1 %v42091_v35 }
 0xeec   : > { %32840 = vmatpush3.bf16.msra.mxu1 %v42092_v48 }
 0xeed   : > { %32842 = vmatprep.subr.bf16.mxu1 %v42093_v9 }
 0xef0   : > { %32844 = vmatpush3.bf16.msra.mxu1 %v42095_v28 }
 0xef1   : > { %32846 = vmatprep.subr.bf16.mxu1 %v42096_v15 }
 0xef4   : > { %32848 = vmatpush3.bf16.msra.mxu1 %v42097_v31 }
 0xef5   : > { %32850 = vmatprep.subr.bf16.mxu1 %v42098_v1 }
 0xef8   : > { %32852 = vmatpush3.bf16.msra.mxu1 %v42099_v30 }
 0xef9   : > { %32854 = vmatprep.subr.bf16.mxu1 %v42100_v54 }
 0xefc   : > { %32856 = vmatpush3.bf16.msra.mxu1 %v42102_v18 }
 0xefd   : > { %32890 = vmatprep.subr.bf16.mxu1 %v39639_v63 }
 0xeff   : > { %21037 = vmatmul.mubr.f32.vlgmr.msra.gmra.mrb[80].mxu1 %v21036_v57 }
 0xf00   : > { %32892 = vmatpush3.bf16.msra.mxu1 %v39644_v62  ;;  %21404 = vmatprep.mubr.f32.mxu1 %v40074_v50 }
 0xf01   : > { %32894 = vmatprep.subr.bf16.mxu1 %v39649_v0 }
 0xf04   : > { %32896 = vmatpush3.bf16.msra.mxu1 %v39656_v20 }
 0xf05   : > { %32898 = vmatprep.subr.bf16.mxu1 %v39661_v36 }
 0xf08   : > { %32900 = vmatpush3.bf16.msra.mxu1 %v39666_v6 }
 0xf09   : > { %32902 = vmatprep.subr.bf16.mxu1 %v39671_v7 }
 0xf0c   : > { %32904 = vmatpush3.bf16.msra.mxu1 %v39676_v59 }
 0xf0d   : > { %32906 = vmatprep.subr.bf16.mxu1 %v39681_v37 }
 0xf10   : > { %32908 = vmatpush3.bf16.msra.mxu1 %v39686_v55 }
 0xf11   : > { %32910 = vmatprep.subr.bf16.mxu1 %v39691_v52 }
 0xf12   : > { %v31390_v40 = vpop.f32.mrb[68].mxu1 }
 0xf13   : > { %v33809_v17 = vadd.f32 %v42149_v25, %v31390_v40  ;;  %v18475_v21 = vpop.f32.mrb[69].mxu1 }
 0xf14   : > { %v33810_v53 = vadd.f32 %v42149_v25, %v18475_v21  ;;  %32912 = vmatpush3.bf16.msra.mxu1 %v39696_v32 }
 0xf15   : > { %v18486_v57 = vmax.f32 %v33809_v17, 0.0  ;;  %32914 = vmatprep.subr.bf16.mxu1 %v39701_v27 }
 0xf16   : > { %v40134_v8 = vmax.f32 %v33810_v53, 0.0  ;;  %v42153_v53 = vld [vmem:[#allocation96_spill] sm:$0xff] }
 0xf17   : > { %v24074_v3 = vrot.slane %v18486_v57, 3  ;;  %v24080_v5 = vrot.slane %v18486_v57, 4  ;;  %v42154_v57 = vld [vmem:[#allocation100_spill] sm:$0xff] }
 0xf18   : > { %32916 = vmatpush3.bf16.msra.mxu1 %v39706_v42  ;;  %v24068_v50 = vrot.slane %v40134_v8, 2  ;;  %v24064_v61 = vrot.slane %v40134_v8, 1  ;;  %v24079_v40 = vrot.slane %v40134_v8, 4  ;;  %v24073_v25 = vrot.slane %v40134_v8, 3 }
 0xf19   : > { %32918 = vmatprep.subr.bf16.mxu1 %v39711_v23 }
 0xf1a   : > { %24069 = vrot.lane.b32.xlu1 %v24068_v50, %s41655_s24  ;;  %24065 = vrot.lane.b32.xlu0 %v24064_v61, %s41648_s12  ;;  %v24081_v17 = vsel %vm402_vm4, %v24079_v40, %v24080_v5  ;;  %v24075_v21 = vsel %vm387_vm2, %v24073_v25, %v24074_v3  ;;  %v42150_v5 = vld [vmem:[#allocation78_spill] sm:$0xff]  ;;  %v21833_v3 = vsel %vm18639_vm3, %v39942_v44, %v39939_v39 }
 0xf1b   : > { %v21834_v61 = vsel %vm18641_vm10, %v21833_v3, %v39947_v41  ;;  %v42151_v50 = vld [vmem:[#allocation94_spill] sm:$0xff] }
 0xf1c   : > { %32920 = vmatpush3.bf16.msra.mxu1 %v39716_v11  ;;  %v42155_v25 = vld [vmem:[#allocation102_spill] sm:$0xff] }
 0xf1d   : > { %32954 = vmatprep.subr.bf16.mxu1 %v39723_v49  ;;  %v42157_v3 = vld [vmem:[#allocation46_spill] sm:$0xff] }
 0xf1e   : > { %24082 = vrot.lane.b32.xlu1 %v24081_v17, %s34762_s18  ;;  %24076 = vrot.lane.b32.xlu0 %v24075_v21, %s34757_s21  ;;  %v42156_v17 = vld [vmem:[#allocation27_spill] sm:$0xff] }
 0xf1f   : > { %21407 = vmatmul.mubr.f32.vlgmr.msra.gmra.mrb[82].mxu1 %v40106_v19  ;;  %v42158_v19 = vld [vmem:[#allocation106_spill] sm:$0xff] }
 0xf20   : > { %32956 = vmatpush3.bf16.msra.mxu1 %v39730_v60  ;;  %21681 = vmatprep.mubr.f32.mxu1 %v40069_v16 }
 0xf21   : > { %32958 = vmatprep.subr.bf16.mxu1 %v39737_v46 }
 0xf22   : > { %24095 = vrot.lane.b32.xlu1 %v39962_v26, %s34765_s10  ;;  %24092 = vrot.lane.b32.xlu0 %v42103_v56, %s34763_s14  ;;  %v42152_v26 = vld [vmem:[#allocation25_spill] sm:$0xff]  ;;  %v21836_v56 = vsel %vm18643_vm11, %v21834_v61, 0 }
 0xf23   : > { %v40172_v40 = vand.u32 4294901760, %v21836_v56 }
 0xf24   : > { %32960 = vmatpush3.bf16.msra.mxu1 %v39746_v22 }
 0xf25   : > { %32962 = vmatprep.subr.bf16.mxu1 %v39753_v33  ;;  %v40177_v39 = vsub.f32 %v21836_v56, %v40172_v40 }
 0xf26   : > { %24089 = vrot.lane.b32.xlu1 %v42150_v5, %s34764_s13  ;;  %s41207_s13 = scalar_lea.hbm %s41256_s7, %s26372_s8 }
 0xf27   : > { %v41486_v16 = vand.u32 4294901760, %v40177_v39 }
 0xf28   : > { %32964 = vmatpush3.bf16.msra.mxu1 %v42151_v50 }
 0xf29   : > { %32966 = vmatprep.subr.bf16.mxu1 %v42152_v26  ;;  %v21937_v56 = vsub.f32 %v40177_v39, %v41486_v16 }
 0xf2c   : > { %32968 = vmatpush3.bf16.msra.mxu1 %v42153_v53 }
 0xf2d   : > { %32970 = vmatprep.subr.bf16.mxu1 %v42154_v57 }
 0xf30   : > { %32972 = vmatpush3.bf16.msra.mxu1 %v42155_v25 }
 0xf31   : > { %32974 = vmatprep.subr.bf16.mxu1 %v42156_v17  ;;  %v42161_v17 = vld [vmem:[#allocation88_spill] sm:$0xff] }
 0xf32   : > { %v27652_v41 = vpop.f32.mrb[70].mxu1 }
 0xf33   : > { %v27653_v21 = vpop.f32.mrb[71].mxu1 }
 0xf34   : > { %v27654_v5 = vadd.f32 %v27653_v21, %v27652_v41  ;;  %32976 = vmatpush3.bf16.msra.mxu1 %v42157_v3  ;;  %v21938_v41 = vand.u32 4294901760, %v21937_v56 }
 0xf35   : > { %32978 = vmatprep.subr.bf16.mxu1 %v42158_v19 }
 0xf36   : > { %v19238_v61 = vadd.f32 %v27654_v5, %v39992_v4  ;;  %v42162_v4 = vld [vmem:[#allocation37_spill] sm:$0xff] }
 0xf38   : > { %32980 = vmatpush3.bf16.msra.mxu1 %v42159_v29  ;;  %v19406_v47 = vadd.f32 %v40009_v2, %v19238_v61  ;;  %v21831_v2 = vsel %vm18635_vm13, %v42162_v4, %v39945_v51 }
 0xf39   : > { %32982 = vmatprep.subr.bf16.mxu1 %v42160_v10  ;;  %v21832_v21 = vsel %vm18637_vm8, %v21831_v2, %v39942_v44 }
 0xf3a   : > { %v40204_v5 = vand.u32 4294901760, %v21832_v21 }
 0xf3c   : > { %32984 = vmatpush3.bf16.msra.mxu1 %v42161_v17  ;;  %v40209_v61 = vsub.f32 %v21832_v21, %v40204_v5 }
 0xf3d   : > { %33018 = vmatprep.subr.bf16.mxu1 %v42083_v14 }
 0xf3e   : > { %v41485_v44 = vand.u32 4294901760, %v40209_v61 }
 0xf3f   : > { %21683 = vmatmul.mubr.f32.vlgmr.msra.gmra.mrb[84].mxu1 %v40101_v24 }
 0xf40   : > { %33020 = vmatpush3.bf16.msra.mxu1 %v42084_v45  ;;  %21939 = vmatprep.mubr.f32.mxu1 %v21938_v41  ;;  %v21943_v2 = vsub.f32 %v40209_v61, %v41485_v44 }
 0xf41   : > { %33022 = vmatprep.subr.bf16.mxu1 %v42085_v38 }
 0xf42   : > { %v21944_v21 = vand.u32 4294901760, %v21943_v2 }
 0xf44   : > { %33024 = vmatpush3.bf16.msra.mxu1 %v42086_v13 }
 0xf45   : > { %33026 = vmatprep.subr.bf16.mxu1 %v42087_v12 }
 0xf48   : > { %33028 = vmatpush3.bf16.msra.mxu1 %v42090_v43 }
 0xf49   : > { %33030 = vmatprep.subr.bf16.mxu1 %v42091_v35 }
 0xf4c   : > { %33032 = vmatpush3.bf16.msra.mxu1 %v42092_v48 }
 0xf4d   : > { %33034 = vmatprep.subr.bf16.mxu1 %v42093_v9 }
 0xf50   : > { %33036 = vmatpush3.bf16.msra.mxu1 %v42095_v28 }
 0xf51   : > { %33038 = vmatprep.subr.bf16.mxu1 %v42096_v15 }
 0xf52   : > { %v27722_v51 = vpop.f32.mrb[72].mxu1 }
 0xf53   : > { %v27723_v56 = vpop.f32.mrb[73].mxu1 }
 0xf54   : > { %v27724_v41 = vadd.f32 %v27723_v56, %v27722_v51  ;;  %33040 = vmatpush3.bf16.msra.mxu1 %v42097_v31 }
 0xf55   : > { %33042 = vmatprep.subr.bf16.mxu1 %v42098_v1 }
 0xf56   : > { %v40215_v4 = vadd.f32 %v27724_v41, %v19406_v47 }
 0xf58   : > { %33044 = vmatpush3.bf16.msra.mxu1 %v42099_v30 }
 0xf59   : > { %33046 = vmatprep.subr.bf16.mxu1 %v42100_v54 }
 0xf5c   : > { %33048 = vmatpush3.bf16.msra.mxu1 %v42102_v18 }
 0xf5d   : > { %33082 = vmatprep.subr.bf16.mxu1 %v39639_v63 }
 0xf5f   : > { %21945 = vmatmul.mubr.f32.vlgmr.msra.gmra.mrb[86].mxu1 %v21944_v21  ;;  %v40247_v21 = vpop.permute.xlu1 %23187 }
 0xf60   : > { %33084 = vmatpush3.bf16.msra.mxu1 %v39644_v62  ;;  %22312 = vmatprep.mubr.f32.mxu1 %v40177_v39 }
 0xf61   : > { %33086 = vmatprep.subr.bf16.mxu1 %v39649_v0 }
 0xf64   : > { %33088 = vmatpush3.bf16.msra.mxu1 %v39656_v20 }
 0xf65   : > { %33090 = vmatprep.subr.bf16.mxu1 %v39661_v36 }
 0xf68   : > { %33092 = vmatpush3.bf16.msra.mxu1 %v39666_v6 }
 0xf69   : > { %33094 = vmatprep.subr.bf16.mxu1 %v39671_v7 }
 0xf6c   : > { %33096 = vmatpush3.bf16.msra.mxu1 %v39676_v59 }
 0xf6d   : > { %33098 = vmatprep.subr.bf16.mxu1 %v39681_v37 }
 0xf70   : > { %33100 = vmatpush3.bf16.msra.mxu1 %v39686_v55 }
 0xf71   : > { %33102 = vmatprep.subr.bf16.mxu1 %v39691_v52 }
 0xf72   : > { %v27792_v47 = vpop.f32.mrb[74].mxu1 }
 0xf73   : > { %v27793_v51 = vpop.f32.mrb[75].mxu1 }
 0xf74   : > { %v27794_v56 = vadd.f32 %v27793_v51, %v27792_v47  ;;  %33104 = vmatpush3.bf16.msra.mxu1 %v39696_v32 }
 0xf75   : > { %33106 = vmatprep.subr.bf16.mxu1 %v39701_v27 }
 0xf76   : > { %v19900_v41 = vadd.f32 %v27794_v56, %v40029_v58  ;;  %v40249_v58 = vpop.permute.xlu0 %23184 }
 0xf78   : > { %33108 = vmatpush3.bf16.msra.mxu1 %v39706_v42  ;;  %v20038_v2 = vadd.f32 %v40050_v34, %v19900_v41  ;;  %v40253_v34 = vpop.permute.xlu1 %23181 }
 0xf79   : > { %33110 = vmatprep.subr.bf16.mxu1 %v39711_v23  ;;  %v42185_v23 = vld [vmem:[#allocation65_spill] sm:$0xff] }
 0xf7a   : > { %v40255_v47 = vpop.permute.xlu0 %23191 }
 0xf7c   : > { %33112 = vmatpush3.bf16.msra.mxu1 %v39716_v11  ;;  %v42184_v11 = vld [vmem:[#allocation60_spill] sm:$0xff] }
 0xf7d   : > { %33146 = vmatprep.subr.bf16.mxu1 %v39723_v49  ;;  %v42183_v49 = vld [vmem:[#allocation90_spill] sm:$0xff] }
 0xf7f   : > { %22315 = vmatmul.mubr.f32.vlgmr.msra.gmra.mrb[88].mxu1 %v40209_v61 }
 0xf80   : > { %33148 = vmatpush3.bf16.msra.mxu1 %v39730_v60  ;;  %22589 = vmatprep.mubr.f32.mxu1 %v40172_v40 }
 0xf81   : > { %33150 = vmatprep.subr.bf16.mxu1 %v39737_v46 }
 0xf84   : > { %33152 = vmatpush3.bf16.msra.mxu1 %v39746_v22 }
 0xf85   : > { %33154 = vmatprep.subr.bf16.mxu1 %v39753_v33 }
 0xf88   : > { %33156 = vmatpush3.bf16.msra.mxu1 %v42151_v50  ;;  %v42163_v50 = vld [vmem:[#allocation27_spill] sm:$0xff] }
 0xf89   : > { %33158 = vmatprep.subr.bf16.mxu1 %v42152_v26 }
 0xf8c   : > { %33160 = vmatpush3.bf16.msra.mxu1 %v42153_v53  ;;  %v24070_v51 = vpop.permute.xlu1 %24069  ;;  %v24066_v56 = vpop.permute.xlu0 %24065 }
 0xf8d   : > { %v24085_v41 = vsel %vm421_vm7, %v40134_v8, %v24066_v56  ;;  %33162 = vmatprep.subr.bf16.mxu1 %v42154_v57  ;;  %v42182_v57 = vld [vmem:[#allocation87_spill] sm:$0xff]  ;;  %vm25472_vm7 = vcmask 424960  }
 0xf8e   : > { %v24086_v16 = vsel %vm429_vm9, %v24085_v41, %v24070_v51  ;;  %v42164_v51 = vld [vmem:[#allocation113_spill] sm:$0xff] }
 0xf90   : > { %33164 = vmatpush3.bf16.msra.mxu1 %v42155_v25  ;;  %v24083_v44 = vpop.permute.xlu1 %24082  ;;  %v24077_v33 = vpop.permute.xlu0 %24076  ;;  %v42181_v25 = vld [vmem:[#allocation68_spill] sm:$0xff] }
 0xf91   : > { %v24087_v22 = vsel %vm18511_vm1, %v24086_v16, %v24077_v33  ;;  %33166 = vmatprep.subr.bf16.mxu1 %v42163_v50  ;;  %v42165_v33 = vmov 0.0   ;;  %v42180_v50 = vld [vmem:[#allocation75_spill] sm:$0xff] }
 0xf92   : > { %v27862_v26 = vpop.f32.mrb[76].mxu1  ;;  %v24088_v53 = vsel %vm18513_vm15, %v24087_v22, %v24083_v44 }
 0xf93   : > { %v27863_v46 = vpop.f32.mrb[77].mxu1  ;;  %24099 = vrot.lane.b32.xlu0 %v24088_v53, %s34766_s23  ;;  %s34770_s23 = smov [#allocation2]  }
 0xf94   : > { %v27864_v60 = vadd.f32 %v27863_v46, %v27862_v26  ;;  %33168 = vmatpush3.bf16.msra.mxu1 %v42157_v3  ;;  %v42166_v46 = vld [vmem:[#allocation12_spill] sm:$0xff]  ;;  %v42179_v3 = vld [vmem:[#allocation67_spill] sm:$0xff]  ;;  %s34659_s1 = sshll.u32 %s34770_s23, 4  ;;  %s34660_s1 = int_to_ptr.vmem [resolvable:$false] %s34659_s1 }
 0xf95   : > { %33170 = vmatprep.subr.bf16.mxu1 %v42158_v19  ;;  %v20432_v22 = vsel %vm417_vm6, %v42166_v46, 0  ;;  %s34661_s15 = scalar_lea.vmem %s34660_s1, 32 }
 0xf96   : > { %v20146_v8 = vadd.f32 %v27864_v60, %v20038_v2  ;;  %v40281_v60 = vsub.f32 %v20432_v22, %v20432_v22 }
 0xf98   : > { %33172 = vmatpush3.bf16.msra.mxu1 %v42159_v29  ;;  %v20314_v56 = vadd.f32 %v42164_v51, %v20146_v8  ;;  %42167 = vst [vmem:[#allocation20_spill] sm:$0xff] %v40281_v60  ;;  %v40284_v2 = vand.u32 4294901760, %v40281_v60 }
 0xf99   : > { %33174 = vmatprep.subr.bf16.mxu1 %v42160_v10 }
 0xf9a   : > { %42168 = vst [vmem:[#allocation11_spill] sm:$0xff] %v40284_v2  ;;  %v20506_v51 = vsub.f32 %v40281_v60, %v40284_v2 }
 0xf9c   : > { %33176 = vmatpush3.bf16.msra.mxu1 %v42161_v17  ;;  %v40290_v29 = vand.u32 4294901760, %v20506_v51  ;;  %v42174_v51 = vld [vmem:[#allocation62_spill] sm:$0xff] }
 0xf9d   : > { %31426 = vmatprep.subr.mxu1 %v42165_v33 }
 0xf9e   : > { %42169 = vst [vmem:[#allocation115_spill] sm:$0xff] %v40290_v29 }
 0xf9f   : > { %22591 = vmatmul.mubr.f32.vlgmr.msra.gmra.mrb[90].mxu1 %v40204_v5 }
 0xfa0   : > { %31428 = vmatprep.mubr.msk.f32.mxu1 %vm34727_vm5, %v42165_v33 }
 0xfb2   : > { %v27932_v16 = vpop.f32.mrb[78].mxu1 }
 0xfb3   : > { %v27933_v26 = vpop.f32.mrb[79].mxu1 }
 0xfb4   : > { %v27934_v53 = vadd.f32 %v27933_v26, %v27932_v16 }
 0xfb6   : > { %v20418_v44 = vadd.f32 %v27934_v53, %v20314_v56  ;;  %v42170_v53 = vld [vmem:[#allocation54_spill] sm:$0xff] }
 0xfb8   : > { %v20421_v41 = vmax.f32 %v40215_v4, %v20418_v44  ;;  %v42171_v44 = vld [vmem:[#allocation59_spill] sm:$0xff] }
 0xfba   : > { %v20423_v8 = vrot.slane %v20421_v41, 1 }
 0xfbc   : > { %v20425_v17 = vmax.f32 %v20421_v41, %v20423_v8  ;;  %v42172_v41 = vld [vmem:[#allocation23_spill] sm:$0xff]  ;;  %v42173_v8 = vld [vmem:[#allocation61_spill] sm:$0xff] }
 0xfbe   : > { %v20435_v10 = vsel %vm387_vm2, %v20425_v17, 0 }
 0xfbf   : > { %v20438_v19 = vand.u32 4294901760, %v20435_v10 }
 0xfc1   : > { %31392 = vmatpush3.msra.mxu0 %v20438_v19  ;;  %v20515_v22 = vsub.f32 %v20435_v10, %v20438_v19 }
 0xfc2   : > { %31394 = vmatmul.mubr.f32.vlgmr.msra.gmra.mrb[84].mxu0 %v40290_v29  ;;  %31396 = vmatprep.subr.mxu0 %v42165_v33 }
 0xfc3   : > { %v20516_v56 = vand.u32 4294901760, %v20515_v22  ;;  %31398 = vmatprep.mubr.msk.f32.mxu0 %vm34727_vm5, %v42165_v33 }
 0xfc5   : > { %v20517_v4 = vsub.f32 %v20515_v22, %v20516_v56 }
 0xfc7   : > { %v20518_v16 = vand.u32 4294901760, %v20517_v4 }
 0xfc9   : > { %31397 = vmatpush3.msra.mxu0 %v20518_v16 }
 0xfca   : > { %31399 = vmatmul.mubr.msk.f32.vlgmr.msra.gmra.mrb[84].mxu0 %vm417_vm6, %v42166_v46  ;;  %31401 = vmatprep.subr.mxu0 %v42165_v33 }
 0xfcb   : > { %31402 = vmatpush3.msra.mxu0 %v20515_v22  ;;  %31403 = vmatprep.mubr.msk.f32.mxu0 %vm34727_vm5, %v42165_v33  ;;  %v42175_v22 = vld [vmem:[#allocation64_spill] sm:$0xff] }
 0xfcc   : > { %31406 = vmatprep.subr.mxu0 %v42165_v33 }
 0xfd2   : > { %31404 = vmatmul.mubr.f32.vlgmr.msra.gmra.mrb[84].mxu0 %v40281_v60  ;;  %v27979_v10 = vpop.f32.mrb[80].mxu1 }
 0xfd3   : > { %31407 = vmatpush3.msra.mxu0 %v20438_v19  ;;  %v27980_v17 = vpop.f32.mrb[81].mxu1  ;;  %31408 = vmatprep.mubr.msk.f32.mxu0 %vm34727_vm5, %v42165_v33 }
 0xfd4   : > { %v40305_v26 = vadd.f32 %v27980_v17, %v27979_v10  ;;  %31411 = vmatprep.subr.mxu0 %v42165_v33  ;;  %v42177_v10 = vld [vmem:[#allocation66_spill] sm:$0xff]  ;;  %v42178_v17 = vld [vmem:[#allocation72_spill] sm:$0xff] }
 0xfda   : > { %31409 = vmatmul.mubr.f32.vlgmr.msra.gmra.mrb[84].mxu0 %v40284_v2 }
 0xfdb   : > { %31412 = vmatpush3.msra.mxu0 %v20516_v56  ;;  %31413 = vmatprep.mubr.msk.f32.mxu0 %vm34727_vm5, %v42165_v33 }
 0xfdc   : > { %31416 = vmatprep.subr.mxu0 %v42165_v33 }
 0xfe2   : > { %31414 = vmatmul.mubr.msk.f32.vlgmr.msra.gmra.mrb[84].mxu0 %vm417_vm6, %v42166_v46 }
 0xfe3   : > { %31417 = vmatpush3.msra.mxu0 %v20438_v19  ;;  %31418 = vmatprep.mubr.msk.f32.mxu0 %vm34727_vm5, %v42165_v33  ;;  %v42176_v19 = vld [vmem:[#allocation63_spill] sm:$0xff] }
 0xfe4   : > { %32858 = vmatprep.subr.bf16.mxu0 %v42170_v53 }
 0xfea   : > { %31419 = vmatmul.mubr.msk.f32.vlgmr.msra.gmra.mrb[84].mxu0 %vm417_vm6, %v42166_v46 }
 0xfeb   : > { %32860 = vmatpush3.bf16.msra.mxu0 %v42171_v44  ;;  %21267 = vmatprep.mubr.f32.mxu0 %v42172_v41 }
 0xfec   : > { %32862 = vmatprep.subr.bf16.mxu0 %v42173_v8 }
 0xfef   : > { %32864 = vmatpush3.bf16.msra.mxu0 %v42174_v51 }
 0xff0   : > { %32866 = vmatprep.subr.bf16.mxu0 %v42175_v22 }
 0xff2   : > { %v28049_v56 = vpop.f32.mrb[82].mxu1 }
 0xff3   : > { %32868 = vmatpush3.bf16.msra.mxu0 %v42176_v19  ;;  %v28050_v4 = vpop.f32.mrb[83].mxu1 }
 0xff4   : > { %v40325_v16 = vadd.f32 %v28050_v4, %v28049_v56  ;;  %32870 = vmatprep.subr.bf16.mxu0 %v42177_v10  ;;  %v42186_v56 = vld [vmem:[#allocation22_spill] sm:$0xff] }
 0xff5   : > { %v42187_v4 = vld [vmem:[#allocation26_spill] sm:$0xff] }
 0xff6   : > { %v42188_v42 = vand.u32 4294901760, %v42187_v4 }
 0xff7   : > { %32872 = vmatpush3.bf16.msra.mxu0 %v42178_v17 }
 0xff8   : > { %32874 = vmatprep.subr.bf16.mxu0 %v42179_v3 }
 0xffb   : > { %32876 = vmatpush3.bf16.msra.mxu0 %v42180_v50 }
 0xffc   : > { %32878 = vmatprep.subr.bf16.mxu0 %v42181_v25 }
 0xfff   : > { %32880 = vmatpush3.bf16.msra.mxu0 %v42182_v57 }
0x1000   : > { %32882 = vmatprep.subr.bf16.mxu0 %v42183_v49 }
0x1003   : > { %32884 = vmatpush3.bf16.msra.mxu0 %v42184_v11 }
0x1004   : > { %32886 = vmatprep.subr.bf16.mxu0 %v42185_v23 }
0x1007   : > { %32888 = vmatpush3.bf16.msra.mxu0 %v42186_v56 }
0x1008   : > { %32922 = vmatprep.subr.bf16.mxu0 %v42083_v14 }
0x100a   : > { %21269 = vmatmul.mubr.f32.vlgmr.msra.gmra.mrb[86].mxu0 %v40101_v24 }
0x100b   : > { %32924 = vmatpush3.bf16.msra.mxu0 %v42084_v45  ;;  %21511 = vmatprep.mubr.f32.mxu0 %v42188_v42  ;;  %v42189_v42 = vld [vmem:[#allocation97_spill] sm:$0xff] }
0x100c   : > { %32926 = vmatprep.subr.bf16.mxu0 %v42085_v38 }
0x100f   : > { %32928 = vmatpush3.bf16.msra.mxu0 %v42086_v13 }
0x1010   : > { %32930 = vmatprep.subr.bf16.mxu0 %v42087_v12 }
0x1012   : > { %v28119_v27 = vpop.f32.mrb[84].mxu1 }
0x1013   : > { %32932 = vmatpush3.bf16.msra.mxu0 %v42090_v43  ;;  %v28120_v32 = vpop.f32.mrb[85].mxu1 }
0x1014   : > { %v40346_v52 = vadd.f32 %v28120_v32, %v28119_v27  ;;  %32934 = vmatprep.subr.bf16.mxu0 %v42091_v35  ;;  %v42190_v32 = vand.u32 4294901760, %v42189_v42 }
0x1017   : > { %32936 = vmatpush3.bf16.msra.mxu0 %v42092_v48 }
0x1018   : > { %32938 = vmatprep.subr.bf16.mxu0 %v42093_v9 }
0x101b   : > { %32940 = vmatpush3.bf16.msra.mxu0 %v42095_v28 }
0x101c   : > { %32942 = vmatprep.subr.bf16.mxu0 %v42096_v15 }
0x101f   : > { %32944 = vmatpush3.bf16.msra.mxu0 %v42097_v31 }
0x1020   : > { %32946 = vmatprep.subr.bf16.mxu0 %v42098_v1 }
0x1023   : > { %32948 = vmatpush3.bf16.msra.mxu0 %v42099_v30 }
0x1024   : > { %32950 = vmatprep.subr.bf16.mxu0 %v42100_v54 }
0x1027   : > { %32952 = vmatpush3.bf16.msra.mxu0 %v42102_v18 }
0x1028   : > { %32986 = vmatprep.subr.bf16.mxu0 %v42083_v14 }
0x102a   : > { %21515 = vmatmul.mubr.f32.vlgmr.msra.gmra.mrb[88].mxu0 %v42190_v32 }
0x102b   : > { %32988 = vmatpush3.bf16.msra.mxu0 %v42084_v45  ;;  %21785 = vmatprep.mubr.f32.mxu0 %v42172_v41 }
0x102c   : > { %32990 = vmatprep.subr.bf16.mxu0 %v42085_v38 }
0x102f   : > { %32992 = vmatpush3.bf16.msra.mxu0 %v42086_v13 }
0x1030   : > { %32994 = vmatprep.subr.bf16.mxu0 %v42087_v12 }
0x1032   : > { %v28189_v27 = vpop.f32.mrb[86].mxu1 }
0x1033   : > { %32996 = vmatpush3.bf16.msra.mxu0 %v42090_v43  ;;  %v28190_v4 = vpop.f32.mrb[87].mxu1 }
0x1034   : > { %v40367_v55 = vadd.f32 %v28190_v4, %v28189_v27  ;;  %32998 = vmatprep.subr.bf16.mxu0 %v42091_v35 }
0x1037   : > { %33000 = vmatpush3.bf16.msra.mxu0 %v42092_v48 }
0x1038   : > { %33002 = vmatprep.subr.bf16.mxu0 %v42093_v9 }
0x103b   : > { %33004 = vmatpush3.bf16.msra.mxu0 %v42095_v28 }
0x103c   : > { %33006 = vmatprep.subr.bf16.mxu0 %v42096_v15 }
0x103f   : > { %33008 = vmatpush3.bf16.msra.mxu0 %v42097_v31 }
0x1040   : > { %33010 = vmatprep.subr.bf16.mxu0 %v42098_v1 }
0x1043   : > { %33012 = vmatpush3.bf16.msra.mxu0 %v42099_v30 }
0x1044   : > { %33014 = vmatprep.subr.bf16.mxu0 %v42100_v54 }
0x1047   : > { %33016 = vmatpush3.bf16.msra.mxu0 %v42102_v18 }
0x1048   : > { %33050 = vmatprep.subr.bf16.mxu0 %v42170_v53 }
0x104a   : > { %21787 = vmatmul.mubr.f32.vlgmr.msra.gmra.mrb[90].mxu0 %v40101_v24  ;;  %v42191_v24 = vand.u32 4294901760, %v40177_v39  ;;  %v42192_v39 = vand.u32 4294901760, %v40209_v61 }
0x104b   : > { %33052 = vmatpush3.bf16.msra.mxu0 %v42171_v44  ;;  %22175 = vmatprep.mubr.f32.mxu0 %v40172_v40 }
0x104c   : > { %33054 = vmatprep.subr.bf16.mxu0 %v42173_v8 }
0x104f   : > { %33056 = vmatpush3.bf16.msra.mxu0 %v42174_v51 }
0x1050   : > { %33058 = vmatprep.subr.bf16.mxu0 %v42175_v22 }
0x1052   : > { %v28259_v41 = vpop.f32.mrb[88].mxu1 }
0x1053   : > { %33060 = vmatpush3.bf16.msra.mxu0 %v42176_v19  ;;  %v28260_v42 = vpop.f32.mrb[89].mxu1 }
0x1054   : > { %v40387_v32 = vadd.f32 %v28260_v42, %v28259_v41  ;;  %33062 = vmatprep.subr.bf16.mxu0 %v42177_v10 }
0x1057   : > { %33064 = vmatpush3.bf16.msra.mxu0 %v42178_v17 }
0x1058   : > { %33066 = vmatprep.subr.bf16.mxu0 %v42179_v3 }
0x105b   : > { %33068 = vmatpush3.bf16.msra.mxu0 %v42180_v50 }
0x105c   : > { %33070 = vmatprep.subr.bf16.mxu0 %v42181_v25 }
0x105f   : > { %33072 = vmatpush3.bf16.msra.mxu0 %v42182_v57 }
0x1060   : > { %33074 = vmatprep.subr.bf16.mxu0 %v42183_v49 }
0x1063   : > { %33076 = vmatpush3.bf16.msra.mxu0 %v42184_v11 }
0x1064   : > { %33078 = vmatprep.subr.bf16.mxu0 %v42185_v23 }
0x1067   : > { %33080 = vmatpush3.bf16.msra.mxu0 %v42186_v56 }
0x1068   : > { %33114 = vmatprep.subr.bf16.mxu0 %v42083_v14 }
0x106a   : > { %22177 = vmatmul.mubr.f32.vlgmr.msra.gmra.mrb[92].mxu0 %v40204_v5 }
0x106b   : > { %33116 = vmatpush3.bf16.msra.mxu0 %v42084_v45  ;;  %22419 = vmatprep.mubr.f32.mxu0 %v42191_v24 }
0x106c   : > { %33118 = vmatprep.subr.bf16.mxu0 %v42085_v38 }
0x106f   : > { %33120 = vmatpush3.bf16.msra.mxu0 %v42086_v13 }
0x1070   : > { %33122 = vmatprep.subr.bf16.mxu0 %v42087_v12 }
0x1072   : > { %v28329_v27 = vpop.f32.mrb[90].mxu1 }
0x1073   : > { %33124 = vmatpush3.bf16.msra.mxu0 %v42090_v43  ;;  %v28330_v4 = vpop.f32.mrb[91].mxu1 }
0x1074   : > { %v40408_v41 = vadd.f32 %v28330_v4, %v28329_v27  ;;  %33126 = vmatprep.subr.bf16.mxu0 %v42091_v35 }
0x1077   : > { %33128 = vmatpush3.bf16.msra.mxu0 %v42092_v48 }
0x1078   : > { %33130 = vmatprep.subr.bf16.mxu0 %v42093_v9 }
0x107b   : > { %33132 = vmatpush3.bf16.msra.mxu0 %v42095_v28 }
0x107c   : > { %33134 = vmatprep.subr.bf16.mxu0 %v42096_v15 }
0x107f   : > { %33136 = vmatpush3.bf16.msra.mxu0 %v42097_v31 }
0x1080   : > { %33138 = vmatprep.subr.bf16.mxu0 %v42098_v1 }
0x1083   : > { %33140 = vmatpush3.bf16.msra.mxu0 %v42099_v30 }
0x1084   : > { %33142 = vmatprep.subr.bf16.mxu0 %v42100_v54 }
0x1087   : > { %33144 = vmatpush3.bf16.msra.mxu0 %v42102_v18 }
0x1088   : > { %33178 = vmatprep.subr.bf16.mxu0 %v42083_v14 }
0x108a   : > { %22423 = vmatmul.mubr.f32.vlgmr.msra.gmra.mrb[94].mxu0 %v42192_v39 }
0x108b   : > { %33180 = vmatpush3.bf16.msra.mxu0 %v42084_v45  ;;  %22693 = vmatprep.mubr.f32.mxu0 %v40172_v40  ;;  %v40446_v40 = vld [vmem:[%s41253_s4] ss:$0 sm:$0xff] }
0x108c   : > { %33182 = vmatprep.subr.bf16.mxu0 %v42085_v38  ;;  %42193 = vst [vmem:[#allocation111_spill] sm:$0xff] %v40446_v40 }
0x108f   : > { %33184 = vmatpush3.bf16.msra.mxu0 %v42086_v13 }
0x1090   : > { %33186 = vmatprep.subr.bf16.mxu0 %v42087_v12 }
0x1093   : > { %33188 = vmatpush3.bf16.msra.mxu0 %v42090_v43 }
0x1094   : > { %33190 = vmatprep.subr.bf16.mxu0 %v42091_v35 }
0x1097   : > { %33192 = vmatpush3.bf16.msra.mxu0 %v42092_v48 }
0x1098   : > { %33194 = vmatprep.subr.bf16.mxu0 %v42093_v9 }
0x109b   : > { %33196 = vmatpush3.bf16.msra.mxu0 %v42095_v28 }
0x109c   : > { %33198 = vmatprep.subr.bf16.mxu0 %v42096_v15 }
0x109f   : > { %33200 = vmatpush3.bf16.msra.mxu0 %v42097_v31 }
0x10a0   : > { %33202 = vmatprep.subr.bf16.mxu0 %v42098_v1 }
0x10a3   : > { %33204 = vmatpush3.bf16.msra.mxu0 %v42099_v30 }
0x10a4   : > { %33206 = vmatprep.subr.bf16.mxu0 %v42100_v54 }
0x10a7   : > { %33208 = vmatpush3.bf16.msra.mxu0 %v42102_v18 }
0x10a8   : > { %31421 = vmatprep.subr.mxu0 %v42165_v33 }
0x10aa   : > { %22695 = vmatmul.mubr.f32.vlgmr.msra.gmra.mrb[96].mxu0 %v40204_v5 }
0x10ab   : > { %31423 = vmatprep.mubr.msk.f32.mxu0 %vm34727_vm5, %v42165_v33 }
0x10bd   : > { %v20879_v61 = vpop.f32.mrb[84].mxu0 }
0x10be   : > { %v33811_v42 = vadd.f32 %v40446_v40, %v20879_v61  ;;  %v31420_v24 = vpop.f32.mrb[85].mxu0 }
0x10c0   : > { %v40449_v27 = vmax.f32 %v33811_v42, 0.0 }
0x10c2   : > { %42194 = vst [vmem:[#allocation10_spill] sm:$0xff] %v40449_v27  ;;  %v25427_v4 = vrot.slane %v40449_v27, 1  ;;  %v25431_v39 = vrot.slane %v40449_v27, 2 }
0x10c4   : > { %25432 = vrot.lane.b32.xlu1 %v25431_v39, %s34762_s18  ;;  %25428 = vrot.lane.b32.xlu0 %v25427_v4, %s41655_s24  ;;  %s34767_s24 = smov 60   ;;  %s34768_s18 = smov 80  }
0x10dd   : > { %v28014_v5 = vpop.f32.mrb[86].mxu0 }
0x10de   : > { %v28015_v56 = vpop.f32.mrb[87].mxu0 }
0x10df   : > { %v28016_v23 = vadd.f32 %v28015_v56, %v28014_v5 }
0x10e1   : > { %v21271_v11 = vadd.f32 %v28016_v23, %v40305_v26 }
0x10e3   : > { %v21409_v49 = vadd.f32 %v40325_v16, %v21271_v11 }
0x10fd   : > { %v28084_v57 = vpop.f32.mrb[88].mxu0 }
0x10fe   : > { %v28085_v61 = vpop.f32.mrb[89].mxu0 }
0x10ff   : > { %v28086_v24 = vadd.f32 %v28085_v61, %v28084_v57 }
0x1101   : > { %v21517_v42 = vadd.f32 %v28086_v24, %v21409_v49 }
0x1103   : > { %v21685_v40 = vadd.f32 %v40346_v52, %v21517_v42  ;;  %v23196_v52 = vsel %vm18639_vm3, %v40249_v58, %v40247_v21 }
0x1104   : > { %v23197_v49 = vsel %vm18641_vm10, %v23196_v52, %v40255_v47 }
0x111d   : > { %v28154_v25 = vpop.f32.mrb[90].mxu0 }
0x111e   : > { %v28155_v50 = vpop.f32.mrb[91].mxu0 }
0x111f   : > { %v28156_v27 = vadd.f32 %v28155_v50, %v28154_v25  ;;  %v23199_v50 = vsel %vm18643_vm11, %v23197_v49, 0  ;;  %v42196_v49 = vld [vmem:[#allocation24_spill] sm:$0xff] }
0x1120   : > { %v40467_v25 = vand.u32 4294901760, %v23199_v50 }
0x1121   : > { %v21789_v3 = vadd.f32 %v28156_v27, %v21685_v40 }
0x113d   : > { %v28224_v39 = vpop.f32.mrb[92].mxu0 }
0x113e   : > { %v28225_v17 = vpop.f32.mrb[93].mxu0 }
0x113f   : > { %v28226_v4 = vadd.f32 %v28225_v17, %v28224_v39 }
0x1141   : > { %v22179_v10 = vadd.f32 %v28226_v4, %v40367_v55 }
0x1143   : > { %v22317_v56 = vadd.f32 %v40387_v32, %v22179_v10  ;;  %v40470_v32 = vsub.f32 %v23199_v50, %v40467_v25  ;;  %v42197_v50 = vld [vmem:[#allocation66_spill] sm:$0xff] }
0x115d   : > { %v28294_v23 = vpop.f32.mrb[94].mxu0 }
0x115e   : > { %v28295_v26 = vpop.f32.mrb[95].mxu0 }
0x115f   : > { %v28296_v11 = vadd.f32 %v28295_v26, %v28294_v23  ;;  %v42195_v23 = vld [vmem:[#allocation34_spill] sm:$0xff] }
0x1160   : > { %v23194_v26 = vsel %vm18635_vm13, %v42195_v23, %v40253_v34  ;;  %v24093_v23 = vpop.permute.xlu0 %24092 }
0x1161   : > { %v22425_v16 = vadd.f32 %v28296_v11, %v22317_v56  ;;  %v23195_v11 = vsel %vm18637_vm8, %v23194_v26, %v40249_v58  ;;  %v42213_v26 = vld [vmem:[#allocation65_spill] sm:$0xff] }
0x1162   : > { %v40497_v34 = vand.u32 4294901760, %v23195_v11 }
0x1163   : > { %v22593_v57 = vadd.f32 %v40408_v41, %v22425_v16  ;;  %v41534_v41 = vand.u32 4294901760, %v40470_v32 }
0x1164   : > { %v40503_v16 = vsub.f32 %v23195_v11, %v40497_v34  ;;  %v42214_v11 = vld [vmem:[#allocation104_spill] sm:$0xff] }
0x1165   : > { %v23300_v21 = vsub.f32 %v40470_v32, %v41534_v41  ;;  %v24100_v41 = vpop.permute.xlu0 %24099 }
0x1166   : > { %v41533_v58 = vand.u32 4294901760, %v40503_v16 }
0x1167   : > { %v23301_v39 = vand.u32 4294901760, %v23300_v21  ;;  %v42205_v21 = vld [vmem:[#allocation68_spill] sm:$0xff] }
0x117d   : > { %v28364_v55 = vpop.f32.mrb[96].mxu0 }
0x117e   : > { %v28365_v17 = vpop.f32.mrb[97].mxu0 }
0x117f   : > { %v28366_v10 = vadd.f32 %v28365_v17, %v28364_v55  ;;  %v42198_v55 = vld [vmem:[#allocation98_spill] sm:$0xff]  ;;  %v42199_v17 = vld [vmem:[#allocation72_spill] sm:$0xff] }
0x1181   : > { %v22697_v40 = vadd.f32 %v28366_v10, %v22593_v57  ;;  %v23306_v57 = vsub.f32 %v40503_v16, %v41533_v58  ;;  %v42200_v10 = vld [vmem:[#allocation74_spill] sm:$0xff]  ;;  %v42216_v58 = vld [vmem:[#allocation91_spill] sm:$0xff] }
0x1183   : > { %v22700_v27 = vmax.f32 %v21789_v3, %v22697_v40  ;;  %v23307_v52 = vand.u32 4294901760, %v23306_v57  ;;  %v42201_v40 = vld [vmem:[#allocation67_spill] sm:$0xff]  ;;  %v42215_v57 = vld [vmem:[#allocation22_spill] sm:$0xff] }
0x1185   : > { %v22702_v5 = vrot.slane %v22700_v27, 1 }
0x1187   : > { %v22704_v61 = vmax.f32 %v22700_v27, %v22702_v5  ;;  %v42202_v27 = vld [vmem:[#allocation21_spill] sm:$0xff]  ;;  %v42203_v5 = vld [vmem:[#allocation75_spill] sm:$0xff] }
0x1189   : > { %v22706_v47 = vsel %vm387_vm2, %v22704_v61, 0  ;;  %v42204_v61 = vld [vmem:[#allocation28_spill] sm:$0xff] }
0x118a   : > { %v22709_v24 = vand.u32 4294901760, %v22706_v47 }
0x118c   : > { %31422 = vmatpush3.msra.mxu0 %v22709_v24  ;;  %v22786_v42 = vsub.f32 %v22706_v47, %v22709_v24  ;;  %v42206_v47 = vld [vmem:[#allocation99_spill] sm:$0xff] }
0x118d   : > { %31424 = vmatmul.mubr.f32.vlgmr.msra.gmra.mrb[98].mxu0 %v40290_v29  ;;  %33210 = vmatprep.subr.bf16.mxu0 %v42083_v14 }
0x118e   : > { %33212 = vmatpush3.bf16.msra.mxu0 %v42084_v45  ;;  %23302 = vmatprep.mubr.f32.mxu0 %v23301_v39  ;;  %v22787_v3 = vand.u32 4294901760, %v22786_v42  ;;  %v42209_v39 = vld [vmem:[#allocation90_spill] sm:$0xff] }
0x118f   : > { %33214 = vmatprep.subr.bf16.mxu0 %v42085_v38 }
0x1190   : > { %v22788_v4 = vsub.f32 %v22786_v42, %v22787_v3 }
0x1192   : > { %33216 = vmatpush3.bf16.msra.mxu0 %v42086_v13  ;;  %v22789_v56 = vand.u32 4294901760, %v22788_v4  ;;  %v42211_v4 = vld [vmem:[#allocation60_spill] sm:$0xff] }
0x1193   : > { %33218 = vmatprep.subr.bf16.mxu0 %v42087_v12 }
0x1194   : > { %31427 = vmatpush3.msra.mxu1 %v22789_v56  ;;  %v42212_v56 = vld [vmem:[#allocation103_spill] sm:$0xff] }
0x1195   : > { %31429 = vmatmul.mubr.msk.f32.vlgmr.msra.gmra.mrb[92].mxu1 %vm417_vm6, %v42166_v46  ;;  %31431 = vmatprep.subr.mxu1 %v42165_v33 }
0x1196   : > { %31432 = vmatpush3.msra.mxu1 %v22786_v42  ;;  %33220 = vmatpush3.bf16.msra.mxu0 %v42090_v43  ;;  %v42208_v42 = vld [vmem:[#allocation95_spill] sm:$0xff] }
0x1197   : > { %33222 = vmatprep.subr.bf16.mxu0 %v42091_v35  ;;  %31433 = vmatprep.mubr.msk.f32.mxu1 %vm34727_vm5, %v42165_v33 }
0x1198   : > { %31436 = vmatprep.subr.mxu1 %v42165_v33 }
0x119a   : > { %33224 = vmatpush3.bf16.msra.mxu0 %v42092_v48 }
0x119b   : > { %33226 = vmatprep.subr.bf16.mxu0 %v42093_v9 }
0x119d   : > { %31434 = vmatmul.mubr.f32.vlgmr.msra.gmra.mrb[92].mxu1 %v40281_v60 }
0x119e   : > { %31437 = vmatpush3.msra.mxu1 %v22709_v24  ;;  %33228 = vmatpush3.bf16.msra.mxu0 %v42095_v28 }
0x119f   : > { %33230 = vmatprep.subr.bf16.mxu0 %v42096_v15  ;;  %31438 = vmatprep.mubr.msk.f32.mxu1 %vm34727_vm5, %v42165_v33 }
0x11a0   : > { %31441 = vmatprep.subr.mxu1 %v42165_v33 }
0x11a2   : > { %33232 = vmatpush3.bf16.msra.mxu0 %v42097_v31 }
0x11a3   : > { %33234 = vmatprep.subr.bf16.mxu0 %v42098_v1 }
0x11a5   : > { %31439 = vmatmul.mubr.f32.vlgmr.msra.gmra.mrb[92].mxu1 %v40284_v2  ;;  %v42217_v2 = vld [vmem:[#allocation93_spill] sm:$0xff] }
0x11a6   : > { %31442 = vmatpush3.msra.mxu1 %v22787_v3  ;;  %33236 = vmatpush3.bf16.msra.mxu0 %v42099_v30  ;;  %v42210_v3 = vld [vmem:[#allocation101_spill] sm:$0xff] }
0x11a7   : > { %33238 = vmatprep.subr.bf16.mxu0 %v42100_v54  ;;  %31443 = vmatprep.mubr.msk.f32.mxu1 %vm34727_vm5, %v42165_v33 }
0x11a8   : > { %31446 = vmatprep.subr.mxu1 %v42165_v33 }
0x11aa   : > { %33240 = vmatpush3.bf16.msra.mxu0 %v42102_v18 }
0x11ab   : > { %33274 = vmatprep.subr.bf16.mxu0 %v39639_v63 }
0x11ad   : > { %31444 = vmatmul.mubr.msk.f32.vlgmr.msra.gmra.mrb[92].mxu1 %vm417_vm6, %v42166_v46  ;;  %23308 = vmatmul.mubr.f32.vlgmr.msra.gmra.mrb[100].mxu0 %v23307_v52  ;;  %v24096_v52 = vpop.permute.xlu1 %24095 }
0x11ae   : > { %31447 = vmatpush3.msra.mxu1 %v22709_v24  ;;  %33276 = vmatpush3.bf16.msra.mxu0 %v39644_v62  ;;  %v42207_v24 = vld [vmem:[#allocation87_spill] sm:$0xff]  ;;  %v24104_v60 = vsel %vm18639_vm3, %v24093_v23, %v24096_v52  ;;  %v42222_v52 = vld [vmem:[#allocation100_spill] sm:$0xff] }
0x11af   : > { %23675 = vmatprep.mubr.f32.mxu0 %v40470_v32  ;;  %33278 = vmatprep.subr.bf16.mxu0 %v39649_v0  ;;  %v24105_v29 = vsel %vm18641_vm10, %v24104_v60, %v24100_v41  ;;  %v42224_v60 = vld [vmem:[#allocation27_spill] sm:$0xff]  ;;  %v42225_v41 = vld [vmem:[#allocation46_spill] sm:$0xff] }
0x11b0   : > { %31448 = vmatprep.mubr.msk.f32.mxu1 %vm34727_vm5, %v42165_v33  ;;  %33242 = vmatprep.subr.bf16.mxu1 %v42170_v53  ;;  %v42219_v33 = vld [vmem:[#allocation94_spill] sm:$0xff] }
0x11b2   : > { %33280 = vmatpush3.bf16.msra.mxu0 %v39656_v20 }
0x11b3   : > { %33282 = vmatprep.subr.bf16.mxu0 %v39661_v36 }
0x11b5   : > { %31449 = vmatmul.mubr.msk.f32.vlgmr.msra.gmra.mrb[92].mxu1 %vm417_vm6, %v42166_v46  ;;  %v42218_v46 = vand.u32 4294901760, %v40470_v32 }
0x11b6   : > { %33244 = vmatpush3.bf16.msra.mxu1 %v42171_v44  ;;  %23538 = vmatprep.mubr.f32.mxu1 %v40467_v25 }
0x11b7   : > { %33284 = vmatpush3.bf16.msra.mxu0 %v39666_v6  ;;  %33246 = vmatprep.subr.bf16.mxu1 %v42173_v8 }
0x11b8   : > { %33286 = vmatprep.subr.bf16.mxu0 %v39671_v7 }
0x11ba   : > { %33248 = vmatpush3.bf16.msra.mxu1 %v42174_v51 }
0x11bb   : > { %33288 = vmatpush3.bf16.msra.mxu0 %v39676_v59  ;;  %33250 = vmatprep.subr.bf16.mxu1 %v42175_v22 }
0x11bc   : > { %33290 = vmatprep.subr.bf16.mxu0 %v39681_v37 }
0x11be   : > { %33252 = vmatpush3.bf16.msra.mxu1 %v42176_v19 }
0x11bf   : > { %33292 = vmatpush3.bf16.msra.mxu0 %v42196_v49  ;;  %33254 = vmatprep.subr.bf16.mxu1 %v42197_v50 }
0x11c0   : > { %33294 = vmatprep.subr.bf16.mxu0 %v42198_v55 }
0x11c2   : > { %33256 = vmatpush3.bf16.msra.mxu1 %v42199_v17 }
0x11c3   : > { %33296 = vmatpush3.bf16.msra.mxu0 %v42200_v10  ;;  %33258 = vmatprep.subr.bf16.mxu1 %v42201_v40 }
0x11c4   : > { %33298 = vmatprep.subr.bf16.mxu0 %v42202_v27 }
0x11c6   : > { %33260 = vmatpush3.bf16.msra.mxu1 %v42203_v5 }
0x11c7   : > { %33300 = vmatpush3.bf16.msra.mxu0 %v42204_v61  ;;  %33262 = vmatprep.subr.bf16.mxu1 %v42205_v21 }
0x11c8   : > { %33302 = vmatprep.subr.bf16.mxu0 %v42206_v47 }
0x11ca   : > { %33264 = vmatpush3.bf16.msra.mxu1 %v42207_v24 }
0x11cb   : > { %33304 = vmatpush3.bf16.msra.mxu0 %v42208_v42  ;;  %33266 = vmatprep.subr.bf16.mxu1 %v42209_v39 }
0x11cc   : > { %33338 = vmatprep.subr.bf16.mxu0 %v42210_v3 }
0x11ce   : > { %33268 = vmatpush3.bf16.msra.mxu1 %v42211_v4  ;;  %23678 = vmatmul.mubr.f32.vlgmr.msra.gmra.mrb[102].mxu0 %v40503_v16 }
0x11cf   : > { %33340 = vmatpush3.bf16.msra.mxu0 %v42212_v56  ;;  %23952 = vmatprep.mubr.f32.mxu0 %v40467_v25 }
0x11d0   : > { %33270 = vmatprep.subr.bf16.mxu1 %v42213_v26  ;;  %33342 = vmatprep.subr.bf16.mxu0 %v42214_v11 }
0x11d2   : > { %33272 = vmatpush3.bf16.msra.mxu1 %v42215_v57  ;;  %v24107_v57 = vsel %vm18643_vm11, %v24105_v29, 0 }
0x11d3   : > { %33344 = vmatpush3.bf16.msra.mxu0 %v42216_v58  ;;  %33306 = vmatprep.subr.bf16.mxu1 %v42083_v14  ;;  %v42220_v58 = vld [vmem:[#allocation25_spill] sm:$0xff]  ;;  %v40584_v32 = vand.u32 4294901760, %v24107_v57 }
0x11d4   : > { %33346 = vmatprep.subr.bf16.mxu0 %v42217_v2  ;;  %v42221_v2 = vld [vmem:[#allocation96_spill] sm:$0xff] }
0x11d5   : > { %23540 = vmatmul.mubr.f32.vlgmr.msra.gmra.mrb[94].mxu1 %v40497_v34  ;;  %v40591_v29 = vsub.f32 %v24107_v57, %v40584_v32 }
0x11d6   : > { %33308 = vmatpush3.bf16.msra.mxu1 %v42084_v45  ;;  %23782 = vmatprep.mubr.f32.mxu1 %v42218_v46  ;;  %v42223_v46 = vld [vmem:[#allocation102_spill] sm:$0xff] }
0x11d7   : > { %33348 = vmatpush3.bf16.msra.mxu0 %v42219_v33  ;;  %33310 = vmatprep.subr.bf16.mxu1 %v42085_v38 }
0x11d8   : > { %33350 = vmatprep.subr.bf16.mxu0 %v42220_v58 }
0x11da   : > { %33312 = vmatpush3.bf16.msra.mxu1 %v42086_v13 }
0x11db   : > { %33352 = vmatpush3.bf16.msra.mxu0 %v42221_v2  ;;  %33314 = vmatprep.subr.bf16.mxu1 %v42087_v12  ;;  %v41540_v2 = vand.u32 4294901760, %v40591_v29 }
0x11dc   : > { %33354 = vmatprep.subr.bf16.mxu0 %v42222_v52  ;;  %v42226_v52 = vld [vmem:[#allocation106_spill] sm:$0xff] }
0x11dd   : > { %v24208_v57 = vsub.f32 %v40591_v29, %v41540_v2  ;;  %v24090_v2 = vpop.permute.xlu1 %24089 }
0x11de   : > { %33316 = vmatpush3.bf16.msra.mxu1 %v42090_v43 }
0x11df   : > { %33356 = vmatpush3.bf16.msra.mxu0 %v42223_v46  ;;  %33318 = vmatprep.subr.bf16.mxu1 %v42091_v35  ;;  %v42227_v46 = vld [vmem:[#allocation50_spill] sm:$0xff] }
0x11e0   : > { %33358 = vmatprep.subr.bf16.mxu0 %v42224_v60  ;;  %v42228_v60 = vld [vmem:[#allocation49_spill] sm:$0xff] }
0x11e2   : > { %33320 = vmatpush3.bf16.msra.mxu1 %v42092_v48 }
0x11e3   : > { %33360 = vmatpush3.bf16.msra.mxu0 %v42225_v41  ;;  %33322 = vmatprep.subr.bf16.mxu1 %v42093_v9  ;;  %v42229_v41 = vld [vmem:[#allocation88_spill] sm:$0xff] }
0x11e4   : > { %33362 = vmatprep.subr.bf16.mxu0 %v42226_v52  ;;  %v24209_v52 = vand.u32 4294901760, %v24208_v57  ;;  %v42230_v57 = vand.u32 4294901760, %v40503_v16 }
0x11e6   : > { %33324 = vmatpush3.bf16.msra.mxu1 %v42095_v28 }
0x11e7   : > { %33364 = vmatpush3.bf16.msra.mxu0 %v42227_v46  ;;  %33326 = vmatprep.subr.bf16.mxu1 %v42096_v15 }
0x11e8   : > { %33366 = vmatprep.subr.bf16.mxu0 %v42228_v60 }
0x11ea   : > { %33328 = vmatpush3.bf16.msra.mxu1 %v42097_v31 }
0x11eb   : > { %33368 = vmatpush3.bf16.msra.mxu0 %v42229_v41  ;;  %33330 = vmatprep.subr.bf16.mxu1 %v42098_v1  ;;  %v42231_v41 = vld [vmem:[#allocation38_spill] sm:$0xff] }
0x11ec   : > { %33402 = vmatprep.subr.bf16.mxu0 %v42083_v14  ;;  %v24102_v60 = vsel %vm18635_vm13, %v42231_v41, %v24090_v2 }
0x11ee   : > { %33332 = vmatpush3.bf16.msra.mxu1 %v42099_v30  ;;  %23954 = vmatmul.mubr.f32.vlgmr.msra.gmra.mrb[104].mxu0 %v40497_v34 }
0x11ef   : > { %33404 = vmatpush3.bf16.msra.mxu0 %v42084_v45  ;;  %24210 = vmatprep.mubr.f32.mxu0 %v24209_v52  ;;  %v24103_v52 = vsel %vm18637_vm8, %v24102_v60, %v24093_v23 }
0x11f0   : > { %33334 = vmatprep.subr.bf16.mxu1 %v42100_v54  ;;  %33406 = vmatprep.subr.bf16.mxu0 %v42085_v38  ;;  %v40631_v16 = vand.u32 4294901760, %v24103_v52 }
0x11f2   : > { %33336 = vmatpush3.bf16.msra.mxu1 %v42102_v18  ;;  %v40638_v2 = vsub.f32 %v24103_v52, %v40631_v16 }
0x11f3   : > { %33408 = vmatpush3.bf16.msra.mxu0 %v42086_v13  ;;  %33370 = vmatprep.subr.bf16.mxu1 %v42083_v14 }
0x11f4   : > { %33410 = vmatprep.subr.bf16.mxu0 %v42087_v12 }
0x11f5   : > { %23786 = vmatmul.mubr.f32.vlgmr.msra.gmra.mrb[96].mxu1 %v42230_v57 }
0x11f6   : > { %33372 = vmatpush3.bf16.msra.mxu1 %v42084_v45  ;;  %24056 = vmatprep.mubr.f32.mxu1 %v40467_v25  ;;  %v24213_v25 = vand.u32 4294901760, %v40638_v2 }
0x11f7   : > { %33412 = vmatpush3.bf16.msra.mxu0 %v42090_v43  ;;  %33374 = vmatprep.subr.bf16.mxu1 %v42085_v38 }
0x11f8   : > { %33414 = vmatprep.subr.bf16.mxu0 %v42091_v35  ;;  %v24214_v23 = vsub.f32 %v40638_v2, %v24213_v25 }
0x11fa   : > { %33376 = vmatpush3.bf16.msra.mxu1 %v42086_v13  ;;  %v24215_v60 = vand.u32 4294901760, %v24214_v23 }
0x11fb   : > { %33416 = vmatpush3.bf16.msra.mxu0 %v42092_v48  ;;  %33378 = vmatprep.subr.bf16.mxu1 %v42087_v12 }
0x11fc   : > { %33418 = vmatprep.subr.bf16.mxu0 %v42093_v9 }
0x11fe   : > { %33380 = vmatpush3.bf16.msra.mxu1 %v42090_v43 }
0x11ff   : > { %33420 = vmatpush3.bf16.msra.mxu0 %v42095_v28  ;;  %33382 = vmatprep.subr.bf16.mxu1 %v42091_v35 }
0x1200   : > { %33422 = vmatprep.subr.bf16.mxu0 %v42096_v15 }
0x1202   : > { %33384 = vmatpush3.bf16.msra.mxu1 %v42092_v48 }
0x1203   : > { %33424 = vmatpush3.bf16.msra.mxu0 %v42097_v31  ;;  %33386 = vmatprep.subr.bf16.mxu1 %v42093_v9 }
0x1204   : > { %33426 = vmatprep.subr.bf16.mxu0 %v42098_v1 }
0x1206   : > { %33388 = vmatpush3.bf16.msra.mxu1 %v42095_v28 }
0x1207   : > { %33428 = vmatpush3.bf16.msra.mxu0 %v42099_v30  ;;  %33390 = vmatprep.subr.bf16.mxu1 %v42096_v15 }
0x1208   : > { %33430 = vmatprep.subr.bf16.mxu0 %v42100_v54 }
0x120a   : > { %33392 = vmatpush3.bf16.msra.mxu1 %v42097_v31 }
0x120b   : > { %33432 = vmatpush3.bf16.msra.mxu0 %v42102_v18  ;;  %33394 = vmatprep.subr.bf16.mxu1 %v42098_v1 }
0x120c   : > { %33466 = vmatprep.subr.bf16.mxu0 %v39639_v63  ;;  %v42232_v63 = vld [vmem:[#allocation22_spill] sm:$0xff] }
0x120e   : > { %33396 = vmatpush3.bf16.msra.mxu1 %v42099_v30  ;;  %24216 = vmatmul.mubr.f32.vlgmr.msra.gmra.mrb[106].mxu0 %v24215_v60 }
0x120f   : > { %33468 = vmatpush3.bf16.msra.mxu0 %v39644_v62  ;;  %24583 = vmatprep.mubr.f32.mxu0 %v40591_v29  ;;  %v42233_v62 = vld [vmem:[#allocation91_spill] sm:$0xff] }
0x1210   : > { %33398 = vmatprep.subr.bf16.mxu1 %v42100_v54  ;;  %33470 = vmatprep.subr.bf16.mxu0 %v39649_v0  ;;  %v42234_v0 = vld [vmem:[#allocation93_spill] sm:$0xff] }
0x1212   : > { %33400 = vmatpush3.bf16.msra.mxu1 %v42102_v18 }
0x1213   : > { %33472 = vmatpush3.bf16.msra.mxu0 %v39656_v20  ;;  %33434 = vmatprep.subr.bf16.mxu1 %v42170_v53  ;;  %v42235_v20 = vand.u32 4294901760, %v40591_v29  ;;  %v42242_v53 = vld [vmem:[#allocation49_spill] sm:$0xff] }
0x1214   : > { %33474 = vmatprep.subr.bf16.mxu0 %v39661_v36  ;;  %v42236_v36 = vld [vmem:[#allocation96_spill] sm:$0xff] }
0x1215   : > { %24058 = vmatmul.mubr.f32.vlgmr.msra.gmra.mrb[98].mxu1 %v40497_v34 }
0x1216   : > { %33436 = vmatpush3.bf16.msra.mxu1 %v42171_v44  ;;  %24446 = vmatprep.mubr.f32.mxu1 %v40584_v32  ;;  %v42243_v44 = vld [vmem:[#allocation88_spill] sm:$0xff] }
0x1217   : > { %33476 = vmatpush3.bf16.msra.mxu0 %v39666_v6  ;;  %33438 = vmatprep.subr.bf16.mxu1 %v42173_v8  ;;  %v42237_v6 = vld [vmem:[#allocation100_spill] sm:$0xff]  ;;  %v42244_v8 = vmov 0.0  }
0x1218   : > { %33478 = vmatprep.subr.bf16.mxu0 %v39671_v7  ;;  %v42238_v7 = vld [vmem:[#allocation102_spill] sm:$0xff] }
0x121a   : > { %33440 = vmatpush3.bf16.msra.mxu1 %v42174_v51 }
0x121b   : > { %33480 = vmatpush3.bf16.msra.mxu0 %v39676_v59  ;;  %33442 = vmatprep.subr.bf16.mxu1 %v42175_v22  ;;  %v42239_v59 = vld [vmem:[#allocation27_spill] sm:$0xff] }
0x121c   : > { %33482 = vmatprep.subr.bf16.mxu0 %v39681_v37  ;;  %v42240_v37 = vld [vmem:[#allocation46_spill] sm:$0xff] }
0x121e   : > { %33444 = vmatpush3.bf16.msra.mxu1 %v42176_v19 }
0x121f   : > { %33484 = vmatpush3.bf16.msra.mxu0 %v42196_v49  ;;  %33446 = vmatprep.subr.bf16.mxu1 %v42197_v50 }
0x1220   : > { %33486 = vmatprep.subr.bf16.mxu0 %v42198_v55 }
0x1222   : > { %33448 = vmatpush3.bf16.msra.mxu1 %v42199_v17 }
0x1223   : > { %33488 = vmatpush3.bf16.msra.mxu0 %v42200_v10  ;;  %33450 = vmatprep.subr.bf16.mxu1 %v42201_v40 }
0x1224   : > { %33490 = vmatprep.subr.bf16.mxu0 %v42202_v27 }
0x1226   : > { %33452 = vmatpush3.bf16.msra.mxu1 %v42203_v5 }
0x1227   : > { %33492 = vmatpush3.bf16.msra.mxu0 %v42204_v61  ;;  %33454 = vmatprep.subr.bf16.mxu1 %v42205_v21 }
0x1228   : > { %33494 = vmatprep.subr.bf16.mxu0 %v42206_v47 }
0x122a   : > { %33456 = vmatpush3.bf16.msra.mxu1 %v42207_v24 }
0x122b   : > { %33496 = vmatpush3.bf16.msra.mxu0 %v42208_v42  ;;  %33458 = vmatprep.subr.bf16.mxu1 %v42209_v39 }
0x122c   : > { %33530 = vmatprep.subr.bf16.mxu0 %v42210_v3 }
0x122e   : > { %33460 = vmatpush3.bf16.msra.mxu1 %v42211_v4  ;;  %24586 = vmatmul.mubr.f32.vlgmr.msra.gmra.mrb[108].mxu0 %v40638_v2 }
0x122f   : > { %33532 = vmatpush3.bf16.msra.mxu0 %v42212_v56  ;;  %24860 = vmatprep.mubr.f32.mxu0 %v40584_v32 }
0x1230   : > { %33462 = vmatprep.subr.bf16.mxu1 %v42213_v26  ;;  %33534 = vmatprep.subr.bf16.mxu0 %v42214_v11 }
0x1232   : > { %33464 = vmatpush3.bf16.msra.mxu1 %v42232_v63 }
0x1233   : > { %33536 = vmatpush3.bf16.msra.mxu0 %v42233_v62  ;;  %33498 = vmatprep.subr.bf16.mxu1 %v42083_v14 }
0x1234   : > { %33538 = vmatprep.subr.bf16.mxu0 %v42234_v0 }
0x1235   : > { %24448 = vmatmul.mubr.f32.vlgmr.msra.gmra.mrb[100].mxu1 %v40631_v16 }
0x1236   : > { %33500 = vmatpush3.bf16.msra.mxu1 %v42084_v45  ;;  %24690 = vmatprep.mubr.f32.mxu1 %v42235_v20 }
0x1237   : > { %33540 = vmatpush3.bf16.msra.mxu0 %v42219_v33  ;;  %33502 = vmatprep.subr.bf16.mxu1 %v42085_v38  ;;  %v42241_v33 = vld [vmem:[#allocation106_spill] sm:$0xff] }
0x1238   : > { %33542 = vmatprep.subr.bf16.mxu0 %v42220_v58 }
0x123a   : > { %33504 = vmatpush3.bf16.msra.mxu1 %v42086_v13 }
0x123b   : > { %33544 = vmatpush3.bf16.msra.mxu0 %v42236_v36  ;;  %33506 = vmatprep.subr.bf16.mxu1 %v42087_v12 }
0x123c   : > { %33546 = vmatprep.subr.bf16.mxu0 %v42237_v6 }
0x123e   : > { %33508 = vmatpush3.bf16.msra.mxu1 %v42090_v43 }
0x123f   : > { %33548 = vmatpush3.bf16.msra.mxu0 %v42238_v7  ;;  %33510 = vmatprep.subr.bf16.mxu1 %v42091_v35 }
0x1240   : > { %33550 = vmatprep.subr.bf16.mxu0 %v42239_v59 }
0x1242   : > { %33512 = vmatpush3.bf16.msra.mxu1 %v42092_v48 }
0x1243   : > { %33552 = vmatpush3.bf16.msra.mxu0 %v42240_v37  ;;  %33514 = vmatprep.subr.bf16.mxu1 %v42093_v9 }
0x1244   : > { %33554 = vmatprep.subr.bf16.mxu0 %v42241_v33 }
0x1246   : > { %33516 = vmatpush3.bf16.msra.mxu1 %v42095_v28 }
0x1247   : > { %33556 = vmatpush3.bf16.msra.mxu0 %v42227_v46  ;;  %33518 = vmatprep.subr.bf16.mxu1 %v42096_v15 }
0x1248   : > { %33558 = vmatprep.subr.bf16.mxu0 %v42242_v53 }
0x124a   : > { %33520 = vmatpush3.bf16.msra.mxu1 %v42097_v31 }
0x124b   : > { %33560 = vmatpush3.bf16.msra.mxu0 %v42243_v44  ;;  %33522 = vmatprep.subr.bf16.mxu1 %v42098_v1  ;;  %v42247_v44 = vld [vmem:[#allocation115_spill] sm:$0xff] }
0x124c   : > { %31451 = vmatprep.subr.mxu0 %v42244_v8 }
0x124e   : > { %33524 = vmatpush3.bf16.msra.mxu1 %v42099_v30  ;;  %24862 = vmatmul.mubr.f32.vlgmr.msra.gmra.mrb[110].mxu0 %v40631_v16 }
0x124f   : > { %33526 = vmatprep.subr.bf16.mxu1 %v42100_v54  ;;  %31453 = vmatprep.mubr.msk.f32.mxu0 %vm34727_vm5, %v42244_v8 }
0x1252   : > { %33528 = vmatpush3.bf16.msra.mxu1 %v42102_v18 }
0x1253   : > { %33562 = vmatprep.subr.bf16.mxu1 %v42083_v14  ;;  %v42245_v14 = vmov 0.0|0.0  }
0x1255   : > { %24694 = vmatmul.mubr.f32.vlgmr.msra.gmra.mrb[102].mxu1 %v24213_v25 }
0x1256   : > { %33564 = vmatpush3.bf16.msra.mxu1 %v42084_v45  ;;  %24964 = vmatprep.mubr.f32.mxu1 %v40584_v32 }
0x1257   : > { %33566 = vmatprep.subr.bf16.mxu1 %v42085_v38 }
0x125a   : > { %33568 = vmatpush3.bf16.msra.mxu1 %v42086_v13 }
0x125b   : > { %33570 = vmatprep.subr.bf16.mxu1 %v42087_v12  ;;  %v42246_v12 = vld [vmem:[#allocation111_spill] sm:$0xff] }
0x125e   : > { %33572 = vmatpush3.bf16.msra.mxu1 %v42090_v43 }
0x125f   : > { %33574 = vmatprep.subr.bf16.mxu1 %v42091_v35 }
0x1260   : > { %v22780_v51 = vpop.f32.mrb[98].mxu0 }
0x1261   : > { %v31425_v22 = vpop.f32.mrb[99].mxu0  ;;  %v22781_v43 = vadd.f32 %v42246_v12, %v22780_v51  ;;  %v42250_v12 = vld [vmem:[#allocation11_spill] sm:$0xff] }
0x1262   : > { %33576 = vmatpush3.bf16.msra.mxu1 %v42092_v48 }
0x1263   : > { %33578 = vmatprep.subr.bf16.mxu1 %v42093_v9 }
0x1266   : > { %33580 = vmatpush3.bf16.msra.mxu1 %v42095_v28 }
0x1267   : > { %33582 = vmatprep.subr.bf16.mxu1 %v42096_v15 }
0x126a   : > { %33584 = vmatpush3.bf16.msra.mxu1 %v42097_v31 }
0x126b   : > { %33586 = vmatprep.subr.bf16.mxu1 %v42098_v1 }
0x126e   : > { %33588 = vmatpush3.bf16.msra.mxu1 %v42099_v30 }
0x126f   : > { %33590 = vmatprep.subr.bf16.mxu1 %v42100_v54 }
0x1272   : > { %33592 = vmatpush3.bf16.msra.mxu1 %v42102_v18 }
0x1273   : > { %33659 = vmatprep.subr.bf16.mxu1 %v42245_v14 }
0x1275   : > { %24966 = vmatmul.mubr.f32.vlgmr.msra.gmra.mrb[104].mxu1 %v40631_v16 }
0x1280   : > { %v28411_v45 = vpop.f32.mrb[100].mxu0 }
0x1281   : > { %v28412_v38 = vpop.f32.mrb[101].mxu0 }
0x1282   : > { %v28413_v13 = vadd.f32 %v28412_v38, %v28411_v45  ;;  %v42248_v38 = vld [vmem:[#allocation12_spill] sm:$0xff] }
0x1288   : > { %v23150_v15 = vpop.f32.mrb[92].mxu1 }
0x1289   : > { %v33813_v35 = vadd.f32 %v23150_v15, %v22781_v43  ;;  %v31450_v31 = vpop.f32.mrb[93].mxu1  ;;  %v317_v43 = vld [vmem:[%s41254_s5] sm:$0xff]  ;;  %v318_v15 = vld [vmem:[%s41254_s5 + $0x8] sm:$0xff] }
0x128a   : > { %v25480_v31 = vand.u32 4294901760, %v317_v43 }
0x128b   : > { %v40757_v48 = vmax.f32 %v33813_v35, 0.0  ;;  %v319_v35 = vld [vmem:[%s41254_s5 + $0x10] sm:$0xff] }
0x128d   : > { %v25439_v1 = vrot.slane %v40757_v48, 1  ;;  %25436 = vrot.lane.b32.xlu0 %v40757_v48, %s34767_s24 }
0x128f   : > { %25440 = vrot.lane.b32.xlu1 %v25439_v1, %s34768_s18  ;;  %v25483_v1 = vand.u32 4294901760, %v318_v15 }
0x12a1   : > { %v28481_v18 = vpop.f32.mrb[102].mxu0 }
0x12a2   : > { %v28482_v9 = vpop.f32.mrb[103].mxu0 }
0x12a3   : > { %v28483_v28 = vadd.f32 %v28482_v9, %v28481_v18  ;;  %v320_v18 = vld [vmem:[%s41254_s5 + $0x18] sm:$0xff]  ;;  %v25486_v9 = vand.u32 4294901760, %v319_v35 }
0x12a8   : > { %v28446_v30 = vpop.f32.mrb[94].mxu1 }
0x12a9   : > { %v28447_v54 = vpop.f32.mrb[95].mxu1 }
0x12aa   : > { %v28448_v19 = vadd.f32 %v28447_v54, %v28446_v30  ;;  %v322_v30 = vld [vmem:[%s41254_s5 + $0x28] sm:$0xff]  ;;  %v25489_v54 = vand.u32 4294901760, %v320_v18 }
0x12ac   : > { %v23542_v34 = vadd.f32 %v28448_v19, %v28413_v13  ;;  %v42249_v13 = vld [vmem:[#allocation20_spill] sm:$0xff] }
0x12ae   : > { %v23680_v58 = vadd.f32 %v28483_v28, %v23542_v34  ;;  %v321_v28 = vld [vmem:[%s41254_s5 + $0x20] sm:$0xff]  ;;  %v25495_v34 = vand.u32 4294901760, %v322_v30 }
0x12af   : > { %v25492_v19 = vand.u32 4294901760, %v321_v28 }
0x12c1   : > { %v28551_v49 = vpop.f32.mrb[104].mxu0 }
0x12c2   : > { %v28552_v50 = vpop.f32.mrb[105].mxu0 }
0x12c3   : > { %v28553_v55 = vadd.f32 %v28552_v50, %v28551_v49  ;;  %v40807_v49 = vsub.f32 %v318_v15, %v25483_v1  ;;  %v40809_v50 = vsub.f32 %v319_v35, %v25486_v9 }
0x12c8   : > { %v28516_v17 = vpop.f32.mrb[96].mxu1 }
0x12c9   : > { %v28517_v10 = vpop.f32.mrb[97].mxu1 }
0x12ca   : > { %v28518_v40 = vadd.f32 %v28517_v10, %v28516_v17  ;;  %v40813_v17 = vsub.f32 %v320_v18, %v25489_v54  ;;  %v323_v10 = vld [vmem:[%s41254_s5 + $0x30] sm:$0xff] }
0x12cc   : > { %v23788_v27 = vadd.f32 %v28518_v40, %v23680_v58  ;;  %v40805_v58 = vsub.f32 %v317_v43, %v25480_v31  ;;  %v324_v40 = vld [vmem:[%s41254_s5 + $0x38] sm:$0xff] }
0x12ce   : > { %v23956_v5 = vadd.f32 %v28553_v55, %v23788_v27  ;;  %v40811_v55 = vpack.c.bf16 %v25483_v1, %v25480_v31  ;;  %v33660_v27 = vpack.c.bf16 %v40807_v49, %v40805_v58 }
0x12d0   : > { %33661 = vmatpush1.bf16.msra.mxu1 %v33660_v27 }
0x12d1   : > { %33662 = vmatprep.subr.bf16.mxu1 %v42245_v14 }
0x12e1   : > { %v28621_v61 = vpop.f32.mrb[106].mxu0 }
0x12e2   : > { %v28622_v21 = vpop.f32.mrb[107].mxu0 }
0x12e3   : > { %v28623_v47 = vadd.f32 %v28622_v21, %v28621_v61  ;;  %v40826_v61 = vsub.f32 %v321_v28, %v25492_v19  ;;  %v40828_v21 = vsub.f32 %v322_v30, %v25495_v34 }
0x12e8   : > { %v28586_v24 = vpop.f32.mrb[98].mxu1 }
0x12e9   : > { %v28587_v42 = vpop.f32.mrb[99].mxu1 }
0x12ea   : > { %v28588_v39 = vadd.f32 %v28587_v42, %v28586_v24  ;;  %v25498_v24 = vand.u32 4294901760, %v323_v10  ;;  %v25501_v42 = vand.u32 4294901760, %v324_v40 }
0x12ec   : > { %v24060_v3 = vadd.f32 %v28588_v39, %v23956_v5  ;;  %v40824_v5 = vpack.c.bf16 %v25489_v54, %v25486_v9  ;;  %v325_v39 = vld [vmem:[%s41254_s5 + $0x40] sm:$0xff]  ;;  %v335_v54 = vld [vmem:[%s41254_s5 + $0x90] sm:$0xff] }
0x1301   : > { %v28691_v4 = vpop.f32.mrb[108].mxu0 }
0x1302   : > { %v28692_v56 = vpop.f32.mrb[109].mxu0 }
0x1303   : > { %v28693_v26 = vadd.f32 %v28692_v56, %v28691_v4  ;;  %v40841_v4 = vpack.c.bf16 %v25495_v34, %v25492_v19  ;;  %v33666_v56 = vpack.c.bf16 %v40828_v21, %v40826_v61  ;;  %v336_v19 = vld [vmem:[%s41254_s5 + $0x98] sm:$0xff]  ;;  %v25534_v34 = vand.u32 4294901760, %v335_v54 }
0x1305   : > { %v25710_v27 = vsub.f32 %v335_v54, %v25534_v34 }
0x1308   : > { %v28656_v11 = vpop.f32.mrb[100].mxu1 }
0x1309   : > { %v28657_v32 = vpop.f32.mrb[101].mxu1 }
0x130a   : > { %v28658_v46 = vadd.f32 %v28657_v32, %v28656_v11  ;;  %v40848_v11 = vsub.f32 %v324_v40, %v25501_v42  ;;  %v25504_v32 = vand.u32 4294901760, %v325_v39 }
0x130c   : > { %v24450_v29 = vadd.f32 %v28658_v46, %v28623_v47  ;;  %v33663_v47 = vpack.c.bf16 %v40813_v17, %v40809_v50 }
0x130e   : > { %v24588_v41 = vadd.f32 %v28693_v26, %v24450_v29  ;;  %33664 = vmatpush1.bf16.msra.mxu1 %v33663_v47  ;;  %v40846_v26 = vsub.f32 %v323_v10, %v25498_v24  ;;  %v327_v29 = vld [vmem:[%s41254_s5 + $0x50] sm:$0xff]  ;;  %v25537_v10 = vand.u32 4294901760, %v336_v19 }
0x130f   : > { %33665 = vmatprep.subr.bf16.mxu1 %v42245_v14 }
0x1310   : > { %v25717_v47 = vsub.f32 %v336_v19, %v25537_v10 }
0x1312   : > { %33667 = vmatpush1.bf16.msra.mxu1 %v33666_v56 }
0x1313   : > { %33668 = vmatprep.subr.bf16.mxu1 %v42245_v14 }
0x1321   : > { %v28761_v57 = vpop.f32.mrb[110].mxu0 }
0x1322   : > { %v28762_v52 = vpop.f32.mrb[111].mxu0 }
0x1323   : > { %v28763_v16 = vadd.f32 %v28762_v52, %v28761_v57  ;;  %v40858_v57 = vpack.c.bf16 %v25501_v42, %v25498_v24  ;;  %v25510_v52 = vand.u32 4294901760, %v327_v29  ;;  %v337_v24 = vld [vmem:[%s41254_s5 + $0xa0] sm:$0xff]  ;;  %v338_v42 = vld [vmem:[%s41254_s5 + $0xa8] sm:$0xff] }
0x1324   : > { %v25543_v56 = vand.u32 4294901760, %v338_v42 }
0x1328   : > { %v28726_v2 = vpop.f32.mrb[102].mxu1 }
0x1329   : > { %v28727_v25 = vpop.f32.mrb[103].mxu1 }
0x132a   : > { %v28728_v23 = vadd.f32 %v28727_v25, %v28726_v2  ;;  %v40863_v2 = vsub.f32 %v325_v39, %v25504_v32  ;;  %v33687_v39 = vpack.c.bf16 %v25717_v47, %v25710_v27 }
0x132c   : > { %v24696_v60 = vadd.f32 %v28728_v23, %v24588_v41  ;;  %v328_v41 = vld [vmem:[%s41254_s5 + $0x58] sm:$0xff] }
0x132d   : > { %v25513_v23 = vand.u32 4294901760, %v328_v41 }
0x132e   : > { %v24864_v63 = vadd.f32 %v28763_v16, %v24696_v60  ;;  %v33669_v16 = vpack.c.bf16 %v40848_v11, %v40846_v26  ;;  %v329_v60 = vld [vmem:[%s41254_s5 + $0x60] sm:$0xff] }
0x1330   : > { %33670 = vmatpush1.bf16.msra.mxu1 %v33669_v16 }
0x1331   : > { %33671 = vmatprep.subr.bf16.mxu1 %v42245_v14 }
0x1348   : > { %v28796_v62 = vpop.f32.mrb[104].mxu1 }
0x1349   : > { %v28797_v0 = vpop.f32.mrb[105].mxu1 }
0x134a   : > { %v28798_v20 = vadd.f32 %v28797_v0, %v28796_v62  ;;  %v40877_v0 = vsub.f32 %v327_v29, %v25510_v52  ;;  %v25731_v29 = vsub.f32 %v338_v42, %v25543_v56 }
0x134c   : > { %v24968_v36 = vadd.f32 %v28798_v20, %v24864_v63  ;;  %v330_v63 = vld [vmem:[%s41254_s5 + $0x68] sm:$0xff]  ;;  %v25732_v54 = vand.u32 4294901760, %v25731_v29 }
0x134e   : > { %v24971_v6 = vmax.f32 %v24060_v3, %v24968_v36  ;;  %v326_v3 = vld [vmem:[%s41254_s5 + $0x48] sm:$0xff]  ;;  %v40882_v36 = vsub.f32 %v328_v41, %v25513_v23 }
0x134f   : > { %v25507_v46 = vand.u32 4294901760, %v326_v3 }
0x1350   : > { %v24973_v7 = vrot.slane %v24971_v6, 1 }
0x1351   : > { %v40865_v25 = vsub.f32 %v326_v3, %v25507_v46  ;;  %v40875_v62 = vpack.c.bf16 %v25507_v46, %v25504_v32  ;;  %v25540_v3 = vand.u32 4294901760, %v337_v24 }
0x1352   : > { %v24975_v59 = vmax.f32 %v24971_v6, %v24973_v7  ;;  %v25516_v6 = vand.u32 4294901760, %v329_v60  ;;  %v25519_v7 = vand.u32 4294901760, %v330_v63 }
0x1353   : > { %v33672_v20 = vpack.c.bf16 %v40865_v25, %v40863_v2  ;;  %v25724_v46 = vsub.f32 %v337_v24, %v25540_v3 }
0x1354   : > { %v24977_v37 = vsel %vm387_vm2, %v24975_v59, 0  ;;  %v331_v59 = vld [vmem:[%s41254_s5 + $0x70] sm:$0xff]  ;;  %vm25463_vm2 = vcmask 654336  }
0x1355   : > { %v24980_v33 = vand.u32 4294901760, %v24977_v37  ;;  %33673 = vmatpush1.bf16.msra.mxu1 %v33672_v20  ;;  %v33690_v41 = vpack.c.bf16 %v25731_v29, %v25724_v46  ;;  %v34654_v20 = vld [vmem:[%s41253_s4] ss:$0 sm:$0xff] }
0x1356   : > { %33674 = vmatprep.subr.bf16.mxu1 %v42245_v14 }
0x1357   : > { %31452 = vmatpush3.msra.mxu0 %v24980_v33  ;;  %v25057_v53 = vsub.f32 %v24977_v37, %v24980_v33  ;;  %v332_v37 = vld [vmem:[%s41254_s5 + $0x78] sm:$0xff] }
0x1358   : > { %31454 = vmatmul.mubr.f32.vlgmr.msra.gmra.mrb[112].mxu0 %v42247_v44  ;;  %31456 = vmatprep.subr.mxu0 %v42244_v8  ;;  %v33675_v44 = vpack.c.bf16 %v40882_v36, %v40877_v0 }
0x1359   : > { %v25058_v51 = vand.u32 4294901760, %v25057_v53  ;;  %31458 = vmatprep.mubr.msk.f32.mxu0 %vm34727_vm5, %v42244_v8 }
0x135a   : > { %33676 = vmatpush1.bf16.msra.mxu1 %v33675_v44 }
0x135b   : > { %v25059_v22 = vsub.f32 %v25057_v53, %v25058_v51  ;;  %33677 = vmatprep.subr.bf16.mxu1 %v42245_v14 }
0x135d   : > { %v25060_v45 = vand.u32 4294901760, %v25059_v22  ;;  %v40899_v22 = vsub.f32 %v330_v63, %v25519_v7 }
0x135f   : > { %31457 = vmatpush3.msra.mxu0 %v25060_v45  ;;  %v25525_v45 = vand.u32 4294901760, %v332_v37 }
0x1360   : > { %31459 = vmatmul.mubr.msk.f32.vlgmr.msra.gmra.mrb[112].mxu0 %vm417_vm6, %v42248_v38  ;;  %31461 = vmatprep.subr.mxu0 %v42244_v8 }
0x1361   : > { %31462 = vmatpush3.msra.mxu0 %v25057_v53  ;;  %31463 = vmatprep.mubr.msk.f32.mxu0 %vm34727_vm5, %v42244_v8  ;;  %v25522_v53 = vand.u32 4294901760, %v331_v59  ;;  %v40916_v35 = vsub.f32 %v332_v37, %v25525_v45 }
0x1362   : > { %31466 = vmatprep.subr.mxu0 %v42244_v8 }
0x1363   : > { %v40911_v43 = vsub.f32 %v331_v59, %v25522_v53  ;;  %v40938_v40 = vpack.c.bf16 %v25525_v45, %v25522_v53  ;;  %v40971_v53 = vpack.c.bf16 %v25543_v56, %v25540_v3  ;;  %v25443_v45 = vrot.slane %v40757_v48, 2 }
0x1364   : > { %v25725_v48 = vand.u32 4294901760, %v25724_v46 }
0x1365   : > { %v33681_v18 = vpack.c.bf16 %v40916_v35, %v40911_v43 }
0x1366   : > { %v40988_v56 = vpack.c.bf16 %v25732_v54, %v25725_v48 }
0x1368   : > { %31464 = vmatmul.mubr.f32.vlgmr.msra.gmra.mrb[112].mxu0 %v42249_v13  ;;  %v334_v13 = vld [vmem:[%s41254_s5 + $0x88] sm:$0xff] }
0x1369   : > { %31467 = vmatpush3.msra.mxu0 %v24980_v33  ;;  %31468 = vmatprep.mubr.msk.f32.mxu0 %vm34727_vm5, %v42244_v8  ;;  %v25531_v1 = vand.u32 4294901760, %v334_v13 }
0x136a   : > { %31471 = vmatprep.subr.mxu0 %v42244_v8 }
0x136b   : > { %v40925_v28 = vsub.f32 %v334_v13, %v25531_v1  ;;  %v25711_v13 = vand.u32 4294901760, %v25710_v27 }
0x1370   : > { %31469 = vmatmul.mubr.f32.vlgmr.msra.gmra.mrb[112].mxu0 %v42250_v12  ;;  %v40909_v12 = vpack.c.bf16 %v25519_v7, %v25516_v6 }
0x1371   : > { %31472 = vmatpush3.msra.mxu0 %v25058_v51  ;;  %31473 = vmatprep.mubr.msk.f32.mxu0 %vm34727_vm5, %v42244_v8  ;;  %v40897_v51 = vsub.f32 %v329_v60, %v25516_v6  ;;  %v40957_v60 = vpack.c.bf16 %v25537_v10, %v25534_v34  ;;  %v25726_v34 = vsub.f32 %v25724_v46, %v25725_v48  ;;  %v25599_v48 = vand.u32 4294901760, %v40809_v50 }
0x1372   : > { %31476 = vmatprep.subr.mxu0 %v42244_v8  ;;  %v25733_v10 = vsub.f32 %v25731_v29, %v25732_v54  ;;  %v25606_v54 = vand.u32 4294901760, %v40813_v17 }
0x1373   : > { %v33678_v15 = vpack.c.bf16 %v40899_v22, %v40897_v51  ;;  %v25727_v24 = vand.u32 4294901760, %v25726_v34 }
0x1374   : > { %v25734_v42 = vand.u32 4294901760, %v25733_v10 }
0x1375   : > { %33679 = vmatpush1.bf16.msra.mxu1 %v33678_v15  ;;  %v25718_v15 = vand.u32 4294901760, %v25717_v47 }
0x1376   : > { %33680 = vmatprep.subr.bf16.mxu1 %v42245_v14 }
0x1377   : > { %v40986_v3 = vpack.c.bf16 %v25718_v15, %v25711_v13 }
0x1378   : > { %31474 = vmatmul.mubr.msk.f32.vlgmr.msra.gmra.mrb[112].mxu0 %vm417_vm6, %v42248_v38 }
0x1379   : > { %31477 = vmatpush3.msra.mxu0 %v24980_v33  ;;  %31478 = vmatprep.mubr.msk.f32.mxu0 %vm34727_vm5, %v42244_v8  ;;  %v40892_v33 = vpack.c.bf16 %v25513_v23, %v25510_v52  ;;  %v339_v52 = vld [vmem:[%s41254_s5 + $0xb0] sm:$0xf]  ;;  %vm25466_vm5 = vcmask 982016  }
0x137a   : > { %33593 = vmatprep.subr.bf16.mxu0 %v42245_v14  ;;  %33682 = vmatpush1.bf16.msra.mxu1 %v33681_v18  ;;  %v25477_v16 = vsel %vm402_vm4, %v339_v52, 0  ;;  %v25429_v52 = vpop.permute.xlu0 %25428  ;;  %vm25468_vm4 = vcmask 97280  }
0x137b   : > { %33683 = vmatprep.subr.bf16.mxu1 %v42245_v14  ;;  %v40959_v63 = vand.u32 4294901760, %v25477_v16 }
0x137d   : > { %v40967_v59 = vsub.f32 %v25477_v16, %v40959_v63 }
0x1380   : > { %31479 = vmatmul.mubr.msk.f32.vlgmr.msra.gmra.mrb[112].mxu0 %vm417_vm6, %v42248_v38  ;;  %v333_v38 = vld [vmem:[%s41254_s5 + $0x80] sm:$0xff]  ;;  %vm25470_vm6 = vcmask 261120  }
0x1381   : > { %33595 = vmatpush1.bf16.msra.mxu0 %v40811_v55  ;;  %v25528_v31 = vand.u32 4294901760, %v333_v38 }
0x1382   : > { %33596 = vmatprep.subr.bf16.mxu0 %v42245_v14 }
0x1383   : > { %v40923_v9 = vsub.f32 %v333_v38, %v25528_v31  ;;  %v40948_v32 = vpack.c.bf16 %v25531_v1, %v25528_v31  ;;  %v25712_v31 = vsub.f32 %v25710_v27, %v25711_v13  ;;  %v25719_v1 = vsub.f32 %v25717_v47, %v25718_v15  ;;  %v42251_v47 = vld [vmem:[#allocation10_spill] sm:$0xff] }
0x1384   : > { %v25459_v16 = vsel %vm429_vm9, %v42251_v47, %v25429_v52  ;;  %v25607_v47 = vsub.f32 %v40813_v17, %v25606_v54  ;;  %vm26224_vm9 = vcmask 73728  }
0x1385   : > { %33598 = vmatpush1.bf16.msra.mxu0 %v40824_v5  ;;  %v33684_v30 = vpack.c.bf16 %v40925_v28, %v40923_v9  ;;  %v25713_v18 = vand.u32 4294901760, %v25712_v31 }
0x1386   : > { %33599 = vmatprep.subr.bf16.mxu0 %v42245_v14 }
0x1387   : > { %33685 = vmatpush1.bf16.msra.mxu1 %v33684_v30  ;;  %v25720_v30 = vand.u32 4294901760, %v25719_v1 }
0x1388   : > { %33686 = vmatprep.subr.bf16.mxu1 %v42245_v14 }
0x1389   : > { %33601 = vmatpush1.bf16.msra.mxu0 %v40841_v4  ;;  %v40982_v19 = vpack.c.bf16 %v25720_v30, %v25713_v18 }
0x138a   : > { %33602 = vmatprep.subr.bf16.mxu0 %v42245_v14 }
0x138b   : > { %33688 = vmatpush1.bf16.msra.mxu1 %v33687_v39  ;;  %v40984_v39 = vpack.c.bf16 %v25734_v42, %v25727_v24 }
0x138c   : > { %33689 = vmatprep.subr.bf16.mxu1 %v42245_v14 }
0x138d   : > { %33604 = vmatpush1.bf16.msra.mxu0 %v40858_v57 }
0x138e   : > { %33605 = vmatprep.subr.bf16.mxu0 %v42245_v14 }
0x138f   : > { %33691 = vmatpush1.bf16.msra.mxu1 %v33690_v41  ;;  %v25433_v41 = vpop.permute.xlu1 %25432 }
0x1390   : > { %25857 = vmatprep.subr.mxu1 %v42244_v8 }
0x1391   : > { %33607 = vmatpush1.bf16.msra.mxu0 %v40875_v62 }
0x1392   : > { %33608 = vmatprep.subr.bf16.mxu0 %v42245_v14 }
0x1393   : > { %25860 = vmatpush1.msra.mxu1 %v40967_v59  ;;  %v25441_v27 = vpop.permute.xlu1 %25440 }
0x1394   : > { %33692 = vmatprep.subr.bf16.mxu1 %v42245_v14 }
0x1395   : > { %33610 = vmatpush1.bf16.msra.mxu0 %v40892_v33 }
0x1396   : > { %33611 = vmatprep.subr.bf16.mxu0 %v42245_v14 }
0x1399   : > { %33613 = vmatpush1.bf16.msra.mxu0 %v40909_v12 }
0x139a   : > { %33614 = vmatprep.subr.bf16.mxu0 %v42245_v14 }
0x139d   : > { %33616 = vmatpush1.bf16.msra.mxu0 %v40938_v40 }
0x139e   : > { %33617 = vmatprep.subr.bf16.mxu0 %v42245_v14 }
0x13a1   : > { %33619 = vmatpush1.bf16.msra.mxu0 %v40948_v32 }
0x13a2   : > { %33620 = vmatprep.subr.bf16.mxu0 %v42245_v14 }
0x13a5   : > { %33622 = vmatpush1.bf16.msra.mxu0 %v40957_v60 }
0x13a6   : > { %33623 = vmatprep.subr.bf16.mxu0 %v42245_v14 }
0x13a9   : > { %33625 = vmatpush1.bf16.msra.mxu0 %v40971_v53 }
0x13aa   : > { %25545 = vmatprep.subr.mxu0 %v42244_v8 }
0x13ad   : > { %25547 = vmatpush1.msra.mxu0 %v40959_v63 }
0x13ae   : > { %33626 = vmatprep.subr.bf16.mxu0 %v42245_v14 }
0x1453   : > { %v25421_v23 = vpop.f32.mrb[112].mxu0 }
0x1454   : > { %v33814_v6 = vadd.f32 %v34654_v20, %v25421_v23  ;;  %v31480_v7 = vpop.f32.mrb[113].mxu0  ;;  %v25437_v23 = vpop.permute.xlu0 %25436  ;;  %v25460_v20 = vsel %vm18513_vm15, %v25459_v16, %v25433_v41  ;;  %v25613_v16 = vand.u32 4294901760, %v40826_v61 }
0x1455   : > { %v25462_v29 = vsel %vm25461_vm0, %v25460_v20, %v25437_v23  ;;  %v25620_v23 = vand.u32 4294901760, %v40828_v21 }
0x1456   : > { %v25425_v37 = vmax.f32 %v33814_v6, 0.0  ;;  %v25464_v7 = vsel %vm25463_vm2, %v25462_v29, %v25441_v27  ;;  %v25600_v27 = vsub.f32 %v40809_v50, %v25599_v48  ;;  %v42252_v50 = vand.u32 4294901760, %v40848_v11 }
0x1458   : > { %v25451_v44 = vrot.slane %v25425_v37, 1  ;;  %25448 = vrot.lane.b32.xlu1 %v25425_v37, %s41645_s30  ;;  %v25455_v38 = vrot.slane %v25425_v37, 2 }
0x145a   : > { %25452 = vrot.lane.b32.xlu0 %v25451_v44, %s41644_s26  ;;  %s269_s26 = sand.u32 1, %s34709_s25  }
0x145b   : > { %s270_s12 = scalar_lea.vmem [#allocation2], %s269_s26  ;;  %s26227_s10 = scalar_lea.sflag [#allocation3], %s269_s26 }
0x145c   : > { %25444 = vrot.lane.b32.xlu1 %v25443_v45, %s34763_s14  ;;  %v25585_v45 = vand.u32 4294901760, %v40805_v58  ;;  %s26239_s21 = sshll.u32 %s270_s12, 4  ;;  %s41209_s21 = int_to_ptr.vmem [resolvable:$true] %s26239_s21 }
0x145d   : > { %s34655_s28 = scalar_lea.vmem %s41209_s21, 16  ;;  %p34662_p0 = scmp.lt.s32.totalorder %s41209_s21, %s34660_s1 }
0x145e   : > { %25456 = vrot.lane.b32.xlu0 %v25455_v38, %s34769_s17  ;;  %v25592_v38 = vand.u32 4294901760, %v40807_v49  ;;  %v25586_v24 = vsub.f32 %v40805_v58, %v25585_v45  ;;  %v33729_v58 = vpack.c.bf16 %v25606_v54, %v25599_v48  ;;  %p34656_p11 = scmp.ne.s32.totalorder %s41209_s21, %s34655_s28  ;;  %p34663_p1 = scmp.lt.s32.totalorder %s34661_s15, %s34655_s28 }
0x1460   : > { %v25593_v42 = vsub.f32 %v40807_v49, %v25592_v38  ;;  %v33732_v49 = vpack.c.bf16 %v25620_v23, %v25613_v16  ;;  %p34657_p12 = pnand %p34656_p11, %p34849_p5  ;;  %p34664_p2 = por %p34663_p1, %p34662_p0 }
0x1462   : > { %v25594_v29 = vand.u32 4294901760, %v25593_v42  ;;  %p34658_p13 = pneg %p34657_p12 }
0x1464   : > { %p34665_p3 = pnand %p34664_p2, %p34658_p13 }
0x14ca   : > { %v25449_v46 = vpop.permute.xlu1 %25448 }
0x14cc   : > { %v25453_v6 = vpop.permute.xlu0 %25452 }
0x14cd   : > { %v25469_v13 = vsel %vm25468_vm4, %v25449_v46, %v25453_v6 }
0x14ce   : > { %v25445_v37 = vpop.permute.xlu1 %25444 }
0x14cf   : > { %v25465_v44 = vsel %vm18637_vm8, %v25464_v7, %v25445_v37  ;;  %v25601_v37 = vand.u32 4294901760, %v25600_v27 }
0x14d0   : > { %v25467_v15 = vsel %vm25466_vm5, %v25465_v44, %v25449_v46  ;;  %v25457_v31 = vpop.permute.xlu0 %25456  ;;  %v25587_v46 = vand.u32 4294901760, %v25586_v24  ;;  %v25608_v44 = vand.u32 4294901760, %v25607_v47  ;;  %v41545_v24 = vand.u32 4294901760, %v40848_v11 }
0x14d1   : > { %v40996_v1 = vand.u32 4294901760, %v25467_v15  ;;  %v25471_v18 = vsel %vm25470_vm6, %v25469_v13, %v25457_v31  ;;  %v25614_v13 = vsub.f32 %v40826_v61, %v25613_v16  ;;  %v42254_v61 = vand.u32 4294901760, %v40865_v25 }
0x14d2   : > { %v25474_v30 = vsel %vm25472_vm7, %v25471_v18, 0  ;;  %v33627_v18 = vpack.c.bf16 %v25594_v29, %v25587_v46  ;;  %v25635_v46 = vsub.f32 %v40848_v11, %v41545_v24  ;;  %v41542_v29 = vand.u32 4294901760, %v40863_v2 }
0x14d3   : > { %v41001_v34 = vsub.f32 %v25467_v15, %v40996_v1  ;;  %v41003_v10 = vand.u32 4294901760, %v25474_v30  ;;  %v25621_v15 = vsub.f32 %v40828_v21, %v25620_v23  ;;  %v25615_v27 = vand.u32 4294901760, %v25614_v13 }
0x14d4   : > { %v42255_v21 = vand.u32 4294901760, %v40877_v0  ;;  %v42257_v11 = vand.u32 4294901760, %v40916_v35 }
0x14d5   : > { %v25574_v41 = vand.u32 4294901760, %v41001_v34  ;;  %v25567_v52 = vsub.f32 %v25474_v30, %v41003_v10  ;;  %v25627_v30 = vand.u32 4294901760, %v40846_v26  ;;  %v25622_v47 = vand.u32 4294901760, %v25621_v15 }
0x14d6   : > { %v25636_v15 = vand.u32 4294901760, %v25635_v46 }
0x14d7   : > { %25881 = vmatprep.mubr.f32.mxu1 %v25567_v52  ;;  %v25568_v20 = vand.u32 4294901760, %v25567_v52  ;;  %v25575_v6 = vsub.f32 %v41001_v34, %v25574_v41  ;;  %v33735_v17 = vpack.c.bf16 %v42252_v50, %v25627_v30 }
0x14d8   : > { %25884 = vmatmul.mubr.f32.vlgmr.msra.gmra.mrb[106].mxu1 %v41001_v34 }
0x14d9   : > { %33694 = vmatpush1.bf16.msra.mxu1 %v40811_v55  ;;  %25979 = vmatprep.mubr.f32.mxu1 %v25568_v20  ;;  %v25569_v7 = vsub.f32 %v25567_v52, %v25568_v20  ;;  %v25576_v42 = vand.u32 4294901760, %v25575_v6  ;;  %v33630_v52 = vpack.c.bf16 %v25608_v44, %v25601_v37  ;;  %v25628_v20 = vsub.f32 %v40846_v26, %v25627_v30 }
0x14da   : > { %33695 = vmatprep.subr.bf16.mxu1 %v42245_v14  ;;  %v41541_v6 = vand.u32 4294901760, %v40865_v25  ;;  %v41543_v37 = vand.u32 4294901760, %v40877_v0  ;;  %v41544_v44 = vand.u32 4294901760, %v40882_v36 }
0x14db   : > { %v25570_v31 = vand.u32 4294901760, %v25569_v7  ;;  %v33633_v7 = vpack.c.bf16 %v25622_v47, %v25615_v27  ;;  %v25629_v13 = vand.u32 4294901760, %v25628_v20  ;;  %v25669_v27 = vand.u32 4294901760, %v40897_v51 }
0x14dc   : > { %v25676_v47 = vand.u32 4294901760, %v40899_v22 }
0x14dd   : > { %33697 = vmatpush1.bf16.msra.mxu1 %v40824_v5  ;;  %25571 = vmatprep.mubr.f32.mxu0 %v25570_v31  ;;  %v25642_v31 = vsub.f32 %v40863_v2, %v41542_v29  ;;  %v33636_v20 = vpack.c.bf16 %v25636_v15, %v25629_v13  ;;  %v25683_v13 = vand.u32 4294901760, %v40911_v43  ;;  %v41546_v15 = vand.u32 4294901760, %v40916_v35 }
0x14de   : > { %25577 = vmatmul.mubr.f32.vlgmr.msra.gmra.mrb[114].mxu0 %v25576_v42  ;;  %33698 = vmatprep.subr.bf16.mxu1 %v42245_v14  ;;  %v25656_v42 = vsub.f32 %v40877_v0, %v41543_v37  ;;  %v25677_v24 = vsub.f32 %v40899_v22, %v25676_v47  ;;  %v33744_v26 = vpack.c.bf16 %v25676_v47, %v25669_v27 }
0x14df   : > { %33628 = vmatpush1.bf16.msra.mxu0 %v33627_v18  ;;  %25762 = vmatprep.mubr.f32.mxu0 %v41003_v10  ;;  %v25649_v18 = vsub.f32 %v40865_v25, %v41541_v6  ;;  %v25643_v46 = vand.u32 4294901760, %v25642_v31 }
0x14e0   : > { %33629 = vmatprep.subr.bf16.mxu0 %v42245_v14  ;;  %v25657_v29 = vand.u32 4294901760, %v25656_v42  ;;  %v25678_v42 = vand.u32 4294901760, %v25677_v24 }
0x14e1   : > { %33700 = vmatpush1.bf16.msra.mxu1 %v40841_v4  ;;  %v25650_v6 = vand.u32 4294901760, %v25649_v18 }
0x14e2   : > { %33701 = vmatprep.subr.bf16.mxu1 %v42245_v14 }
0x14e3   : > { %33631 = vmatpush1.bf16.msra.mxu0 %v33630_v52  ;;  %v25663_v52 = vsub.f32 %v40882_v36, %v41544_v44  ;;  %v25670_v44 = vsub.f32 %v40897_v51, %v25669_v27 }
0x14e4   : > { %33632 = vmatprep.subr.bf16.mxu0 %v42245_v14 }
0x14e5   : > { %33703 = vmatpush1.bf16.msra.mxu1 %v40858_v57  ;;  %v25664_v37 = vand.u32 4294901760, %v25663_v52  ;;  %v25671_v18 = vand.u32 4294901760, %v25670_v44  ;;  %v25684_v52 = vsub.f32 %v40911_v43, %v25683_v13 }
0x14e6   : > { %33704 = vmatprep.subr.bf16.mxu1 %v42245_v14 }
0x14e7   : > { %33634 = vmatpush1.bf16.msra.mxu0 %v33633_v7  ;;  %v33639_v7 = vpack.c.bf16 %v25650_v6, %v25643_v46  ;;  %v33642_v31 = vpack.c.bf16 %v25664_v37, %v25657_v29  ;;  %v25691_v6 = vsub.f32 %v40916_v35, %v41546_v15  ;;  %v25704_v46 = vand.u32 4294901760, %v40925_v28 }
0x14e8   : > { %33635 = vmatprep.subr.bf16.mxu0 %v42245_v14  ;;  %v33645_v24 = vpack.c.bf16 %v25678_v42, %v25671_v18  ;;  %v25685_v29 = vand.u32 4294901760, %v25684_v52  ;;  %v25739_v52 = vand.u32 4294901760, %v40967_v59 }
0x14e9   : > { %33706 = vmatpush1.bf16.msra.mxu1 %v40875_v62  ;;  %v25692_v37 = vand.u32 4294901760, %v25691_v6 }
0x14ea   : > { %33707 = vmatprep.subr.bf16.mxu1 %v42245_v14  ;;  %v25740_v6 = vsub.f32 %v40967_v59, %v25739_v52  ;;  %v42253_v59 = vand.u32 4294901760, %v40863_v2  ;;  %v33747_v2 = vpack.c.bf16 %v42257_v11, %v25683_v13 }
0x14eb   : > { %33637 = vmatpush1.bf16.msra.mxu0 %v33636_v20  ;;  %v25697_v20 = vand.u32 4294901760, %v40923_v9  ;;  %v33648_v15 = vpack.c.bf16 %v25692_v37, %v25685_v29 }
0x14ec   : > { %33638 = vmatprep.subr.bf16.mxu0 %v42245_v14 }
0x14ed   : > { %33709 = vmatpush1.bf16.msra.mxu1 %v40892_v33  ;;  %v25698_v44 = vsub.f32 %v40923_v9, %v25697_v20  ;;  %v33750_v25 = vpack.c.bf16 %v25704_v46, %v25697_v20 }
0x14ee   : > { %33710 = vmatprep.subr.bf16.mxu1 %v42245_v14 }
0x14ef   : > { %33640 = vmatpush1.bf16.msra.mxu0 %v33639_v7  ;;  %v25705_v7 = vsub.f32 %v40925_v28, %v25704_v46  ;;  %v25699_v18 = vand.u32 4294901760, %v25698_v44 }
0x14f0   : > { %33641 = vmatprep.subr.bf16.mxu0 %v42245_v14 }
0x14f1   : > { %33712 = vmatpush1.bf16.msra.mxu1 %v40909_v12 }
0x14f2   : > { %33713 = vmatprep.subr.bf16.mxu1 %v42245_v14 }
0x14f3   : > { %33643 = vmatpush1.bf16.msra.mxu0 %v33642_v31  ;;  %v25706_v31 = vand.u32 4294901760, %v25705_v7 }
0x14f4   : > { %33644 = vmatprep.subr.bf16.mxu0 %v42245_v14 }
0x14f5   : > { %33715 = vmatpush1.bf16.msra.mxu1 %v40938_v40  ;;  %v33651_v42 = vpack.c.bf16 %v25706_v31, %v25699_v18 }
0x14f6   : > { %33716 = vmatprep.subr.bf16.mxu1 %v42245_v14 }
0x14f7   : > { %33646 = vmatpush1.bf16.msra.mxu0 %v33645_v24 }
0x14f8   : > { %33647 = vmatprep.subr.bf16.mxu0 %v42245_v14 }
0x14f9   : > { %33718 = vmatpush1.bf16.msra.mxu1 %v40948_v32 }
0x14fa   : > { %33719 = vmatprep.subr.bf16.mxu1 %v42245_v14 }
0x14fb   : > { %33649 = vmatpush1.bf16.msra.mxu0 %v33648_v15  ;;  %v33726_v15 = vpack.c.bf16 %v25592_v38, %v25585_v45  ;;  %v42256_v45 = vand.u32 4294901760, %v40882_v36 }
0x14fc   : > { %33650 = vmatprep.subr.bf16.mxu0 %v42245_v14 }
0x14fd   : > { %33721 = vmatpush1.bf16.msra.mxu1 %v40957_v60  ;;  %v33741_v38 = vpack.c.bf16 %v42256_v45, %v42255_v21 }
0x14fe   : > { %33722 = vmatprep.subr.bf16.mxu1 %v42245_v14 }
0x14ff   : > { %33652 = vmatpush1.bf16.msra.mxu0 %v33651_v42 }
0x1500   : > { %33653 = vmatprep.subr.bf16.mxu0 %v42245_v14 }
0x1501   : > { %33724 = vmatpush1.bf16.msra.mxu1 %v40971_v53 }
0x1502   : > { %25955 = vmatprep.subr.mxu1 %v42244_v8 }
0x1503   : > { %33655 = vmatpush1.bf16.msra.mxu0 %v40982_v19  ;;  %v25741_v19 = vand.u32 4294901760, %v25740_v6 }
0x1504   : > { %33656 = vmatprep.subr.bf16.mxu0 %v42245_v14 }
0x1505   : > { %25957 = vmatpush1.msra.mxu1 %v40959_v63 }
0x1506   : > { %25983 = vmatmul.mubr.f32.vlgmr.msra.gmra.mrb[106].mxu1 %v25574_v41  ;;  %33725 = vmatprep.subr.bf16.mxu1 %v42245_v14 }
0x1507   : > { %33658 = vmatpush1.bf16.msra.mxu0 %v40984_v39  ;;  %33727 = vmatpush1.bf16.msra.mxu1 %v33726_v15  ;;  %v33738_v39 = vpack.c.bf16 %v42254_v61, %v42253_v59 }
0x1508   : > { %26122 = vmatprep.mubr.f32.mxu1 %v41003_v10  ;;  %25736 = vmatprep.subr.mxu0 %v42244_v8 }
0x1509   : > { %33728 = vmatprep.subr.bf16.mxu1 %v42245_v14 }
0x150b   : > { %25742 = vmatpush1.msra.mxu0 %v25741_v19  ;;  %33730 = vmatpush1.bf16.msra.mxu1 %v33729_v58 }
0x150c   : > { %25764 = vmatmul.mubr.f32.vlgmr.msra.gmra.mrb[114].mxu0 %v40996_v1  ;;  %33731 = vmatprep.subr.bf16.mxu1 %v42245_v14 }
0x150f   : > { %33733 = vmatpush1.bf16.msra.mxu1 %v33732_v49 }
0x1510   : > { %33734 = vmatprep.subr.bf16.mxu1 %v42245_v14 }
0x1513   : > { %33736 = vmatpush1.bf16.msra.mxu1 %v33735_v17 }
0x1514   : > { %33737 = vmatprep.subr.bf16.mxu1 %v42245_v14 }
0x1517   : > { %33739 = vmatpush1.bf16.msra.mxu1 %v33738_v39 }
0x1518   : > { %33740 = vmatprep.subr.bf16.mxu1 %v42245_v14 }
0x151b   : > { %33742 = vmatpush1.bf16.msra.mxu1 %v33741_v38 }
0x151c   : > { %33743 = vmatprep.subr.bf16.mxu1 %v42245_v14 }
0x151f   : > { %33745 = vmatpush1.bf16.msra.mxu1 %v33744_v26 }
0x1520   : > { %33746 = vmatprep.subr.bf16.mxu1 %v42245_v14 }
0x1523   : > { %33748 = vmatpush1.bf16.msra.mxu1 %v33747_v2 }
0x1524   : > { %33749 = vmatprep.subr.bf16.mxu1 %v42245_v14 }
0x1527   : > { %33751 = vmatpush1.bf16.msra.mxu1 %v33750_v25 }
0x1528   : > { %33752 = vmatprep.subr.bf16.mxu1 %v42245_v14 }
0x152b   : > { %33754 = vmatpush1.bf16.msra.mxu1 %v40986_v3 }
0x152c   : > { %33755 = vmatprep.subr.bf16.mxu1 %v42245_v14 }
0x152f   : > { %33757 = vmatpush1.bf16.msra.mxu1 %v40988_v56 }
0x1530   : > { %26098 = vmatprep.subr.mxu1 %v42244_v8 }
0x1533   : > { %26102 = vmatpush1.msra.mxu1 %v25739_v52 }
0x1534   : > { %26124 = vmatmul.mubr.f32.vlgmr.msra.gmra.mrb[106].mxu1 %v40996_v1  ;;  %33758 = vmatprep.subr.bf16.mxu1 %v42245_v14 }
0x1535   : > { %33760 = vmatpush1.bf16.msra.mxu1 %v40811_v55  ;;  %26217 = vmatprep.mubr.f32.mxu1 %v41003_v10 }
0x1536   : > { %33761 = vmatprep.subr.bf16.mxu1 %v42245_v14 }
0x1539   : > { %33763 = vmatpush1.bf16.msra.mxu1 %v40824_v5 }
0x153a   : > { %33764 = vmatprep.subr.bf16.mxu1 %v42245_v14 }
0x153d   : > { %33766 = vmatpush1.bf16.msra.mxu1 %v40841_v4  ;;  %v340_v4 = vld [vmem:[%s41255_s6] sm:$0x1] }
0x153e   : > { %33767 = vmatprep.subr.bf16.mxu1 %v42245_v14 }
0x1541   : > { %33769 = vmatpush1.bf16.msra.mxu1 %v40858_v57 }
0x1542   : > { %33770 = vmatprep.subr.bf16.mxu1 %v42245_v14 }
0x1545   : > { %33772 = vmatpush1.bf16.msra.mxu1 %v40875_v62 }
0x1546   : > { %33773 = vmatprep.subr.bf16.mxu1 %v42245_v14 }
0x1549   : > { %33775 = vmatpush1.bf16.msra.mxu1 %v40892_v33 }
0x154a   : > { %33776 = vmatprep.subr.bf16.mxu1 %v42245_v14 }
0x154d   : > { %33778 = vmatpush1.bf16.msra.mxu1 %v40909_v12 }
0x154e   : > { %33779 = vmatprep.subr.bf16.mxu1 %v42245_v14 }
0x1551   : > { %33781 = vmatpush1.bf16.msra.mxu1 %v40938_v40 }
0x1552   : > { %33782 = vmatprep.subr.bf16.mxu1 %v42245_v14 }
0x1555   : > { %33784 = vmatpush1.bf16.msra.mxu1 %v40948_v32 }
0x1556   : > { %33785 = vmatprep.subr.bf16.mxu1 %v42245_v14 }
0x1559   : > { %33787 = vmatpush1.bf16.msra.mxu1 %v40957_v60 }
0x155a   : > { %33788 = vmatprep.subr.bf16.mxu1 %v42245_v14 }
0x155d   : > { %33790 = vmatpush1.bf16.msra.mxu1 %v40971_v53 }
0x155e   : > { %26195 = vmatprep.subr.mxu1 %v42244_v8 }
0x1561   : > { %26197 = vmatpush1.msra.mxu1 %v40959_v63 }
0x1562   : > { %26219 = vmatmul.mubr.f32.vlgmr.msra.gmra.mrb[106].mxu1 %v40996_v1 }
0x15df   : > { %v25765_v55 = vpop.f32.mrb[114].mxu0 }
0x15e0   : > { %v25767_v5 = vpop.f32.mrb[115].mxu0  ;;  %v33815_v14 = vadd.f32 %v25765_v55, %v340_v4 }
0x1635   : > { %v26220_v57 = vpop.f32.mrb[106].mxu1 }
0x1636   : > { %v33816_v62 = vadd.f32 %v33815_v14, %v26220_v57  ;;  %v26222_v8 = vpop.f32.mrb[107].mxu1 }
0x1638   : > { %26225 = vst.msk [vmem:[%s270_s12] sm:$0x1] %vm26224_vm9, %v33816_v62 }
0x1639   : > { %34668 = shalt.err (!%p34665_p3)
}
0x163a   : > { %s34669_s29 = scalar_lea.hbm %s41207_s13, 16  ;;  %s34673_s9 = scalar_lea.hbm %s41256_s7, 32 }
0x163b   : > { %p34670_p4 = scmp.ne.s32.totalorder %s41207_s13, %s34669_s29  ;;  %p34674_p9 = scmp.lt.u32.totalorder %s41207_s13, %s41256_s7 }
0x163c   : > { %p34675_p10 = scmp.lt.u32.totalorder %s34673_s9, %s34669_s29  ;;  %p34677_p12 = scmp.lt.u32.totalorder %s34669_s29, %s41207_s13 }
0x163d   : > { %p34671_p7 = pnand %p34670_p4, %p34849_p5 }
0x163e   : > { %p34676_p11 = por %p34675_p10, %p34674_p9 }
0x163f   : > { %p34672_p8 = pneg %p34671_p7 }
0x1640   : > { %p34678_p13 = por %p34677_p12, %p34676_p11 }
0x1642   : > { %p34679_p0 = pnand %p34678_p13, %p34672_p8 }
0x1644   : > { %34682 = shalt.err (!%p34679_p0)
}
0x1645   : > { %34554 = dma.vmem_to_hbm [thread:$0]  (%p34849_p5), %s41209_s21, 16, %s41207_s13, %s26227_s10  }
0x1646 PF: > { %s42258_s0 = sld [smem:[#allocation5_spill]]  ;;  %p34560_p1 = scmp.ge.s32.totalorder %s34717_s27, 2 }
0x1648   : > { %p34557_p2 = pnand %p34560_p1, %p34853_p6 }
0x164c   : > { %s26251_s26 = sand.u32 1, %s42258_s0  }
0x164d   : > { %s26252_s30 = scalar_lea.sflag [#allocation3], %s26251_s26 }
0x164e   : > { %34700 = dma.done.wait (!%p34557_p2), %s26252_s30, 16  }
0x164f   : > { %34702 = vsyncadd (!%p34557_p2), %s26252_s30, 4294967280  ;;  %s42260_s27 = sld [smem:[#allocation7_spill]]  ;;  %s42261_s14 = sld [smem:[#allocation6_spill]] }
0x1650   : > { %s42262_s26 = sld [smem:[#allocation8_spill]]  ;;  %s42263_s24 = smov %s34709_s25 }
0x1655   : > { %p17_p3 = scmp.ge.s32.totalorder %s42260_s27, 4   ;;  %s42264_s25 = smov %s42261_s14 }
0x1657   :  { %19 = sbr.rel (!%p17_p3) target bundleno = 6 (0x6), region = 83 }
0x165e   :  { %26256 = vsyncpa [#allocation3], 1 }
0x165f   :  { %26258 = vsyncpa [#allocation3 + $0x1], 1 }

</bundles_post_ra>
